<compile_context>
chip_gen: v5e
topology: v5e:2x2
jax: 0.10.0
libtpu: 0.0.40
codegen_flags: <defaults>
</compile_context>

<pallas_src>
import functools

import jax
import jax.numpy as jnp
from jax.experimental import pallas as pl
from jax.experimental.pallas import tpu as pltpu

# ---------------------------------------------------------------------------
# Spatial bookkeeping.  All conv activations live on a fixed per-sample 11x11
# canvas (the conv1 padded size), flattened to rows (row = h*11 + w, channels
# on the lane axis).  A 3x3 tap (i, j) is then just a row shift of i*11 + j,
# and rows outside the valid output region are harmless garbage that is never
# read by downstream layers.
# ---------------------------------------------------------------------------
CANVAS_W = 11
CANVAS = CANVAS_W * CANVAS_W            # 121 rows per sample
CONV_SPATIAL = (9, 7, 5, 3)             # valid output spatial size per conv
CONV_CH = (6, 16, 32, 64, 128)          # channel chain Cin -> ... -> Cout


def _rows_needed(batch, spatial):
    """Number of canvas rows to compute so every valid output row is covered."""
    return (batch - 1) * CANVAS + (spatial - 1) * (CANVAS_W + 1) + 1


# ---------------------------------------------------------------------------
# Fused kernel: 4 convs + flatten + 3 linears, activations resident in VMEM.
# ---------------------------------------------------------------------------
def _fused_cnn_kernel(
    x_ref,
    w1_ref, b1_ref, w2_ref, b2_ref, w3_ref, b3_ref, w4_ref, b4_ref,
    wf1_ref, bf1_ref, wf2_ref, bf2_ref, wo_ref, bo_ref,
    out_ref,
    a1_ref, a2_ref, a3_ref, a4_ref, fcin_ref,
    *, batch):

    def conv3x3_relu(src_ref, w_ref, b_ref, dst_ref):
        # src_ref: (rows_in, Cin) canvas, w_ref: (9, Cin, Cout), b_ref: (1, Cout)
        m_out, cout = dst_ref.shape
        acc = jnp.zeros((m_out, cout), jnp.float32)
        for i in range(3):
            for j in range(3):
                shift = i * CANVAS_W + j
                xs = src_ref[pl.ds(shift, m_out), :]          # (m_out, Cin)
                acc = acc + jnp.dot(xs, w_ref[i * 3 + j],
                                    preferred_element_type=jnp.float32)
        dst_ref[...] = jnp.maximum(acc + b_ref[...], 0.0)

    # Conv stack, chained through VMEM scratch canvases.
    conv3x3_relu(x_ref,  w1_ref, b1_ref, a1_ref)   # (B, 16, 9, 9)  on canvas
    conv3x3_relu(a1_ref, w2_ref, b2_ref, a2_ref)   # (B, 32, 7, 7)
    conv3x3_relu(a2_ref, w3_ref, b3_ref, a3_ref)   # (B, 64, 5, 5)
    conv3x3_relu(a3_ref, w4_ref, b4_ref, a4_ref)   # (B, 128, 3, 3)

    # Gather the 3x3x128 valid region of conv4 into a (B, 1152) matrix in
    # HWC order (fc1 weight is pre-permuted to match).
    for b in range(batch):
        for h in range(3):
            for w in range(3):
                row = b * CANVAS + h * CANVAS_W + w
                col = (h * 3 + w) * 128
                fcin_ref[pl.ds(b, 1), pl.ds(col, 128)] = a4_ref[pl.ds(row, 1), :]

    h1 = jnp.maximum(
        jnp.dot(fcin_ref[...], wf1_ref[...], preferred_element_type=jnp.float32)
        + bf1_ref[...], 0.0)                                        # (B, 512)
    h2 = jnp.maximum(
        jnp.dot(h1, wf2_ref[...], preferred_element_type=jnp.float32)
        + bf2_ref[...], 0.0)                                        # (B, 128)
    out_ref[...] = (
        jnp.dot(h2, wo_ref[...], preferred_element_type=jnp.float32)
        + bo_ref[...])                                              # (B, 1)


# ---------------------------------------------------------------------------
# Wrapper: input layout prep (NCHW -> padded NHWC canvas) + one pallas_call.
# ---------------------------------------------------------------------------
@jax.jit
def cnn_ver3_forward(packed, x):
    B = x.shape[0]
    assert x.shape[1:] == (CONV_CH[0], 9, 9)

    # NCHW -> NHWC, pad=1 spatially (for conv1), flatten to the row canvas.
    xc = jnp.transpose(x, (0, 2, 3, 1)).astype(jnp.float32)
    xc = jnp.pad(xc, ((0, 0), (1, 1), (1, 1), (0, 0)))
    xc = xc.reshape(B * CANVAS, CONV_CH[0])

    m1 = _rows_needed(B, CONV_SPATIAL[0])
    m2 = _rows_needed(B, CONV_SPATIAL[1])
    m3 = _rows_needed(B, CONV_SPATIAL[2])
    m4 = _rows_needed(B, CONV_SPATIAL[3])

    vmem_specs = [pl.BlockSpec(memory_space=pltpu.MemorySpace.VMEM)
                  for _ in range(15)]
    return pl.pallas_call(
        functools.partial(_fused_cnn_kernel, batch=B),
        out_shape=jax.ShapeDtypeStruct((B, 1), jnp.float32),
        in_specs=vmem_specs,
        out_specs=pl.BlockSpec(memory_space=pltpu.MemorySpace.VMEM),
        scratch_shapes=[
            pltpu.VMEM((m1, CONV_CH[1]), jnp.float32),   # conv1 activations
            pltpu.VMEM((m2, CONV_CH[2]), jnp.float32),   # conv2 activations
            pltpu.VMEM((m3, CONV_CH[3]), jnp.float32),   # conv3 activations
            pltpu.VMEM((m4, CONV_CH[4]), jnp.float32),   # conv4 activations
            pltpu.VMEM((B, 128 * 9), jnp.float32),       # flattened fc1 input
        ],
    )(xc,
      packed["w1"], packed["b1"], packed["w2"], packed["b2"],
      packed["w3"], packed["b3"], packed["w4"], packed["b4"],
      packed["wf1"], packed["bf1"], packed["wf2"], packed["bf2"],
      packed["wo"], packed["bo"])


# ---------------------------------------------------------------------------
# Parameter handling.
# ---------------------------------------------------------------------------
def init_params(key):
    """Deterministic U(-1/sqrt(fan_in), 1/sqrt(fan_in)) init, PyTorch shapes."""
    def dense_init(k, shape, fan_in):
        bound = 1.0 / jnp.sqrt(jnp.float32(fan_in))
        return jax.random.uniform(k, shape, jnp.float32, -bound, bound)

    keys = jax.random.split(key, 14)
    p = {}
    idx = 0
    conv_shapes = [(16, 6), (32, 16), (64, 32), (128, 64)]
    for li, (co, ci) in enumerate(conv_shapes, start=1):
        fan_in = ci * 9
        p[f"conv{li}_w"] = dense_init(keys[idx], (co, ci, 3, 3), fan_in); idx += 1
        p[f"conv{li}_b"] = dense_init(keys[idx], (co,), fan_in); idx += 1
    fc_shapes = [("fc1", 512, 128 * 3 * 3), ("fc2", 128, 512), ("out", 1, 128)]
    for name, out_f, in_f in fc_shapes:
        p[f"{name}_w"] = dense_init(keys[idx], (out_f, in_f), in_f); idx += 1
        p[f"{name}_b"] = dense_init(keys[idx], (out_f,), in_f); idx += 1
    return p


def pack_params(p):
    """One-time conversion from PyTorch layouts to kernel-native layouts."""
    def conv_w(w):  # (Cout, Cin, 3, 3) -> (9, Cin, Cout), tap-major (i*3+j)
        co, ci = w.shape[0], w.shape[1]
        return jnp.transpose(w, (2, 3, 1, 0)).reshape(9, ci, co).astype(jnp.float32)

    def bias(b):
        return b.reshape(1, -1).astype(jnp.float32)

    packed = {}
    for li in range(1, 5):
        packed[f"w{li}"] = conv_w(p[f"conv{li}_w"])
        packed[f"b{li}"] = bias(p[f"conv{li}_b"])
    # fc1 columns: PyTorch flatten is (c, h, w); kernel flatten is (h, w, c).
    packed["wf1"] = (jnp.transpose(p["fc1_w"].reshape(512, 128, 3, 3), (2, 3, 1, 0))
                     .reshape(128 * 9, 512).astype(jnp.float32))
    packed["bf1"] = bias(p["fc1_b"])
    packed["wf2"] = p["fc2_w"].T.astype(jnp.float32)      # (512, 128)
    packed["bf2"] = bias(p["fc2_b"])
    packed["wo"] = p["out_w"].T.astype(jnp.float32)       # (128, 1)
    packed["bo"] = bias(p["out_b"])
    return packed


# ---------------------------------------------------------------------------
# Pure-XLA reference (PyTorch semantics) for the self-check.
# ---------------------------------------------------------------------------
def ref_forward(params, x):
    hp = jax.lax.Precision.HIGHEST

    def conv(x, w, b, pad):
        y = jax.lax.conv_general_dilated(
            x, w, window_strides=(1, 1), padding=[(pad, pad), (pad, pad)],
            dimension_numbers=("NCHW", "OIHW", "NCHW"), precision=hp)
        return jax.nn.relu(y + b[None, :, None, None])

    x = conv(x, params["conv1_w"], params["conv1_b"], 1)
    x = conv(x, params["conv2_w"], params["conv2_b"], 0)
    x = conv(x, params["conv3_w"], params["conv3_b"], 0)
    x = conv(x, params["conv4_w"], params["conv4_b"], 0)
    x = x.reshape(x.shape[0], -1)
    x = jax.nn.relu(jnp.dot(x, params["fc1_w"].T, precision=hp) + params["fc1_b"])
    x = jax.nn.relu(jnp.dot(x, params["fc2_w"].T, precision=hp) + params["fc2_b"])
    return jnp.dot(x, params["out_w"].T, precision=hp) + params["out_b"]


if __name__ == "__main__":
    key = jax.random.PRNGKey(0)
    kp, kx = jax.random.split(key)
    params = init_params(kp)
    packed = pack_params(params)                       # one-time weight packing
    x = jax.random.normal(kx, (2, 6, 9, 9), jnp.float32)  # NCHW, 9x9 spatial

    y = cnn_ver3_forward(packed, x)
    jax.block_until_ready(y)
    assert y.shape == (2, 1) and y.dtype == jnp.float32

    y_ref = ref_forward(params, x)
    assert jnp.allclose(y, y_ref, atol=2e-3, rtol=2e-3), (y, y_ref)
    print("KERNEL_OK")
</pallas_src>

<mosaic_0001>
module attributes {stable_mosaic.version = 11 : i64} {
  func.func @_fused_cnn_kernel(%arg0: memref<242x6xf32, #tpu.memory_space<vmem>>, %arg1: memref<9x6x16xf32, #tpu.memory_space<vmem>>, %arg2: memref<1x16xf32, #tpu.memory_space<vmem>>, %arg3: memref<9x16x32xf32, #tpu.memory_space<vmem>>, %arg4: memref<1x32xf32, #tpu.memory_space<vmem>>, %arg5: memref<9x32x64xf32, #tpu.memory_space<vmem>>, %arg6: memref<1x64xf32, #tpu.memory_space<vmem>>, %arg7: memref<9x64x128xf32, #tpu.memory_space<vmem>>, %arg8: memref<1x128xf32, #tpu.memory_space<vmem>>, %arg9: memref<1152x512xf32, #tpu.memory_space<vmem>>, %arg10: memref<1x512xf32, #tpu.memory_space<vmem>>, %arg11: memref<512x128xf32, #tpu.memory_space<vmem>>, %arg12: memref<1x128xf32, #tpu.memory_space<vmem>>, %arg13: memref<128x1xf32, #tpu.memory_space<vmem>>, %arg14: memref<1x1xf32, #tpu.memory_space<vmem>>, %arg15: memref<2x1xf32, #tpu.memory_space<vmem>>, %arg16: memref<218x16xf32, #tpu.memory_space<vmem>>, %arg17: memref<194x32xf32, #tpu.memory_space<vmem>>, %arg18: memref<170x64xf32, #tpu.memory_space<vmem>>, %arg19: memref<146x128xf32, #tpu.memory_space<vmem>>, %arg20: memref<2x1152xf32, #tpu.memory_space<vmem>>) attributes {dimension_semantics = [], scalar_prefetch = 0 : i64, scratch_operands = 5 : i64, tpu.core_type = #tpu.core_type<tc>} {
    %cst = arith.constant 0.000000e+00 : f32
    %0 = vector.broadcast %cst : f32 to vector<218x16xf32>
    %c0 = arith.constant 0 : index
    %c0_0 = arith.constant 0 : index
    %1 = vector.load %arg0[%c0, %c0_0] : memref<242x6xf32, #tpu.memory_space<vmem>>, vector<218x6xf32>
    %c0_1 = arith.constant 0 : index
    %c0_2 = arith.constant 0 : index
    %c0_3 = arith.constant 0 : index
    %2 = vector.load %arg1[%c0_1, %c0_2, %c0_3] : memref<9x6x16xf32, #tpu.memory_space<vmem>>, vector<1x6x16xf32>
    %3 = vector.shape_cast %2 : vector<1x6x16xf32> to vector<6x16xf32>
    %cst_4 = arith.constant dense<0.000000e+00> : vector<218x16xf32>
    %4 = tpu.matmul %1, %3, %cst_4 {dimension_numbers = #tpu.dot_dimension_numbers<[1], [0], [0], [1], [0, 0, 1, 1], [], []>} : vector<218x6xf32>, vector<6x16xf32>, vector<218x16xf32> -> vector<218x16xf32>
    %5 = arith.addf %0, %4 : vector<218x16xf32>
    %c1 = arith.constant 1 : index
    %c0_5 = arith.constant 0 : index
    %6 = vector.load %arg0[%c1, %c0_5] : memref<242x6xf32, #tpu.memory_space<vmem>>, vector<218x6xf32>
    %c1_6 = arith.constant 1 : index
    %c0_7 = arith.constant 0 : index
    %c0_8 = arith.constant 0 : index
    %7 = vector.load %arg1[%c1_6, %c0_7, %c0_8] : memref<9x6x16xf32, #tpu.memory_space<vmem>>, vector<1x6x16xf32>
    %8 = vector.shape_cast %7 : vector<1x6x16xf32> to vector<6x16xf32>
    %cst_9 = arith.constant dense<0.000000e+00> : vector<218x16xf32>
    %9 = tpu.matmul %6, %8, %cst_9 {dimension_numbers = #tpu.dot_dimension_numbers<[1], [0], [0], [1], [0, 0, 1, 1], [], []>} : vector<218x6xf32>, vector<6x16xf32>, vector<218x16xf32> -> vector<218x16xf32>
    %10 = arith.addf %5, %9 : vector<218x16xf32>
    %c2 = arith.constant 2 : index
    %c0_10 = arith.constant 0 : index
    %11 = vector.load %arg0[%c2, %c0_10] : memref<242x6xf32, #tpu.memory_space<vmem>>, vector<218x6xf32>
    %c2_11 = arith.constant 2 : index
    %c0_12 = arith.constant 0 : index
    %c0_13 = arith.constant 0 : index
    %12 = vector.load %arg1[%c2_11, %c0_12, %c0_13] : memref<9x6x16xf32, #tpu.memory_space<vmem>>, vector<1x6x16xf32>
    %13 = vector.shape_cast %12 : vector<1x6x16xf32> to vector<6x16xf32>
    %cst_14 = arith.constant dense<0.000000e+00> : vector<218x16xf32>
    %14 = tpu.matmul %11, %13, %cst_14 {dimension_numbers = #tpu.dot_dimension_numbers<[1], [0], [0], [1], [0, 0, 1, 1], [], []>} : vector<218x6xf32>, vector<6x16xf32>, vector<218x16xf32> -> vector<218x16xf32>
    %15 = arith.addf %10, %14 : vector<218x16xf32>
    %c11 = arith.constant 11 : index
    %c0_15 = arith.constant 0 : index
    %16 = vector.load %arg0[%c11, %c0_15] : memref<242x6xf32, #tpu.memory_space<vmem>>, vector<218x6xf32>
    %c3 = arith.constant 3 : index
    %c0_16 = arith.constant 0 : index
    %c0_17 = arith.constant 0 : index
    %17 = vector.load %arg1[%c3, %c0_16, %c0_17] : memref<9x6x16xf32, #tpu.memory_space<vmem>>, vector<1x6x16xf32>
    %18 = vector.shape_cast %17 : vector<1x6x16xf32> to vector<6x16xf32>
    %cst_18 = arith.constant dense<0.000000e+00> : vector<218x16xf32>
    %19 = tpu.matmul %16, %18, %cst_18 {dimension_numbers = #tpu.dot_dimension_numbers<[1], [0], [0], [1], [0, 0, 1, 1], [], []>} : vector<218x6xf32>, vector<6x16xf32>, vector<218x16xf32> -> vector<218x16xf32>
    %20 = arith.addf %15, %19 : vector<218x16xf32>
    %c12 = arith.constant 12 : index
    %c0_19 = arith.constant 0 : index
    %21 = vector.load %arg0[%c12, %c0_19] : memref<242x6xf32, #tpu.memory_space<vmem>>, vector<218x6xf32>
    %c4 = arith.constant 4 : index
    %c0_20 = arith.constant 0 : index
    %c0_21 = arith.constant 0 : index
    %22 = vector.load %arg1[%c4, %c0_20, %c0_21] : memref<9x6x16xf32, #tpu.memory_space<vmem>>, vector<1x6x16xf32>
    %23 = vector.shape_cast %22 : vector<1x6x16xf32> to vector<6x16xf32>
    %cst_22 = arith.constant dense<0.000000e+00> : vector<218x16xf32>
    %24 = tpu.matmul %21, %23, %cst_22 {dimension_numbers = #tpu.dot_dimension_numbers<[1], [0], [0], [1], [0, 0, 1, 1], [], []>} : vector<218x6xf32>, vector<6x16xf32>, vector<218x16xf32> -> vector<218x16xf32>
    %25 = arith.addf %20, %24 : vector<218x16xf32>
    %c13 = arith.constant 13 : index
    %c0_23 = arith.constant 0 : index
    %26 = vector.load %arg0[%c13, %c0_23] : memref<242x6xf32, #tpu.memory_space<vmem>>, vector<218x6xf32>
    %c5 = arith.constant 5 : index
    %c0_24 = arith.constant 0 : index
    %c0_25 = arith.constant 0 : index
    %27 = vector.load %arg1[%c5, %c0_24, %c0_25] : memref<9x6x16xf32, #tpu.memory_space<vmem>>, vector<1x6x16xf32>
    %28 = vector.shape_cast %27 : vector<1x6x16xf32> to vector<6x16xf32>
    %cst_26 = arith.constant dense<0.000000e+00> : vector<218x16xf32>
    %29 = tpu.matmul %26, %28, %cst_26 {dimension_numbers = #tpu.dot_dimension_numbers<[1], [0], [0], [1], [0, 0, 1, 1], [], []>} : vector<218x6xf32>, vector<6x16xf32>, vector<218x16xf32> -> vector<218x16xf32>
    %30 = arith.addf %25, %29 : vector<218x16xf32>
    %c22 = arith.constant 22 : index
    %c0_27 = arith.constant 0 : index
    %31 = vector.load %arg0[%c22, %c0_27] : memref<242x6xf32, #tpu.memory_space<vmem>>, vector<218x6xf32>
    %c6 = arith.constant 6 : index
    %c0_28 = arith.constant 0 : index
    %c0_29 = arith.constant 0 : index
    %32 = vector.load %arg1[%c6, %c0_28, %c0_29] : memref<9x6x16xf32, #tpu.memory_space<vmem>>, vector<1x6x16xf32>
    %33 = vector.shape_cast %32 : vector<1x6x16xf32> to vector<6x16xf32>
    %cst_30 = arith.constant dense<0.000000e+00> : vector<218x16xf32>
    %34 = tpu.matmul %31, %33, %cst_30 {dimension_numbers = #tpu.dot_dimension_numbers<[1], [0], [0], [1], [0, 0, 1, 1], [], []>} : vector<218x6xf32>, vector<6x16xf32>, vector<218x16xf32> -> vector<218x16xf32>
    %35 = arith.addf %30, %34 : vector<218x16xf32>
    %c23 = arith.constant 23 : index
    %c0_31 = arith.constant 0 : index
    %36 = vector.load %arg0[%c23, %c0_31] : memref<242x6xf32, #tpu.memory_space<vmem>>, vector<218x6xf32>
    %c7 = arith.constant 7 : index
    %c0_32 = arith.constant 0 : index
    %c0_33 = arith.constant 0 : index
    %37 = vector.load %arg1[%c7, %c0_32, %c0_33] : memref<9x6x16xf32, #tpu.memory_space<vmem>>, vector<1x6x16xf32>
    %38 = vector.shape_cast %37 : vector<1x6x16xf32> to vector<6x16xf32>
    %cst_34 = arith.constant dense<0.000000e+00> : vector<218x16xf32>
    %39 = tpu.matmul %36, %38, %cst_34 {dimension_numbers = #tpu.dot_dimension_numbers<[1], [0], [0], [1], [0, 0, 1, 1], [], []>} : vector<218x6xf32>, vector<6x16xf32>, vector<218x16xf32> -> vector<218x16xf32>
    %40 = arith.addf %35, %39 : vector<218x16xf32>
    %c24 = arith.constant 24 : index
    %c0_35 = arith.constant 0 : index
    %41 = vector.load %arg0[%c24, %c0_35] : memref<242x6xf32, #tpu.memory_space<vmem>>, vector<218x6xf32>
    %c8 = arith.constant 8 : index
    %c0_36 = arith.constant 0 : index
    %c0_37 = arith.constant 0 : index
    %42 = vector.load %arg1[%c8, %c0_36, %c0_37] : memref<9x6x16xf32, #tpu.memory_space<vmem>>, vector<1x6x16xf32>
    %43 = vector.shape_cast %42 : vector<1x6x16xf32> to vector<6x16xf32>
    %cst_38 = arith.constant dense<0.000000e+00> : vector<218x16xf32>
    %44 = tpu.matmul %41, %43, %cst_38 {dimension_numbers = #tpu.dot_dimension_numbers<[1], [0], [0], [1], [0, 0, 1, 1], [], []>} : vector<218x6xf32>, vector<6x16xf32>, vector<218x16xf32> -> vector<218x16xf32>
    %45 = arith.addf %40, %44 : vector<218x16xf32>
    %c0_39 = arith.constant 0 : index
    %c0_40 = arith.constant 0 : index
    %46 = vector.load %arg2[%c0_39, %c0_40] : memref<1x16xf32, #tpu.memory_space<vmem>>, vector<1x16xf32>
    %47 = vector.broadcast %46 : vector<1x16xf32> to vector<218x16xf32>
    %48 = arith.addf %45, %47 : vector<218x16xf32>
    %cst_41 = arith.constant 0.000000e+00 : f32
    %49 = vector.broadcast %cst_41 : f32 to vector<218x16xf32>
    %50 = arith.maximumf %48, %49 : vector<218x16xf32>
    %c0_42 = arith.constant 0 : index
    %c0_43 = arith.constant 0 : index
    %51 = vector.load %arg16[%c0_42, %c0_43] : memref<218x16xf32, #tpu.memory_space<vmem>>, vector<218x16xf32>
    tpu.vector_store %arg16[%c0_42, %c0_43], %50 {strides = array<i32>} : memref<218x16xf32, #tpu.memory_space<vmem>>, vector<218x16xf32>,
    %cst_44 = arith.constant 0.000000e+00 : f32
    %52 = vector.broadcast %cst_44 : f32 to vector<194x32xf32>
    %c0_45 = arith.constant 0 : index
    %c0_46 = arith.constant 0 : index
    %53 = vector.load %arg16[%c0_45, %c0_46] : memref<218x16xf32, #tpu.memory_space<vmem>>, vector<194x16xf32>
    %c0_47 = arith.constant 0 : index
    %c0_48 = arith.constant 0 : index
    %c0_49 = arith.constant 0 : index
    %54 = vector.load %arg3[%c0_47, %c0_48, %c0_49] : memref<9x16x32xf32, #tpu.memory_space<vmem>>, vector<1x16x32xf32>
    %55 = vector.shape_cast %54 : vector<1x16x32xf32> to vector<16x32xf32>
    %cst_50 = arith.constant dense<0.000000e+00> : vector<194x32xf32>
    %56 = tpu.matmul %53, %55, %cst_50 {dimension_numbers = #tpu.dot_dimension_numbers<[1], [0], [0], [1], [0, 0, 1, 1], [], []>} : vector<194x16xf32>, vector<16x32xf32>, vector<194x32xf32> -> vector<194x32xf32>
    %57 = arith.addf %52, %56 : vector<194x32xf32>
    %c1_51 = arith.constant 1 : index
    %c0_52 = arith.constant 0 : index
    %58 = vector.load %arg16[%c1_51, %c0_52] : memref<218x16xf32, #tpu.memory_space<vmem>>, vector<194x16xf32>
    %c1_53 = arith.constant 1 : index
    %c0_54 = arith.constant 0 : index
    %c0_55 = arith.constant 0 : index
    %59 = vector.load %arg3[%c1_53, %c0_54, %c0_55] : memref<9x16x32xf32, #tpu.memory_space<vmem>>, vector<1x16x32xf32>
    %60 = vector.shape_cast %59 : vector<1x16x32xf32> to vector<16x32xf32>
    %cst_56 = arith.constant dense<0.000000e+00> : vector<194x32xf32>
    %61 = tpu.matmul %58, %60, %cst_56 {dimension_numbers = #tpu.dot_dimension_numbers<[1], [0], [0], [1], [0, 0, 1, 1], [], []>} : vector<194x16xf32>, vector<16x32xf32>, vector<194x32xf32> -> vector<194x32xf32>
    %62 = arith.addf %57, %61 : vector<194x32xf32>
    %c2_57 = arith.constant 2 : index
    %c0_58 = arith.constant 0 : index
    %63 = vector.load %arg16[%c2_57, %c0_58] : memref<218x16xf32, #tpu.memory_space<vmem>>, vector<194x16xf32>
    %c2_59 = arith.constant 2 : index
    %c0_60 = arith.constant 0 : index
    %c0_61 = arith.constant 0 : index
    %64 = vector.load %arg3[%c2_59, %c0_60, %c0_61] : memref<9x16x32xf32, #tpu.memory_space<vmem>>, vector<1x16x32xf32>
    %65 = vector.shape_cast %64 : vector<1x16x32xf32> to vector<16x32xf32>
    %cst_62 = arith.constant dense<0.000000e+00> : vector<194x32xf32>
    %66 = tpu.matmul %63, %65, %cst_62 {dimension_numbers = #tpu.dot_dimension_numbers<[1], [0], [0], [1], [0, 0, 1, 1], [], []>} : vector<194x16xf32>, vector<16x32xf32>, vector<194x32xf32> -> vector<194x32xf32>
    %67 = arith.addf %62, %66 : vector<194x32xf32>
    %c11_63 = arith.constant 11 : index
    %c0_64 = arith.constant 0 : index
    %68 = vector.load %arg16[%c11_63, %c0_64] : memref<218x16xf32, #tpu.memory_space<vmem>>, vector<194x16xf32>
    %c3_65 = arith.constant 3 : index
    %c0_66 = arith.constant 0 : index
    %c0_67 = arith.constant 0 : index
    %69 = vector.load %arg3[%c3_65, %c0_66, %c0_67] : memref<9x16x32xf32, #tpu.memory_space<vmem>>, vector<1x16x32xf32>
    %70 = vector.shape_cast %69 : vector<1x16x32xf32> to vector<16x32xf32>
    %cst_68 = arith.constant dense<0.000000e+00> : vector<194x32xf32>
    %71 = tpu.matmul %68, %70, %cst_68 {dimension_numbers = #tpu.dot_dimension_numbers<[1], [0], [0], [1], [0, 0, 1, 1], [], []>} : vector<194x16xf32>, vector<16x32xf32>, vector<194x32xf32> -> vector<194x32xf32>
    %72 = arith.addf %67, %71 : vector<194x32xf32>
    %c12_69 = arith.constant 12 : index
    %c0_70 = arith.constant 0 : index
    %73 = vector.load %arg16[%c12_69, %c0_70] : memref<218x16xf32, #tpu.memory_space<vmem>>, vector<194x16xf32>
    %c4_71 = arith.constant 4 : index
    %c0_72 = arith.constant 0 : index
    %c0_73 = arith.constant 0 : index
    %74 = vector.load %arg3[%c4_71, %c0_72, %c0_73] : memref<9x16x32xf32, #tpu.memory_space<vmem>>, vector<1x16x32xf32>
    %75 = vector.shape_cast %74 : vector<1x16x32xf32> to vector<16x32xf32>
    %cst_74 = arith.constant dense<0.000000e+00> : vector<194x32xf32>
    %76 = tpu.matmul %73, %75, %cst_74 {dimension_numbers = #tpu.dot_dimension_numbers<[1], [0], [0], [1], [0, 0, 1, 1], [], []>} : vector<194x16xf32>, vector<16x32xf32>, vector<194x32xf32> -> vector<194x32xf32>
    %77 = arith.addf %72, %76 : vector<194x32xf32>
    %c13_75 = arith.constant 13 : index
    %c0_76 = arith.constant 0 : index
    %78 = vector.load %arg16[%c13_75, %c0_76] : memref<218x16xf32, #tpu.memory_space<vmem>>, vector<194x16xf32>
    %c5_77 = arith.constant 5 : index
    %c0_78 = arith.constant 0 : index
    %c0_79 = arith.constant 0 : index
    %79 = vector.load %arg3[%c5_77, %c0_78, %c0_79] : memref<9x16x32xf32, #tpu.memory_space<vmem>>, vector<1x16x32xf32>
    %80 = vector.shape_cast %79 : vector<1x16x32xf32> to vector<16x32xf32>
    %cst_80 = arith.constant dense<0.000000e+00> : vector<194x32xf32>
    %81 = tpu.matmul %78, %80, %cst_80 {dimension_numbers = #tpu.dot_dimension_numbers<[1], [0], [0], [1], [0, 0, 1, 1], [], []>} : vector<194x16xf32>, vector<16x32xf32>, vector<194x32xf32> -> vector<194x32xf32>
    %82 = arith.addf %77, %81 : vector<194x32xf32>
    %c22_81 = arith.constant 22 : index
    %c0_82 = arith.constant 0 : index
    %83 = vector.load %arg16[%c22_81, %c0_82] : memref<218x16xf32, #tpu.memory_space<vmem>>, vector<194x16xf32>
    %c6_83 = arith.constant 6 : index
    %c0_84 = arith.constant 0 : index
    %c0_85 = arith.constant 0 : index
    %84 = vector.load %arg3[%c6_83, %c0_84, %c0_85] : memref<9x16x32xf32, #tpu.memory_space<vmem>>, vector<1x16x32xf32>
    %85 = vector.shape_cast %84 : vector<1x16x32xf32> to vector<16x32xf32>
    %cst_86 = arith.constant dense<0.000000e+00> : vector<194x32xf32>
    %86 = tpu.matmul %83, %85, %cst_86 {dimension_numbers = #tpu.dot_dimension_numbers<[1], [0], [0], [1], [0, 0, 1, 1], [], []>} : vector<194x16xf32>, vector<16x32xf32>, vector<194x32xf32> -> vector<194x32xf32>
    %87 = arith.addf %82, %86 : vector<194x32xf32>
    %c23_87 = arith.constant 23 : index
    %c0_88 = arith.constant 0 : index
    %88 = vector.load %arg16[%c23_87, %c0_88] : memref<218x16xf32, #tpu.memory_space<vmem>>, vector<194x16xf32>
    %c7_89 = arith.constant 7 : index
    %c0_90 = arith.constant 0 : index
    %c0_91 = arith.constant 0 : index
    %89 = vector.load %arg3[%c7_89, %c0_90, %c0_91] : memref<9x16x32xf32, #tpu.memory_space<vmem>>, vector<1x16x32xf32>
    %90 = vector.shape_cast %89 : vector<1x16x32xf32> to vector<16x32xf32>
    %cst_92 = arith.constant dense<0.000000e+00> : vector<194x32xf32>
    %91 = tpu.matmul %88, %90, %cst_92 {dimension_numbers = #tpu.dot_dimension_numbers<[1], [0], [0], [1], [0, 0, 1, 1], [], []>} : vector<194x16xf32>, vector<16x32xf32>, vector<194x32xf32> -> vector<194x32xf32>
    %92 = arith.addf %87, %91 : vector<194x32xf32>
    %c24_93 = arith.constant 24 : index
    %c0_94 = arith.constant 0 : index
    %93 = vector.load %arg16[%c24_93, %c0_94] : memref<218x16xf32, #tpu.memory_space<vmem>>, vector<194x16xf32>
    %c8_95 = arith.constant 8 : index
    %c0_96 = arith.constant 0 : index
    %c0_97 = arith.constant 0 : index
    %94 = vector.load %arg3[%c8_95, %c0_96, %c0_97] : memref<9x16x32xf32, #tpu.memory_space<vmem>>, vector<1x16x32xf32>
    %95 = vector.shape_cast %94 : vector<1x16x32xf32> to vector<16x32xf32>
    %cst_98 = arith.constant dense<0.000000e+00> : vector<194x32xf32>
    %96 = tpu.matmul %93, %95, %cst_98 {dimension_numbers = #tpu.dot_dimension_numbers<[1], [0], [0], [1], [0, 0, 1, 1], [], []>} : vector<194x16xf32>, vector<16x32xf32>, vector<194x32xf32> -> vector<194x32xf32>
    %97 = arith.addf %92, %96 : vector<194x32xf32>
    %c0_99 = arith.constant 0 : index
    %c0_100 = arith.constant 0 : index
    %98 = vector.load %arg4[%c0_99, %c0_100] : memref<1x32xf32, #tpu.memory_space<vmem>>, vector<1x32xf32>
    %99 = vector.broadcast %98 : vector<1x32xf32> to vector<194x32xf32>
    %100 = arith.addf %97, %99 : vector<194x32xf32>
    %cst_101 = arith.constant 0.000000e+00 : f32
    %101 = vector.broadcast %cst_101 : f32 to vector<194x32xf32>
    %102 = arith.maximumf %100, %101 : vector<194x32xf32>
    %c0_102 = arith.constant 0 : index
    %c0_103 = arith.constant 0 : index
    %103 = vector.load %arg17[%c0_102, %c0_103] : memref<194x32xf32, #tpu.memory_space<vmem>>, vector<194x32xf32>
    tpu.vector_store %arg17[%c0_102, %c0_103], %102 {strides = array<i32>} : memref<194x32xf32, #tpu.memory_space<vmem>>, vector<194x32xf32>,
    %cst_104 = arith.constant 0.000000e+00 : f32
    %104 = vector.broadcast %cst_104 : f32 to vector<170x64xf32>
    %c0_105 = arith.constant 0 : index
    %c0_106 = arith.constant 0 : index
    %105 = vector.load %arg17[%c0_105, %c0_106] : memref<194x32xf32, #tpu.memory_space<vmem>>, vector<170x32xf32>
    %c0_107 = arith.constant 0 : index
    %c0_108 = arith.constant 0 : index
    %c0_109 = arith.constant 0 : index
    %106 = vector.load %arg5[%c0_107, %c0_108, %c0_109] : memref<9x32x64xf32, #tpu.memory_space<vmem>>, vector<1x32x64xf32>
    %107 = vector.shape_cast %106 : vector<1x32x64xf32> to vector<32x64xf32>
    %cst_110 = arith.constant dense<0.000000e+00> : vector<170x64xf32>
    %108 = tpu.matmul %105, %107, %cst_110 {dimension_numbers = #tpu.dot_dimension_numbers<[1], [0], [0], [1], [0, 0, 1, 1], [], []>} : vector<170x32xf32>, vector<32x64xf32>, vector<170x64xf32> -> vector<170x64xf32>
    %109 = arith.addf %104, %108 : vector<170x64xf32>
    %c1_111 = arith.constant 1 : index
    %c0_112 = arith.constant 0 : index
    %110 = vector.load %arg17[%c1_111, %c0_112] : memref<194x32xf32, #tpu.memory_space<vmem>>, vector<170x32xf32>
    %c1_113 = arith.constant 1 : index
    %c0_114 = arith.constant 0 : index
    %c0_115 = arith.constant 0 : index
    %111 = vector.load %arg5[%c1_113, %c0_114, %c0_115] : memref<9x32x64xf32, #tpu.memory_space<vmem>>, vector<1x32x64xf32>
    %112 = vector.shape_cast %111 : vector<1x32x64xf32> to vector<32x64xf32>
    %cst_116 = arith.constant dense<0.000000e+00> : vector<170x64xf32>
    %113 = tpu.matmul %110, %112, %cst_116 {dimension_numbers = #tpu.dot_dimension_numbers<[1], [0], [0], [1], [0, 0, 1, 1], [], []>} : vector<170x32xf32>, vector<32x64xf32>, vector<170x64xf32> -> vector<170x64xf32>
    %114 = arith.addf %109, %113 : vector<170x64xf32>
    %c2_117 = arith.constant 2 : index
    %c0_118 = arith.constant 0 : index
    %115 = vector.load %arg17[%c2_117, %c0_118] : memref<194x32xf32, #tpu.memory_space<vmem>>, vector<170x32xf32>
    %c2_119 = arith.constant 2 : index
    %c0_120 = arith.constant 0 : index
    %c0_121 = arith.constant 0 : index
    %116 = vector.load %arg5[%c2_119, %c0_120, %c0_121] : memref<9x32x64xf32, #tpu.memory_space<vmem>>, vector<1x32x64xf32>
    %117 = vector.shape_cast %116 : vector<1x32x64xf32> to vector<32x64xf32>
    %cst_122 = arith.constant dense<0.000000e+00> : vector<170x64xf32>
    %118 = tpu.matmul %115, %117, %cst_122 {dimension_numbers = #tpu.dot_dimension_numbers<[1], [0], [0], [1], [0, 0, 1, 1], [], []>} : vector<170x32xf32>, vector<32x64xf32>, vector<170x64xf32> -> vector<170x64xf32>
    %119 = arith.addf %114, %118 : vector<170x64xf32>
    %c11_123 = arith.constant 11 : index
    %c0_124 = arith.constant 0 : index
    %120 = vector.load %arg17[%c11_123, %c0_124] : memref<194x32xf32, #tpu.memory_space<vmem>>, vector<170x32xf32>
    %c3_125 = arith.constant 3 : index
    %c0_126 = arith.constant 0 : index
    %c0_127 = arith.constant 0 : index
    %121 = vector.load %arg5[%c3_125, %c0_126, %c0_127] : memref<9x32x64xf32, #tpu.memory_space<vmem>>, vector<1x32x64xf32>
    %122 = vector.shape_cast %121 : vector<1x32x64xf32> to vector<32x64xf32>
    %cst_128 = arith.constant dense<0.000000e+00> : vector<170x64xf32>
    %123 = tpu.matmul %120, %122, %cst_128 {dimension_numbers = #tpu.dot_dimension_numbers<[1], [0], [0], [1], [0, 0, 1, 1], [], []>} : vector<170x32xf32>, vector<32x64xf32>, vector<170x64xf32> -> vector<170x64xf32>
    %124 = arith.addf %119, %123 : vector<170x64xf32>
    %c12_129 = arith.constant 12 : index
    %c0_130 = arith.constant 0 : index
    %125 = vector.load %arg17[%c12_129, %c0_130] : memref<194x32xf32, #tpu.memory_space<vmem>>, vector<170x32xf32>
    %c4_131 = arith.constant 4 : index
    %c0_132 = arith.constant 0 : index
    %c0_133 = arith.constant 0 : index
    %126 = vector.load %arg5[%c4_131, %c0_132, %c0_133] : memref<9x32x64xf32, #tpu.memory_space<vmem>>, vector<1x32x64xf32>
    %127 = vector.shape_cast %126 : vector<1x32x64xf32> to vector<32x64xf32>
    %cst_134 = arith.constant dense<0.000000e+00> : vector<170x64xf32>
    %128 = tpu.matmul %125, %127, %cst_134 {dimension_numbers = #tpu.dot_dimension_numbers<[1], [0], [0], [1], [0, 0, 1, 1], [], []>} : vector<170x32xf32>, vector<32x64xf32>, vector<170x64xf32> -> vector<170x64xf32>
    %129 = arith.addf %124, %128 : vector<170x64xf32>
    %c13_135 = arith.constant 13 : index
    %c0_136 = arith.constant 0 : index
    %130 = vector.load %arg17[%c13_135, %c0_136] : memref<194x32xf32, #tpu.memory_space<vmem>>, vector<170x32xf32>
    %c5_137 = arith.constant 5 : index
    %c0_138 = arith.constant 0 : index
    %c0_139 = arith.constant 0 : index
    %131 = vector.load %arg5[%c5_137, %c0_138, %c0_139] : memref<9x32x64xf32, #tpu.memory_space<vmem>>, vector<1x32x64xf32>
    %132 = vector.shape_cast %131 : vector<1x32x64xf32> to vector<32x64xf32>
    %cst_140 = arith.constant dense<0.000000e+00> : vector<170x64xf32>
    %133 = tpu.matmul %130, %132, %cst_140 {dimension_numbers = #tpu.dot_dimension_numbers<[1], [0], [0], [1], [0, 0, 1, 1], [], []>} : vector<170x32xf32>, vector<32x64xf32>, vector<170x64xf32> -> vector<170x64xf32>
    %134 = arith.addf %129, %133 : vector<170x64xf32>
    %c22_141 = arith.constant 22 : index
    %c0_142 = arith.constant 0 : index
    %135 = vector.load %arg17[%c22_141, %c0_142] : memref<194x32xf32, #tpu.memory_space<vmem>>, vector<170x32xf32>
    %c6_143 = arith.constant 6 : index
    %c0_144 = arith.constant 0 : index
    %c0_145 = arith.constant 0 : index
    %136 = vector.load %arg5[%c6_143, %c0_144, %c0_145] : memref<9x32x64xf32, #tpu.memory_space<vmem>>, vector<1x32x64xf32>
    %137 = vector.shape_cast %136 : vector<1x32x64xf32> to vector<32x64xf32>
    %cst_146 = arith.constant dense<0.000000e+00> : vector<170x64xf32>
    %138 = tpu.matmul %135, %137, %cst_146 {dimension_numbers = #tpu.dot_dimension_numbers<[1], [0], [0], [1], [0, 0, 1, 1], [], []>} : vector<170x32xf32>, vector<32x64xf32>, vector<170x64xf32> -> vector<170x64xf32>
    %139 = arith.addf %134, %138 : vector<170x64xf32>
    %c23_147 = arith.constant 23 : index
    %c0_148 = arith.constant 0 : index
    %140 = vector.load %arg17[%c23_147, %c0_148] : memref<194x32xf32, #tpu.memory_space<vmem>>, vector<170x32xf32>
    %c7_149 = arith.constant 7 : index
    %c0_150 = arith.constant 0 : index
    %c0_151 = arith.constant 0 : index
    %141 = vector.load %arg5[%c7_149, %c0_150, %c0_151] : memref<9x32x64xf32, #tpu.memory_space<vmem>>, vector<1x32x64xf32>
    %142 = vector.shape_cast %141 : vector<1x32x64xf32> to vector<32x64xf32>
    %cst_152 = arith.constant dense<0.000000e+00> : vector<170x64xf32>
    %143 = tpu.matmul %140, %142, %cst_152 {dimension_numbers = #tpu.dot_dimension_numbers<[1], [0], [0], [1], [0, 0, 1, 1], [], []>} : vector<170x32xf32>, vector<32x64xf32>, vector<170x64xf32> -> vector<170x64xf32>
    %144 = arith.addf %139, %143 : vector<170x64xf32>
    %c24_153 = arith.constant 24 : index
    %c0_154 = arith.constant 0 : index
    %145 = vector.load %arg17[%c24_153, %c0_154] : memref<194x32xf32, #tpu.memory_space<vmem>>, vector<170x32xf32>
    %c8_155 = arith.constant 8 : index
    %c0_156 = arith.constant 0 : index
    %c0_157 = arith.constant 0 : index
    %146 = vector.load %arg5[%c8_155, %c0_156, %c0_157] : memref<9x32x64xf32, #tpu.memory_space<vmem>>, vector<1x32x64xf32>
    %147 = vector.shape_cast %146 : vector<1x32x64xf32> to vector<32x64xf32>
    %cst_158 = arith.constant dense<0.000000e+00> : vector<170x64xf32>
    %148 = tpu.matmul %145, %147, %cst_158 {dimension_numbers = #tpu.dot_dimension_numbers<[1], [0], [0], [1], [0, 0, 1, 1], [], []>} : vector<170x32xf32>, vector<32x64xf32>, vector<170x64xf32> -> vector<170x64xf32>
    %149 = arith.addf %144, %148 : vector<170x64xf32>
    %c0_159 = arith.constant 0 : index
    %c0_160 = arith.constant 0 : index
    %150 = vector.load %arg6[%c0_159, %c0_160] : memref<1x64xf32, #tpu.memory_space<vmem>>, vector<1x64xf32>
    %151 = vector.broadcast %150 : vector<1x64xf32> to vector<170x64xf32>
    %152 = arith.addf %149, %151 : vector<170x64xf32>
    %cst_161 = arith.constant 0.000000e+00 : f32
    %153 = vector.broadcast %cst_161 : f32 to vector<170x64xf32>
    %154 = arith.maximumf %152, %153 : vector<170x64xf32>
    %c0_162 = arith.constant 0 : index
    %c0_163 = arith.constant 0 : index
    %155 = vector.load %arg18[%c0_162, %c0_163] : memref<170x64xf32, #tpu.memory_space<vmem>>, vector<170x64xf32>
    tpu.vector_store %arg18[%c0_162, %c0_163], %154 {strides = array<i32>} : memref<170x64xf32, #tpu.memory_space<vmem>>, vector<170x64xf32>,
    %cst_164 = arith.constant 0.000000e+00 : f32
    %156 = vector.broadcast %cst_164 : f32 to vector<146x128xf32>
    %c0_165 = arith.constant 0 : index
    %c0_166 = arith.constant 0 : index
    %157 = vector.load %arg18[%c0_165, %c0_166] : memref<170x64xf32, #tpu.memory_space<vmem>>, vector<146x64xf32>
    %c0_167 = arith.constant 0 : index
    %c0_168 = arith.constant 0 : index
    %c0_169 = arith.constant 0 : index
    %158 = vector.load %arg7[%c0_167, %c0_168, %c0_169] : memref<9x64x128xf32, #tpu.memory_space<vmem>>, vector<1x64x128xf32>
    %159 = vector.shape_cast %158 : vector<1x64x128xf32> to vector<64x128xf32>
    %cst_170 = arith.constant dense<0.000000e+00> : vector<146x128xf32>
    %160 = tpu.matmul %157, %159, %cst_170 {dimension_numbers = #tpu.dot_dimension_numbers<[1], [0], [0], [1], [0, 0, 1, 1], [], []>} : vector<146x64xf32>, vector<64x128xf32>, vector<146x128xf32> -> vector<146x128xf32>
    %161 = arith.addf %156, %160 : vector<146x128xf32>
    %c1_171 = arith.constant 1 : index
    %c0_172 = arith.constant 0 : index
    %162 = vector.load %arg18[%c1_171, %c0_172] : memref<170x64xf32, #tpu.memory_space<vmem>>, vector<146x64xf32>
    %c1_173 = arith.constant 1 : index
    %c0_174 = arith.constant 0 : index
    %c0_175 = arith.constant 0 : index
    %163 = vector.load %arg7[%c1_173, %c0_174, %c0_175] : memref<9x64x128xf32, #tpu.memory_space<vmem>>, vector<1x64x128xf32>
    %164 = vector.shape_cast %163 : vector<1x64x128xf32> to vector<64x128xf32>
    %cst_176 = arith.constant dense<0.000000e+00> : vector<146x128xf32>
    %165 = tpu.matmul %162, %164, %cst_176 {dimension_numbers = #tpu.dot_dimension_numbers<[1], [0], [0], [1], [0, 0, 1, 1], [], []>} : vector<146x64xf32>, vector<64x128xf32>, vector<146x128xf32> -> vector<146x128xf32>
    %166 = arith.addf %161, %165 : vector<146x128xf32>
    %c2_177 = arith.constant 2 : index
    %c0_178 = arith.constant 0 : index
    %167 = vector.load %arg18[%c2_177, %c0_178] : memref<170x64xf32, #tpu.memory_space<vmem>>, vector<146x64xf32>
    %c2_179 = arith.constant 2 : index
    %c0_180 = arith.constant 0 : index
    %c0_181 = arith.constant 0 : index
    %168 = vector.load %arg7[%c2_179, %c0_180, %c0_181] : memref<9x64x128xf32, #tpu.memory_space<vmem>>, vector<1x64x128xf32>
    %169 = vector.shape_cast %168 : vector<1x64x128xf32> to vector<64x128xf32>
    %cst_182 = arith.constant dense<0.000000e+00> : vector<146x128xf32>
    %170 = tpu.matmul %167, %169, %cst_182 {dimension_numbers = #tpu.dot_dimension_numbers<[1], [0], [0], [1], [0, 0, 1, 1], [], []>} : vector<146x64xf32>, vector<64x128xf32>, vector<146x128xf32> -> vector<146x128xf32>
    %171 = arith.addf %166, %170 : vector<146x128xf32>
    %c11_183 = arith.constant 11 : index
    %c0_184 = arith.constant 0 : index
    %172 = vector.load %arg18[%c11_183, %c0_184] : memref<170x64xf32, #tpu.memory_space<vmem>>, vector<146x64xf32>
    %c3_185 = arith.constant 3 : index
    %c0_186 = arith.constant 0 : index
    %c0_187 = arith.constant 0 : index
    %173 = vector.load %arg7[%c3_185, %c0_186, %c0_187] : memref<9x64x128xf32, #tpu.memory_space<vmem>>, vector<1x64x128xf32>
    %174 = vector.shape_cast %173 : vector<1x64x128xf32> to vector<64x128xf32>
    %cst_188 = arith.constant dense<0.000000e+00> : vector<146x128xf32>
    %175 = tpu.matmul %172, %174, %cst_188 {dimension_numbers = #tpu.dot_dimension_numbers<[1], [0], [0], [1], [0, 0, 1, 1], [], []>} : vector<146x64xf32>, vector<64x128xf32>, vector<146x128xf32> -> vector<146x128xf32>
    %176 = arith.addf %171, %175 : vector<146x128xf32>
    %c12_189 = arith.constant 12 : index
    %c0_190 = arith.constant 0 : index
    %177 = vector.load %arg18[%c12_189, %c0_190] : memref<170x64xf32, #tpu.memory_space<vmem>>, vector<146x64xf32>
    %c4_191 = arith.constant 4 : index
    %c0_192 = arith.constant 0 : index
    %c0_193 = arith.constant 0 : index
    %178 = vector.load %arg7[%c4_191, %c0_192, %c0_193] : memref<9x64x128xf32, #tpu.memory_space<vmem>>, vector<1x64x128xf32>
    %179 = vector.shape_cast %178 : vector<1x64x128xf32> to vector<64x128xf32>
    %cst_194 = arith.constant dense<0.000000e+00> : vector<146x128xf32>
    %180 = tpu.matmul %177, %179, %cst_194 {dimension_numbers = #tpu.dot_dimension_numbers<[1], [0], [0], [1], [0, 0, 1, 1], [], []>} : vector<146x64xf32>, vector<64x128xf32>, vector<146x128xf32> -> vector<146x128xf32>
    %181 = arith.addf %176, %180 : vector<146x128xf32>
    %c13_195 = arith.constant 13 : index
    %c0_196 = arith.constant 0 : index
    %182 = vector.load %arg18[%c13_195, %c0_196] : memref<170x64xf32, #tpu.memory_space<vmem>>, vector<146x64xf32>
    %c5_197 = arith.constant 5 : index
    %c0_198 = arith.constant 0 : index
    %c0_199 = arith.constant 0 : index
    %183 = vector.load %arg7[%c5_197, %c0_198, %c0_199] : memref<9x64x128xf32, #tpu.memory_space<vmem>>, vector<1x64x128xf32>
    %184 = vector.shape_cast %183 : vector<1x64x128xf32> to vector<64x128xf32>
    %cst_200 = arith.constant dense<0.000000e+00> : vector<146x128xf32>
    %185 = tpu.matmul %182, %184, %cst_200 {dimension_numbers = #tpu.dot_dimension_numbers<[1], [0], [0], [1], [0, 0, 1, 1], [], []>} : vector<146x64xf32>, vector<64x128xf32>, vector<146x128xf32> -> vector<146x128xf32>
    %186 = arith.addf %181, %185 : vector<146x128xf32>
    %c22_201 = arith.constant 22 : index
    %c0_202 = arith.constant 0 : index
    %187 = vector.load %arg18[%c22_201, %c0_202] : memref<170x64xf32, #tpu.memory_space<vmem>>, vector<146x64xf32>
    %c6_203 = arith.constant 6 : index
    %c0_204 = arith.constant 0 : index
    %c0_205 = arith.constant 0 : index
    %188 = vector.load %arg7[%c6_203, %c0_204, %c0_205] : memref<9x64x128xf32, #tpu.memory_space<vmem>>, vector<1x64x128xf32>
    %189 = vector.shape_cast %188 : vector<1x64x128xf32> to vector<64x128xf32>
    %cst_206 = arith.constant dense<0.000000e+00> : vector<146x128xf32>
    %190 = tpu.matmul %187, %189, %cst_206 {dimension_numbers = #tpu.dot_dimension_numbers<[1], [0], [0], [1], [0, 0, 1, 1], [], []>} : vector<146x64xf32>, vector<64x128xf32>, vector<146x128xf32> -> vector<146x128xf32>
    %191 = arith.addf %186, %190 : vector<146x128xf32>
    %c23_207 = arith.constant 23 : index
    %c0_208 = arith.constant 0 : index
    %192 = vector.load %arg18[%c23_207, %c0_208] : memref<170x64xf32, #tpu.memory_space<vmem>>, vector<146x64xf32>
    %c7_209 = arith.constant 7 : index
    %c0_210 = arith.constant 0 : index
    %c0_211 = arith.constant 0 : index
    %193 = vector.load %arg7[%c7_209, %c0_210, %c0_211] : memref<9x64x128xf32, #tpu.memory_space<vmem>>, vector<1x64x128xf32>
    %194 = vector.shape_cast %193 : vector<1x64x128xf32> to vector<64x128xf32>
    %cst_212 = arith.constant dense<0.000000e+00> : vector<146x128xf32>
    %195 = tpu.matmul %192, %194, %cst_212 {dimension_numbers = #tpu.dot_dimension_numbers<[1], [0], [0], [1], [0, 0, 1, 1], [], []>} : vector<146x64xf32>, vector<64x128xf32>, vector<146x128xf32> -> vector<146x128xf32>
    %196 = arith.addf %191, %195 : vector<146x128xf32>
    %c24_213 = arith.constant 24 : index
    %c0_214 = arith.constant 0 : index
    %197 = vector.load %arg18[%c24_213, %c0_214] : memref<170x64xf32, #tpu.memory_space<vmem>>, vector<146x64xf32>
    %c8_215 = arith.constant 8 : index
    %c0_216 = arith.constant 0 : index
    %c0_217 = arith.constant 0 : index
    %198 = vector.load %arg7[%c8_215, %c0_216, %c0_217] : memref<9x64x128xf32, #tpu.memory_space<vmem>>, vector<1x64x128xf32>
    %199 = vector.shape_cast %198 : vector<1x64x128xf32> to vector<64x128xf32>
    %cst_218 = arith.constant dense<0.000000e+00> : vector<146x128xf32>
    %200 = tpu.matmul %197, %199, %cst_218 {dimension_numbers = #tpu.dot_dimension_numbers<[1], [0], [0], [1], [0, 0, 1, 1], [], []>} : vector<146x64xf32>, vector<64x128xf32>, vector<146x128xf32> -> vector<146x128xf32>
    %201 = arith.addf %196, %200 : vector<146x128xf32>
    %c0_219 = arith.constant 0 : index
    %c0_220 = arith.constant 0 : index
    %202 = vector.load %arg8[%c0_219, %c0_220] : memref<1x128xf32, #tpu.memory_space<vmem>>, vector<1x128xf32>
    %203 = vector.broadcast %202 : vector<1x128xf32> to vector<146x128xf32>
    %204 = arith.addf %201, %203 : vector<146x128xf32>
    %cst_221 = arith.constant 0.000000e+00 : f32
    %205 = vector.broadcast %cst_221 : f32 to vector<146x128xf32>
    %206 = arith.maximumf %204, %205 : vector<146x128xf32>
    %c0_222 = arith.constant 0 : index
    %c0_223 = arith.constant 0 : index
    %207 = vector.load %arg19[%c0_222, %c0_223] : memref<146x128xf32, #tpu.memory_space<vmem>>, vector<146x128xf32>
    tpu.vector_store %arg19[%c0_222, %c0_223], %206 {strides = array<i32>} : memref<146x128xf32, #tpu.memory_space<vmem>>, vector<146x128xf32>,
    %c0_224 = arith.constant 0 : index
    %c0_225 = arith.constant 0 : index
    %208 = vector.load %arg19[%c0_224, %c0_225] : memref<146x128xf32, #tpu.memory_space<vmem>>, vector<1x128xf32>
    %c0_226 = arith.constant 0 : index
    %c0_227 = arith.constant 0 : index
    %209 = vector.load %arg20[%c0_226, %c0_227] : memref<2x1152xf32, #tpu.memory_space<vmem>>, vector<1x128xf32>
    tpu.vector_store %arg20[%c0_226, %c0_227], %208 {strides = array<i32>} : memref<2x1152xf32, #tpu.memory_space<vmem>>, vector<1x128xf32>,
    %c1_228 = arith.constant 1 : index
    %c0_229 = arith.constant 0 : index
    %210 = vector.load %arg19[%c1_228, %c0_229] : memref<146x128xf32, #tpu.memory_space<vmem>>, vector<1x128xf32>
    %c0_230 = arith.constant 0 : index
    %c128 = arith.constant 128 : index
    %211 = vector.load %arg20[%c0_230, %c128] : memref<2x1152xf32, #tpu.memory_space<vmem>>, vector<1x128xf32>
    tpu.vector_store %arg20[%c0_230, %c128], %210 {strides = array<i32>} : memref<2x1152xf32, #tpu.memory_space<vmem>>, vector<1x128xf32>,
    %c2_231 = arith.constant 2 : index
    %c0_232 = arith.constant 0 : index
    %212 = vector.load %arg19[%c2_231, %c0_232] : memref<146x128xf32, #tpu.memory_space<vmem>>, vector<1x128xf32>
    %c0_233 = arith.constant 0 : index
    %c256 = arith.constant 256 : index
    %213 = vector.load %arg20[%c0_233, %c256] : memref<2x1152xf32, #tpu.memory_space<vmem>>, vector<1x128xf32>
    tpu.vector_store %arg20[%c0_233, %c256], %212 {strides = array<i32>} : memref<2x1152xf32, #tpu.memory_space<vmem>>, vector<1x128xf32>,
    %c11_234 = arith.constant 11 : index
    %c0_235 = arith.constant 0 : index
    %214 = vector.load %arg19[%c11_234, %c0_235] : memref<146x128xf32, #tpu.memory_space<vmem>>, vector<1x128xf32>
    %c0_236 = arith.constant 0 : index
    %c384 = arith.constant 384 : index
    %215 = vector.load %arg20[%c0_236, %c384] : memref<2x1152xf32, #tpu.memory_space<vmem>>, vector<1x128xf32>
    tpu.vector_store %arg20[%c0_236, %c384], %214 {strides = array<i32>} : memref<2x1152xf32, #tpu.memory_space<vmem>>, vector<1x128xf32>,
    %c12_237 = arith.constant 12 : index
    %c0_238 = arith.constant 0 : index
    %216 = vector.load %arg19[%c12_237, %c0_238] : memref<146x128xf32, #tpu.memory_space<vmem>>, vector<1x128xf32>
    %c0_239 = arith.constant 0 : index
    %c512 = arith.constant 512 : index
    %217 = vector.load %arg20[%c0_239, %c512] : memref<2x1152xf32, #tpu.memory_space<vmem>>, vector<1x128xf32>
    tpu.vector_store %arg20[%c0_239, %c512], %216 {strides = array<i32>} : memref<2x1152xf32, #tpu.memory_space<vmem>>, vector<1x128xf32>,
    %c13_240 = arith.constant 13 : index
    %c0_241 = arith.constant 0 : index
    %218 = vector.load %arg19[%c13_240, %c0_241] : memref<146x128xf32, #tpu.memory_space<vmem>>, vector<1x128xf32>
    %c0_242 = arith.constant 0 : index
    %c640 = arith.constant 640 : index
    %219 = vector.load %arg20[%c0_242, %c640] : memref<2x1152xf32, #tpu.memory_space<vmem>>, vector<1x128xf32>
    tpu.vector_store %arg20[%c0_242, %c640], %218 {strides = array<i32>} : memref<2x1152xf32, #tpu.memory_space<vmem>>, vector<1x128xf32>,
    %c22_243 = arith.constant 22 : index
    %c0_244 = arith.constant 0 : index
    %220 = vector.load %arg19[%c22_243, %c0_244] : memref<146x128xf32, #tpu.memory_space<vmem>>, vector<1x128xf32>
    %c0_245 = arith.constant 0 : index
    %c768 = arith.constant 768 : index
    %221 = vector.load %arg20[%c0_245, %c768] : memref<2x1152xf32, #tpu.memory_space<vmem>>, vector<1x128xf32>
    tpu.vector_store %arg20[%c0_245, %c768], %220 {strides = array<i32>} : memref<2x1152xf32, #tpu.memory_space<vmem>>, vector<1x128xf32>,
    %c23_246 = arith.constant 23 : index
    %c0_247 = arith.constant 0 : index
    %222 = vector.load %arg19[%c23_246, %c0_247] : memref<146x128xf32, #tpu.memory_space<vmem>>, vector<1x128xf32>
    %c0_248 = arith.constant 0 : index
    %c896 = arith.constant 896 : index
    %223 = vector.load %arg20[%c0_248, %c896] : memref<2x1152xf32, #tpu.memory_space<vmem>>, vector<1x128xf32>
    tpu.vector_store %arg20[%c0_248, %c896], %222 {strides = array<i32>} : memref<2x1152xf32, #tpu.memory_space<vmem>>, vector<1x128xf32>,
    %c24_249 = arith.constant 24 : index
    %c0_250 = arith.constant 0 : index
    %224 = vector.load %arg19[%c24_249, %c0_250] : memref<146x128xf32, #tpu.memory_space<vmem>>, vector<1x128xf32>
    %c0_251 = arith.constant 0 : index
    %c1024 = arith.constant 1024 : index
    %225 = vector.load %arg20[%c0_251, %c1024] : memref<2x1152xf32, #tpu.memory_space<vmem>>, vector<1x128xf32>
    tpu.vector_store %arg20[%c0_251, %c1024], %224 {strides = array<i32>} : memref<2x1152xf32, #tpu.memory_space<vmem>>, vector<1x128xf32>,
    %c121 = arith.constant 121 : index
    %c0_252 = arith.constant 0 : index
    %226 = vector.load %arg19[%c121, %c0_252] : memref<146x128xf32, #tpu.memory_space<vmem>>, vector<1x128xf32>
    %c1_253 = arith.constant 1 : index
    %c0_254 = arith.constant 0 : index
    %227 = vector.load %arg20[%c1_253, %c0_254] : memref<2x1152xf32, #tpu.memory_space<vmem>>, vector<1x128xf32>
    tpu.vector_store %arg20[%c1_253, %c0_254], %226 {strides = array<i32>} : memref<2x1152xf32, #tpu.memory_space<vmem>>, vector<1x128xf32>,
    %c122 = arith.constant 122 : index
    %c0_255 = arith.constant 0 : index
    %228 = vector.load %arg19[%c122, %c0_255] : memref<146x128xf32, #tpu.memory_space<vmem>>, vector<1x128xf32>
    %c1_256 = arith.constant 1 : index
    %c128_257 = arith.constant 128 : index
    %229 = vector.load %arg20[%c1_256, %c128_257] : memref<2x1152xf32, #tpu.memory_space<vmem>>, vector<1x128xf32>
    tpu.vector_store %arg20[%c1_256, %c128_257], %228 {strides = array<i32>} : memref<2x1152xf32, #tpu.memory_space<vmem>>, vector<1x128xf32>,
    %c123 = arith.constant 123 : index
    %c0_258 = arith.constant 0 : index
    %230 = vector.load %arg19[%c123, %c0_258] : memref<146x128xf32, #tpu.memory_space<vmem>>, vector<1x128xf32>
    %c1_259 = arith.constant 1 : index
    %c256_260 = arith.constant 256 : index
    %231 = vector.load %arg20[%c1_259, %c256_260] : memref<2x1152xf32, #tpu.memory_space<vmem>>, vector<1x128xf32>
    tpu.vector_store %arg20[%c1_259, %c256_260], %230 {strides = array<i32>} : memref<2x1152xf32, #tpu.memory_space<vmem>>, vector<1x128xf32>,
    %c132 = arith.constant 132 : index
    %c0_261 = arith.constant 0 : index
    %232 = vector.load %arg19[%c132, %c0_261] : memref<146x128xf32, #tpu.memory_space<vmem>>, vector<1x128xf32>
    %c1_262 = arith.constant 1 : index
    %c384_263 = arith.constant 384 : index
    %233 = vector.load %arg20[%c1_262, %c384_263] : memref<2x1152xf32, #tpu.memory_space<vmem>>, vector<1x128xf32>
    tpu.vector_store %arg20[%c1_262, %c384_263], %232 {strides = array<i32>} : memref<2x1152xf32, #tpu.memory_space<vmem>>, vector<1x128xf32>,
    %c133 = arith.constant 133 : index
    %c0_264 = arith.constant 0 : index
    %234 = vector.load %arg19[%c133, %c0_264] : memref<146x128xf32, #tpu.memory_space<vmem>>, vector<1x128xf32>
    %c1_265 = arith.constant 1 : index
    %c512_266 = arith.constant 512 : index
    %235 = vector.load %arg20[%c1_265, %c512_266] : memref<2x1152xf32, #tpu.memory_space<vmem>>, vector<1x128xf32>
    tpu.vector_store %arg20[%c1_265, %c512_266], %234 {strides = array<i32>} : memref<2x1152xf32, #tpu.memory_space<vmem>>, vector<1x128xf32>,
    %c134 = arith.constant 134 : index
    %c0_267 = arith.constant 0 : index
    %236 = vector.load %arg19[%c134, %c0_267] : memref<146x128xf32, #tpu.memory_space<vmem>>, vector<1x128xf32>
    %c1_268 = arith.constant 1 : index
    %c640_269 = arith.constant 640 : index
    %237 = vector.load %arg20[%c1_268, %c640_269] : memref<2x1152xf32, #tpu.memory_space<vmem>>, vector<1x128xf32>
    tpu.vector_store %arg20[%c1_268, %c640_269], %236 {strides = array<i32>} : memref<2x1152xf32, #tpu.memory_space<vmem>>, vector<1x128xf32>,
    %c143 = arith.constant 143 : index
    %c0_270 = arith.constant 0 : index
    %238 = vector.load %arg19[%c143, %c0_270] : memref<146x128xf32, #tpu.memory_space<vmem>>, vector<1x128xf32>
    %c1_271 = arith.constant 1 : index
    %c768_272 = arith.constant 768 : index
    %239 = vector.load %arg20[%c1_271, %c768_272] : memref<2x1152xf32, #tpu.memory_space<vmem>>, vector<1x128xf32>
    tpu.vector_store %arg20[%c1_271, %c768_272], %238 {strides = array<i32>} : memref<2x1152xf32, #tpu.memory_space<vmem>>, vector<1x128xf32>,
    %c144 = arith.constant 144 : index
    %c0_273 = arith.constant 0 : index
    %240 = vector.load %arg19[%c144, %c0_273] : memref<146x128xf32, #tpu.memory_space<vmem>>, vector<1x128xf32>
    %c1_274 = arith.constant 1 : index
    %c896_275 = arith.constant 896 : index
    %241 = vector.load %arg20[%c1_274, %c896_275] : memref<2x1152xf32, #tpu.memory_space<vmem>>, vector<1x128xf32>
    tpu.vector_store %arg20[%c1_274, %c896_275], %240 {strides = array<i32>} : memref<2x1152xf32, #tpu.memory_space<vmem>>, vector<1x128xf32>,
    %c145 = arith.constant 145 : index
    %c0_276 = arith.constant 0 : index
    %242 = vector.load %arg19[%c145, %c0_276] : memref<146x128xf32, #tpu.memory_space<vmem>>, vector<1x128xf32>
    %c1_277 = arith.constant 1 : index
    %c1024_278 = arith.constant 1024 : index
    %243 = vector.load %arg20[%c1_277, %c1024_278] : memref<2x1152xf32, #tpu.memory_space<vmem>>, vector<1x128xf32>
    tpu.vector_store %arg20[%c1_277, %c1024_278], %242 {strides = array<i32>} : memref<2x1152xf32, #tpu.memory_space<vmem>>, vector<1x128xf32>,
    %c0_279 = arith.constant 0 : index
    %c0_280 = arith.constant 0 : index
    %244 = vector.load %arg20[%c0_279, %c0_280] : memref<2x1152xf32, #tpu.memory_space<vmem>>, vector<2x1152xf32>
    %c0_281 = arith.constant 0 : index
    %c0_282 = arith.constant 0 : index
    %245 = vector.load %arg9[%c0_281, %c0_282] : memref<1152x512xf32, #tpu.memory_space<vmem>>, vector<1152x512xf32>
    %cst_283 = arith.constant dense<0.000000e+00> : vector<2x512xf32>
    %246 = tpu.matmul %244, %245, %cst_283 {dimension_numbers = #tpu.dot_dimension_numbers<[1], [0], [0], [1], [0, 0, 1, 1], [], []>} : vector<2x1152xf32>, vector<1152x512xf32>, vector<2x512xf32> -> vector<2x512xf32>
    %c0_284 = arith.constant 0 : index
    %c0_285 = arith.constant 0 : index
    %247 = vector.load %arg10[%c0_284, %c0_285] : memref<1x512xf32, #tpu.memory_space<vmem>>, vector<1x512xf32>
    %248 = vector.broadcast %247 : vector<1x512xf32> to vector<2x512xf32>
    %249 = arith.addf %246, %248 : vector<2x512xf32>
    %cst_286 = arith.constant 0.000000e+00 : f32
    %250 = vector.broadcast %cst_286 : f32 to vector<2x512xf32>
    %251 = arith.maximumf %249, %250 : vector<2x512xf32>
    %c0_287 = arith.constant 0 : index
    %c0_288 = arith.constant 0 : index
    %252 = vector.load %arg11[%c0_287, %c0_288] : memref<512x128xf32, #tpu.memory_space<vmem>>, vector<512x128xf32>
    %cst_289 = arith.constant dense<0.000000e+00> : vector<2x128xf32>
    %253 = tpu.matmul %251, %252, %cst_289 {dimension_numbers = #tpu.dot_dimension_numbers<[1], [0], [0], [1], [0, 0, 1, 1], [], []>} : vector<2x512xf32>, vector<512x128xf32>, vector<2x128xf32> -> vector<2x128xf32>
    %c0_290 = arith.constant 0 : index
    %c0_291 = arith.constant 0 : index
    %254 = vector.load %arg12[%c0_290, %c0_291] : memref<1x128xf32, #tpu.memory_space<vmem>>, vector<1x128xf32>
    %255 = vector.broadcast %254 : vector<1x128xf32> to vector<2x128xf32>
    %256 = arith.addf %253, %255 : vector<2x128xf32>
    %cst_292 = arith.constant 0.000000e+00 : f32
    %257 = vector.broadcast %cst_292 : f32 to vector<2x128xf32>
    %258 = arith.maximumf %256, %257 : vector<2x128xf32>
    %c0_293 = arith.constant 0 : index
    %c0_294 = arith.constant 0 : index
    %259 = vector.load %arg13[%c0_293, %c0_294] : memref<128x1xf32, #tpu.memory_space<vmem>>, vector<128x1xf32>
    %cst_295 = arith.constant dense<0.000000e+00> : vector<2x1xf32>
    %260 = tpu.matmul %258, %259, %cst_295 {dimension_numbers = #tpu.dot_dimension_numbers<[1], [0], [0], [1], [0, 0, 1, 1], [], []>} : vector<2x128xf32>, vector<128x1xf32>, vector<2x1xf32> -> vector<2x1xf32>
    %c0_296 = arith.constant 0 : index
    %c0_297 = arith.constant 0 : index
    %261 = vector.load %arg14[%c0_296, %c0_297] : memref<1x1xf32, #tpu.memory_space<vmem>>, vector<1x1xf32>
    %262 = vector.broadcast %261 : vector<1x1xf32> to vector<2x1xf32>
    %263 = arith.addf %260, %262 : vector<2x1xf32>
    %c0_298 = arith.constant 0 : index
    %c0_299 = arith.constant 0 : index
    %264 = vector.load %arg15[%c0_298, %c0_299] : memref<2x1xf32, #tpu.memory_space<vmem>>, vector<2x1xf32>
    tpu.vector_store %arg15[%c0_298, %c0_299], %263 {strides = array<i32>} : memref<2x1xf32, #tpu.memory_space<vmem>>, vector<2x1xf32>,
    return
  }
}

</mosaic_0001>

<bundles_post_ra>
// kernel: cnn_ver3_forward.1
= control target key start
LH: loop header
LB: loop body
LE: loop exit
PB: predicated region body
PF: predicated region fallthrough
CT: control target
= control target key end

     0   :  { %s13778_s0 = inlined_call_operand.vmem [shape: f32[242,6], index: 0, kind: input, shape index: {}]   ;;  %s13779_s1 = inlined_call_operand.hbm [shape: f32[9,6,16], index: 1, kind: input, shape index: {}]   ;;  %s13780_s2 = inlined_call_operand.hbm [shape: f32[1,16], index: 2, kind: input, shape index: {}]   ;;  %s13781_s3 = inlined_call_operand.hbm [shape: f32[9,16,32], index: 3, kind: input, shape index: {}]   ;;  %s13782_s4 = inlined_call_operand.hbm [shape: f32[1,32], index: 4, kind: input, shape index: {}]   ;;  %s13783_s5 = inlined_call_operand.hbm [shape: f32[9,32,64], index: 5, kind: input, shape index: {}]   ;;  %s13784_s6 = inlined_call_operand.hbm [shape: f32[1,64], index: 6, kind: input, shape index: {}]   ;;  %s13785_s7 = inlined_call_operand.hbm [shape: f32[9,64,128], index: 7, kind: input, shape index: {}]   ;;  %s13786_s8 = inlined_call_operand.hbm [shape: f32[1,128], index: 8, kind: input, shape index: {}]   ;;  %s13787_s9 = inlined_call_operand.hbm [shape: f32[1152,512], index: 9, kind: input, shape index: {}]   ;;  %s13788_s10 = inlined_call_operand.hbm [shape: f32[1,512], index: 10, kind: input, shape index: {}]   ;;  %s13789_s11 = inlined_call_operand.hbm [shape: f32[512,128], index: 11, kind: input, shape index: {}]   ;;  %s13790_s12 = inlined_call_operand.hbm [shape: f32[1,128], index: 12, kind: input, shape index: {}]   ;;  %s13791_s13 = inlined_call_operand.vmem [shape: f32[128,1], index: 13, kind: input, shape index: {}]   ;;  %s13792_s14 = inlined_call_operand.<no memory space> [shape: f32[1,1], index: 14, kind: input, shape index: {}]   ;;  %s13793_s15 = inlined_call_operand.vmem [shape: f32[2,1], index: 15, kind: output, shape index: {}]  }
   0x1   :  { %v20_v0 = vstv %s13792_s14 }
   0x2   :  { %21 = vst [vmem:[#allocation7] sm:$0x1] %v20_v0 }
   0x3   :  { %22 = vsyncpa [#allocation9], 0 }
   0x4   :  { %23 = vsyncpa [#allocation11], 0 }
   0x5   :  { %24 = vsyncpa [#allocation14], 0 }
   0x6   :  { %25 = vsyncpa [#allocation17], 0 }
   0x7   :  { %26 = vsyncpa [#allocation20], 0 }
   0x8   :  { %27 = vsyncpa [#allocation23], 0  ;;  %s49_s22 = sshll.u32 %s13780_s2, 4  ;;  %s50_s22 = int_to_ptr.hbm [resolvable:$true] %s49_s22 }
   0x9   :  { %28 = vsyncpa [#allocation26], 0  ;;  %s10681_s23 = smov [#allocation10]   ;;  %s73_s14 = sshll.u32 %s13782_s4, 4  ;;  %s74_s14 = int_to_ptr.hbm [resolvable:$true] %s73_s14 }
   0xa   :  { %s51_s24 = sshll.u32 %s10681_s23, 4  ;;  %s10682_s27 = smov [#allocation13]   ;;  %s52_s24 = int_to_ptr.vmem [resolvable:$true] %s51_s24 }
   0xb   :  { %54 = dma.hbm_to_vmem [thread:$0]  %s50_s22, 16, %s52_s24, [#allocation11]  }
   0xc   :  { %s75_s28 = sshll.u32 %s10682_s27, 4  ;;  %s97_s16 = sshll.u32 %s13784_s6, 4  ;;  %s76_s28 = int_to_ptr.vmem [resolvable:$true] %s75_s28  ;;  %s98_s16 = int_to_ptr.hbm [resolvable:$true] %s97_s16 }
   0xd   :  { %78 = dma.hbm_to_vmem [thread:$0]  %s74_s14, 16, %s76_s28, [#allocation14]  }
   0xe   :  { %s121_s18 = sshll.u32 %s13786_s8, 4  ;;  %s10683_s19 = smov [#allocation16]   ;;  %s122_s18 = int_to_ptr.hbm [resolvable:$true] %s121_s18 }
   0xf   :  { %s99_s20 = sshll.u32 %s10683_s19, 4  ;;  %s10684_s4 = smov [#allocation19]   ;;  %s100_s20 = int_to_ptr.vmem [resolvable:$true] %s99_s20 }
  0x10   :  { %102 = dma.hbm_to_vmem [thread:$0]  %s98_s16, 16, %s100_s20, [#allocation17]  }
  0x11   :  { %s123_s21 = sshll.u32 %s10684_s4, 4  ;;  %s145_s24 = sshll.u32 %s13788_s10, 4  ;;  %s124_s21 = int_to_ptr.vmem [resolvable:$true] %s123_s21  ;;  %s146_s24 = int_to_ptr.hbm [resolvable:$true] %s145_s24 }
  0x12   :  { %126 = dma.hbm_to_vmem [thread:$0]  %s122_s18, 16, %s124_s21, [#allocation20]  }
  0x13   :  { %s35_s26 = sshll.u32 %s13779_s1, 4  ;;  %s10685_s14 = smov [#allocation22]   ;;  %s36_s26 = int_to_ptr.hbm [resolvable:$true] %s35_s26 }
  0x14   :  { %s147_s8 = sshll.u32 %s10685_s14, 4  ;;  %s10686_s27 = smov [#allocation8]   ;;  %s148_s8 = int_to_ptr.vmem [resolvable:$true] %s147_s8 }
  0x15   :  { %150 = dma.hbm_to_vmem [thread:$0]  %s146_s24, 64, %s148_s8, [#allocation23]  }
  0x16   :  { %s37_s28 = sshll.u32 %s10686_s27, 4  ;;  %s10687_s29 = smov 128   ;;  %s38_s28 = int_to_ptr.vmem [resolvable:$true] %s37_s28 }
  0x17   :  { %s10688_s30 = smov 8   ;;  %s59_s2 = sshll.u32 %s13781_s3, 4  ;;  %s60_s2 = int_to_ptr.hbm [resolvable:$true] %s59_s2 }
  0x18   :  { %43 = dma.hbm_to_vmem [thread:$0]  %s36_s26, 1152, %s38_s28, [#allocation9], %s10687_s29, %s10687_s29, %s10688_s30  }
  0x19   :  { %s10689_s1 = smov [#allocation12]   ;;  %s83_s20 = sshll.u32 %s13783_s5, 4  ;;  %s84_s20 = int_to_ptr.hbm [resolvable:$true] %s83_s20 }
  0x1a   :  { %s61_s17 = sshll.u32 %s10689_s1, 4  ;;  %s10690_s4 = smov [#allocation15]   ;;  %s62_s17 = int_to_ptr.vmem [resolvable:$true] %s61_s17 }
  0x1b   :  { %67 = dma.hbm_to_vmem [thread:$0]  %s60_s2, 2304, %s62_s17, [#allocation11], %s10687_s29, %s10687_s29, %s10688_s30  }
  0x1c   :  { %s85_s21 = sshll.u32 %s10690_s4, 4  ;;  %s107_s24 = sshll.u32 %s13785_s7, 4  ;;  %s86_s21 = int_to_ptr.vmem [resolvable:$true] %s85_s21  ;;  %s108_s24 = int_to_ptr.hbm [resolvable:$true] %s107_s24 }
  0x1d   :  { %91 = dma.hbm_to_vmem [thread:$0]  %s84_s20, 4608, %s86_s21, [#allocation14], %s10687_s29, %s10687_s29, %s10688_s30  }
  0x1e   :  { %s131_s5 = sshll.u32 %s13787_s9, 4  ;;  %s10691_s25 = smov [#allocation18]   ;;  %s132_s5 = int_to_ptr.hbm [resolvable:$true] %s131_s5 }
  0x1f   :  { %s109_s26 = sshll.u32 %s10691_s25, 4  ;;  %s10692_s14 = smov [#allocation21]   ;;  %s110_s26 = int_to_ptr.vmem [resolvable:$true] %s109_s26 }
  0x20   :  { %115 = dma.hbm_to_vmem [thread:$0]  %s108_s24, 9216, %s110_s26, [#allocation17], %s10687_s29, %s10687_s29, %s10688_s30  }
  0x21   :  { %s133_s7 = sshll.u32 %s10692_s14, 4  ;;  %s10693_s8 = smov 512   ;;  %s134_s7 = int_to_ptr.vmem [resolvable:$true] %s133_s7 }
  0x22   :  { %s10694_s27 = smov 32   ;;  %s155_s16 = sshll.u32 %s13789_s11, 4  ;;  %s156_s16 = int_to_ptr.hbm [resolvable:$true] %s155_s16 }
  0x23   :  { %139 = dma.hbm_to_vmem [thread:$0]  %s132_s5, 73728, %s134_s7, [#allocation20], %s10693_s8, %s10693_s8, %s10694_s27  }
  0x24   :  { %s10695_s9 = smov [#allocation24]   ;;  %s169_s18 = sshll.u32 %s13790_s12, 4  ;;  %s170_s18 = int_to_ptr.hbm [resolvable:$true] %s169_s18 }
  0x25   :  { %s157_s2 = sshll.u32 %s10695_s9, 4  ;;  %s10696_s19 = smov [#allocation25]   ;;  %s158_s2 = int_to_ptr.vmem [resolvable:$true] %s157_s2 }
  0x26   :  { %163 = dma.hbm_to_vmem [thread:$0]  %s156_s16, 8192, %s158_s2, [#allocation23], %s10687_s29, %s10687_s29, %s10688_s30  }
  0x27   :  { %s171_s20 = sshll.u32 %s10696_s19, 4  ;;  %s172_s20 = int_to_ptr.vmem [resolvable:$true] %s171_s20 }
  0x28   :  { %174 = dma.hbm_to_vmem [thread:$0]  %s170_s18, 16, %s172_s20, [#allocation26]  }
  0x29   :  { %10667 = dma.done.wait [#allocation9], 1152  }
  0x2a   :  { %10668 = vsyncadd [#allocation9], 4294966144 }
  0x2b   :  { %10669 = dma.done.wait [#allocation11], 2320  }
  0x2c   :  { %10670 = vsyncadd [#allocation11], 4294964976 }
  0x2d   :  { %10671 = dma.done.wait [#allocation14], 4624  }
  0x2e   :  { %10672 = vsyncadd [#allocation14], 4294962672 }
  0x2f   :  { %10673 = dma.done.wait [#allocation17], 9232  }
  0x30   :  { %10674 = vsyncadd [#allocation17], 4294958064 }
  0x31   :  { %10675 = dma.done.wait [#allocation20], 73744  }
  0x32   :  { %10676 = vsyncadd [#allocation20], 4294893552 }
  0x33   :  { %10677 = dma.done.wait [#allocation23], 8256  }
  0x34   :  { %10678 = vsyncadd [#allocation23], 4294959040 }
  0x35   :  { %10679 = dma.done.wait [#allocation26], 16  }
  0x36   :  { %10680 = vsyncadd [#allocation26], 4294967280  ;;  %vm371_vm0 = vcmask 1045504   ;;  %vm286_vm1 = vcmask 48128   ;;  %v285_v1 = vld [vmem:[#allocation8 + $0x8] sm:$0x3f] }
  0x37   :  { %v255_v2 = vld [vmem:[#allocation8] sm:$0x3f]  ;;  %v693_v3 = vld [vmem:[#allocation8 + $0x10] sm:$0x3f]  ;;  %9495 = vmatpush.msk.msra.mxu0 %vm371_vm0, %v285_v1  ;;  %v256_v4 = vld [vmem:[%s13778_s0 + $0x1] sm:$0xff]  ;;  %vm2446_vm2 = vcmask 130048  }
  0x38   :  { %9524 = vmatpush.msk.msra.mxu1 %vm371_vm0, %v255_v2  ;;  %v227_v5 = vld [vmem:[%s13778_s0] sm:$0xff]  ;;  %9553 = vmatpush.msk.msra.mxu2 %vm371_vm0, %v693_v3  ;;  %v691_v7 = vld [vmem:[%s13778_s0 + $0xda] sm:$0x3]  ;;  %v257_v9 = vld [vmem:[%s13778_s0 + $0x9] sm:$0xff]  ;;  %vm2474_vm3 = vcmask 123904   ;;  %vm4459_vm4 = vcmask 261120  }
  0x39   :  { %v664_v6 = vld [vmem:[%s13778_s0 + $0x2] sm:$0xff]  ;;  %10350 = vmatpush.msk.msra.mxu3 %vm371_vm0, %v693_v3  ;;  %9496 = vmatmul.msk.f32.vlgmr.msra.gmra.mxu0 %vm286_vm1, %v256_v4  ;;  %v665_v11 = vld [vmem:[%s13778_s0 + $0xa] sm:$0xff]  ;;  %v666_v15 = vld [vmem:[%s13778_s0 + $0x12] sm:$0xff]  ;;  %vm4484_vm5 = vcmask 254976   ;;  %vm6271_vm6 = vcmask 523264   ;;  %vm6293_vm7 = vcmask 517120  }
  0x3a   :  { %v939_v8 = vld [vmem:[#allocation8 + $0x18] sm:$0x3f]  ;;  %9525 = vmatmul.msk.f32.vlgmr.msra.gmra.mxu1 %vm286_vm1, %v227_v5  ;;  %9554 = vmatmul.msk.f32.vlgmr.msra.gmra.mxu2 %vm286_vm1, %v664_v6  ;;  %v910_v12 = vld [vmem:[%s13778_s0 + $0xb] sm:$0xff]  ;;  %v911_v16 = vld [vmem:[%s13778_s0 + $0x13] sm:$0xff]  ;;  %vm9482_vm8 = vcmask 1024  }
  0x3b   :  { %9581 = vmatmul.msk.f32.vlgmr.msra.gmra.mxu3 %vm286_vm1, %v691_v7  ;;  %v228_v10 = vld [vmem:[%s13778_s0 + $0x8] sm:$0xff]  ;;  %v258_v13 = vld [vmem:[%s13778_s0 + $0x11] sm:$0xff]  ;;  %v259_v17 = vld [vmem:[%s13778_s0 + $0x19] sm:$0xff] }
  0x3c   :  { %9582 = vmatpush.msk.msrb.mxu3 %vm371_vm0, %v939_v8  ;;  %v229_v14 = vld [vmem:[%s13778_s0 + $0x10] sm:$0xff]  ;;  %v230_v18 = vld [vmem:[%s13778_s0 + $0x18] sm:$0xff]  ;;  %v260_v21 = vld [vmem:[%s13778_s0 + $0x21] sm:$0xff] }
  0x3d   :  { %v667_v19 = vld [vmem:[%s13778_s0 + $0x1a] sm:$0xff]  ;;  %v668_v23 = vld [vmem:[%s13778_s0 + $0x22] sm:$0xff]  ;;  %v669_v27 = vld [vmem:[%s13778_s0 + $0x2a] sm:$0xff] }
  0x3e   :  { %v912_v20 = vld [vmem:[%s13778_s0 + $0x1b] sm:$0xff]  ;;  %v913_v24 = vld [vmem:[%s13778_s0 + $0x23] sm:$0xff]  ;;  %v914_v28 = vld [vmem:[%s13778_s0 + $0x2b] sm:$0xff] }
  0x3f   :  { %v231_v22 = vld [vmem:[%s13778_s0 + $0x20] sm:$0xff]  ;;  %v261_v25 = vld [vmem:[%s13778_s0 + $0x29] sm:$0xff]  ;;  %v262_v29 = vld [vmem:[%s13778_s0 + $0x31] sm:$0xff] }
  0x40   :  { %v232_v26 = vld [vmem:[%s13778_s0 + $0x28] sm:$0xff]  ;;  %v233_v30 = vld [vmem:[%s13778_s0 + $0x30] sm:$0xff]  ;;  %v263_v33 = vld [vmem:[%s13778_s0 + $0x39] sm:$0xff] }
  0x41   :  { %9497 = vmatmul.msk.f32.gmra.mxu0 %vm286_vm1, %v257_v9  ;;  %v670_v31 = vld [vmem:[%s13778_s0 + $0x32] sm:$0xff]  ;;  %v671_v35 = vld [vmem:[%s13778_s0 + $0x3a] sm:$0xff]  ;;  %v1185_v37 = vld [vmem:[#allocation8 + $0x20] sm:$0x3f] }
  0x42   :  { %9526 = vmatmul.msk.f32.gmra.mxu1 %vm286_vm1, %v228_v10  ;;  %9555 = vmatmul.msk.f32.gmra.mxu2 %vm286_vm1, %v665_v11  ;;  %v915_v32 = vld [vmem:[%s13778_s0 + $0x33] sm:$0xff]  ;;  %v916_v36 = vld [vmem:[%s13778_s0 + $0x3b] sm:$0xff]  ;;  %v917_v41 = vld [vmem:[%s13778_s0 + $0x43] sm:$0xff] }
  0x43   :  { %9583 = vmatmul.msk.f32.vlgmr.msrb.gmra.mxu3 %vm286_vm1, %v910_v12  ;;  %v234_v34 = vld [vmem:[%s13778_s0 + $0x38] sm:$0xff]  ;;  %9611 = vmatpush.msk.msrb.mxu0 %vm371_vm0, %v1185_v37  ;;  %v264_v38 = vld [vmem:[%s13778_s0 + $0x41] sm:$0xff]  ;;  %v265_v42 = vld [vmem:[%s13778_s0 + $0x49] sm:$0xff] }
  0x44   :  { %v235_v39 = vld [vmem:[%s13778_s0 + $0x40] sm:$0xff]  ;;  %v236_v43 = vld [vmem:[%s13778_s0 + $0x48] sm:$0xff]  ;;  %v266_v46 = vld [vmem:[%s13778_s0 + $0x51] sm:$0xff] }
  0x45   :  { %v672_v40 = vld [vmem:[%s13778_s0 + $0x42] sm:$0xff]  ;;  %v673_v44 = vld [vmem:[%s13778_s0 + $0x4a] sm:$0xff]  ;;  %v674_v48 = vld [vmem:[%s13778_s0 + $0x52] sm:$0xff] }
  0x46   :  { %v918_v45 = vld [vmem:[%s13778_s0 + $0x4b] sm:$0xff]  ;;  %v919_v49 = vld [vmem:[%s13778_s0 + $0x53] sm:$0xff]  ;;  %v920_v53 = vld [vmem:[%s13778_s0 + $0x5b] sm:$0xff] }
  0x47   :  { %v237_v47 = vld [vmem:[%s13778_s0 + $0x50] sm:$0xff]  ;;  %v267_v50 = vld [vmem:[%s13778_s0 + $0x59] sm:$0xff]  ;;  %v268_v54 = vld [vmem:[%s13778_s0 + $0x61] sm:$0xff] }
  0x48   :  { %v238_v51 = vld [vmem:[%s13778_s0 + $0x58] sm:$0xff]  ;;  %v239_v55 = vld [vmem:[%s13778_s0 + $0x60] sm:$0xff]  ;;  %v269_v58 = vld [vmem:[%s13778_s0 + $0x69] sm:$0xff] }
  0x49   :  { %9498 = vmatmul.msk.f32.gmra.mxu0 %vm286_vm1, %v258_v13  ;;  %v675_v52 = vld [vmem:[%s13778_s0 + $0x5a] sm:$0xff]  ;;  %v676_v56 = vld [vmem:[%s13778_s0 + $0x62] sm:$0xff]  ;;  %v677_v60 = vld [vmem:[%s13778_s0 + $0x6a] sm:$0xff] }
  0x4a   :  { %9527 = vmatmul.msk.f32.gmra.mxu1 %vm286_vm1, %v229_v14  ;;  %9556 = vmatmul.msk.f32.gmra.mxu2 %vm286_vm1, %v666_v15  ;;  %v921_v57 = vld [vmem:[%s13778_s0 + $0x63] sm:$0xff]  ;;  %v922_v61 = vld [vmem:[%s13778_s0 + $0x6b] sm:$0xff]  ;;  %v923_v1 = vld [vmem:[%s13778_s0 + $0x73] sm:$0xff] }
  0x4b   :  { %9584 = vmatmul.msk.f32.gmra.mxu3 %vm286_vm1, %v911_v16  ;;  %v240_v59 = vld [vmem:[%s13778_s0 + $0x68] sm:$0xff]  ;;  %v270_v62 = vld [vmem:[%s13778_s0 + $0x71] sm:$0xff]  ;;  %v271_v2 = vld [vmem:[%s13778_s0 + $0x79] sm:$0xff] }
  0x4c   :  { %v241_v63 = vld [vmem:[%s13778_s0 + $0x70] sm:$0xff]  ;;  %v242_v3 = vld [vmem:[%s13778_s0 + $0x78] sm:$0xff]  ;;  %v272_v8 = vld [vmem:[%s13778_s0 + $0x81] sm:$0xff] }
  0x4d   :  { %v678_v0 = vld [vmem:[%s13778_s0 + $0x72] sm:$0xff]  ;;  %v679_v4 = vld [vmem:[%s13778_s0 + $0x7a] sm:$0xff]  ;;  %v680_v10 = vld [vmem:[%s13778_s0 + $0x82] sm:$0xff] }
  0x4e   :  { %v924_v5 = vld [vmem:[%s13778_s0 + $0x7b] sm:$0xff]  ;;  %v925_v11 = vld [vmem:[%s13778_s0 + $0x83] sm:$0xff] }
  0x4f   :  { %v243_v9 = vld [vmem:[%s13778_s0 + $0x80] sm:$0xff]  ;;  %v273_v16 = vld [vmem:[%s13778_s0 + $0x89] sm:$0xff] }
  0x51   :  { %9499 = vmatmul.msk.f32.gmra.mxu0 %vm286_vm1, %v259_v17  ;;  %v244_v17 = vld [vmem:[%s13778_s0 + $0x88] sm:$0xff] }
  0x52   :  { %9528 = vmatmul.msk.f32.gmra.mxu1 %vm286_vm1, %v230_v18  ;;  %9557 = vmatmul.msk.f32.gmra.mxu2 %vm286_vm1, %v667_v19  ;;  %v681_v18 = vld [vmem:[%s13778_s0 + $0x8a] sm:$0xff] }
  0x53   :  { %9585 = vmatmul.msk.f32.gmra.mxu3 %vm286_vm1, %v912_v20  ;;  %v926_v19 = vld [vmem:[%s13778_s0 + $0x8b] sm:$0xff] }
  0x59   :  { %9500 = vmatmul.msk.f32.gmra.mxu0 %vm286_vm1, %v260_v21 }
  0x5a   :  { %9529 = vmatmul.msk.f32.gmra.mxu1 %vm286_vm1, %v231_v22  ;;  %9558 = vmatmul.msk.f32.gmra.mxu2 %vm286_vm1, %v668_v23 }
  0x5b   :  { %9586 = vmatmul.msk.f32.gmra.mxu3 %vm286_vm1, %v913_v24 }
  0x61   :  { %9501 = vmatmul.msk.f32.gmra.mxu0 %vm286_vm1, %v261_v25 }
  0x62   :  { %9530 = vmatmul.msk.f32.gmra.mxu1 %vm286_vm1, %v232_v26  ;;  %9559 = vmatmul.msk.f32.gmra.mxu2 %vm286_vm1, %v669_v27  ;;  %v274_v27 = vld [vmem:[%s13778_s0 + $0x91] sm:$0xff] }
  0x63   :  { %9587 = vmatmul.msk.f32.gmra.mxu3 %vm286_vm1, %v914_v28  ;;  %v245_v28 = vld [vmem:[%s13778_s0 + $0x90] sm:$0xff] }
  0x69   :  { %9502 = vmatmul.msk.f32.gmra.mxu0 %vm286_vm1, %v262_v29  ;;  %v682_v29 = vld [vmem:[%s13778_s0 + $0x92] sm:$0xff] }
  0x6a   :  { %9531 = vmatmul.msk.f32.gmra.mxu1 %vm286_vm1, %v233_v30  ;;  %9560 = vmatmul.msk.f32.gmra.mxu2 %vm286_vm1, %v670_v31  ;;  %v927_v30 = vld [vmem:[%s13778_s0 + $0x93] sm:$0xff] }
  0x6b   :  { %9588 = vmatmul.msk.f32.gmra.mxu3 %vm286_vm1, %v915_v32 }
  0x71   :  { %9503 = vmatmul.msk.f32.gmra.mxu0 %vm286_vm1, %v263_v33 }
  0x72   :  { %9532 = vmatmul.msk.f32.gmra.mxu1 %vm286_vm1, %v234_v34  ;;  %9561 = vmatmul.msk.f32.gmra.mxu2 %vm286_vm1, %v671_v35 }
  0x73   :  { %9589 = vmatmul.msk.f32.gmra.mxu3 %vm286_vm1, %v916_v36 }
  0x79   :  { %9504 = vmatmul.msk.f32.gmra.mxu0 %vm286_vm1, %v264_v38  ;;  %v275_v38 = vld [vmem:[%s13778_s0 + $0x99] sm:$0xff] }
  0x7a   :  { %9533 = vmatmul.msk.f32.gmra.mxu1 %vm286_vm1, %v235_v39  ;;  %9562 = vmatmul.msk.f32.gmra.mxu2 %vm286_vm1, %v672_v40  ;;  %v246_v39 = vld [vmem:[%s13778_s0 + $0x98] sm:$0xff] }
  0x7b   :  { %9590 = vmatmul.msk.f32.gmra.mxu3 %vm286_vm1, %v917_v41  ;;  %v683_v40 = vld [vmem:[%s13778_s0 + $0x9a] sm:$0xff] }
  0x7c   :  { %v928_v41 = vld [vmem:[%s13778_s0 + $0x9b] sm:$0xff] }
  0x81   :  { %9505 = vmatmul.msk.f32.gmra.mxu0 %vm286_vm1, %v265_v42 }
  0x82   :  { %9534 = vmatmul.msk.f32.gmra.mxu1 %vm286_vm1, %v236_v43  ;;  %9563 = vmatmul.msk.f32.gmra.mxu2 %vm286_vm1, %v673_v44 }
  0x83   :  { %9591 = vmatmul.msk.f32.gmra.mxu3 %vm286_vm1, %v918_v45 }
  0x89   :  { %9506 = vmatmul.msk.f32.gmra.mxu0 %vm286_vm1, %v266_v46 }
  0x8a   :  { %9535 = vmatmul.msk.f32.gmra.mxu1 %vm286_vm1, %v237_v47  ;;  %9564 = vmatmul.msk.f32.gmra.mxu2 %vm286_vm1, %v674_v48 }
  0x8b   :  { %9592 = vmatmul.msk.f32.gmra.mxu3 %vm286_vm1, %v919_v49  ;;  %v276_v49 = vld [vmem:[%s13778_s0 + $0xa1] sm:$0xff] }
  0x91   :  { %9507 = vmatmul.msk.f32.gmra.mxu0 %vm286_vm1, %v267_v50  ;;  %v247_v50 = vld [vmem:[%s13778_s0 + $0xa0] sm:$0xff] }
  0x92   :  { %9536 = vmatmul.msk.f32.gmra.mxu1 %vm286_vm1, %v238_v51  ;;  %9565 = vmatmul.msk.f32.gmra.mxu2 %vm286_vm1, %v675_v52  ;;  %v684_v51 = vld [vmem:[%s13778_s0 + $0xa2] sm:$0xff] }
  0x93   :  { %9593 = vmatmul.msk.f32.gmra.mxu3 %vm286_vm1, %v920_v53  ;;  %v929_v52 = vld [vmem:[%s13778_s0 + $0xa3] sm:$0xff] }
  0x99   :  { %9508 = vmatmul.msk.f32.gmra.mxu0 %vm286_vm1, %v268_v54 }
  0x9a   :  { %9537 = vmatmul.msk.f32.gmra.mxu1 %vm286_vm1, %v239_v55  ;;  %9566 = vmatmul.msk.f32.gmra.mxu2 %vm286_vm1, %v676_v56 }
  0x9b   :  { %9594 = vmatmul.msk.f32.gmra.mxu3 %vm286_vm1, %v921_v57 }
  0xa1   :  { %9509 = vmatmul.msk.f32.gmra.mxu0 %vm286_vm1, %v269_v58 }
  0xa2   :  { %9538 = vmatmul.msk.f32.gmra.mxu1 %vm286_vm1, %v240_v59  ;;  %9567 = vmatmul.msk.f32.gmra.mxu2 %vm286_vm1, %v677_v60  ;;  %v277_v60 = vld [vmem:[%s13778_s0 + $0xa9] sm:$0xff] }
  0xa3   :  { %9595 = vmatmul.msk.f32.gmra.mxu3 %vm286_vm1, %v922_v61  ;;  %v248_v61 = vld [vmem:[%s13778_s0 + $0xa8] sm:$0xff] }
  0xa9   :  { %9510 = vmatmul.msk.f32.gmra.mxu0 %vm286_vm1, %v270_v62  ;;  %v685_v62 = vld [vmem:[%s13778_s0 + $0xaa] sm:$0xff] }
  0xaa   :  { %9539 = vmatmul.msk.f32.gmra.mxu1 %vm286_vm1, %v241_v63  ;;  %9568 = vmatmul.msk.f32.gmra.mxu2 %vm286_vm1, %v678_v0  ;;  %v930_v63 = vld [vmem:[%s13778_s0 + $0xab] sm:$0xff] }
  0xab   :  { %9596 = vmatmul.msk.f32.gmra.mxu3 %vm286_vm1, %v923_v1 }
  0xb1   :  { %9511 = vmatmul.msk.f32.gmra.mxu0 %vm286_vm1, %v271_v2 }
  0xb2   :  { %9540 = vmatmul.msk.f32.gmra.mxu1 %vm286_vm1, %v242_v3  ;;  %9569 = vmatmul.msk.f32.gmra.mxu2 %vm286_vm1, %v679_v4 }
  0xb3   :  { %9597 = vmatmul.msk.f32.gmra.mxu3 %vm286_vm1, %v924_v5 }
  0xb6   :  { %v392_v6 = vpop.f32.mrf.mxu0 }
  0xb7   :  { %v580_v7 = vpop.f32.mrf.mxu1 }
  0xb8   :  { %v581_v20 = vadd.f32 %v580_v7, %v392_v6  ;;  %v278_v7 = vld [vmem:[%s13778_s0 + $0xb1] sm:$0xff] }
  0xb9   :  { %9512 = vmatmul.msk.f32.gmra.mxu0 %vm286_vm1, %v272_v8  ;;  %v249_v8 = vld [vmem:[%s13778_s0 + $0xb0] sm:$0xff] }
  0xba   :  { %9541 = vmatmul.msk.f32.gmra.mxu1 %vm286_vm1, %v243_v9  ;;  %9570 = vmatmul.msk.f32.gmra.mxu2 %vm286_vm1, %v680_v10  ;;  %v686_v9 = vld [vmem:[%s13778_s0 + $0xb2] sm:$0xff] }
  0xbb   :  { %9598 = vmatmul.msk.f32.gmra.mxu3 %vm286_vm1, %v925_v11  ;;  %v931_v10 = vld [vmem:[%s13778_s0 + $0xb3] sm:$0xff] }
  0xbd   :  { %v798_v12 = vpop.f32.mrf.mxu2 }
  0xbe   :  { %v11109_v13 = vpop.f32.mrf.mxu3  ;;  %v395_v14 = vpop.f32.mrf.mxu0  ;;  %v882_v21 = vadd.f32 %v798_v12, %v581_v20  ;;  %v250_v20 = vld [vmem:[%s13778_s0 + $0xb8] sm:$0xff] }
  0xbf   :  { %v583_v15 = vpop.f32.mrf.mxu1 }
  0xc0   :  { %v584_v31 = vadd.f32 %v583_v15, %v395_v14 }
  0xc1   :  { %9513 = vmatmul.msk.f32.gmra.mxu0 %vm286_vm1, %v273_v16 }
  0xc2   :  { %9542 = vmatmul.msk.f32.gmra.mxu1 %vm286_vm1, %v244_v17  ;;  %9571 = vmatmul.msk.f32.gmra.mxu2 %vm286_vm1, %v681_v18 }
  0xc3   :  { %9599 = vmatmul.msk.f32.gmra.mxu3 %vm286_vm1, %v926_v19  ;;  %v279_v19 = vld [vmem:[%s13778_s0 + $0xb9] sm:$0xff] }
  0xc5   :  { %v801_v22 = vpop.f32.mrf.mxu2 }
  0xc6   :  { %v1044_v23 = vpop.f32.mrf.mxu3  ;;  %v398_v25 = vpop.f32.mrf.mxu0  ;;  %v883_v32 = vadd.f32 %v801_v22, %v584_v31  ;;  %v932_v22 = vld [vmem:[%s13778_s0 + $0xbb] sm:$0xff] }
  0xc7   :  { %v11127_v24 = vadd.f32 %v1044_v23, %v882_v21  ;;  %v586_v26 = vpop.f32.mrf.mxu1  ;;  %v687_v21 = vld [vmem:[%s13778_s0 + $0xba] sm:$0xff] }
  0xc8   :  { %v587_v42 = vadd.f32 %v586_v26, %v398_v25  ;;  %v280_v31 = vld [vmem:[%s13778_s0 + $0xc1] sm:$0xff] }
  0xc9   :  { %9514 = vmatmul.msk.f32.gmra.mxu0 %vm286_vm1, %v274_v27 }
  0xca   :  { %9543 = vmatmul.msk.f32.gmra.mxu1 %vm286_vm1, %v245_v28  ;;  %9572 = vmatmul.msk.f32.gmra.mxu2 %vm286_vm1, %v682_v29 }
  0xcb   :  { %9600 = vmatmul.msk.f32.gmra.mxu3 %vm286_vm1, %v927_v30 }
  0xcd   :  { %v804_v33 = vpop.f32.mrf.mxu2 }
  0xce   :  { %v1047_v34 = vpop.f32.mrf.mxu3  ;;  %v401_v36 = vpop.f32.mrf.mxu0  ;;  %v884_v43 = vadd.f32 %v804_v33, %v587_v42  ;;  %v1677_v33 = vld [vmem:[#allocation8 + $0x30] sm:$0x3f] }
  0xcf   :  { %v11145_v35 = vadd.f32 %v1047_v34, %v883_v32  ;;  %v589_v37 = vpop.f32.mrf.mxu1  ;;  %v251_v32 = vld [vmem:[%s13778_s0 + $0xc0] sm:$0xff]  ;;  %9669 = vmatpush.msk.msrb.mxu2 %vm371_vm0, %v1677_v33  ;;  %v1157_v33 = vld [vmem:[%s13778_s0 + $0x14] sm:$0xff] }
  0xd0   :  { %v590_v53 = vadd.f32 %v589_v37, %v401_v36  ;;  %v688_v34 = vld [vmem:[%s13778_s0 + $0xc2] sm:$0xff] }
  0xd1   :  { %9515 = vmatmul.msk.f32.gmra.mxu0 %vm286_vm1, %v275_v38  ;;  %v933_v36 = vld [vmem:[%s13778_s0 + $0xc3] sm:$0xff]  ;;  %v1431_v38 = vld [vmem:[#allocation8 + $0x28] sm:$0x3f] }
  0xd2   :  { %9544 = vmatmul.msk.f32.gmra.mxu1 %vm286_vm1, %v246_v39  ;;  %9573 = vmatmul.msk.f32.gmra.mxu2 %vm286_vm1, %v683_v40 }
  0xd3   :  { %9601 = vmatmul.msk.f32.gmra.mxu3 %vm286_vm1, %v928_v41  ;;  %9640 = vmatpush.msk.msrb.mxu1 %vm371_vm0, %v1431_v38 }
  0xd5   :  { %v807_v44 = vpop.f32.mrf.mxu2 }
  0xd6   :  { %v1050_v45 = vpop.f32.mrf.mxu3  ;;  %v404_v47 = vpop.f32.mrf.mxu0  ;;  %v885_v54 = vadd.f32 %v807_v44, %v590_v53 }
  0xd7   :  { %v11163_v46 = vadd.f32 %v1050_v45, %v884_v43  ;;  %v592_v48 = vpop.f32.mrf.mxu1  ;;  %v281_v45 = vld [vmem:[%s13778_s0 + $0xc9] sm:$0xff] }
  0xd8   :  { %v593_v0 = vadd.f32 %v592_v48, %v404_v47  ;;  %v252_v47 = vld [vmem:[%s13778_s0 + $0xc8] sm:$0xff] }
  0xd9   :  { %9516 = vmatmul.msk.f32.gmra.mxu0 %vm286_vm1, %v276_v49  ;;  %v689_v48 = vld [vmem:[%s13778_s0 + $0xca] sm:$0xff] }
  0xda   :  { %9545 = vmatmul.msk.f32.gmra.mxu1 %vm286_vm1, %v247_v50  ;;  %9574 = vmatmul.msk.f32.gmra.mxu2 %vm286_vm1, %v684_v51  ;;  %v934_v49 = vld [vmem:[%s13778_s0 + $0xcb] sm:$0xff]  ;;  %v1923_v50 = vld [vmem:[#allocation8 + $0x38] sm:$0x3f] }
  0xdb   :  { %9602 = vmatmul.msk.f32.gmra.mxu3 %vm286_vm1, %v929_v52 }
  0xdc   :  { %9698 = vmatpush.msk.msra.mxu3 %vm371_vm0, %v1923_v50  ;;  %v1651_v50 = vld [vmem:[%s13778_s0 + $0x2e] sm:$0xff] }
  0xdd   :  { %v810_v55 = vpop.f32.mrf.mxu2 }
  0xde   :  { %v1053_v56 = vpop.f32.mrf.mxu3  ;;  %v407_v58 = vpop.f32.mrf.mxu0  ;;  %v886_v1 = vadd.f32 %v810_v55, %v593_v0 }
  0xdf   :  { %v11181_v57 = vadd.f32 %v1053_v56, %v885_v54  ;;  %v595_v59 = vpop.f32.mrf.mxu1 }
  0xe0   :  { %v596_v11 = vadd.f32 %v595_v59, %v407_v58  ;;  %v282_v59 = vld [vmem:[%s13778_s0 + $0xd1] sm:$0xff] }
  0xe1   :  { %9517 = vmatmul.msk.f32.gmra.mxu0 %vm286_vm1, %v277_v60  ;;  %v253_v60 = vld [vmem:[%s13778_s0 + $0xd0] sm:$0xff] }
  0xe2   :  { %9546 = vmatmul.msk.f32.gmra.mxu1 %vm286_vm1, %v248_v61  ;;  %9575 = vmatmul.msk.f32.gmra.mxu2 %vm286_vm1, %v685_v62  ;;  %v690_v61 = vld [vmem:[%s13778_s0 + $0xd2] sm:$0xff] }
  0xe3   :  { %9603 = vmatmul.msk.f32.gmra.mxu3 %vm286_vm1, %v930_v63  ;;  %v935_v62 = vld [vmem:[%s13778_s0 + $0xd3] sm:$0xff] }
  0xe5   :  { %v813_v2 = vpop.f32.mrf.mxu2 }
  0xe6   :  { %v1056_v3 = vpop.f32.mrf.mxu3  ;;  %v410_v5 = vpop.f32.mrf.mxu0  ;;  %v887_v12 = vadd.f32 %v813_v2, %v596_v11 }
  0xe7   :  { %v11199_v4 = vadd.f32 %v1056_v3, %v886_v1  ;;  %v598_v6 = vpop.f32.mrf.mxu1 }
  0xe8   :  { %v599_v23 = vadd.f32 %v598_v6, %v410_v5 }
  0xe9   :  { %9518 = vmatmul.msk.f32.gmra.mxu0 %vm286_vm1, %v278_v7  ;;  %v283_v7 = vld [vmem:[%s13778_s0 + $0xd9] sm:$0x3] }
  0xea   :  { %9547 = vmatmul.msk.f32.gmra.mxu1 %vm286_vm1, %v249_v8  ;;  %9576 = vmatmul.msk.f32.gmra.mxu2 %vm286_vm1, %v686_v9  ;;  %v254_v8 = vld [vmem:[%s13778_s0 + $0xd8] sm:$0x3]  ;;  %v936_v9 = vld [vmem:[%s13778_s0 + $0xdb] sm:$0xff] }
  0xeb   :  { %9604 = vmatmul.msk.f32.gmra.mxu3 %vm286_vm1, %v931_v10  ;;  %v1648_v10 = vld [vmem:[%s13778_s0 + $0x16] sm:$0xff] }
  0xed   :  { %v816_v14 = vpop.f32.mrf.mxu2 }
  0xee   :  { %v1059_v15 = vpop.f32.mrf.mxu3  ;;  %v413_v17 = vpop.f32.mrf.mxu0  ;;  %v888_v25 = vadd.f32 %v816_v14, %v599_v23  ;;  %v1649_v23 = vld [vmem:[%s13778_s0 + $0x1e] sm:$0xff] }
  0xef   :  { %v11217_v16 = vadd.f32 %v1059_v15, %v887_v12  ;;  %v601_v18 = vpop.f32.mrf.mxu1 }
  0xf0   :  { %v602_v37 = vadd.f32 %v601_v18, %v413_v17 }
  0xf1   :  { %9519 = vmatmul.msk.f32.gmra.mxu0 %vm286_vm1, %v279_v19 }
  0xf2   :  { %9548 = vmatmul.msk.f32.gmra.mxu1 %vm286_vm1, %v250_v20  ;;  %9577 = vmatmul.msk.f32.gmra.mxu2 %vm286_vm1, %v687_v21  ;;  %v1156_v20 = vld [vmem:[%s13778_s0 + $0xc] sm:$0xff] }
  0xf3   :  { %9605 = vmatmul.msk.f32.gmra.mxu3 %vm286_vm1, %v932_v22  ;;  %v1402_v21 = vld [vmem:[%s13778_s0 + $0xd] sm:$0xff]  ;;  %v937_v22 = vld [vmem:[%s13778_s0 + $0xe3] sm:$0x3] }
  0xf5   :  { %v819_v26 = vpop.f32.mrf.mxu2 }
  0xf6   :  { %v1062_v27 = vpop.f32.mrf.mxu3  ;;  %v416_v29 = vpop.f32.mrf.mxu0  ;;  %v889_v39 = vadd.f32 %v819_v26, %v602_v37  ;;  %v1650_v37 = vld [vmem:[%s13778_s0 + $0x26] sm:$0xff] }
  0xf7   :  { %v11235_v28 = vadd.f32 %v1062_v27, %v888_v25  ;;  %v604_v30 = vpop.f32.mrf.mxu1 }
  0xf8   :  { %v605_v51 = vadd.f32 %v604_v30, %v416_v29 }
  0xf9   :  { %9520 = vmatmul.msk.f32.gmra.mxu0 %vm286_vm1, %v280_v31 }
  0xfa   :  { %9549 = vmatmul.msk.f32.gmra.mxu1 %vm286_vm1, %v251_v32  ;;  %9578 = vmatmul.msk.f32.gmra.mxu2 %vm286_vm1, %v688_v34  ;;  %v1403_v34 = vld [vmem:[%s13778_s0 + $0x15] sm:$0xff] }
  0xfb   :  { %9606 = vmatmul.msk.f32.gmra.mxu3 %vm286_vm1, %v933_v36  ;;  %v1894_v36 = vld [vmem:[%s13778_s0 + $0x17] sm:$0xff] }
  0xfd   :  { %v822_v40 = vpop.f32.mrf.mxu2 }
  0xfe   :  { %v1065_v41 = vpop.f32.mrf.mxu3  ;;  %v419_v43 = vpop.f32.mrf.mxu0  ;;  %v890_v52 = vadd.f32 %v822_v40, %v605_v51 }
  0xff   :  { %v11255_v42 = vadd.f32 %v1065_v41, %v889_v39  ;;  %v607_v44 = vpop.f32.mrf.mxu1 }
 0x100   :  { %v608_v63 = vadd.f32 %v607_v44, %v419_v43 }
 0x101   :  { %9521 = vmatmul.msk.f32.gmra.mxu0 %vm286_vm1, %v281_v45 }
 0x102   :  { %9550 = vmatmul.msk.f32.gmra.mxu1 %vm286_vm1, %v252_v47  ;;  %9579 = vmatmul.msk.f32.gmra.mxu2 %vm286_vm1, %v689_v48  ;;  %v1158_v47 = vld [vmem:[%s13778_s0 + $0x1c] sm:$0xff] }
 0x103   :  { %9607 = vmatmul.msk.f32.gmra.mxu3 %vm286_vm1, %v934_v49  ;;  %v1404_v48 = vld [vmem:[%s13778_s0 + $0x1d] sm:$0xff] }
 0x104   :  { %v1895_v49 = vld [vmem:[%s13778_s0 + $0x1f] sm:$0xff] }
 0x105   :  { %v825_v53 = vpop.f32.mrf.mxu2 }
 0x106   :  { %v1068_v54 = vpop.f32.mrf.mxu3  ;;  %v422_v56 = vpop.f32.mrf.mxu0  ;;  %v891_v0 = vadd.f32 %v825_v53, %v608_v63  ;;  %v1652_v63 = vld [vmem:[%s13778_s0 + $0x36] sm:$0xff] }
 0x107   :  { %v11274_v55 = vadd.f32 %v1068_v54, %v890_v52  ;;  %v610_v58 = vpop.f32.mrf.mxu1 }
 0x108   :  { %v611_v11 = vadd.f32 %v610_v58, %v422_v56 }
 0x109   :  { %9522 = vmatmul.msk.f32.gmra.mxu0 %vm286_vm1, %v282_v59 }
 0x10a   :  { %9551 = vmatmul.msk.f32.gmra.mxu1 %vm286_vm1, %v253_v60  ;;  %9580 = vmatmul.msk.f32.gmra.mxu2 %vm286_vm1, %v690_v61  ;;  %v1159_v60 = vld [vmem:[%s13778_s0 + $0x24] sm:$0xff] }
 0x10b   :  { %9608 = vmatmul.msk.f32.gmra.mxu3 %vm286_vm1, %v935_v62  ;;  %v1405_v61 = vld [vmem:[%s13778_s0 + $0x25] sm:$0xff] }
 0x10c   :  { %v1896_v62 = vld [vmem:[%s13778_s0 + $0x27] sm:$0xff] }
 0x10d   :  { %v828_v1 = vpop.f32.mrf.mxu2 }
 0x10e   :  { %v1071_v2 = vpop.f32.mrf.mxu3  ;;  %v425_v5 = vpop.f32.mrf.mxu0  ;;  %v892_v12 = vadd.f32 %v828_v1, %v611_v11  ;;  %v1897_v11 = vld [vmem:[%s13778_s0 + $0x2f] sm:$0xff] }
 0x10f   :  { %v11292_v3 = vadd.f32 %v1071_v2, %v891_v0  ;;  %v613_v6 = vpop.f32.mrf.mxu1 }
 0x110   :  { %v614_v25 = vadd.f32 %v613_v6, %v425_v5 }
 0x111   :  { %9523 = vmatmul.msk.f32.gmra.mxu0 %vm286_vm1, %v283_v7 }
 0x112   :  { %9552 = vmatmul.msk.f32.gmra.mxu1 %vm286_vm1, %v254_v8  ;;  %9670 = vmatmul.msk.f32.vlgmr.msrb.gmra.mxu2 %vm286_vm1, %v1648_v10  ;;  %v1406_v10 = vld [vmem:[%s13778_s0 + $0x2d] sm:$0xff] }
 0x113   :  { %9609 = vmatmul.msk.f32.gmra.mxu3 %vm286_vm1, %v936_v9  ;;  %v1160_v9 = vld [vmem:[%s13778_s0 + $0x2c] sm:$0xff] }
 0x115   :  { %v831_v14 = vpop.f32.mrf.mxu2 }
 0x116   :  { %v1074_v15 = vpop.f32.mrf.mxu3  ;;  %v428_v18 = vpop.f32.mrf.mxu0  ;;  %v893_v26 = vadd.f32 %v831_v14, %v614_v25  ;;  %v1407_v25 = vld [vmem:[%s13778_s0 + $0x35] sm:$0xff] }
 0x117   :  { %v11310_v17 = vadd.f32 %v1074_v15, %v892_v12  ;;  %v616_v19 = vpop.f32.mrf.mxu1  ;;  %v1653_v12 = vld [vmem:[%s13778_s0 + $0x3e] sm:$0xff] }
 0x118   :  { %v617_v38 = vadd.f32 %v616_v19, %v428_v18 }
 0x119   :  { %9612 = vmatmul.msk.f32.vlgmr.msrb.gmra.mxu0 %vm286_vm1, %v1156_v20 }
 0x11a   :  { %9641 = vmatmul.msk.f32.vlgmr.msrb.gmra.mxu1 %vm286_vm1, %v1402_v21  ;;  %9671 = vmatmul.msk.f32.gmra.mxu2 %vm286_vm1, %v1649_v23  ;;  %v1161_v23 = vld [vmem:[%s13778_s0 + $0x34] sm:$0xff] }
 0x11b   :  { %9610 = vmatmul.msk.f32.gmra.mxu3 %vm286_vm1, %v937_v22 }
 0x11d   :  { %v834_v27 = vpop.f32.mrf.mxu2 }
 0x11e   :  { %v1077_v29 = vpop.f32.mrf.mxu3  ;;  %v431_v31 = vpop.f32.mrf.mxu0  ;;  %v894_v39 = vadd.f32 %v834_v27, %v617_v38  ;;  %v1654_v27 = vld [vmem:[%s13778_s0 + $0x46] sm:$0xff]  ;;  %v1162_v38 = vld [vmem:[%s13778_s0 + $0x3c] sm:$0xff] }
 0x11f   :  { %v11328_v30 = vadd.f32 %v1077_v29, %v893_v26  ;;  %v619_v32 = vpop.f32.mrf.mxu1  ;;  %v1898_v26 = vld [vmem:[%s13778_s0 + $0x37] sm:$0xff] }
 0x120   :  { %v620_v51 = vadd.f32 %v619_v32, %v431_v31 }
 0x121   :  { %9613 = vmatmul.msk.f32.gmra.mxu0 %vm286_vm1, %v1157_v33 }
 0x122   :  { %9642 = vmatmul.msk.f32.gmra.mxu1 %vm286_vm1, %v1403_v34  ;;  %9672 = vmatmul.msk.f32.gmra.mxu2 %vm286_vm1, %v1650_v37 }
 0x123   :  { %9699 = vmatmul.msk.f32.vlgmr.msra.gmra.mxu3 %vm286_vm1, %v1894_v36 }
 0x125   :  { %v837_v40 = vpop.f32.mrf.mxu2 }
 0x126   :  { %v1080_v41 = vpop.f32.mrf.mxu3  ;;  %v434_v44 = vpop.f32.mrf.mxu0  ;;  %v895_v52 = vadd.f32 %v837_v40, %v620_v51  ;;  %v1899_v40 = vld [vmem:[%s13778_s0 + $0x3f] sm:$0xff] }
 0x127   :  { %v11346_v43 = vadd.f32 %v1080_v41, %v894_v39  ;;  %v622_v45 = vpop.f32.mrf.mxu1  ;;  %v1408_v39 = vld [vmem:[%s13778_s0 + $0x3d] sm:$0xff]  ;;  %v1655_v41 = vld [vmem:[%s13778_s0 + $0x4e] sm:$0xff] }
 0x128   :  { %v623_v0 = vadd.f32 %v622_v45, %v434_v44 }
 0x129   :  { %9614 = vmatmul.msk.f32.gmra.mxu0 %vm286_vm1, %v1158_v47 }
 0x12a   :  { %9643 = vmatmul.msk.f32.gmra.mxu1 %vm286_vm1, %v1404_v48  ;;  %9673 = vmatmul.msk.f32.gmra.mxu2 %vm286_vm1, %v1651_v50 }
 0x12b   :  { %9700 = vmatmul.msk.f32.gmra.mxu3 %vm286_vm1, %v1895_v49 }
 0x12d   :  { %v840_v53 = vpop.f32.mrf.mxu2 }
 0x12e   :  { %v1083_v54 = vpop.f32.mrf.mxu3  ;;  %v437_v58 = vpop.f32.mrf.mxu0  ;;  %v896_v1 = vadd.f32 %v840_v53, %v623_v0  ;;  %v1409_v53 = vld [vmem:[%s13778_s0 + $0x45] sm:$0xff] }
 0x12f   :  { %v11364_v56 = vadd.f32 %v1083_v54, %v895_v52  ;;  %v625_v59 = vpop.f32.mrf.mxu1  ;;  %v1163_v52 = vld [vmem:[%s13778_s0 + $0x44] sm:$0xff] }
 0x130   :  { %v626_v14 = vadd.f32 %v625_v59, %v437_v58  ;;  %v1900_v54 = vld [vmem:[%s13778_s0 + $0x47] sm:$0xff]  ;;  %v1656_v58 = vld [vmem:[%s13778_s0 + $0x56] sm:$0xff] }
 0x131   :  { %9615 = vmatmul.msk.f32.gmra.mxu0 %vm286_vm1, %v1159_v60  ;;  %v2169_v60 = vld [vmem:[#allocation8 + $0x40] sm:$0x3f] }
 0x132   :  { %9644 = vmatmul.msk.f32.gmra.mxu1 %vm286_vm1, %v1405_v61  ;;  %9674 = vmatmul.msk.f32.gmra.mxu2 %vm286_vm1, %v1652_v63 }
 0x133   :  { %9701 = vmatmul.msk.f32.gmra.mxu3 %vm286_vm1, %v1896_v62  ;;  %9727 = vmatpush.msk.msra.mxu0 %vm371_vm0, %v2169_v60 }
 0x135   :  { %v843_v2 = vpop.f32.mrf.mxu2 }
 0x136   :  { %v1086_v5 = vpop.f32.mrf.mxu3  ;;  %v440_v7 = vpop.f32.mrf.mxu0  ;;  %v897_v15 = vadd.f32 %v843_v2, %v626_v14 }
 0x137   :  { %v11382_v6 = vadd.f32 %v1086_v5, %v896_v1  ;;  %v628_v8 = vpop.f32.mrf.mxu1  ;;  %v1164_v5 = vld [vmem:[%s13778_s0 + $0x4c] sm:$0xff] }
 0x138   :  { %v629_v29 = vadd.f32 %v628_v8, %v440_v7  ;;  %v1410_v7 = vld [vmem:[%s13778_s0 + $0x4d] sm:$0xff] }
 0x139   :  { %9616 = vmatmul.msk.f32.gmra.mxu0 %vm286_vm1, %v1160_v9  ;;  %v1901_v8 = vld [vmem:[%s13778_s0 + $0x4f] sm:$0xff]  ;;  %v1657_v9 = vld [vmem:[%s13778_s0 + $0x5e] sm:$0xff] }
 0x13a   :  { %9645 = vmatmul.msk.f32.gmra.mxu1 %vm286_vm1, %v1406_v10  ;;  %9675 = vmatmul.msk.f32.gmra.mxu2 %vm286_vm1, %v1653_v12 }
 0x13b   :  { %9702 = vmatmul.msk.f32.gmra.mxu3 %vm286_vm1, %v1897_v11 }
 0x13d   :  { %v846_v18 = vpop.f32.mrf.mxu2 }
 0x13e   :  { %v1089_v19 = vpop.f32.mrf.mxu3  ;;  %v443_v21 = vpop.f32.mrf.mxu0  ;;  %v898_v31 = vadd.f32 %v846_v18, %v629_v29 }
 0x13f   :  { %v11400_v20 = vadd.f32 %v1089_v19, %v897_v15  ;;  %v631_v22 = vpop.f32.mrf.mxu1 }
 0x140   :  { %v632_v44 = vadd.f32 %v631_v22, %v443_v21  ;;  %v1165_v21 = vld [vmem:[%s13778_s0 + $0x54] sm:$0xff] }
 0x141   :  { %9617 = vmatmul.msk.f32.gmra.mxu0 %vm286_vm1, %v1161_v23  ;;  %v1411_v22 = vld [vmem:[%s13778_s0 + $0x55] sm:$0xff] }
 0x142   :  { %9646 = vmatmul.msk.f32.gmra.mxu1 %vm286_vm1, %v1407_v25  ;;  %9676 = vmatmul.msk.f32.gmra.mxu2 %vm286_vm1, %v1654_v27  ;;  %v1902_v23 = vld [vmem:[%s13778_s0 + $0x57] sm:$0xff]  ;;  %v1658_v25 = vld [vmem:[%s13778_s0 + $0x66] sm:$0xff] }
 0x143   :  { %9703 = vmatmul.msk.f32.gmra.mxu3 %vm286_vm1, %v1898_v26 }
 0x145   :  { %v849_v32 = vpop.f32.mrf.mxu2 }
 0x146   :  { %v1092_v33 = vpop.f32.mrf.mxu3  ;;  %v446_v36 = vpop.f32.mrf.mxu0  ;;  %v899_v45 = vadd.f32 %v849_v32, %v632_v44 }
 0x147   :  { %v11418_v34 = vadd.f32 %v1092_v33, %v898_v31  ;;  %v634_v37 = vpop.f32.mrf.mxu1 }
 0x148   :  { %v635_v59 = vadd.f32 %v634_v37, %v446_v36  ;;  %v1166_v37 = vld [vmem:[%s13778_s0 + $0x5c] sm:$0xff] }
 0x149   :  { %9618 = vmatmul.msk.f32.gmra.mxu0 %vm286_vm1, %v1162_v38  ;;  %v1412_v38 = vld [vmem:[%s13778_s0 + $0x5d] sm:$0xff] }
 0x14a   :  { %9647 = vmatmul.msk.f32.gmra.mxu1 %vm286_vm1, %v1408_v39  ;;  %9677 = vmatmul.msk.f32.gmra.mxu2 %vm286_vm1, %v1655_v41  ;;  %v1903_v39 = vld [vmem:[%s13778_s0 + $0x5f] sm:$0xff] }
 0x14b   :  { %9704 = vmatmul.msk.f32.gmra.mxu3 %vm286_vm1, %v1899_v40  ;;  %v1659_v40 = vld [vmem:[%s13778_s0 + $0x6e] sm:$0xff] }
 0x14d   :  { %v852_v47 = vpop.f32.mrf.mxu2 }
 0x14e   :  { %v1095_v48 = vpop.f32.mrf.mxu3  ;;  %v449_v50 = vpop.f32.mrf.mxu0  ;;  %v900_v61 = vadd.f32 %v852_v47, %v635_v59 }
 0x14f   :  { %v11436_v49 = vadd.f32 %v1095_v48, %v899_v45  ;;  %v637_v51 = vpop.f32.mrf.mxu1 }
 0x150   :  { %v638_v10 = vadd.f32 %v637_v51, %v449_v50 }
 0x151   :  { %9619 = vmatmul.msk.f32.gmra.mxu0 %vm286_vm1, %v1163_v52  ;;  %v1167_v52 = vld [vmem:[%s13778_s0 + $0x64] sm:$0xff] }
 0x152   :  { %9648 = vmatmul.msk.f32.gmra.mxu1 %vm286_vm1, %v1409_v53  ;;  %9678 = vmatmul.msk.f32.gmra.mxu2 %vm286_vm1, %v1656_v58  ;;  %v1413_v53 = vld [vmem:[%s13778_s0 + $0x65] sm:$0xff]  ;;  %v1660_v58 = vld [vmem:[%s13778_s0 + $0x76] sm:$0xff] }
 0x153   :  { %9705 = vmatmul.msk.f32.gmra.mxu3 %vm286_vm1, %v1900_v54  ;;  %v1904_v54 = vld [vmem:[%s13778_s0 + $0x67] sm:$0xff] }
 0x155   :  { %v855_v62 = vpop.f32.mrf.mxu2 }
 0x156   :  { %v1098_v63 = vpop.f32.mrf.mxu3  ;;  %v452_v1 = vpop.f32.mrf.mxu0  ;;  %v901_v11 = vadd.f32 %v855_v62, %v638_v10 }
 0x157   :  { %v11455_v0 = vadd.f32 %v1098_v63, %v900_v61  ;;  %v640_v2 = vpop.f32.mrf.mxu1 }
 0x158   :  { %v641_v26 = vadd.f32 %v640_v2, %v452_v1 }
 0x159   :  { %9620 = vmatmul.msk.f32.gmra.mxu0 %vm286_vm1, %v1164_v5  ;;  %v1168_v5 = vld [vmem:[%s13778_s0 + $0x6c] sm:$0xff] }
 0x15a   :  { %9649 = vmatmul.msk.f32.gmra.mxu1 %vm286_vm1, %v1410_v7  ;;  %9679 = vmatmul.msk.f32.gmra.mxu2 %vm286_vm1, %v1657_v9  ;;  %v1414_v7 = vld [vmem:[%s13778_s0 + $0x6d] sm:$0xff]  ;;  %v1661_v9 = vld [vmem:[%s13778_s0 + $0x7e] sm:$0xff] }
 0x15b   :  { %9706 = vmatmul.msk.f32.gmra.mxu3 %vm286_vm1, %v1901_v8  ;;  %v1905_v8 = vld [vmem:[%s13778_s0 + $0x6f] sm:$0xff] }
 0x15d   :  { %v858_v12 = vpop.f32.mrf.mxu2 }
 0x15e   :  { %v1101_v14 = vpop.f32.mrf.mxu3  ;;  %v455_v18 = vpop.f32.mrf.mxu0  ;;  %v902_v27 = vadd.f32 %v858_v12, %v641_v26  ;;  %v1662_v26 = vld [vmem:[%s13778_s0 + $0x86] sm:$0xff] }
 0x15f   :  { %v11473_v15 = vadd.f32 %v1101_v14, %v901_v11  ;;  %v643_v19 = vpop.f32.mrf.mxu1 }
 0x160   :  { %v644_v41 = vadd.f32 %v643_v19, %v455_v18 }
 0x161   :  { %9621 = vmatmul.msk.f32.gmra.mxu0 %vm286_vm1, %v1165_v21 }
 0x162   :  { %9650 = vmatmul.msk.f32.gmra.mxu1 %vm286_vm1, %v1411_v22  ;;  %9680 = vmatmul.msk.f32.gmra.mxu2 %vm286_vm1, %v1658_v25  ;;  %v1169_v22 = vld [vmem:[%s13778_s0 + $0x74] sm:$0xff] }
 0x163   :  { %9707 = vmatmul.msk.f32.gmra.mxu3 %vm286_vm1, %v1902_v23  ;;  %v1415_v23 = vld [vmem:[%s13778_s0 + $0x75] sm:$0xff] }
 0x164   :  { %v1906_v25 = vld [vmem:[%s13778_s0 + $0x77] sm:$0xff] }
 0x165   :  { %v861_v29 = vpop.f32.mrf.mxu2 }
 0x166   :  { %v1104_v31 = vpop.f32.mrf.mxu3  ;;  %v458_v33 = vpop.f32.mrf.mxu0  ;;  %v903_v44 = vadd.f32 %v861_v29, %v644_v41  ;;  %v1907_v41 = vld [vmem:[%s13778_s0 + $0x7f] sm:$0xff] }
 0x167   :  { %v11491_v32 = vadd.f32 %v1104_v31, %v902_v27  ;;  %v646_v36 = vpop.f32.mrf.mxu1 }
 0x168   :  { %v647_v59 = vadd.f32 %v646_v36, %v458_v33 }
 0x169   :  { %9622 = vmatmul.msk.f32.gmra.mxu0 %vm286_vm1, %v1166_v37 }
 0x16a   :  { %9651 = vmatmul.msk.f32.gmra.mxu1 %vm286_vm1, %v1412_v38  ;;  %9681 = vmatmul.msk.f32.gmra.mxu2 %vm286_vm1, %v1659_v40  ;;  %v1416_v40 = vld [vmem:[%s13778_s0 + $0x7d] sm:$0xff] }
 0x16b   :  { %9708 = vmatmul.msk.f32.gmra.mxu3 %vm286_vm1, %v1903_v39  ;;  %v1170_v39 = vld [vmem:[%s13778_s0 + $0x7c] sm:$0xff] }
 0x16d   :  { %v864_v45 = vpop.f32.mrf.mxu2 }
 0x16e   :  { %v1107_v47 = vpop.f32.mrf.mxu3  ;;  %v461_v50 = vpop.f32.mrf.mxu0  ;;  %v904_v60 = vadd.f32 %v864_v45, %v647_v59  ;;  %v1417_v59 = vld [vmem:[%s13778_s0 + $0x85] sm:$0xff] }
 0x16f   :  { %v11509_v48 = vadd.f32 %v1107_v47, %v903_v44  ;;  %v649_v51 = vpop.f32.mrf.mxu1  ;;  %v1663_v44 = vld [vmem:[%s13778_s0 + $0x8e] sm:$0xff] }
 0x170   :  { %v650_v10 = vadd.f32 %v649_v51, %v461_v50 }
 0x171   :  { %9623 = vmatmul.msk.f32.gmra.mxu0 %vm286_vm1, %v1167_v52 }
 0x172   :  { %9652 = vmatmul.msk.f32.gmra.mxu1 %vm286_vm1, %v1413_v53  ;;  %9682 = vmatmul.msk.f32.gmra.mxu2 %vm286_vm1, %v1660_v58  ;;  %v1171_v58 = vld [vmem:[%s13778_s0 + $0x84] sm:$0xff] }
 0x173   :  { %9709 = vmatmul.msk.f32.gmra.mxu3 %vm286_vm1, %v1904_v54 }
 0x175   :  { %v867_v61 = vpop.f32.mrf.mxu2 }
 0x176   :  { %v1110_v62 = vpop.f32.mrf.mxu3  ;;  %v464_v1 = vpop.f32.mrf.mxu0  ;;  %v905_v11 = vadd.f32 %v867_v61, %v650_v10  ;;  %v1664_v61 = vld [vmem:[%s13778_s0 + $0x96] sm:$0xff]  ;;  %v1172_v10 = vld [vmem:[%s13778_s0 + $0x8c] sm:$0xff] }
 0x177   :  { %v11527_v63 = vadd.f32 %v1110_v62, %v904_v60  ;;  %v652_v2 = vpop.f32.mrf.mxu1  ;;  %v1908_v60 = vld [vmem:[%s13778_s0 + $0x87] sm:$0xff] }
 0x178   :  { %v653_v27 = vadd.f32 %v652_v2, %v464_v1 }
 0x179   :  { %9624 = vmatmul.msk.f32.gmra.mxu0 %vm286_vm1, %v1168_v5 }
 0x17a   :  { %9653 = vmatmul.msk.f32.gmra.mxu1 %vm286_vm1, %v1414_v7  ;;  %9683 = vmatmul.msk.f32.gmra.mxu2 %vm286_vm1, %v1661_v9 }
 0x17b   :  { %9710 = vmatmul.msk.f32.gmra.mxu3 %vm286_vm1, %v1905_v8 }
 0x17d   :  { %v870_v12 = vpop.f32.mrf.mxu2 }
 0x17e   :  { %v1113_v14 = vpop.f32.mrf.mxu3  ;;  %v467_v19 = vpop.f32.mrf.mxu0  ;;  %v906_v29 = vadd.f32 %v870_v12, %v653_v27  ;;  %v1173_v27 = vld [vmem:[%s13778_s0 + $0x94] sm:$0xff] }
 0x17f   :  { %v11545_v18 = vadd.f32 %v1113_v14, %v905_v11  ;;  %v655_v21 = vpop.f32.mrf.mxu1  ;;  %v1418_v11 = vld [vmem:[%s13778_s0 + $0x8d] sm:$0xff] }
 0x180   :  { %v656_v45 = vadd.f32 %v655_v21, %v467_v19  ;;  %v1909_v14 = vld [vmem:[%s13778_s0 + $0x8f] sm:$0xff]  ;;  %v1665_v19 = vld [vmem:[%s13778_s0 + $0x9e] sm:$0xff] }
 0x181   :  { %9625 = vmatmul.msk.f32.gmra.mxu0 %vm286_vm1, %v1169_v22 }
 0x182   :  { %9654 = vmatmul.msk.f32.gmra.mxu1 %vm286_vm1, %v1415_v23  ;;  %9684 = vmatmul.msk.f32.gmra.mxu2 %vm286_vm1, %v1662_v26 }
 0x183   :  { %9711 = vmatmul.msk.f32.gmra.mxu3 %vm286_vm1, %v1906_v25 }
 0x185   :  { %v873_v31 = vpop.f32.mrf.mxu2 }
 0x186   :  { %v1116_v33 = vpop.f32.mrf.mxu3  ;;  %v470_v37 = vpop.f32.mrf.mxu0  ;;  %v907_v47 = vadd.f32 %v873_v31, %v656_v45 }
 0x187   :  { %v11563_v36 = vadd.f32 %v1116_v33, %v906_v29  ;;  %v658_v38 = vpop.f32.mrf.mxu1  ;;  %v1419_v29 = vld [vmem:[%s13778_s0 + $0x95] sm:$0xff] }
 0x188   :  { %v659_v62 = vadd.f32 %v658_v38, %v470_v37  ;;  %v1910_v33 = vld [vmem:[%s13778_s0 + $0x97] sm:$0xff]  ;;  %v1666_v37 = vld [vmem:[%s13778_s0 + $0xa6] sm:$0xff] }
 0x189   :  { %9626 = vmatmul.msk.f32.gmra.mxu0 %vm286_vm1, %v1170_v39 }
 0x18a   :  { %9655 = vmatmul.msk.f32.gmra.mxu1 %vm286_vm1, %v1416_v40  ;;  %9685 = vmatmul.msk.f32.gmra.mxu2 %vm286_vm1, %v1663_v44 }
 0x18b   :  { %9712 = vmatmul.msk.f32.gmra.mxu3 %vm286_vm1, %v1907_v41 }
 0x18d   :  { %v876_v50 = vpop.f32.mrf.mxu2 }
 0x18e   :  { %v1119_v51 = vpop.f32.mrf.mxu3  ;;  %v11583_v53 = vpop.f32.mrf.mxu0  ;;  %v908_v1 = vadd.f32 %v876_v50, %v659_v62  ;;  %v1420_v50 = vld [vmem:[%s13778_s0 + $0x9d] sm:$0xff] }
 0x18f   :  { %v11581_v52 = vadd.f32 %v1119_v51, %v907_v47  ;;  %v11585_v54 = vpop.f32.mrf.mxu1  ;;  %v1174_v47 = vld [vmem:[%s13778_s0 + $0x9c] sm:$0xff] }
 0x191   :  { %9627 = vmatmul.msk.f32.gmra.mxu0 %vm286_vm1, %v1171_v58  ;;  %v1911_v58 = vld [vmem:[%s13778_s0 + $0x9f] sm:$0xff] }
 0x192   :  { %9656 = vmatmul.msk.f32.gmra.mxu1 %vm286_vm1, %v1417_v59  ;;  %9686 = vmatmul.msk.f32.gmra.mxu2 %vm286_vm1, %v1664_v61  ;;  %v1667_v59 = vld [vmem:[%s13778_s0 + $0xae] sm:$0xff] }
 0x193   :  { %9713 = vmatmul.msk.f32.gmra.mxu3 %vm286_vm1, %v1908_v60 }
 0x195   :  { %v1782_v5 = vpop.f32.mrf.mxu2 }
 0x196   :  { %v1122_v2 = vpop.f32.mrf.mxu3  ;;  %v1290_v8 = vpop.f32.mrf.mxu0 }
 0x197   :  { %v11603_v7 = vadd.f32 %v1122_v2, %v908_v1  ;;  %v1536_v9 = vpop.f32.mrf.mxu1  ;;  %v1374_v12 = vadd.f32 %v1290_v8, %v11127_v24  ;;  %v1175_v8 = vld [vmem:[%s13778_s0 + $0xa4] sm:$0xff] }
 0x199   :  { %v1620_v21 = vadd.f32 %v1536_v9, %v1374_v12  ;;  %9628 = vmatmul.msk.f32.gmra.mxu0 %vm286_vm1, %v1172_v10  ;;  %v1421_v9 = vld [vmem:[%s13778_s0 + $0xa5] sm:$0xff]  ;;  %v1668_v12 = vld [vmem:[%s13778_s0 + $0xb6] sm:$0xff] }
 0x19a   :  { %9657 = vmatmul.msk.f32.gmra.mxu1 %vm286_vm1, %v1418_v11  ;;  %9687 = vmatmul.msk.f32.gmra.mxu2 %vm286_vm1, %v1665_v19  ;;  %v1912_v11 = vld [vmem:[%s13778_s0 + $0xa7] sm:$0xff] }
 0x19b   :  { %9714 = vmatmul.msk.f32.gmra.mxu3 %vm286_vm1, %v1909_v14  ;;  %v1866_v22 = vadd.f32 %v1782_v5, %v1620_v21 }
 0x19d   :  { %v1785_v24 = vpop.f32.mrf.mxu2 }
 0x19e   :  { %v11622_v23 = vpop.f32.mrf.mxu3  ;;  %v1293_v25 = vpop.f32.mrf.mxu0 }
 0x19f   :  { %v1539_v26 = vpop.f32.mrf.mxu1  ;;  %v1375_v31 = vadd.f32 %v1293_v25, %v11145_v35 }
 0x1a1   :  { %v1621_v38 = vadd.f32 %v1539_v26, %v1375_v31  ;;  %9629 = vmatmul.msk.f32.gmra.mxu0 %vm286_vm1, %v1173_v27  ;;  %v1176_v26 = vld [vmem:[%s13778_s0 + $0xac] sm:$0xff] }
 0x1a2   :  { %9658 = vmatmul.msk.f32.gmra.mxu1 %vm286_vm1, %v1419_v29  ;;  %9688 = vmatmul.msk.f32.gmra.mxu2 %vm286_vm1, %v1666_v37  ;;  %v1422_v27 = vld [vmem:[%s13778_s0 + $0xad] sm:$0xff] }
 0x1a3   :  { %9715 = vmatmul.msk.f32.gmra.mxu3 %vm286_vm1, %v1910_v33  ;;  %v1867_v39 = vadd.f32 %v1785_v24, %v1621_v38  ;;  %v1913_v31 = vld [vmem:[%s13778_s0 + $0xaf] sm:$0xff]  ;;  %v1669_v33 = vld [vmem:[%s13778_s0 + $0xbe] sm:$0xff] }
 0x1a5   :  { %v1788_v35 = vpop.f32.mrf.mxu2 }
 0x1a6   :  { %v2028_v40 = vpop.f32.mrf.mxu3  ;;  %v1296_v44 = vpop.f32.mrf.mxu0 }
 0x1a7   :  { %v11641_v41 = vadd.f32 %v2028_v40, %v1866_v22  ;;  %v1542_v45 = vpop.f32.mrf.mxu1  ;;  %v1376_v51 = vadd.f32 %v1296_v44, %v11163_v46 }
 0x1a9   :  { %v1622_v60 = vadd.f32 %v1542_v45, %v1376_v51  ;;  %9630 = vmatmul.msk.f32.gmra.mxu0 %vm286_vm1, %v1174_v47  ;;  %v1177_v45 = vld [vmem:[%s13778_s0 + $0xb4] sm:$0xff] }
 0x1aa   :  { %9659 = vmatmul.msk.f32.gmra.mxu1 %vm286_vm1, %v1420_v50  ;;  %9689 = vmatmul.msk.f32.gmra.mxu2 %vm286_vm1, %v1667_v59  ;;  %v1423_v47 = vld [vmem:[%s13778_s0 + $0xb5] sm:$0xff] }
 0x1ab   :  { %9716 = vmatmul.msk.f32.gmra.mxu3 %vm286_vm1, %v1911_v58  ;;  %v1868_v61 = vadd.f32 %v1788_v35, %v1622_v60  ;;  %v1914_v51 = vld [vmem:[%s13778_s0 + $0xb7] sm:$0xff]  ;;  %v1670_v58 = vld [vmem:[%s13778_s0 + $0xc6] sm:$0xff] }
 0x1ad   :  { %v1791_v46 = vpop.f32.mrf.mxu2 }
 0x1ae   :  { %v2031_v62 = vpop.f32.mrf.mxu3  ;;  %v1299_v2 = vpop.f32.mrf.mxu0 }
 0x1af   :  { %v11660_v1 = vadd.f32 %v2031_v62, %v1867_v39  ;;  %v1545_v5 = vpop.f32.mrf.mxu1  ;;  %v1377_v10 = vadd.f32 %v1299_v2, %v11181_v57  ;;  %v1424_v2 = vld [vmem:[%s13778_s0 + $0xbd] sm:$0xff] }
 0x1b1   :  { %v1623_v14 = vadd.f32 %v1545_v5, %v1377_v10  ;;  %9631 = vmatmul.msk.f32.gmra.mxu0 %vm286_vm1, %v1175_v8  ;;  %v1915_v8 = vld [vmem:[%s13778_s0 + $0xbf] sm:$0xff] }
 0x1b2   :  { %9660 = vmatmul.msk.f32.gmra.mxu1 %vm286_vm1, %v1421_v9  ;;  %9690 = vmatmul.msk.f32.gmra.mxu2 %vm286_vm1, %v1668_v12  ;;  %v1671_v9 = vld [vmem:[%s13778_s0 + $0xce] sm:$0xff] }
 0x1b3   :  { %9717 = vmatmul.msk.f32.gmra.mxu3 %vm286_vm1, %v1912_v11  ;;  %v1869_v19 = vadd.f32 %v1791_v46, %v1623_v14  ;;  %v1178_v46 = vld [vmem:[%s13778_s0 + $0xbc] sm:$0xff] }
 0x1b5   :  { %v1794_v57 = vpop.f32.mrf.mxu2 }
 0x1b6   :  { %v2034_v21 = vpop.f32.mrf.mxu3  ;;  %v1302_v24 = vpop.f32.mrf.mxu0 }
 0x1b7   :  { %v11679_v22 = vadd.f32 %v2034_v21, %v1868_v61  ;;  %v1548_v25 = vpop.f32.mrf.mxu1  ;;  %v1378_v29 = vadd.f32 %v1302_v24, %v11199_v4  ;;  %v1425_v21 = vld [vmem:[%s13778_s0 + $0xc5] sm:$0xff] }
 0x1b8   :  { %v1916_v24 = vld [vmem:[%s13778_s0 + $0xc7] sm:$0xff] }
 0x1b9   :  { %v1624_v37 = vadd.f32 %v1548_v25, %v1378_v29  ;;  %9632 = vmatmul.msk.f32.gmra.mxu0 %vm286_vm1, %v1176_v26  ;;  %v1672_v25 = vld [vmem:[%s13778_s0 + $0xd6] sm:$0xff] }
 0x1ba   :  { %9661 = vmatmul.msk.f32.gmra.mxu1 %vm286_vm1, %v1422_v27  ;;  %9691 = vmatmul.msk.f32.gmra.mxu2 %vm286_vm1, %v1669_v33  ;;  %v1180_v33 = vld [vmem:[%s13778_s0 + $0xcc] sm:$0xff] }
 0x1bb   :  { %9718 = vmatmul.msk.f32.gmra.mxu3 %vm286_vm1, %v1913_v31  ;;  %v11698_v38 = vadd.f32 %v1794_v57, %v1624_v37  ;;  %v1426_v37 = vld [vmem:[%s13778_s0 + $0xcd] sm:$0xff] }
 0x1bd   :  { %v1797_v39 = vpop.f32.mrf.mxu2 }
 0x1be   :  { %v2037_v4 = vpop.f32.mrf.mxu3  ;;  %v1305_v35 = vpop.f32.mrf.mxu0 }
 0x1bf   :  { %v11700_v40 = vadd.f32 %v2037_v4, %v1869_v19  ;;  %v1551_v44 = vpop.f32.mrf.mxu1  ;;  %v1379_v50 = vadd.f32 %v1305_v35, %v11217_v16  ;;  %v1179_v19 = vld [vmem:[%s13778_s0 + $0xc4] sm:$0xff] }
 0x1c0   :  { %v1673_v35 = vld [vmem:[%s13778_s0 + $0xde] sm:$0xff] }
 0x1c1   :  { %v1625_v59 = vadd.f32 %v1551_v44, %v1379_v50  ;;  %9633 = vmatmul.msk.f32.gmra.mxu0 %vm286_vm1, %v1177_v45 }
 0x1c2   :  { %9662 = vmatmul.msk.f32.gmra.mxu1 %vm286_vm1, %v1423_v47  ;;  %9692 = vmatmul.msk.f32.gmra.mxu2 %vm286_vm1, %v1670_v58  ;;  %v1427_v58 = vld [vmem:[%s13778_s0 + $0xd5] sm:$0xff] }
 0x1c3   :  { %9719 = vmatmul.msk.f32.gmra.mxu3 %vm286_vm1, %v1914_v51  ;;  %v11719_v60 = vadd.f32 %v1797_v39, %v1625_v59  ;;  %v1917_v39 = vld [vmem:[%s13778_s0 + $0xcf] sm:$0xff] }
 0x1c4   :  { %v1181_v51 = vld [vmem:[%s13778_s0 + $0xd4] sm:$0xff] }
 0x1c5   :  { %v1800_v16 = vpop.f32.mrf.mxu2 }
 0x1c6   :  { %v1308_v61 = vpop.f32.mrf.mxu0 }
 0x1c7   :  { %v1554_v62 = vpop.f32.mrf.mxu1  ;;  %v1380_v5 = vadd.f32 %v1308_v61, %v11235_v28  ;;  %v1674_v61 = vld [vmem:[%s13778_s0 + $0xe6] sm:$0xff] }
 0x1c9   :  { %v1626_v10 = vadd.f32 %v1554_v62, %v1380_v5  ;;  %9634 = vmatmul.msk.f32.gmra.mxu0 %vm286_vm1, %v1178_v46 }
 0x1ca   :  { %9663 = vmatmul.msk.f32.gmra.mxu1 %vm286_vm1, %v1424_v2  ;;  %9693 = vmatmul.msk.f32.gmra.mxu2 %vm286_vm1, %v1671_v9  ;;  %v1182_v9 = vld [vmem:[%s13778_s0 + $0xdc] sm:$0xff] }
 0x1cb   :  { %9720 = vmatmul.msk.f32.gmra.mxu3 %vm286_vm1, %v1915_v8  ;;  %v11738_v11 = vadd.f32 %v1800_v16, %v1626_v10  ;;  %v1918_v16 = vld [vmem:[%s13778_s0 + $0xd7] sm:$0xff] }
 0x1cc   :  { %v1428_v10 = vld [vmem:[%s13778_s0 + $0xdd] sm:$0xff] }
 0x1cd   :  { %v1803_v28 = vpop.f32.mrf.mxu2 }
 0x1ce   :  { %v1311_v12 = vpop.f32.mrf.mxu0 }
 0x1cf   :  { %v1557_v14 = vpop.f32.mrf.mxu1  ;;  %v1381_v57 = vadd.f32 %v1311_v12, %v11255_v42  ;;  %v1919_v12 = vld [vmem:[%s13778_s0 + $0xdf] sm:$0xff] }
 0x1d1   :  { %v1627_v26 = vadd.f32 %v1557_v14, %v1381_v57  ;;  %9635 = vmatmul.msk.f32.gmra.mxu0 %vm286_vm1, %v1179_v19  ;;  %v1675_v14 = vld [vmem:[%s13778_s0 + $0xee] sm:$0x3] }
 0x1d2   :  { %9664 = vmatmul.msk.f32.gmra.mxu1 %vm286_vm1, %v1425_v21  ;;  %9694 = vmatmul.msk.f32.gmra.mxu2 %vm286_vm1, %v1672_v25  ;;  %v2530_v19 = vld [vmem:[#allocation12 + $0x18] sm:$0xff] }
 0x1d3   :  { %9721 = vmatmul.msk.f32.gmra.mxu3 %vm286_vm1, %v1916_v24  ;;  %v11757_v27 = vadd.f32 %v1803_v28, %v1627_v26  ;;  %2620 = vmatpush.msra.mxu1 %v2530_v19  ;;  %v1183_v26 = vld [vmem:[%s13778_s0 + $0xe4] sm:$0x3]  ;;  %v2143_v19 = vld [vmem:[%s13778_s0 + $0x30] sm:$0xff] }
 0x1d5   :  { %v1806_v42 = vpop.f32.mrf.mxu2 }
 0x1d6   :  { %v1314_v29 = vpop.f32.mrf.mxu0 }
 0x1d7   :  { %v1560_v31 = vpop.f32.mrf.mxu1  ;;  %v1382_v4 = vadd.f32 %v1314_v29, %v11274_v55 }
 0x1d9   :  { %v1628_v44 = vadd.f32 %v1560_v31, %v1382_v4  ;;  %9636 = vmatmul.msk.f32.gmra.mxu0 %vm286_vm1, %v1180_v33  ;;  %v1920_v31 = vld [vmem:[%s13778_s0 + $0xe7] sm:$0xff] }
 0x1da   :  { %9665 = vmatmul.msk.f32.gmra.mxu1 %vm286_vm1, %v1426_v37  ;;  %9695 = vmatmul.msk.f32.gmra.mxu2 %vm286_vm1, %v1673_v35 }
 0x1db   :  { %9722 = vmatmul.msk.f32.gmra.mxu3 %vm286_vm1, %v1917_v39  ;;  %v11776_v45 = vadd.f32 %v1806_v42, %v1628_v44  ;;  %v1429_v42 = vld [vmem:[%s13778_s0 + $0xe5] sm:$0x3] }
 0x1dd   :  { %v1809_v55 = vpop.f32.mrf.mxu2 }
 0x1de   :  { %v1317_v47 = vpop.f32.mrf.mxu0 }
 0x1df   :  { %v1563_v50 = vpop.f32.mrf.mxu1  ;;  %v1383_v59 = vadd.f32 %v1317_v47, %v11292_v3  ;;  %v2502_v3 = vld [vmem:[#allocation12 + $0x8] sm:$0xff] }
 0x1e0   :  { %2787 = vmatpush.msra.mxu2 %v2502_v3 }
 0x1e1   :  { %v1629_v62 = vadd.f32 %v1563_v50, %v1383_v59  ;;  %9637 = vmatmul.msk.f32.gmra.mxu0 %vm286_vm1, %v1181_v51 }
 0x1e2   :  { %9666 = vmatmul.msk.f32.gmra.mxu1 %vm286_vm1, %v1427_v58  ;;  %9696 = vmatmul.msk.f32.gmra.mxu2 %vm286_vm1, %v1674_v61 }
 0x1e3   :  { %9723 = vmatmul.msk.f32.gmra.mxu3 %vm286_vm1, %v1918_v16  ;;  %v11795_v46 = vadd.f32 %v1809_v55, %v1629_v62  ;;  %v1921_v55 = vld [vmem:[%s13778_s0 + $0xef] sm:$0x3]  ;;  %v2141_v16 = vld [vmem:[%s13778_s0 + $0x20] sm:$0xff] }
 0x1e5   :  { %v1812_v2 = vpop.f32.mrf.mxu2 }
 0x1e6   :  { %v1320_v5 = vpop.f32.mrf.mxu0 }
 0x1e7   :  { %v1566_v8 = vpop.f32.mrf.mxu1  ;;  %v1384_v28 = vadd.f32 %v1320_v5, %v11310_v17 }
 0x1e9   :  { %v1630_v21 = vadd.f32 %v1566_v8, %v1384_v28  ;;  %9638 = vmatmul.msk.f32.gmra.mxu0 %vm286_vm1, %v1182_v9  ;;  %v2142_v8 = vld [vmem:[%s13778_s0 + $0x28] sm:$0xff] }
 0x1ea   :  { %9667 = vmatmul.msk.f32.gmra.mxu1 %vm286_vm1, %v1428_v10  ;;  %9697 = vmatmul.msk.f32.gmra.mxu2 %vm286_vm1, %v1675_v14 }
 0x1eb   :  { %9724 = vmatmul.msk.f32.gmra.mxu3 %vm286_vm1, %v1919_v12  ;;  %v11814_v17 = vadd.f32 %v1812_v2, %v1630_v21 }
 0x1ed   :  { %v1815_v57 = vpop.f32.mrf.mxu2 }
 0x1ee   :  { %v1323_v24 = vpop.f32.mrf.mxu0 }
 0x1ef   :  { %v1569_v25 = vpop.f32.mrf.mxu1  ;;  %v1385_v29 = vadd.f32 %v1323_v24, %v11328_v30  ;;  %v2140_v30 = vld [vmem:[%s13778_s0 + $0x18] sm:$0xff] }
 0x1f1   :  { %v1631_v33 = vadd.f32 %v1569_v25, %v1385_v29  ;;  %9639 = vmatmul.msk.f32.gmra.mxu0 %vm286_vm1, %v1183_v26 }
 0x1f2   :  { %9668 = vmatmul.msk.f32.gmra.mxu1 %vm286_vm1, %v1429_v42  ;;  %v2144_v42 = vld [vmem:[%s13778_s0 + $0x38] sm:$0xff] }
 0x1f3   :  { %9725 = vmatmul.msk.f32.gmra.mxu3 %vm286_vm1, %v1920_v31  ;;  %v11829_v37 = vadd.f32 %v1815_v57, %v1631_v33 }
 0x1f5   :  { %v1818_v4 = vpop.f32.mrf.mxu2 }
 0x1f6   :  { %v1326_v39 = vpop.f32.mrf.mxu0 }
 0x1f7   :  { %v1572_v35 = vpop.f32.mrf.mxu1  ;;  %v1386_v44 = vadd.f32 %v1326_v39, %v11346_v43 }
 0x1f9   :  { %v1632_v47 = vadd.f32 %v1572_v35, %v1386_v44  ;;  %9728 = vmatmul.msk.f32.vlgmr.msra.gmra.mxu0 %vm286_vm1, %v2140_v30  ;;  %v2145_v35 = vld [vmem:[%s13778_s0 + $0x40] sm:$0xff] }
 0x1fb   :  { %9726 = vmatmul.msk.f32.gmra.mxu3 %vm286_vm1, %v1921_v55  ;;  %v11840_v50 = vadd.f32 %v1818_v4, %v1632_v47  ;;  %v11875_v55 = vpop.f32.mrf.mxu3 }
 0x1fd   :  { %v1821_v51 = vpop.f32.mrf.mxu2 }
 0x1fe   :  { %v1329_v58 = vpop.f32.mrf.mxu0 }
 0x1ff   :  { %v1575_v59 = vpop.f32.mrf.mxu1  ;;  %v1387_v43 = vadd.f32 %v1329_v58, %v11364_v56 }
 0x201   :  { %v1633_v61 = vadd.f32 %v1575_v59, %v1387_v43  ;;  %9729 = vmatmul.msk.f32.gmra.mxu0 %vm286_vm1, %v2141_v16  ;;  %v2146_v59 = vld [vmem:[%s13778_s0 + $0x48] sm:$0xff] }
 0x203   :  { %v11847_v62 = vadd.f32 %v1821_v51, %v1633_v61  ;;  %v11886_v61 = vpop.f32.mrf.mxu3 }
 0x205   :  { %v1824_v3 = vpop.f32.mrf.mxu2 }
 0x206   :  { %v1332_v2 = vpop.f32.mrf.mxu0 }
 0x207   :  { %v1578_v5 = vpop.f32.mrf.mxu1  ;;  %v1388_v9 = vadd.f32 %v1332_v2, %v11382_v6 }
 0x209   :  { %v1634_v10 = vadd.f32 %v1578_v5, %v1388_v9  ;;  %9730 = vmatmul.msk.f32.gmra.mxu0 %vm286_vm1, %v2142_v8  ;;  %v2147_v8 = vld [vmem:[%s13778_s0 + $0x50] sm:$0xff] }
 0x20b   :  { %v11854_v28 = vadd.f32 %v1824_v3, %v1634_v10 }
 0x20d   :  { %v1827_v56 = vpop.f32.mrf.mxu2 }
 0x20e   :  { %v1335_v12 = vpop.f32.mrf.mxu0 }
 0x20f   :  { %v1581_v14 = vpop.f32.mrf.mxu1  ;;  %v1389_v21 = vadd.f32 %v1335_v12, %v11400_v20 }
 0x211   :  { %v1635_v57 = vadd.f32 %v1581_v14, %v1389_v21  ;;  %9731 = vmatmul.msk.f32.gmra.mxu0 %vm286_vm1, %v2143_v19  ;;  %v2148_v19 = vld [vmem:[%s13778_s0 + $0x58] sm:$0xff]  ;;  %v11898_v21 = vpop.f32.mrf.mxu3 }
 0x213   :  { %v11861_v24 = vadd.f32 %v1827_v56, %v1635_v57 }
 0x215   :  { %v1830_v6 = vpop.f32.mrf.mxu2 }
 0x216   :  { %v1338_v25 = vpop.f32.mrf.mxu0 }
 0x217   :  { %v1584_v26 = vpop.f32.mrf.mxu1  ;;  %v1390_v29 = vadd.f32 %v1338_v25, %v11418_v34 }
 0x219   :  { %v1636_v31 = vadd.f32 %v1584_v26, %v1390_v29  ;;  %9732 = vmatmul.msk.f32.gmra.mxu0 %vm286_vm1, %v2144_v42  ;;  %v2149_v29 = vld [vmem:[%s13778_s0 + $0x60] sm:$0xff] }
 0x21b   :  { %v11868_v33 = vadd.f32 %v1830_v6, %v1636_v31 }
 0x21d   :  { %v1833_v20 = vpop.f32.mrf.mxu2 }
 0x21e   :  { %v1341_v4 = vpop.f32.mrf.mxu0 }
 0x21f   :  { %v1587_v39 = vpop.f32.mrf.mxu1  ;;  %v1391_v30 = vadd.f32 %v1341_v4, %v11436_v49 }
 0x221   :  { %v1637_v44 = vadd.f32 %v1587_v39, %v1391_v30  ;;  %9733 = vmatmul.msk.f32.gmra.mxu0 %vm286_vm1, %v2145_v35 }
 0x223   :  { %v11877_v34 = vadd.f32 %v1833_v20, %v1637_v44  ;;  %v11908_v20 = vpop.f32.mrf.mxu3  ;;  %v2150_v44 = vld [vmem:[%s13778_s0 + $0x68] sm:$0xff] }
 0x225   :  { %v1836_v47 = vpop.f32.mrf.mxu2 }
 0x226   :  { %v1344_v51 = vpop.f32.mrf.mxu0 }
 0x227   :  { %v1590_v58 = vpop.f32.mrf.mxu1  ;;  %v1392_v16 = vadd.f32 %v1344_v51, %v11455_v0 }
 0x229   :  { %v1638_v43 = vadd.f32 %v1590_v58, %v1392_v16  ;;  %9734 = vmatmul.msk.f32.gmra.mxu0 %vm286_vm1, %v2146_v59 }
 0x22b   :  { %v11884_v49 = vadd.f32 %v1836_v47, %v1638_v43 }
 0x22d   :  { %v1839_v3 = vpop.f32.mrf.mxu2 }
 0x22e   :  { %v1347_v2 = vpop.f32.mrf.mxu0 }
 0x22f   :  { %v1593_v5 = vpop.f32.mrf.mxu1  ;;  %v1393_v9 = vadd.f32 %v1347_v2, %v11473_v15 }
 0x231   :  { %v1639_v10 = vadd.f32 %v1593_v5, %v1393_v9  ;;  %9735 = vmatmul.msk.f32.gmra.mxu0 %vm286_vm1, %v2147_v8  ;;  %v2501_v8 = vld [vmem:[#allocation12] sm:$0xff] }
 0x232   :  { %2788 = vmatpush.msra.mxu2 %v2501_v8 }
 0x233   :  { %v11893_v0 = vadd.f32 %v1839_v3, %v1639_v10  ;;  %v2151_v3 = vld [vmem:[%s13778_s0 + $0x70] sm:$0xff] }
 0x235   :  { %v1842_v56 = vpop.f32.mrf.mxu2 }
 0x236   :  { %v1350_v12 = vpop.f32.mrf.mxu0 }
 0x237   :  { %v1596_v14 = vpop.f32.mrf.mxu1  ;;  %v1394_v57 = vadd.f32 %v1350_v12, %v11491_v32 }
 0x239   :  { %v1640_v6 = vadd.f32 %v1596_v14, %v1394_v57  ;;  %9736 = vmatmul.msk.f32.gmra.mxu0 %vm286_vm1, %v2148_v19  ;;  %v2152_v14 = vld [vmem:[%s13778_s0 + $0x78] sm:$0xff] }
 0x23b   :  { %v11902_v15 = vadd.f32 %v1842_v56, %v1640_v6 }
 0x23d   :  { %v1845_v25 = vpop.f32.mrf.mxu2 }
 0x23e   :  { %v1353_v26 = vpop.f32.mrf.mxu0 }
 0x23f   :  { %v1599_v42 = vpop.f32.mrf.mxu1  ;;  %v1395_v31 = vadd.f32 %v1353_v26, %v11509_v48  ;;  %v11918_v48 = vpop.f32.mrf.mxu3 }
 0x241   :  { %v1641_v4 = vadd.f32 %v1599_v42, %v1395_v31  ;;  %9737 = vmatmul.msk.f32.gmra.mxu0 %vm286_vm1, %v2149_v29  ;;  %v2153_v29 = vld [vmem:[%s13778_s0 + $0x80] sm:$0xff] }
 0x243   :  { %v11911_v32 = vadd.f32 %v1845_v25, %v1641_v4  ;;  %v2529_v25 = vld [vmem:[#allocation12 + $0x10] sm:$0xff] }
 0x244   :  { %2621 = vmatpush.msra.mxu1 %v2529_v25 }
 0x245   :  { %v1848_v39 = vpop.f32.mrf.mxu2 }
 0x246   :  { %v1356_v35 = vpop.f32.mrf.mxu0 }
 0x247   :  { %v1602_v30 = vpop.f32.mrf.mxu1  ;;  %v1396_v47 = vadd.f32 %v1356_v35, %v11527_v63  ;;  %v11929_v9 = vpop.f32.mrf.mxu3 }
 0x249   :  { %v1642_v51 = vadd.f32 %v1602_v30, %v1396_v47  ;;  %9738 = vmatmul.msk.f32.gmra.mxu0 %vm286_vm1, %v2150_v44  ;;  %v2154_v47 = vld [vmem:[%s13778_s0 + $0x88] sm:$0xff] }
 0x24b   :  { %v11920_v58 = vadd.f32 %v1848_v39, %v1642_v51  ;;  %v662_v51 = vadd.f32 %v11585_v54, %v11583_v53  ;;  %v2155_v53 = vld [vmem:[%s13778_s0 + $0x90] sm:$0xff] }
 0x24d   :  { %v1851_v59 = vpop.f32.mrf.mxu2 }
 0x24e   :  { %v1359_v16 = vpop.f32.mrf.mxu0 }
 0x24f   :  { %v1605_v43 = vpop.f32.mrf.mxu1  ;;  %v1397_v2 = vadd.f32 %v1359_v16, %v11545_v18  ;;  %v11941_v31 = vpop.f32.mrf.mxu3 }
 0x251   :  { %v1643_v5 = vadd.f32 %v1605_v43, %v1397_v2  ;;  %9739 = vmatmul.msk.f32.gmra.mxu0 %vm286_vm1, %v2151_v3  ;;  %v2892_v43 = vld [vmem:[#allocation12 + $0x28] sm:$0xff]  ;;  %v909_v3 = vadd.f32 %v11109_v13, %v662_v51 }
 0x252   :  { %2982 = vmatpush.msrb.mxu3 %v2892_v43 }
 0x253   :  { %v11927_v63 = vadd.f32 %v1851_v59, %v1643_v5  ;;  %v2891_v5 = vld [vmem:[#allocation12 + $0x20] sm:$0xff]  ;;  %v1155_v8 = vadd.f32 %v11622_v23, %v909_v3 }
 0x254   :  { %2983 = vmatpush.msrb.mxu3 %v2891_v5  ;;  %v2156_v23 = vld [vmem:[%s13778_s0 + $0x98] sm:$0xff] }
 0x255   :  { %v1854_v10 = vpop.f32.mrf.mxu2 }
 0x256   :  { %v1362_v56 = vpop.f32.mrf.mxu0 }
 0x257   :  { %v1608_v12 = vpop.f32.mrf.mxu1  ;;  %v1398_v19 = vadd.f32 %v1362_v56, %v11563_v36  ;;  %v11953_v16 = vpop.f32.mrf.mxu3 }
 0x259   :  { %v1644_v57 = vadd.f32 %v1608_v12, %v1398_v19  ;;  %9740 = vmatmul.msk.f32.gmra.mxu0 %vm286_vm1, %v2152_v14  ;;  %v11968_v19 = vld [vmem:[#allocation10] ss:$0 sm:$0xff] }
 0x25b   :  { %v11936_v18 = vadd.f32 %v1854_v10, %v1644_v57 }
 0x25d   :  { %v1857_v6 = vpop.f32.mrf.mxu2 }
 0x25e   :  { %v1365_v26 = vpop.f32.mrf.mxu0 }
 0x25f   :  { %v1611_v42 = vpop.f32.mrf.mxu1  ;;  %v1399_v4 = vadd.f32 %v1365_v26, %v11581_v52  ;;  %v11964_v14 = vpop.f32.mrf.mxu3 }
 0x261   :  { %v1645_v39 = vadd.f32 %v1611_v42, %v1399_v4  ;;  %9741 = vmatmul.msk.f32.gmra.mxu0 %vm286_vm1, %v2153_v29  ;;  %v2157_v4 = vld [vmem:[%s13778_s0 + $0xa0] sm:$0xff] }
 0x263   :  { %v11945_v36 = vadd.f32 %v1857_v6, %v1645_v39 }
 0x265   :  { %v1860_v35 = vpop.f32.mrf.mxu2 }
 0x266   :  { %v1368_v30 = vpop.f32.mrf.mxu0 }
 0x267   :  { %v1614_v44 = vpop.f32.mrf.mxu1  ;;  %v1400_v59 = vadd.f32 %v1368_v30, %v11603_v7  ;;  %v11976_v42 = vpop.f32.mrf.mxu3 }
 0x269   :  { %v1646_v52 = vadd.f32 %v1614_v44, %v1400_v59  ;;  %9742 = vmatmul.msk.f32.gmra.mxu0 %vm286_vm1, %v2154_v47  ;;  %v2158_v47 = vld [vmem:[%s13778_s0 + $0xa8] sm:$0xff] }
 0x26b   :  { %v11957_v2 = vadd.f32 %v1860_v35, %v1646_v52 }
 0x26d   :  { %v1863_v7 = vpop.f32.mrf.mxu2 }
 0x26e   :  { %v1371_v10 = vpop.f32.mrf.mxu0 }
 0x26f   :  { %v1617_v56 = vpop.f32.mrf.mxu1  ;;  %v1401_v54 = vadd.f32 %v1371_v10, %v1155_v8  ;;  %v11990_v51 = vpop.f32.mrf.mxu3 }
 0x271   :  { %v1647_v12 = vadd.f32 %v1617_v56, %v1401_v54  ;;  %9743 = vmatmul.msk.f32.gmra.mxu0 %vm286_vm1, %v2155_v53 }
 0x273   :  { %v11966_v13 = vadd.f32 %v1863_v7, %v1647_v12 }
 0x276   :  { %v2274_v57 = vpop.f32.mrf.mxu0 }
 0x277   :  { %v2358_v6 = vadd.f32 %v2274_v57, %v11641_v41  ;;  %v12003_v56 = vpop.f32.mrf.mxu3 }
 0x279   :  { %v2390_v25 = vadd.f32 %v11968_v19, %v2358_v6  ;;  %9744 = vmatmul.msk.f32.gmra.mxu0 %vm286_vm1, %v2156_v23  ;;  %v2116_v23 = vadd.f32 %v11875_v55, %v11698_v38  ;;  %v2160_v6 = vld [vmem:[%s13778_s0 + $0xb8] sm:$0xff] }
 0x27b   :  { %v2418_v26 = vmax.f32 %v2390_v25, 0.0 }
 0x27d   :  { %2447 = vst.msk [vmem:[#allocation2] sm:$0xff] %vm2446_vm2, %v2418_v26 }
 0x27e   :  { %v2277_v29 = vpop.f32.mrf.mxu0 }
 0x27f   :  { %v2359_v39 = vadd.f32 %v2277_v29, %v11660_v1  ;;  %v12018_v29 = vpop.f32.mrf.mxu3 }
 0x281   :  { %v2391_v35 = vadd.f32 %v11968_v19, %v2359_v39  ;;  %9745 = vmatmul.msk.f32.gmra.mxu0 %vm286_vm1, %v2157_v4 }
 0x283   :  { %v2419_v41 = vmax.f32 %v2391_v35, 0.0  ;;  %v2117_v35 = vadd.f32 %v11886_v61, %v11719_v60 }
 0x284   :  { %v2476_v30 = vld [vmem:[#allocation2] sm:$0xff] }
 0x285   :  { %2448 = vst.msk [vmem:[#allocation2 + $0x8] sm:$0xff] %vm2446_vm2, %v2419_v41  ;;  %9781 = vmatmul.msk.f32.vlgmr.msra.gmra.mxu2 %vm2446_vm2, %v2476_v30  ;;  %v2161_v30 = vld [vmem:[%s13778_s0 + $0xc0] sm:$0xff] }
 0x286   :  { %v2280_v44 = vpop.f32.mrf.mxu0 }
 0x287   :  { %v2360_v59 = vadd.f32 %v2280_v44, %v11679_v22  ;;  %v2159_v22 = vld [vmem:[%s13778_s0 + $0xb0] sm:$0xff] }
 0x289   :  { %v2392_v1 = vadd.f32 %v11968_v19, %v2360_v59  ;;  %9746 = vmatmul.msk.f32.gmra.mxu0 %vm286_vm1, %v2158_v47 }
 0x28b   :  { %v2420_v52 = vmax.f32 %v2392_v1, 0.0 }
 0x28c   :  { %v2503_v43 = vld [vmem:[#allocation2 + $0x1] sm:$0xff] }
 0x28d   :  { %v2477_v3 = vld [vmem:[#allocation2 + $0x8] sm:$0xff]  ;;  %2449 = vst.msk [vmem:[#allocation2 + $0x10] sm:$0xff] %vm2446_vm2, %v2420_v52  ;;  %9756 = vmatmul.msk.f32.vlgmr.msra.gmra.mxu1 %vm2446_vm2, %v2503_v43  ;;  %v2118_v52 = vadd.f32 %v11898_v21, %v11738_v11  ;;  %v12033_v43 = vpop.f32.mrf.mxu3 }
 0x28e   :  { %v2865_v5 = vld [vmem:[#allocation2 + $0x2] sm:$0xff]  ;;  %9782 = vmatmul.msk.f32.gmra.mxu2 %vm2446_vm2, %v2477_v3  ;;  %v2283_v8 = vpop.f32.mrf.mxu0 }
 0x28f   :  { %9806 = vmatmul.msk.f32.vlgmr.msrb.gmra.mxu3 %vm2446_vm2, %v2865_v5  ;;  %v2361_v10 = vadd.f32 %v2283_v8, %v11700_v40  ;;  %v2162_v5 = vld [vmem:[%s13778_s0 + $0xc8] sm:$0xff] }
 0x291   :  { %v2393_v53 = vadd.f32 %v11968_v19, %v2361_v10  ;;  %9747 = vmatmul.msk.f32.gmra.mxu0 %vm286_vm1, %v2159_v22 }
 0x293   :  { %v2421_v54 = vmax.f32 %v2393_v53, 0.0 }
 0x294   :  { %v2504_v7 = vld [vmem:[#allocation2 + $0x9] sm:$0xff] }
 0x295   :  { %v2478_v12 = vld [vmem:[#allocation2 + $0x10] sm:$0xff]  ;;  %2450 = vst.msk [vmem:[#allocation2 + $0x18] sm:$0xff] %vm2446_vm2, %v2421_v54  ;;  %9757 = vmatmul.msk.f32.gmra.mxu1 %vm2446_vm2, %v2504_v7  ;;  %v2119_v54 = vadd.f32 %v11908_v20, %v11757_v27 }
 0x296   :  { %v2866_v57 = vld [vmem:[#allocation2 + $0xa] sm:$0xff]  ;;  %9783 = vmatmul.msk.f32.gmra.mxu2 %vm2446_vm2, %v2478_v12  ;;  %v2286_v40 = vpop.f32.mrf.mxu0 }
 0x297   :  { %9807 = vmatmul.msk.f32.gmra.mxu3 %vm2446_vm2, %v2866_v57  ;;  %v2362_v25 = vadd.f32 %v2286_v40, %v2116_v23  ;;  %v2163_v12 = vld [vmem:[%s13778_s0 + $0xd0] sm:$0xff]  ;;  %v12053_v57 = vpop.f32.mrf.mxu3 }
 0x299   :  { %v2394_v26 = vadd.f32 %v11968_v19, %v2362_v25  ;;  %9748 = vmatmul.msk.f32.gmra.mxu0 %vm286_vm1, %v2160_v6 }
 0x29b   :  { %v2422_v38 = vmax.f32 %v2394_v26, 0.0  ;;  %v2120_v26 = vadd.f32 %v11918_v48, %v11776_v45 }
 0x29c   :  { %v2505_v55 = vld [vmem:[#allocation2 + $0x11] sm:$0xff] }
 0x29d   :  { %v2479_v4 = vld [vmem:[#allocation2 + $0x18] sm:$0xff]  ;;  %2451 = vst.msk [vmem:[#allocation2 + $0x20] sm:$0xff] %vm2446_vm2, %v2422_v38  ;;  %9758 = vmatmul.msk.f32.gmra.mxu1 %vm2446_vm2, %v2505_v55  ;;  %v2164_v55 = vld [vmem:[%s13778_s0 + $0xd8] sm:$0xff] }
 0x29e   :  { %v2867_v39 = vld [vmem:[#allocation2 + $0x12] sm:$0xff]  ;;  %9784 = vmatmul.msk.f32.gmra.mxu2 %vm2446_vm2, %v2479_v4  ;;  %v2289_v41 = vpop.f32.mrf.mxu0 }
 0x29f   :  { %9808 = vmatmul.msk.f32.gmra.mxu3 %vm2446_vm2, %v2867_v39  ;;  %v2363_v44 = vadd.f32 %v2289_v41, %v2117_v35  ;;  %v3772_v4 = vld [vmem:[#allocation12 + $0x68] sm:$0xff]  ;;  %v3771_v35 = vld [vmem:[#allocation12 + $0x60] sm:$0xff]  ;;  %v12066_v41 = vpop.f32.mrf.mxu3 }
 0x2a0   :  { %3862 = vmatpush.msrb.mxu0 %v3772_v4  ;;  %v2124_v4 = vadd.f32 %v11964_v14, %v11840_v50 }
 0x2a1   :  { %v2395_v47 = vadd.f32 %v11968_v19, %v2363_v44  ;;  %9749 = vmatmul.msk.f32.gmra.mxu0 %vm286_vm1, %v2161_v30 }
 0x2a2   :  { %3863 = vmatpush.msrb.mxu0 %v3771_v35 }
 0x2a3   :  { %v2423_v59 = vmax.f32 %v2395_v47, 0.0 }
 0x2a4   :  { %v2506_v60 = vld [vmem:[#allocation2 + $0x19] sm:$0xff] }
 0x2a5   :  { %v2480_v61 = vld [vmem:[#allocation2 + $0x20] sm:$0xff]  ;;  %2452 = vst.msk [vmem:[#allocation2 + $0x28] sm:$0xff] %vm2446_vm2, %v2423_v59  ;;  %9759 = vmatmul.msk.f32.gmra.mxu1 %vm2446_vm2, %v2506_v60  ;;  %v2121_v59 = vadd.f32 %v11929_v9, %v11795_v46 }
 0x2a6   :  { %v2868_v1 = vld [vmem:[#allocation2 + $0x1a] sm:$0xff]  ;;  %9785 = vmatmul.msk.f32.gmra.mxu2 %vm2446_vm2, %v2480_v61  ;;  %v2292_v3 = vpop.f32.mrf.mxu0 }
 0x2a7   :  { %9809 = vmatmul.msk.f32.gmra.mxu3 %vm2446_vm2, %v2868_v1  ;;  %v2364_v8 = vadd.f32 %v2292_v3, %v2118_v52  ;;  %v2165_v61 = vld [vmem:[%s13778_s0 + $0xe0] sm:$0xff]  ;;  %v12081_v3 = vpop.f32.mrf.mxu3 }
 0x2a9   :  { %v2396_v22 = vadd.f32 %v11968_v19, %v2364_v8  ;;  %9750 = vmatmul.msk.f32.gmra.mxu0 %vm286_vm1, %v2162_v5 }
 0x2ab   :  { %v2424_v11 = vmax.f32 %v2396_v22, 0.0  ;;  %v2122_v22 = vadd.f32 %v11941_v31, %v11814_v17 }
 0x2ac   :  { %v2507_v21 = vld [vmem:[#allocation2 + $0x21] sm:$0xff] }
 0x2ad   :  { %v2481_v10 = vld [vmem:[#allocation2 + $0x28] sm:$0xff]  ;;  %2453 = vst.msk [vmem:[#allocation2 + $0x30] sm:$0xff] %vm2446_vm2, %v2424_v11  ;;  %9760 = vmatmul.msk.f32.gmra.mxu1 %vm2446_vm2, %v2507_v21  ;;  %v3332_v11 = vld [vmem:[#allocation12 + $0x48] sm:$0xff] }
 0x2ae   :  { %v2869_v53 = vld [vmem:[#allocation2 + $0x22] sm:$0xff]  ;;  %9786 = vmatmul.msk.f32.gmra.mxu2 %vm2446_vm2, %v2481_v10  ;;  %v2295_v7 = vpop.f32.mrf.mxu0 }
 0x2af   :  { %9810 = vmatmul.msk.f32.gmra.mxu3 %vm2446_vm2, %v2869_v53  ;;  %v2365_v23 = vadd.f32 %v2295_v7, %v2119_v54  ;;  %v2166_v10 = vld [vmem:[%s13778_s0 + $0xe8] sm:$0xff]  ;;  %3422 = vmatpush.msrb.mxu2 %v3332_v11 }
 0x2b1   :  { %v2397_v40 = vadd.f32 %v11968_v19, %v2365_v23  ;;  %9751 = vmatmul.msk.f32.gmra.mxu0 %vm286_vm1, %v2163_v12  ;;  %v2123_v23 = vadd.f32 %v11953_v16, %v11829_v37 }
 0x2b3   :  { %v2425_v27 = vmax.f32 %v2397_v40, 0.0  ;;  %v12096_v40 = vpop.f32.mrf.mxu3 }
 0x2b4   :  { %v2508_v20 = vld [vmem:[#allocation2 + $0x29] sm:$0xff] }
 0x2b5   :  { %v2482_v6 = vld [vmem:[#allocation2 + $0x30] sm:$0xff]  ;;  %2454 = vst.msk [vmem:[#allocation2 + $0x38] sm:$0xff] %vm2446_vm2, %v2425_v27  ;;  %9761 = vmatmul.msk.f32.gmra.mxu1 %vm2446_vm2, %v2508_v20  ;;  %v3112_v27 = vld [vmem:[#allocation12 + $0x38] sm:$0xff] }
 0x2b6   :  { %v2870_v25 = vld [vmem:[#allocation2 + $0x2a] sm:$0xff]  ;;  %9787 = vmatmul.msk.f32.gmra.mxu2 %vm2446_vm2, %v2482_v6  ;;  %v2298_v38 = vpop.f32.mrf.mxu0  ;;  %v2167_v6 = vld [vmem:[%s13778_s0 + $0xf0] sm:$0x3]  ;;  %3202 = vmatpush.msrb.mxu1 %v3112_v27 }
 0x2b7   :  { %9811 = vmatmul.msk.f32.gmra.mxu3 %vm2446_vm2, %v2870_v25  ;;  %v2366_v39 = vadd.f32 %v2298_v38, %v2120_v26 }
 0x2b9   :  { %v2398_v45 = vadd.f32 %v11968_v19, %v2366_v39  ;;  %9752 = vmatmul.msk.f32.gmra.mxu0 %vm286_vm1, %v2164_v55 }
 0x2bb   :  { %v2426_v48 = vmax.f32 %v2398_v45, 0.0  ;;  %v12113_v35 = vpop.f32.mrf.mxu3 }
 0x2bc   :  { %v2509_v30 = vld [vmem:[#allocation2 + $0x31] sm:$0xff] }
 0x2bd   :  { %v2483_v44 = vld [vmem:[#allocation2 + $0x38] sm:$0xff]  ;;  %2455 = vst.msk [vmem:[#allocation2 + $0x40] sm:$0xff] %vm2446_vm2, %v2426_v48  ;;  %9762 = vmatmul.msk.f32.gmra.mxu1 %vm2446_vm2, %v2509_v30 }
 0x2be   :  { %v2871_v47 = vld [vmem:[#allocation2 + $0x32] sm:$0xff]  ;;  %9788 = vmatmul.msk.f32.gmra.mxu2 %vm2446_vm2, %v2483_v44  ;;  %v2301_v60 = vpop.f32.mrf.mxu0 }
 0x2bf   :  { %9812 = vmatmul.msk.f32.gmra.mxu3 %vm2446_vm2, %v2871_v47  ;;  %v2367_v1 = vadd.f32 %v2301_v60, %v2121_v59  ;;  %v3745_v48 = vld [vmem:[#allocation2 + $0x16] sm:$0xff]  ;;  %v2125_v59 = vadd.f32 %v11976_v42, %v11847_v62 }
 0x2c1   :  { %v2399_v52 = vadd.f32 %v11968_v19, %v2367_v1  ;;  %9753 = vmatmul.msk.f32.gmra.mxu0 %vm286_vm1, %v2165_v61  ;;  %v3746_v1 = vld [vmem:[#allocation2 + $0x1e] sm:$0xff] }
 0x2c3   :  { %v2427_v46 = vmax.f32 %v2399_v52, 0.0  ;;  %v12123_v52 = vpop.f32.mrf.mxu3 }
 0x2c4   :  { %v2510_v9 = vld [vmem:[#allocation2 + $0x39] sm:$0xff] }
 0x2c5   :  { %v2484_v5 = vld [vmem:[#allocation2 + $0x40] sm:$0xff]  ;;  %2456 = vst.msk [vmem:[#allocation2 + $0x48] sm:$0xff] %vm2446_vm2, %v2427_v46  ;;  %9763 = vmatmul.msk.f32.gmra.mxu1 %vm2446_vm2, %v2510_v9 }
 0x2c6   :  { %v2872_v8 = vld [vmem:[#allocation2 + $0x3a] sm:$0xff]  ;;  %9789 = vmatmul.msk.f32.gmra.mxu2 %vm2446_vm2, %v2484_v5  ;;  %v2304_v21 = vpop.f32.mrf.mxu0 }
 0x2c7   :  { %9813 = vmatmul.msk.f32.gmra.mxu3 %vm2446_vm2, %v2872_v8  ;;  %v2368_v53 = vadd.f32 %v2304_v21, %v2122_v22  ;;  %v2126_v8 = vadd.f32 %v11990_v51, %v11854_v28  ;;  %v3747_v21 = vld [vmem:[#allocation2 + $0x26] sm:$0xff] }
 0x2c9   :  { %v2400_v54 = vadd.f32 %v11968_v19, %v2368_v53  ;;  %9754 = vmatmul.msk.f32.gmra.mxu0 %vm286_vm1, %v2166_v10 }
 0x2cb   :  { %v2428_v17 = vmax.f32 %v2400_v54, 0.0  ;;  %v12135_v53 = vpop.f32.mrf.mxu3 }
 0x2cc   :  { %v2511_v31 = vld [vmem:[#allocation2 + $0x41] sm:$0xff] }
 0x2cd   :  { %v2485_v7 = vld [vmem:[#allocation2 + $0x48] sm:$0xff]  ;;  %2457 = vst.msk [vmem:[#allocation2 + $0x50] sm:$0xff] %vm2446_vm2, %v2428_v17  ;;  %9764 = vmatmul.msk.f32.gmra.mxu1 %vm2446_vm2, %v2511_v31  ;;  %v2127_v31 = vadd.f32 %v12003_v56, %v11861_v24  ;;  %v2128_v24 = vadd.f32 %v12018_v29, %v11868_v33 }
 0x2ce   :  { %v2873_v12 = vld [vmem:[#allocation2 + $0x42] sm:$0xff]  ;;  %9790 = vmatmul.msk.f32.gmra.mxu2 %vm2446_vm2, %v2485_v7  ;;  %v2307_v20 = vpop.f32.mrf.mxu0 }
 0x2cf   :  { %9814 = vmatmul.msk.f32.gmra.mxu3 %vm2446_vm2, %v2873_v12  ;;  %v2369_v25 = vadd.f32 %v2307_v20, %v2123_v23  ;;  %v3748_v23 = vld [vmem:[#allocation2 + $0x2e] sm:$0xff] }
 0x2d1   :  { %v2401_v37 = vadd.f32 %v11968_v19, %v2369_v25  ;;  %9755 = vmatmul.msk.f32.gmra.mxu0 %vm286_vm1, %v2167_v6 }
 0x2d3   :  { %v2429_v16 = vmax.f32 %v2401_v37, 0.0  ;;  %v12147_v56 = vpop.f32.mrf.mxu3 }
 0x2d4   :  { %v2512_v26 = vld [vmem:[#allocation2 + $0x49] sm:$0xff] }
 0x2d5   :  { %v2486_v38 = vld [vmem:[#allocation2 + $0x50] sm:$0xff]  ;;  %2458 = vst.msk [vmem:[#allocation2 + $0x58] sm:$0xff] %vm2446_vm2, %v2429_v16  ;;  %9765 = vmatmul.msk.f32.gmra.mxu1 %vm2446_vm2, %v2512_v26 }
 0x2d6   :  { %v2874_v55 = vld [vmem:[#allocation2 + $0x4a] sm:$0xff]  ;;  %9791 = vmatmul.msk.f32.gmra.mxu2 %vm2446_vm2, %v2486_v38  ;;  %v2310_v39 = vpop.f32.mrf.mxu0  ;;  %v3749_v38 = vld [vmem:[#allocation2 + $0x36] sm:$0xff] }
 0x2d7   :  { %9815 = vmatmul.msk.f32.gmra.mxu3 %vm2446_vm2, %v2874_v55  ;;  %v2370_v45 = vadd.f32 %v2310_v39, %v2124_v4 }
 0x2d9   :  { %v2402_v30 = vadd.f32 %v11968_v19, %v2370_v45  ;;  %9906 = vmatmul.msk.f32.vlgmr.msrb.gmra.mxu0 %vm2446_vm2, %v3745_v48  ;;  %v2129_v45 = vadd.f32 %v12033_v43, %v11877_v34 }
 0x2db   :  { %v2430_v44 = vmax.f32 %v2402_v30, 0.0  ;;  %v12161_v30 = vpop.f32.mrf.mxu3 }
 0x2dc   :  { %v2513_v47 = vld [vmem:[#allocation2 + $0x51] sm:$0xff] }
 0x2dd   :  { %v2487_v50 = vld [vmem:[#allocation2 + $0x58] sm:$0xff]  ;;  %2459 = vst.msk [vmem:[#allocation2 + $0x60] sm:$0xff] %vm2446_vm2, %v2430_v44  ;;  %9766 = vmatmul.msk.f32.gmra.mxu1 %vm2446_vm2, %v2513_v47 }
 0x2de   :  { %v2875_v14 = vld [vmem:[#allocation2 + $0x52] sm:$0xff]  ;;  %9792 = vmatmul.msk.f32.gmra.mxu2 %vm2446_vm2, %v2487_v50  ;;  %v2313_v60 = vpop.f32.mrf.mxu0  ;;  %v3750_v47 = vld [vmem:[#allocation2 + $0x3e] sm:$0xff] }
 0x2df   :  { %9816 = vmatmul.msk.f32.gmra.mxu3 %vm2446_vm2, %v2875_v14  ;;  %v2371_v61 = vadd.f32 %v2313_v60, %v2125_v59  ;;  %v2130_v60 = vadd.f32 %v12053_v57, %v11884_v49 }
 0x2e1   :  { %v2403_v46 = vadd.f32 %v11968_v19, %v2371_v61  ;;  %9907 = vmatmul.msk.f32.gmra.mxu0 %vm2446_vm2, %v3746_v1 }
 0x2e3   :  { %v2431_v9 = vmax.f32 %v2403_v46, 0.0 }
 0x2e4   :  { %v2514_v5 = vld [vmem:[#allocation2 + $0x59] sm:$0xff] }
 0x2e5   :  { %v2488_v62 = vld [vmem:[#allocation2 + $0x60] sm:$0xff]  ;;  %2460 = vst.msk [vmem:[#allocation2 + $0x68] sm:$0xff] %vm2446_vm2, %v2431_v9  ;;  %9767 = vmatmul.msk.f32.gmra.mxu1 %vm2446_vm2, %v2514_v5  ;;  %v12171_v5 = vpop.f32.mrf.mxu3 }
 0x2e6   :  { %v2876_v42 = vld [vmem:[#allocation2 + $0x5a] sm:$0xff]  ;;  %9793 = vmatmul.msk.f32.gmra.mxu2 %vm2446_vm2, %v2488_v62  ;;  %v2316_v22 = vpop.f32.mrf.mxu0  ;;  %v3751_v9 = vld [vmem:[#allocation2 + $0x46] sm:$0xff] }
 0x2e7   :  { %9817 = vmatmul.msk.f32.gmra.mxu3 %vm2446_vm2, %v2876_v42  ;;  %v2372_v11 = vadd.f32 %v2316_v22, %v2126_v8 }
 0x2e9   :  { %v2404_v10 = vadd.f32 %v11968_v19, %v2372_v11  ;;  %9908 = vmatmul.msk.f32.gmra.mxu0 %vm2446_vm2, %v3747_v21  ;;  %v2131_v11 = vadd.f32 %v12066_v41, %v11893_v0 }
 0x2eb   :  { %v2432_v54 = vmax.f32 %v2404_v10, 0.0 }
 0x2ec   :  { %v2515_v17 = vld [vmem:[#allocation2 + $0x61] sm:$0xff] }
 0x2ed   :  { %v2489_v28 = vld [vmem:[#allocation2 + $0x68] sm:$0xff]  ;;  %2461 = vst.msk [vmem:[#allocation2 + $0x70] sm:$0xff] %vm2446_vm2, %v2432_v54  ;;  %9768 = vmatmul.msk.f32.gmra.mxu1 %vm2446_vm2, %v2515_v17 }
 0x2ee   :  { %v2877_v51 = vld [vmem:[#allocation2 + $0x62] sm:$0xff]  ;;  %9794 = vmatmul.msk.f32.gmra.mxu2 %vm2446_vm2, %v2489_v28  ;;  %v2319_v7 = vpop.f32.mrf.mxu0  ;;  %v3752_v28 = vld [vmem:[#allocation2 + $0x4e] sm:$0xff] }
 0x2ef   :  { %9818 = vmatmul.msk.f32.gmra.mxu3 %vm2446_vm2, %v2877_v51  ;;  %v2373_v12 = vadd.f32 %v2319_v7, %v2127_v31 }
 0x2f1   :  { %v2405_v27 = vadd.f32 %v11968_v19, %v2373_v12  ;;  %9909 = vmatmul.msk.f32.gmra.mxu0 %vm2446_vm2, %v3748_v23 }
 0x2f3   :  { %v2433_v20 = vmax.f32 %v2405_v27, 0.0 }
 0x2f4   :  { %v2516_v6 = vld [vmem:[#allocation2 + $0x69] sm:$0xff] }
 0x2f5   :  { %v2490_v25 = vld [vmem:[#allocation2 + $0x70] sm:$0xff]  ;;  %2462 = vst.msk [vmem:[#allocation2 + $0x78] sm:$0xff] %vm2446_vm2, %v2433_v20  ;;  %9769 = vmatmul.msk.f32.gmra.mxu1 %vm2446_vm2, %v2516_v6  ;;  %v2132_v20 = vadd.f32 %v12081_v3, %v11902_v15 }
 0x2f6   :  { %v2878_v37 = vld [vmem:[#allocation2 + $0x6a] sm:$0xff]  ;;  %9795 = vmatmul.msk.f32.gmra.mxu2 %vm2446_vm2, %v2490_v25  ;;  %v2322_v16 = vpop.f32.mrf.mxu0 }
 0x2f7   :  { %9819 = vmatmul.msk.f32.gmra.mxu3 %vm2446_vm2, %v2878_v37  ;;  %v2374_v26 = vadd.f32 %v2322_v16, %v2128_v24  ;;  %v3753_v16 = vld [vmem:[#allocation2 + $0x56] sm:$0xff] }
 0x2f9   :  { %v2406_v55 = vadd.f32 %v11968_v19, %v2374_v26  ;;  %9910 = vmatmul.msk.f32.gmra.mxu0 %vm2446_vm2, %v3749_v38 }
 0x2fb   :  { %v2434_v4 = vmax.f32 %v2406_v55, 0.0 }
 0x2fc   :  { %v2517_v39 = vld [vmem:[#allocation2 + $0x71] sm:$0xff] }
 0x2fd   :  { %v2491_v33 = vld [vmem:[#allocation2 + $0x78] sm:$0xff]  ;;  %2463 = vst.msk [vmem:[#allocation2 + $0x80] sm:$0xff] %vm2446_vm2, %v2434_v4  ;;  %9770 = vmatmul.msk.f32.gmra.mxu1 %vm2446_vm2, %v2517_v39 }
 0x2fe   :  { %v2879_v29 = vld [vmem:[#allocation2 + $0x72] sm:$0xff]  ;;  %9796 = vmatmul.msk.f32.gmra.mxu2 %vm2446_vm2, %v2491_v33  ;;  %v2325_v48 = vpop.f32.mrf.mxu0 }
 0x2ff   :  { %9820 = vmatmul.msk.f32.gmra.mxu3 %vm2446_vm2, %v2879_v29  ;;  %v2375_v44 = vadd.f32 %v2325_v48, %v2129_v45  ;;  %v2133_v29 = vadd.f32 %v12096_v40, %v11911_v32 }
 0x301   :  { %v2407_v50 = vadd.f32 %v11968_v19, %v2375_v44  ;;  %9911 = vmatmul.msk.f32.gmra.mxu0 %vm2446_vm2, %v3750_v47 }
 0x303   :  { %v2435_v14 = vmax.f32 %v2407_v50, 0.0  ;;  %v3754_v50 = vld [vmem:[#allocation2 + $0x5e] sm:$0xff] }
 0x304   :  { %v2518_v59 = vld [vmem:[#allocation2 + $0x79] sm:$0xff] }
 0x305   :  { %v2492_v34 = vld [vmem:[#allocation2 + $0x80] sm:$0xff]  ;;  %2464 = vst.msk [vmem:[#allocation2 + $0x88] sm:$0xff] %vm2446_vm2, %v2435_v14  ;;  %9771 = vmatmul.msk.f32.gmra.mxu1 %vm2446_vm2, %v2518_v59 }
 0x306   :  { %v2880_v43 = vld [vmem:[#allocation2 + $0x7a] sm:$0xff]  ;;  %9797 = vmatmul.msk.f32.gmra.mxu2 %vm2446_vm2, %v2492_v34  ;;  %v2328_v61 = vpop.f32.mrf.mxu0 }
 0x307   :  { %9821 = vmatmul.msk.f32.gmra.mxu3 %vm2446_vm2, %v2880_v43  ;;  %v2376_v1 = vadd.f32 %v2328_v61, %v2130_v60 }
 0x308   :  { %v2790_v46 = vpop.f32.mrf.mxu2 }
 0x309   :  { %v2408_v62 = vadd.f32 %v11968_v19, %v2376_v1  ;;  %9912 = vmatmul.msk.f32.gmra.mxu0 %vm2446_vm2, %v3751_v9  ;;  %v2134_v1 = vadd.f32 %v12113_v35, %v11920_v58 }
 0x30a   :  { %v2623_v42 = vpop.f32.mrf.mxu1 }
 0x30b   :  { %v2436_v49 = vmax.f32 %v2408_v62, 0.0  ;;  %v2791_v54 = vadd.f32 %v2790_v46, %v2623_v42 }
 0x30c   :  { %v2519_v57 = vld [vmem:[#allocation2 + $0x81] sm:$0xff] }
 0x30d   :  { %v2493_v8 = vld [vmem:[#allocation2 + $0x88] sm:$0xff]  ;;  %2465 = vst.msk [vmem:[#allocation2 + $0x90] sm:$0xff] %vm2446_vm2, %v2436_v49  ;;  %9772 = vmatmul.msk.f32.gmra.mxu1 %vm2446_vm2, %v2519_v57 }
 0x30e   :  { %v2881_v22 = vld [vmem:[#allocation2 + $0x82] sm:$0xff]  ;;  %9798 = vmatmul.msk.f32.gmra.mxu2 %vm2446_vm2, %v2493_v8  ;;  %v2331_v21 = vpop.f32.mrf.mxu0 }
 0x30f   :  { %9822 = vmatmul.msk.f32.gmra.mxu3 %vm2446_vm2, %v2881_v22  ;;  %v2377_v10 = vadd.f32 %v2331_v21, %v2131_v11  ;;  %v3755_v49 = vld [vmem:[#allocation2 + $0x66] sm:$0xff] }
 0x311   :  { %v2793_v17 = vpop.f32.mrf.mxu2  ;;  %v2409_v51 = vadd.f32 %v11968_v19, %v2377_v10  ;;  %9913 = vmatmul.msk.f32.gmra.mxu0 %vm2446_vm2, %v3752_v28  ;;  %v3111_v28 = vld [vmem:[#allocation12 + $0x30] sm:$0xff] }
 0x312   :  { %v2985_v31 = vpop.f32.mrf.mxu3  ;;  %v2626_v0 = vpop.f32.mrf.mxu1  ;;  %3203 = vmatpush.msrb.mxu1 %v3111_v28  ;;  %v2139_v28 = vadd.f32 %v12171_v5, %v11966_v13 }
 0x313   :  { %v12183_v7 = vadd.f32 %v2985_v31, %v2791_v54  ;;  %v2437_v41 = vmax.f32 %v2409_v51, 0.0  ;;  %v2794_v37 = vadd.f32 %v2793_v17, %v2626_v0  ;;  %v2135_v54 = vadd.f32 %v12123_v52, %v11927_v63  ;;  %v3331_v17 = vld [vmem:[#allocation12 + $0x40] sm:$0xff] }
 0x314   :  { %v2520_v12 = vld [vmem:[#allocation2 + $0x89] sm:$0xff]  ;;  %3423 = vmatpush.msrb.mxu2 %v3331_v17 }
 0x315   :  { %v2494_v23 = vld [vmem:[#allocation2 + $0x90] sm:$0xff]  ;;  %2466 = vst.msk [vmem:[#allocation2 + $0x98] sm:$0xff] %vm2446_vm2, %v2437_v41  ;;  %9773 = vmatmul.msk.f32.gmra.mxu1 %vm2446_vm2, %v2520_v12 }
 0x316   :  { %v2882_v27 = vld [vmem:[#allocation2 + $0x8a] sm:$0xff]  ;;  %9799 = vmatmul.msk.f32.gmra.mxu2 %vm2446_vm2, %v2494_v23  ;;  %v2334_v6 = vpop.f32.mrf.mxu0 }
 0x317   :  { %9823 = vmatmul.msk.f32.gmra.mxu3 %vm2446_vm2, %v2882_v27  ;;  %v2378_v25 = vadd.f32 %v2334_v6, %v2132_v20  ;;  %v3756_v12 = vld [vmem:[#allocation2 + $0x6e] sm:$0xff]  ;;  %v3552_v20 = vld [vmem:[#allocation12 + $0x58] sm:$0xff] }
 0x318   :  { %3642 = vmatpush.msra.mxu3 %v3552_v20  ;;  %v3305_v17 = vld [vmem:[#allocation2 + $0xc] sm:$0xff] }
 0x319   :  { %v2796_v24 = vpop.f32.mrf.mxu2  ;;  %v2410_v26 = vadd.f32 %v11968_v19, %v2378_v25  ;;  %9914 = vmatmul.msk.f32.gmra.mxu0 %vm2446_vm2, %v3753_v16  ;;  %v2136_v16 = vadd.f32 %v12135_v53, %v11936_v18 }
 0x31a   :  { %v2988_v38 = vpop.f32.mrf.mxu3  ;;  %v2629_v15 = vpop.f32.mrf.mxu1 }
 0x31b   :  { %v12193_v55 = vadd.f32 %v2988_v38, %v2794_v37  ;;  %v2438_v3 = vmax.f32 %v2410_v26, 0.0  ;;  %v2797_v44 = vadd.f32 %v2796_v24, %v2629_v15  ;;  %v3551_v26 = vld [vmem:[#allocation12 + $0x50] sm:$0xff] }
 0x31c   :  { %v2521_v4 = vld [vmem:[#allocation2 + $0x91] sm:$0xff]  ;;  %3643 = vmatpush.msra.mxu3 %v3551_v26 }
 0x31d   :  { %v2495_v39 = vld [vmem:[#allocation2 + $0x98] sm:$0xff]  ;;  %2467 = vst.msk [vmem:[#allocation2 + $0xa0] sm:$0xff] %vm2446_vm2, %v2438_v3  ;;  %9774 = vmatmul.msk.f32.gmra.mxu1 %vm2446_vm2, %v2521_v4 }
 0x31e   :  { %v2883_v33 = vld [vmem:[#allocation2 + $0x92] sm:$0xff]  ;;  %9800 = vmatmul.msk.f32.gmra.mxu2 %vm2446_vm2, %v2495_v39  ;;  %v2337_v45 = vpop.f32.mrf.mxu0 }
 0x31f   :  { %9824 = vmatmul.msk.f32.gmra.mxu3 %vm2446_vm2, %v2883_v33  ;;  %v2379_v48 = vadd.f32 %v2337_v45, %v2133_v29  ;;  %v3757_v39 = vld [vmem:[#allocation2 + $0x76] sm:$0xff] }
 0x321   :  { %v2799_v47 = vpop.f32.mrf.mxu2  ;;  %v2411_v14 = vadd.f32 %v11968_v19, %v2379_v48  ;;  %9915 = vmatmul.msk.f32.gmra.mxu0 %vm2446_vm2, %v3754_v50  ;;  %v2137_v50 = vadd.f32 %v12147_v56, %v11945_v36 }
 0x322   :  { %v2991_v59 = vpop.f32.mrf.mxu3  ;;  %v2632_v32 = vpop.f32.mrf.mxu1 }
 0x323   :  { %v12203_v34 = vadd.f32 %v2991_v59, %v2797_v44  ;;  %v2439_v40 = vmax.f32 %v2411_v14, 0.0  ;;  %v2800_v62 = vadd.f32 %v2799_v47, %v2632_v32 }
 0x324   :  { %v2522_v43 = vld [vmem:[#allocation2 + $0x99] sm:$0xff] }
 0x325   :  { %v2496_v60 = vld [vmem:[#allocation2 + $0xa0] sm:$0xff]  ;;  %2468 = vst.msk [vmem:[#allocation2 + $0xa8] sm:$0xff] %vm2446_vm2, %v2439_v40  ;;  %9775 = vmatmul.msk.f32.gmra.mxu1 %vm2446_vm2, %v2522_v43 }
 0x326   :  { %v2884_v61 = vld [vmem:[#allocation2 + $0x9a] sm:$0xff]  ;;  %9801 = vmatmul.msk.f32.gmra.mxu2 %vm2446_vm2, %v2496_v60  ;;  %v2340_v46 = vpop.f32.mrf.mxu0 }
 0x327   :  { %9825 = vmatmul.msk.f32.gmra.mxu3 %vm2446_vm2, %v2884_v61  ;;  %v2380_v9 = vadd.f32 %v2340_v46, %v2134_v1  ;;  %v3758_v43 = vld [vmem:[#allocation2 + $0x7e] sm:$0xff] }
 0x329   :  { %v2802_v42 = vpop.f32.mrf.mxu2  ;;  %v2412_v57 = vadd.f32 %v11968_v19, %v2380_v9  ;;  %9916 = vmatmul.msk.f32.gmra.mxu0 %vm2446_vm2, %v3755_v49 }
 0x32a   :  { %v2994_v8 = vpop.f32.mrf.mxu3  ;;  %v2635_v58 = vpop.f32.mrf.mxu1 }
 0x32b   :  { %v12213_v22 = vadd.f32 %v2994_v8, %v2800_v62  ;;  %v2440_v35 = vmax.f32 %v2412_v57, 0.0  ;;  %v2803_v0 = vadd.f32 %v2802_v42, %v2635_v58  ;;  %v2138_v42 = vadd.f32 %v12161_v30, %v11957_v2 }
 0x32c   :  { %v2523_v11 = vld [vmem:[#allocation2 + $0xa1] sm:$0xff] }
 0x32d   :  { %v2497_v21 = vld [vmem:[#allocation2 + $0xa8] sm:$0xff]  ;;  %2469 = vst.msk [vmem:[#allocation2 + $0xb0] sm:$0xff] %vm2446_vm2, %v2440_v35  ;;  %9776 = vmatmul.msk.f32.gmra.mxu1 %vm2446_vm2, %v2523_v11 }
 0x32e   :  { %v2885_v10 = vld [vmem:[#allocation2 + $0xa2] sm:$0xff]  ;;  %9802 = vmatmul.msk.f32.gmra.mxu2 %vm2446_vm2, %v2497_v21  ;;  %v2343_v51 = vpop.f32.mrf.mxu0 }
 0x32f   :  { %9826 = vmatmul.msk.f32.gmra.mxu3 %vm2446_vm2, %v2885_v10  ;;  %v2381_v31 = vadd.f32 %v2343_v51, %v2135_v54  ;;  %v3759_v35 = vld [vmem:[#allocation2 + $0x86] sm:$0xff] }
 0x331   :  { %v2805_v41 = vpop.f32.mrf.mxu2  ;;  %v2413_v23 = vadd.f32 %v11968_v19, %v2381_v31  ;;  %9917 = vmatmul.msk.f32.gmra.mxu0 %vm2446_vm2, %v3756_v12 }
 0x332   :  { %v2997_v63 = vpop.f32.mrf.mxu3  ;;  %v2638_v27 = vpop.f32.mrf.mxu1 }
 0x333   :  { %v12223_v52 = vadd.f32 %v2997_v63, %v2803_v0  ;;  %v2441_v6 = vmax.f32 %v2413_v23, 0.0  ;;  %v2806_v3 = vadd.f32 %v2805_v41, %v2638_v27  ;;  %v3760_v23 = vld [vmem:[#allocation2 + $0x8e] sm:$0xff] }
 0x334   :  { %v2524_v25 = vld [vmem:[#allocation2 + $0xa9] sm:$0xff] }
 0x335   :  { %v2498_v37 = vld [vmem:[#allocation2 + $0xb0] sm:$0xff]  ;;  %2470 = vst.msk [vmem:[#allocation2 + $0xb8] sm:$0xff] %vm2446_vm2, %v2441_v6  ;;  %9777 = vmatmul.msk.f32.gmra.mxu1 %vm2446_vm2, %v2524_v25 }
 0x336   :  { %v2886_v24 = vld [vmem:[#allocation2 + $0xaa] sm:$0xff]  ;;  %9803 = vmatmul.msk.f32.gmra.mxu2 %vm2446_vm2, %v2498_v37  ;;  %v2346_v38 = vpop.f32.mrf.mxu0  ;;  %v3306_v25 = vld [vmem:[#allocation2 + $0x14] sm:$0xff] }
 0x337   :  { %9827 = vmatmul.msk.f32.gmra.mxu3 %vm2446_vm2, %v2886_v24  ;;  %v2382_v15 = vadd.f32 %v2346_v38, %v2136_v16  ;;  %v3085_v6 = vld [vmem:[#allocation2 + $0xb] sm:$0xff]  ;;  %v3761_v16 = vld [vmem:[#allocation2 + $0x96] sm:$0xff] }
 0x338   :  { %v3525_v37 = vld [vmem:[#allocation2 + $0xd] sm:$0xff] }
 0x339   :  { %v2808_v4 = vpop.f32.mrf.mxu2  ;;  %v2414_v33 = vadd.f32 %v11968_v19, %v2382_v15  ;;  %9918 = vmatmul.msk.f32.gmra.mxu0 %vm2446_vm2, %v3757_v39  ;;  %v3526_v39 = vld [vmem:[#allocation2 + $0x15] sm:$0xff] }
 0x33a   :  { %v3000_v29 = vpop.f32.mrf.mxu3  ;;  %v2641_v53 = vpop.f32.mrf.mxu1 }
 0x33b   :  { %v12233_v18 = vadd.f32 %v3000_v29, %v2806_v3  ;;  %v2442_v45 = vmax.f32 %v2414_v33, 0.0  ;;  %v2809_v32 = vadd.f32 %v2808_v4, %v2641_v53  ;;  %v3086_v3 = vld [vmem:[#allocation2 + $0x13] sm:$0xff]  ;;  %v3307_v4 = vld [vmem:[#allocation2 + $0x1c] sm:$0xff] }
 0x33c   :  { %v2525_v48 = vld [vmem:[#allocation2 + $0xb1] sm:$0xff]  ;;  %v3762_v53 = vld [vmem:[#allocation2 + $0x9e] sm:$0xff] }
 0x33d   :  { %v2499_v44 = vld [vmem:[#allocation2 + $0xb8] sm:$0xff]  ;;  %2471 = vst.msk [vmem:[#allocation2 + $0xc0] sm:$0xff] %vm2446_vm2, %v2442_v45  ;;  %9778 = vmatmul.msk.f32.gmra.mxu1 %vm2446_vm2, %v2525_v48 }
 0x33e   :  { %v2887_v47 = vld [vmem:[#allocation2 + $0xb2] sm:$0xff]  ;;  %9804 = vmatmul.msk.f32.gmra.mxu2 %vm2446_vm2, %v2499_v44  ;;  %v2349_v14 = vpop.f32.mrf.mxu0 }
 0x33f   :  { %9828 = vmatmul.msk.f32.gmra.mxu3 %vm2446_vm2, %v2887_v47  ;;  %v2383_v59 = vadd.f32 %v2349_v14, %v2137_v50  ;;  %v3087_v47 = vld [vmem:[#allocation2 + $0x1b] sm:$0xff]  ;;  %v3308_v50 = vld [vmem:[#allocation2 + $0x24] sm:$0xff] }
 0x340   :  { %v3527_v14 = vld [vmem:[#allocation2 + $0x1d] sm:$0xff] }
 0x341   :  { %v2811_v40 = vpop.f32.mrf.mxu2  ;;  %v2415_v60 = vadd.f32 %v11968_v19, %v2383_v59  ;;  %9919 = vmatmul.msk.f32.gmra.mxu0 %vm2446_vm2, %v3758_v43 }
 0x342   :  { %v3003_v61 = vpop.f32.mrf.mxu3  ;;  %v2644_v36 = vpop.f32.mrf.mxu1 }
 0x343   :  { %v12243_v1 = vadd.f32 %v3003_v61, %v2809_v32  ;;  %v2443_v56 = vmax.f32 %v2415_v60, 0.0  ;;  %v2812_v8 = vadd.f32 %v2811_v40, %v2644_v36  ;;  %v3763_v40 = vld [vmem:[#allocation2 + $0xa6] sm:$0xff] }
 0x344   :  { %v2526_v46 = vld [vmem:[#allocation2 + $0xb9] sm:$0xff]  ;;  %v2527_v54 = vld [vmem:[#allocation2 + $0xc1] sm:$0x3]  ;;  %v3088_v36 = vld [vmem:[#allocation2 + $0x23] sm:$0xff] }
 0x345   :  { %v2500_v9 = vld [vmem:[#allocation2 + $0xc0] sm:$0x3]  ;;  %2472 = vst.msk [vmem:[#allocation2 + $0xc8] sm:$0xff] %vm2446_vm2, %v2443_v56  ;;  %9779 = vmatmul.msk.f32.gmra.mxu1 %vm2446_vm2, %v2526_v46  ;;  %v2889_v51 = vld [vmem:[#allocation2 + $0xc2] sm:$0x3]  ;;  %v3309_v56 = vld [vmem:[#allocation2 + $0x2c] sm:$0xff] }
 0x346   :  { %v2888_v62 = vld [vmem:[#allocation2 + $0xba] sm:$0xff]  ;;  %9805 = vmatmul.msk.f32.gmra.mxu2 %vm2446_vm2, %v2500_v9  ;;  %v2352_v49 = vpop.f32.mrf.mxu0  ;;  %v3528_v46 = vld [vmem:[#allocation2 + $0x25] sm:$0xff] }
 0x347   :  { %9829 = vmatmul.msk.f32.gmra.mxu3 %vm2446_vm2, %v2888_v62  ;;  %v2384_v57 = vadd.f32 %v2352_v49, %v2138_v42  ;;  %v3764_v42 = vld [vmem:[#allocation2 + $0xae] sm:$0xff] }
 0x349   :  { %v2814_v58 = vpop.f32.mrf.mxu2  ;;  %v2416_v11 = vadd.f32 %v11968_v19, %v2384_v57  ;;  %9920 = vmatmul.msk.f32.gmra.mxu0 %vm2446_vm2, %v3759_v35  ;;  %v3310_v35 = vld [vmem:[#allocation2 + $0x34] sm:$0xff] }
 0x34a   :  { %v3006_v21 = vpop.f32.mrf.mxu3  ;;  %v2647_v2 = vpop.f32.mrf.mxu1 }
 0x34b   :  { %v12253_v10 = vadd.f32 %v3006_v21, %v2812_v8  ;;  %v2444_v30 = vmax.f32 %v2416_v11, 0.0  ;;  %v2815_v41 = vadd.f32 %v2814_v58, %v2647_v2  ;;  %v3089_v58 = vld [vmem:[#allocation2 + $0x2b] sm:$0xff] }
 0x34c   :  { %v3529_v11 = vld [vmem:[#allocation2 + $0x2d] sm:$0xff] }
 0x34d   :  { %2473 = vst.msk [vmem:[#allocation2 + $0xd0] sm:$0xff] %vm2446_vm2, %v2444_v30  ;;  %9780 = vmatmul.msk.f32.gmra.mxu1 %vm2446_vm2, %v2527_v54  ;;  %v3765_v30 = vld [vmem:[#allocation2 + $0xb6] sm:$0xff] }
 0x34e   :  { %9856 = vmatmul.msk.f32.vlgmr.msrb.gmra.mxu2 %vm2446_vm2, %v3305_v17  ;;  %v2355_v31 = vpop.f32.mrf.mxu0 }
 0x34f   :  { %9830 = vmatmul.msk.f32.gmra.mxu3 %vm2446_vm2, %v2889_v51  ;;  %v2385_v0 = vadd.f32 %v2355_v31, %v2139_v28  ;;  %v3090_v51 = vld [vmem:[#allocation2 + $0x33] sm:$0xff]  ;;  %v3311_v31 = vld [vmem:[#allocation2 + $0x3c] sm:$0xff] }
 0x351   :  { %v2817_v12 = vpop.f32.mrf.mxu2  ;;  %v2417_v63 = vadd.f32 %v11968_v19, %v2385_v0  ;;  %9921 = vmatmul.msk.f32.gmra.mxu0 %vm2446_vm2, %v3760_v23  ;;  %v3530_v0 = vld [vmem:[#allocation2 + $0x35] sm:$0xff]  ;;  %v3766_v23 = vld [vmem:[#allocation2 + $0xbe] sm:$0xff] }
 0x352   :  { %v3009_v27 = vpop.f32.mrf.mxu3  ;;  %v2650_v5 = vpop.f32.mrf.mxu1 }
 0x353   :  { %v12263_v13 = vadd.f32 %v3009_v27, %v2815_v41  ;;  %v2445_v20 = vmax.f32 %v2417_v63, 0.0  ;;  %v2818_v24 = vadd.f32 %v2817_v12, %v2650_v5 }
 0x355   :  { %2475 = vst.msk [vmem:[#allocation2 + $0xd8] sm:$0x3] %vm2474_vm3, %v2445_v20  ;;  %9831 = vmatmul.msk.f32.vlgmr.msrb.gmra.mxu1 %vm2446_vm2, %v3085_v6  ;;  %v3091_v20 = vld [vmem:[#allocation2 + $0x3b] sm:$0xff]  ;;  %v3312_v6 = vld [vmem:[#allocation2 + $0x44] sm:$0xff] }
 0x356   :  { %9857 = vmatmul.msk.f32.gmra.mxu2 %vm2446_vm2, %v3306_v25  ;;  %v3531_v25 = vld [vmem:[#allocation2 + $0x3d] sm:$0xff] }
 0x357   :  { %9881 = vmatmul.msk.f32.vlgmr.msra.gmra.mxu3 %vm2446_vm2, %v3525_v37 }
 0x359   :  { %v2820_v19 = vpop.f32.mrf.mxu2  ;;  %9922 = vmatmul.msk.f32.gmra.mxu0 %vm2446_vm2, %v3761_v16 }
 0x35a   :  { %v3012_v26 = vpop.f32.mrf.mxu3  ;;  %v2653_v15 = vpop.f32.mrf.mxu1 }
 0x35b   :  { %v12269_v38 = vadd.f32 %v3012_v26, %v2818_v24  ;;  %v2821_v33 = vadd.f32 %v2820_v19, %v2653_v15  ;;  %v3767_v19 = vld [vmem:[#allocation2 + $0xc6] sm:$0xff] }
 0x35d   :  { %9832 = vmatmul.msk.f32.gmra.mxu1 %vm2446_vm2, %v3086_v3  ;;  %v4212_v3 = vld [vmem:[#allocation12 + $0x88] sm:$0xff] }
 0x35e   :  { %9858 = vmatmul.msk.f32.gmra.mxu2 %vm2446_vm2, %v3307_v4  ;;  %v3092_v4 = vld [vmem:[#allocation2 + $0x43] sm:$0xff] }
 0x35f   :  { %9882 = vmatmul.msk.f32.gmra.mxu3 %vm2446_vm2, %v3526_v39  ;;  %v3313_v39 = vld [vmem:[#allocation2 + $0x4c] sm:$0xff]  ;;  %4302 = vmatpush.msra.mxu2 %v4212_v3 }
 0x361   :  { %v2823_v29 = vpop.f32.mrf.mxu2  ;;  %9923 = vmatmul.msk.f32.gmra.mxu0 %vm2446_vm2, %v3762_v53 }
 0x362   :  { %v3015_v45 = vpop.f32.mrf.mxu3  ;;  %v2656_v44 = vpop.f32.mrf.mxu1 }
 0x363   :  { %v12275_v48 = vadd.f32 %v3015_v45, %v2821_v33  ;;  %v2824_v59 = vadd.f32 %v2823_v29, %v2656_v44  ;;  %v3532_v33 = vld [vmem:[#allocation2 + $0x45] sm:$0xff]  ;;  %v3768_v44 = vld [vmem:[#allocation2 + $0xce] sm:$0xff] }
 0x364   :  { %v3992_v29 = vld [vmem:[#allocation12 + $0x78] sm:$0xff] }
 0x365   :  { %9833 = vmatmul.msk.f32.gmra.mxu1 %vm2446_vm2, %v3087_v47 }
 0x366   :  { %9859 = vmatmul.msk.f32.gmra.mxu2 %vm2446_vm2, %v3308_v50  ;;  %4082 = vmatpush.msra.mxu1 %v3992_v29 }
 0x367   :  { %9883 = vmatmul.msk.f32.gmra.mxu3 %vm2446_vm2, %v3527_v14 }
 0x369   :  { %v2826_v32 = vpop.f32.mrf.mxu2  ;;  %9924 = vmatmul.msk.f32.gmra.mxu0 %vm2446_vm2, %v3763_v40  ;;  %v3533_v40 = vld [vmem:[#allocation2 + $0x4d] sm:$0xff] }
 0x36a   :  { %v3018_v43 = vpop.f32.mrf.mxu3  ;;  %v2659_v61 = vpop.f32.mrf.mxu1 }
 0x36b   :  { %v12281_v60 = vadd.f32 %v3018_v43, %v2824_v59  ;;  %v2827_v9 = vadd.f32 %v2826_v32, %v2659_v61  ;;  %v3093_v59 = vld [vmem:[#allocation2 + $0x4b] sm:$0xff]  ;;  %v3314_v32 = vld [vmem:[#allocation2 + $0x54] sm:$0xff] }
 0x36d   :  { %9834 = vmatmul.msk.f32.gmra.mxu1 %vm2446_vm2, %v3088_v36  ;;  %v3769_v36 = vld [vmem:[#allocation2 + $0xd6] sm:$0x3] }
 0x36e   :  { %9860 = vmatmul.msk.f32.gmra.mxu2 %vm2446_vm2, %v3309_v56  ;;  %v12316_v56 = vpop.f32.mrf.mxu0 }
 0x36f   :  { %9884 = vmatmul.msk.f32.gmra.mxu3 %vm2446_vm2, %v3528_v46 }
 0x371   :  { %v2829_v62 = vpop.f32.mrf.mxu2  ;;  %9925 = vmatmul.msk.f32.gmra.mxu0 %vm2446_vm2, %v3764_v42  ;;  %v3094_v42 = vld [vmem:[#allocation2 + $0x53] sm:$0xff] }
 0x372   :  { %v3021_v49 = vpop.f32.mrf.mxu3  ;;  %v2662_v8 = vpop.f32.mrf.mxu1 }
 0x373   :  { %v12287_v57 = vadd.f32 %v3021_v49, %v2827_v9  ;;  %v2830_v21 = vadd.f32 %v2829_v62, %v2662_v8  ;;  %v3315_v49 = vld [vmem:[#allocation2 + $0x5c] sm:$0xff] }
 0x374   :  { %v3534_v8 = vld [vmem:[#allocation2 + $0x55] sm:$0xff] }
 0x375   :  { %9835 = vmatmul.msk.f32.gmra.mxu1 %vm2446_vm2, %v3089_v58 }
 0x376   :  { %9861 = vmatmul.msk.f32.gmra.mxu2 %vm2446_vm2, %v3310_v35 }
 0x377   :  { %9885 = vmatmul.msk.f32.gmra.mxu3 %vm2446_vm2, %v3529_v11 }
 0x379   :  { %v2832_v2 = vpop.f32.mrf.mxu2  ;;  %9926 = vmatmul.msk.f32.gmra.mxu0 %vm2446_vm2, %v3765_v30  ;;  %v3095_v30 = vld [vmem:[#allocation2 + $0x5b] sm:$0xff] }
 0x37a   :  { %v3024_v54 = vpop.f32.mrf.mxu3  ;;  %v2665_v28 = vpop.f32.mrf.mxu1 }
 0x37b   :  { %v12293_v17 = vadd.f32 %v3024_v54, %v2830_v21  ;;  %v2833_v41 = vadd.f32 %v2832_v2, %v2665_v28  ;;  %v3316_v54 = vld [vmem:[#allocation2 + $0x64] sm:$0xff] }
 0x37c   :  { %v3535_v28 = vld [vmem:[#allocation2 + $0x5d] sm:$0xff] }
 0x37d   :  { %9836 = vmatmul.msk.f32.gmra.mxu1 %vm2446_vm2, %v3090_v51 }
 0x37e   :  { %9862 = vmatmul.msk.f32.gmra.mxu2 %vm2446_vm2, %v3311_v31 }
 0x37f   :  { %9886 = vmatmul.msk.f32.gmra.mxu3 %vm2446_vm2, %v3530_v0 }
 0x381   :  { %v2835_v12 = vpop.f32.mrf.mxu2  ;;  %9927 = vmatmul.msk.f32.gmra.mxu0 %vm2446_vm2, %v3766_v23  ;;  %v3096_v23 = vld [vmem:[#allocation2 + $0x63] sm:$0xff] }
 0x382   :  { %v3027_v63 = vpop.f32.mrf.mxu3  ;;  %v2668_v5 = vpop.f32.mrf.mxu1 }
 0x383   :  { %v12299_v27 = vadd.f32 %v3027_v63, %v2833_v41  ;;  %v2836_v37 = vadd.f32 %v2835_v12, %v2668_v5  ;;  %v3317_v63 = vld [vmem:[#allocation2 + $0x6c] sm:$0xff] }
 0x384   :  { %v3536_v5 = vld [vmem:[#allocation2 + $0x65] sm:$0xff] }
 0x385   :  { %9837 = vmatmul.msk.f32.gmra.mxu1 %vm2446_vm2, %v3091_v20 }
 0x386   :  { %9863 = vmatmul.msk.f32.gmra.mxu2 %vm2446_vm2, %v3312_v6 }
 0x387   :  { %9887 = vmatmul.msk.f32.gmra.mxu3 %vm2446_vm2, %v3531_v25 }
 0x389   :  { %v2838_v24 = vpop.f32.mrf.mxu2  ;;  %9928 = vmatmul.msk.f32.gmra.mxu0 %vm2446_vm2, %v3767_v19  ;;  %v3097_v19 = vld [vmem:[#allocation2 + $0x6b] sm:$0xff] }
 0x38a   :  { %v3030_v16 = vpop.f32.mrf.mxu3  ;;  %v2671_v15 = vpop.f32.mrf.mxu1 }
 0x38b   :  { %v12305_v26 = vadd.f32 %v3030_v16, %v2836_v37  ;;  %v2839_v53 = vadd.f32 %v2838_v24, %v2671_v15  ;;  %v3318_v16 = vld [vmem:[#allocation2 + $0x74] sm:$0xff] }
 0x38c   :  { %v3537_v15 = vld [vmem:[#allocation2 + $0x6d] sm:$0xff] }
 0x38d   :  { %9838 = vmatmul.msk.f32.gmra.mxu1 %vm2446_vm2, %v3092_v4 }
 0x38e   :  { %9864 = vmatmul.msk.f32.gmra.mxu2 %vm2446_vm2, %v3313_v39 }
 0x38f   :  { %9888 = vmatmul.msk.f32.gmra.mxu3 %vm2446_vm2, %v3532_v33 }
 0x391   :  { %v2841_v45 = vpop.f32.mrf.mxu2  ;;  %9929 = vmatmul.msk.f32.gmra.mxu0 %vm2446_vm2, %v3768_v44  ;;  %v3538_v44 = vld [vmem:[#allocation2 + $0x75] sm:$0xff] }
 0x392   :  { %v3033_v47 = vpop.f32.mrf.mxu3  ;;  %v2674_v14 = vpop.f32.mrf.mxu1 }
 0x393   :  { %v12311_v50 = vadd.f32 %v3033_v47, %v2839_v53  ;;  %v2842_v43 = vadd.f32 %v2841_v45, %v2674_v14  ;;  %v3098_v53 = vld [vmem:[#allocation2 + $0x73] sm:$0xff]  ;;  %v3319_v45 = vld [vmem:[#allocation2 + $0x7c] sm:$0xff] }
 0x395   :  { %9839 = vmatmul.msk.f32.gmra.mxu1 %vm2446_vm2, %v3093_v59 }
 0x396   :  { %9865 = vmatmul.msk.f32.gmra.mxu2 %vm2446_vm2, %v3314_v32 }
 0x397   :  { %9889 = vmatmul.msk.f32.gmra.mxu3 %vm2446_vm2, %v3533_v40 }
 0x399   :  { %v2844_v61 = vpop.f32.mrf.mxu2  ;;  %9930 = vmatmul.msk.f32.gmra.mxu0 %vm2446_vm2, %v3769_v36  ;;  %v3539_v36 = vld [vmem:[#allocation2 + $0x7d] sm:$0xff] }
 0x39a   :  { %v3036_v46 = vpop.f32.mrf.mxu3  ;;  %v2677_v62 = vpop.f32.mrf.mxu1 }
 0x39b   :  { %v12319_v9 = vadd.f32 %v3036_v46, %v2842_v43  ;;  %v2845_v58 = vadd.f32 %v2844_v61, %v2677_v62  ;;  %v3099_v43 = vld [vmem:[#allocation2 + $0x7b] sm:$0xff]  ;;  %v3320_v61 = vld [vmem:[#allocation2 + $0x84] sm:$0xff] }
 0x39d   :  { %9840 = vmatmul.msk.f32.gmra.mxu1 %vm2446_vm2, %v3094_v42 }
 0x39e   :  { %9866 = vmatmul.msk.f32.gmra.mxu2 %vm2446_vm2, %v3315_v49 }
 0x39f   :  { %9890 = vmatmul.msk.f32.gmra.mxu3 %vm2446_vm2, %v3534_v8 }
 0x3a1   :  { %v2847_v35 = vpop.f32.mrf.mxu2 }
 0x3a2   :  { %v3039_v11 = vpop.f32.mrf.mxu3  ;;  %v2680_v2 = vpop.f32.mrf.mxu1 }
 0x3a3   :  { %v12324_v21 = vadd.f32 %v3039_v11, %v2845_v58  ;;  %v2848_v51 = vadd.f32 %v2847_v35, %v2680_v2  ;;  %v3100_v58 = vld [vmem:[#allocation2 + $0x83] sm:$0xff]  ;;  %v3321_v35 = vld [vmem:[#allocation2 + $0x8c] sm:$0xff] }
 0x3a4   :  { %v3540_v11 = vld [vmem:[#allocation2 + $0x85] sm:$0xff] }
 0x3a5   :  { %9841 = vmatmul.msk.f32.gmra.mxu1 %vm2446_vm2, %v3095_v30 }
 0x3a6   :  { %9867 = vmatmul.msk.f32.gmra.mxu2 %vm2446_vm2, %v3316_v54 }
 0x3a7   :  { %9891 = vmatmul.msk.f32.gmra.mxu3 %vm2446_vm2, %v3535_v28 }
 0x3a9   :  { %v2850_v31 = vpop.f32.mrf.mxu2 }
 0x3aa   :  { %v3042_v0 = vpop.f32.mrf.mxu3  ;;  %v2683_v12 = vpop.f32.mrf.mxu1 }
 0x3ab   :  { %v12329_v41 = vadd.f32 %v3042_v0, %v2848_v51  ;;  %v2851_v20 = vadd.f32 %v2850_v31, %v2683_v12  ;;  %v3101_v0 = vld [vmem:[#allocation2 + $0x8b] sm:$0xff]  ;;  %v3322_v12 = vld [vmem:[#allocation2 + $0x94] sm:$0xff] }
 0x3ad   :  { %9842 = vmatmul.msk.f32.gmra.mxu1 %vm2446_vm2, %v3096_v23  ;;  %v3541_v23 = vld [vmem:[#allocation2 + $0x8d] sm:$0xff] }
 0x3ae   :  { %9868 = vmatmul.msk.f32.gmra.mxu2 %vm2446_vm2, %v3317_v63 }
 0x3af   :  { %9892 = vmatmul.msk.f32.gmra.mxu3 %vm2446_vm2, %v3536_v5 }
 0x3b1   :  { %v2853_v6 = vpop.f32.mrf.mxu2 }
 0x3b2   :  { %v3045_v25 = vpop.f32.mrf.mxu3  ;;  %v2686_v24 = vpop.f32.mrf.mxu1 }
 0x3b3   :  { %v12334_v37 = vadd.f32 %v3045_v25, %v2851_v20  ;;  %v2854_v3 = vadd.f32 %v2853_v6, %v2686_v24 }
 0x3b5   :  { %9843 = vmatmul.msk.f32.gmra.mxu1 %vm2446_vm2, %v3097_v19  ;;  %v3102_v19 = vld [vmem:[#allocation2 + $0x93] sm:$0xff] }
 0x3b6   :  { %9869 = vmatmul.msk.f32.gmra.mxu2 %vm2446_vm2, %v3318_v16  ;;  %v3323_v16 = vld [vmem:[#allocation2 + $0x9c] sm:$0xff] }
 0x3b7   :  { %9893 = vmatmul.msk.f32.gmra.mxu3 %vm2446_vm2, %v3537_v15 }
 0x3b9   :  { %v2856_v4 = vpop.f32.mrf.mxu2 }
 0x3ba   :  { %v3048_v39 = vpop.f32.mrf.mxu3  ;;  %v2689_v29 = vpop.f32.mrf.mxu1 }
 0x3bb   :  { %v12339_v33 = vadd.f32 %v3048_v39, %v2854_v3  ;;  %v2857_v47 = vadd.f32 %v2856_v4, %v2689_v29  ;;  %v3103_v29 = vld [vmem:[#allocation2 + $0x9b] sm:$0xff] }
 0x3bd   :  { %9844 = vmatmul.msk.f32.gmra.mxu1 %vm2446_vm2, %v3098_v53  ;;  %v3324_v53 = vld [vmem:[#allocation2 + $0xa4] sm:$0xff] }
 0x3be   :  { %9870 = vmatmul.msk.f32.gmra.mxu2 %vm2446_vm2, %v3319_v45 }
 0x3bf   :  { %9894 = vmatmul.msk.f32.gmra.mxu3 %vm2446_vm2, %v3538_v44 }
 0x3c1   :  { %v2859_v14 = vpop.f32.mrf.mxu2 }
 0x3c2   :  { %v3051_v59 = vpop.f32.mrf.mxu3  ;;  %v2692_v40 = vpop.f32.mrf.mxu1 }
 0x3c3   :  { %v12344_v32 = vadd.f32 %v3051_v59, %v2857_v47  ;;  %v2860_v46 = vadd.f32 %v2859_v14, %v2692_v40  ;;  %v3104_v59 = vld [vmem:[#allocation2 + $0xa3] sm:$0xff]  ;;  %v3325_v40 = vld [vmem:[#allocation2 + $0xac] sm:$0xff] }
 0x3c5   :  { %9845 = vmatmul.msk.f32.gmra.mxu1 %vm2446_vm2, %v3099_v43 }
 0x3c6   :  { %9871 = vmatmul.msk.f32.gmra.mxu2 %vm2446_vm2, %v3320_v61  ;;  %v4211_v61 = vld [vmem:[#allocation12 + $0x80] sm:$0xff] }
 0x3c7   :  { %9895 = vmatmul.msk.f32.gmra.mxu3 %vm2446_vm2, %v3539_v36  ;;  %4303 = vmatpush.msra.mxu2 %v4211_v61 }
 0x3c9   :  { %v2862_v62 = vpop.f32.mrf.mxu2 }
 0x3ca   :  { %v3054_v42 = vpop.f32.mrf.mxu3  ;;  %v2695_v8 = vpop.f32.mrf.mxu1 }
 0x3cb   :  { %v12349_v49 = vadd.f32 %v3054_v42, %v2860_v46  ;;  %v2863_v2 = vadd.f32 %v2862_v62, %v2695_v8  ;;  %v3991_v42 = vld [vmem:[#allocation12 + $0x70] sm:$0xff]  ;;  %v3105_v8 = vld [vmem:[#allocation2 + $0xab] sm:$0xff] }
 0x3cc   :  { %4083 = vmatpush.msra.mxu1 %v3991_v42  ;;  %v4187_v42 = vld [vmem:[#allocation2 + $0x28] sm:$0xff] }
 0x3cd   :  { %9846 = vmatmul.msk.f32.gmra.mxu1 %vm2446_vm2, %v3100_v58  ;;  %v3545_v58 = vld [vmem:[#allocation2 + $0xad] sm:$0xff] }
 0x3ce   :  { %9872 = vmatmul.msk.f32.gmra.mxu2 %vm2446_vm2, %v3321_v35 }
 0x3cf   :  { %9896 = vmatmul.msk.f32.gmra.mxu3 %vm2446_vm2, %v3540_v11 }
 0x3d1   :  { %v3425_v30 = vpop.f32.mrf.mxu2 }
 0x3d2   :  { %v3057_v54 = vpop.f32.mrf.mxu3  ;;  %v3205_v51 = vpop.f32.mrf.mxu1 }
 0x3d3   :  { %v12354_v28 = vadd.f32 %v3057_v54, %v2863_v2  ;;  %v3280_v31 = vadd.f32 %v3205_v51, %v12183_v7  ;;  %v3542_v7 = vld [vmem:[#allocation2 + $0x95] sm:$0xff] }
 0x3d4   :  { %v3106_v54 = vld [vmem:[#allocation2 + $0xb3] sm:$0xff]  ;;  %v3327_v51 = vld [vmem:[#allocation2 + $0xbc] sm:$0xff] }
 0x3d5   :  { %9847 = vmatmul.msk.f32.gmra.mxu1 %vm2446_vm2, %v3101_v0  ;;  %v3500_v63 = vadd.f32 %v3425_v30, %v3280_v31 }
 0x3d6   :  { %9873 = vmatmul.msk.f32.gmra.mxu2 %vm2446_vm2, %v3322_v12 }
 0x3d7   :  { %9897 = vmatmul.msk.f32.gmra.mxu3 %vm2446_vm2, %v3541_v23 }
 0x3d9   :  { %v3428_v5 = vpop.f32.mrf.mxu2 }
 0x3da   :  { %v3645_v20 = vpop.f32.mrf.mxu3  ;;  %v3208_v25 = vpop.f32.mrf.mxu1 }
 0x3db   :  { %v12360_v6 = vadd.f32 %v3645_v20, %v3500_v63  ;;  %v3281_v24 = vadd.f32 %v3208_v25, %v12193_v55  ;;  %v3543_v55 = vld [vmem:[#allocation2 + $0x9d] sm:$0xff] }
 0x3dc   :  { %v3107_v63 = vld [vmem:[#allocation2 + $0xbb] sm:$0xff] }
 0x3dd   :  { %9848 = vmatmul.msk.f32.gmra.mxu1 %vm2446_vm2, %v3102_v19  ;;  %v12365_v15 = vadd.f32 %v3428_v5, %v3281_v24  ;;  %v3328_v5 = vld [vmem:[#allocation2 + $0xc4] sm:$0xff] }
 0x3de   :  { %9874 = vmatmul.msk.f32.gmra.mxu2 %vm2446_vm2, %v3323_v16  ;;  %v3108_v16 = vld [vmem:[#allocation2 + $0xc3] sm:$0xff] }
 0x3df   :  { %9898 = vmatmul.msk.f32.gmra.mxu3 %vm2446_vm2, %v3542_v7  ;;  %v3329_v7 = vld [vmem:[#allocation2 + $0xcc] sm:$0x3] }
 0x3e1   :  { %v3431_v3 = vpop.f32.mrf.mxu2 }
 0x3e2   :  { %v3211_v4 = vpop.f32.mrf.mxu1 }
 0x3e3   :  { %v3282_v39 = vadd.f32 %v3211_v4, %v12203_v34  ;;  %v3544_v34 = vld [vmem:[#allocation2 + $0xa5] sm:$0xff] }
 0x3e5   :  { %9849 = vmatmul.msk.f32.gmra.mxu1 %vm2446_vm2, %v3103_v29  ;;  %v12371_v45 = vadd.f32 %v3431_v3, %v3282_v39 }
 0x3e6   :  { %9875 = vmatmul.msk.f32.gmra.mxu2 %vm2446_vm2, %v3324_v53  ;;  %v3109_v53 = vld [vmem:[#allocation2 + $0xcb] sm:$0x3] }
 0x3e7   :  { %9899 = vmatmul.msk.f32.gmra.mxu3 %vm2446_vm2, %v3543_v55  ;;  %v4185_v55 = vld [vmem:[#allocation2 + $0x18] sm:$0xff] }
 0x3e9   :  { %v3434_v44 = vpop.f32.mrf.mxu2 }
 0x3ea   :  { %v3214_v47 = vpop.f32.mrf.mxu1 }
 0x3eb   :  { %v3283_v14 = vadd.f32 %v3214_v47, %v12213_v22  ;;  %v3326_v22 = vld [vmem:[#allocation2 + $0xb4] sm:$0xff] }
 0x3ed   :  { %9850 = vmatmul.msk.f32.gmra.mxu1 %vm2446_vm2, %v3104_v59  ;;  %v12377_v43 = vadd.f32 %v3434_v44, %v3283_v14 }
 0x3ee   :  { %9876 = vmatmul.msk.f32.gmra.mxu2 %vm2446_vm2, %v3325_v40  ;;  %v3965_v40 = vld [vmem:[#allocation2 + $0x17] sm:$0xff] }
 0x3ef   :  { %9900 = vmatmul.msk.f32.gmra.mxu3 %vm2446_vm2, %v3544_v34  ;;  %v4186_v34 = vld [vmem:[#allocation2 + $0x20] sm:$0xff] }
 0x3f1   :  { %v3437_v36 = vpop.f32.mrf.mxu2 }
 0x3f2   :  { %v3217_v46 = vpop.f32.mrf.mxu1 }
 0x3f3   :  { %v3284_v62 = vadd.f32 %v3217_v46, %v12223_v52  ;;  %v3546_v52 = vld [vmem:[#allocation2 + $0xb5] sm:$0xff] }
 0x3f5   :  { %9851 = vmatmul.msk.f32.gmra.mxu1 %vm2446_vm2, %v3105_v8  ;;  %v12383_v35 = vadd.f32 %v3437_v36, %v3284_v62  ;;  %v3966_v62 = vld [vmem:[#allocation2 + $0x1f] sm:$0xff] }
 0x3f6   :  { %9877 = vmatmul.msk.f32.gmra.mxu2 %vm2446_vm2, %v3326_v22 }
 0x3f7   :  { %9901 = vmatmul.msk.f32.gmra.mxu3 %vm2446_vm2, %v3545_v58 }
 0x3f9   :  { %v3440_v11 = vpop.f32.mrf.mxu2 }
 0x3fa   :  { %v3220_v2 = vpop.f32.mrf.mxu1 }
 0x3fb   :  { %v3285_v30 = vadd.f32 %v3220_v2, %v12233_v18  ;;  %v3547_v18 = vld [vmem:[#allocation2 + $0xbd] sm:$0xff]  ;;  %v3967_v2 = vld [vmem:[#allocation2 + $0x27] sm:$0xff] }
 0x3fd   :  { %9852 = vmatmul.msk.f32.gmra.mxu1 %vm2446_vm2, %v3106_v54  ;;  %v12389_v31 = vadd.f32 %v3440_v11, %v3285_v30  ;;  %v4188_v30 = vld [vmem:[#allocation2 + $0x30] sm:$0xff] }
 0x3fe   :  { %9878 = vmatmul.msk.f32.gmra.mxu2 %vm2446_vm2, %v3327_v51  ;;  %v4511_v54 = vld [vmem:[#allocation15 + $0x18] sm:$0xff] }
 0x3ff   :  { %9902 = vmatmul.msk.f32.gmra.mxu3 %vm2446_vm2, %v3546_v52  ;;  %4766 = vmatpush.msra.mxu0 %v4511_v54  ;;  %v3973_v54 = vld [vmem:[#allocation2 + $0x57] sm:$0xff] }
 0x401   :  { %v3443_v0 = vpop.f32.mrf.mxu2 }
 0x402   :  { %v3223_v12 = vpop.f32.mrf.mxu1 }
 0x403   :  { %v3286_v23 = vadd.f32 %v3223_v12, %v12243_v1  ;;  %v3548_v1 = vld [vmem:[#allocation2 + $0xc5] sm:$0xff]  ;;  %v3968_v12 = vld [vmem:[#allocation2 + $0x2f] sm:$0xff] }
 0x405   :  { %9853 = vmatmul.msk.f32.gmra.mxu1 %vm2446_vm2, %v3107_v63  ;;  %v12395_v20 = vadd.f32 %v3443_v0, %v3286_v23  ;;  %v4189_v23 = vld [vmem:[#allocation2 + $0x38] sm:$0xff] }
 0x406   :  { %9879 = vmatmul.msk.f32.gmra.mxu2 %vm2446_vm2, %v3328_v5  ;;  %v12430_v5 = vpop.f32.mrf.mxu0 }
 0x407   :  { %9903 = vmatmul.msk.f32.gmra.mxu3 %vm2446_vm2, %v3547_v18 }
 0x409   :  { %v3446_v25 = vpop.f32.mrf.mxu2 }
 0x40a   :  { %v3226_v24 = vpop.f32.mrf.mxu1 }
 0x40b   :  { %v3287_v19 = vadd.f32 %v3226_v24, %v12253_v10  ;;  %v3549_v10 = vld [vmem:[#allocation2 + $0xcd] sm:$0x3]  ;;  %v3969_v24 = vld [vmem:[#allocation2 + $0x37] sm:$0xff] }
 0x40d   :  { %9854 = vmatmul.msk.f32.gmra.mxu1 %vm2446_vm2, %v3108_v16  ;;  %v12401_v3 = vadd.f32 %v3446_v25, %v3287_v19  ;;  %v4190_v19 = vld [vmem:[#allocation2 + $0x40] sm:$0xff] }
 0x40e   :  { %9880 = vmatmul.msk.f32.gmra.mxu2 %vm2446_vm2, %v3329_v7 }
 0x40f   :  { %9904 = vmatmul.msk.f32.gmra.mxu3 %vm2446_vm2, %v3548_v1 }
 0x411   :  { %v3449_v4 = vpop.f32.mrf.mxu2 }
 0x412   :  { %v3229_v39 = vpop.f32.mrf.mxu1 }
 0x413   :  { %v3288_v29 = vadd.f32 %v3229_v39, %v12263_v13  ;;  %v3970_v39 = vld [vmem:[#allocation2 + $0x3f] sm:$0xff] }
 0x415   :  { %9855 = vmatmul.msk.f32.gmra.mxu1 %vm2446_vm2, %v3109_v53  ;;  %v12407_v44 = vadd.f32 %v3449_v4, %v3288_v29  ;;  %v12438_v4 = vpop.f32.mrf.mxu0  ;;  %v4191_v29 = vld [vmem:[#allocation2 + $0x48] sm:$0xff]  ;;  %v12444_v53 = vpop.f32.mrf.mxu3 }
 0x416   :  { %9956 = vmatmul.msk.f32.vlgmr.msra.gmra.mxu2 %vm2446_vm2, %v4185_v55 }
 0x417   :  { %9905 = vmatmul.msk.f32.gmra.mxu3 %vm2446_vm2, %v3549_v10 }
 0x419   :  { %v3452_v47 = vpop.f32.mrf.mxu2 }
 0x41a   :  { %v3232_v14 = vpop.f32.mrf.mxu1 }
 0x41b   :  { %v3289_v59 = vadd.f32 %v3232_v14, %v12269_v38  ;;  %v4538_v38 = vld [vmem:[#allocation15 + $0x38] sm:$0xff]  ;;  %v3971_v14 = vld [vmem:[#allocation2 + $0x47] sm:$0xff] }
 0x41c   :  { %4617 = vmatpush.msrb.mxu3 %v4538_v38  ;;  %v4537_v38 = vld [vmem:[#allocation15 + $0x30] sm:$0xff] }
 0x41d   :  { %9931 = vmatmul.msk.f32.vlgmr.msra.gmra.mxu1 %vm2446_vm2, %v3965_v40  ;;  %v12413_v13 = vadd.f32 %v3452_v47, %v3289_v59  ;;  %v4192_v59 = vld [vmem:[#allocation2 + $0x50] sm:$0xff]  ;;  %v12451_v40 = vpop.f32.mrf.mxu0 }
 0x41e   :  { %9957 = vmatmul.msk.f32.gmra.mxu2 %vm2446_vm2, %v4186_v34  ;;  %4618 = vmatpush.msrb.mxu3 %v4537_v38 }
 0x421   :  { %v3455_v61 = vpop.f32.mrf.mxu2 }
 0x422   :  { %v3235_v36 = vpop.f32.mrf.mxu1 }
 0x423   :  { %v3290_v46 = vadd.f32 %v3235_v36, %v12275_v48 }
 0x425   :  { %9932 = vmatmul.msk.f32.gmra.mxu1 %vm2446_vm2, %v3966_v62  ;;  %v12418_v8 = vadd.f32 %v3455_v61, %v3290_v46  ;;  %v12453_v61 = vpop.f32.mrf.mxu3  ;;  %v3972_v62 = vld [vmem:[#allocation2 + $0x4f] sm:$0xff] }
 0x426   :  { %9958 = vmatmul.msk.f32.gmra.mxu2 %vm2446_vm2, %v4187_v42  ;;  %v4193_v42 = vld [vmem:[#allocation2 + $0x58] sm:$0xff] }
 0x429   :  { %v3458_v22 = vpop.f32.mrf.mxu2 }
 0x42a   :  { %v3238_v58 = vpop.f32.mrf.mxu1 }
 0x42b   :  { %v3291_v11 = vadd.f32 %v3238_v58, %v12281_v60 }
 0x42d   :  { %9933 = vmatmul.msk.f32.gmra.mxu1 %vm2446_vm2, %v3967_v2  ;;  %v12423_v48 = vadd.f32 %v3458_v22, %v3291_v11  ;;  %v12460_v22 = vpop.f32.mrf.mxu0 }
 0x42e   :  { %9959 = vmatmul.msk.f32.gmra.mxu2 %vm2446_vm2, %v4188_v30  ;;  %v12463_v30 = vpop.f32.mrf.mxu3 }
 0x431   :  { %v3461_v51 = vpop.f32.mrf.mxu2 }
 0x432   :  { %v3241_v52 = vpop.f32.mrf.mxu1 }
 0x433   :  { %v3292_v0 = vadd.f32 %v3241_v52, %v12287_v57  ;;  %v4510_v52 = vld [vmem:[#allocation15 + $0x10] sm:$0xff] }
 0x434   :  { %4767 = vmatpush.msra.mxu0 %v4510_v52 }
 0x435   :  { %9934 = vmatmul.msk.f32.gmra.mxu1 %vm2446_vm2, %v3968_v12  ;;  %v12428_v60 = vadd.f32 %v3461_v51, %v3292_v0  ;;  %v12469_v12 = vpop.f32.mrf.mxu0 }
 0x436   :  { %9960 = vmatmul.msk.f32.gmra.mxu2 %vm2446_vm2, %v4189_v23 }
 0x439   :  { %v3464_v63 = vpop.f32.mrf.mxu2 }
 0x43a   :  { %v3244_v18 = vpop.f32.mrf.mxu1 }
 0x43b   :  { %v3293_v25 = vadd.f32 %v3244_v18, %v12293_v17  ;;  %v3974_v18 = vld [vmem:[#allocation2 + $0x5f] sm:$0xff] }
 0x43d   :  { %9935 = vmatmul.msk.f32.gmra.mxu1 %vm2446_vm2, %v3969_v24  ;;  %v12435_v57 = vadd.f32 %v3464_v63, %v3293_v25  ;;  %v12476_v24 = vpop.f32.mrf.mxu3 }
 0x43e   :  { %9961 = vmatmul.msk.f32.gmra.mxu2 %vm2446_vm2, %v4190_v19 }
 0x441   :  { %v3467_v16 = vpop.f32.mrf.mxu2 }
 0x442   :  { %v3247_v7 = vpop.f32.mrf.mxu1 }
 0x443   :  { %v3294_v1 = vadd.f32 %v3247_v7, %v12299_v27 }
 0x445   :  { %9936 = vmatmul.msk.f32.gmra.mxu1 %vm2446_vm2, %v3970_v39  ;;  %v12442_v17 = vadd.f32 %v3467_v16, %v3294_v1  ;;  %v12479_v1 = vpop.f32.mrf.mxu0  ;;  %v3975_v39 = vld [vmem:[#allocation2 + $0x67] sm:$0xff] }
 0x446   :  { %9962 = vmatmul.msk.f32.gmra.mxu2 %vm2446_vm2, %v4191_v29  ;;  %v4196_v29 = vld [vmem:[#allocation2 + $0x70] sm:$0xff] }
 0x449   :  { %v3470_v55 = vpop.f32.mrf.mxu2 }
 0x44a   :  { %v3250_v10 = vpop.f32.mrf.mxu1 }
 0x44b   :  { %v3295_v47 = vadd.f32 %v3250_v10, %v12305_v26 }
 0x44d   :  { %9937 = vmatmul.msk.f32.gmra.mxu1 %vm2446_vm2, %v3971_v14  ;;  %v12449_v27 = vadd.f32 %v3470_v55, %v3295_v47  ;;  %v12485_v55 = vpop.f32.mrf.mxu3 }
 0x44e   :  { %9963 = vmatmul.msk.f32.gmra.mxu2 %vm2446_vm2, %v4192_v59  ;;  %v3976_v59 = vld [vmem:[#allocation2 + $0x6f] sm:$0xff] }
 0x451   :  { %v3473_v34 = vpop.f32.mrf.mxu2 }
 0x452   :  { %v3253_v36 = vpop.f32.mrf.mxu1 }
 0x453   :  { %v3296_v46 = vadd.f32 %v3253_v36, %v12311_v50  ;;  %v4194_v50 = vld [vmem:[#allocation2 + $0x60] sm:$0xff]  ;;  %v12492_v36 = vpop.f32.mrf.mxu0 }
 0x455   :  { %9938 = vmatmul.msk.f32.gmra.mxu1 %vm2446_vm2, %v3972_v62  ;;  %v12458_v26 = vadd.f32 %v3473_v34, %v3296_v46  ;;  %v4197_v34 = vld [vmem:[#allocation2 + $0x78] sm:$0xff]  ;;  %v12494_v62 = vpop.f32.mrf.mxu3 }
 0x456   :  { %9964 = vmatmul.msk.f32.gmra.mxu2 %vm2446_vm2, %v4193_v42 }
 0x459   :  { %v3476_v58 = vpop.f32.mrf.mxu2 }
 0x45a   :  { %v3256_v11 = vpop.f32.mrf.mxu1 }
 0x45b   :  { %v3297_v2 = vadd.f32 %v3256_v11, %v12319_v9  ;;  %v4195_v9 = vld [vmem:[#allocation2 + $0x68] sm:$0xff]  ;;  %v4198_v11 = vld [vmem:[#allocation2 + $0x80] sm:$0xff] }
 0x45d   :  { %9939 = vmatmul.msk.f32.gmra.mxu1 %vm2446_vm2, %v3973_v54  ;;  %v12467_v51 = vadd.f32 %v3476_v58, %v3297_v2  ;;  %v3977_v58 = vld [vmem:[#allocation2 + $0x77] sm:$0xff]  ;;  %v12501_v2 = vpop.f32.mrf.mxu0 }
 0x45e   :  { %9965 = vmatmul.msk.f32.gmra.mxu2 %vm2446_vm2, %v4194_v50 }
 0x461   :  { %v3479_v0 = vpop.f32.mrf.mxu2 }
 0x462   :  { %v3259_v23 = vpop.f32.mrf.mxu1 }
 0x463   :  { %v3298_v63 = vadd.f32 %v3259_v23, %v12324_v21  ;;  %v3978_v23 = vld [vmem:[#allocation2 + $0x7f] sm:$0xff] }
 0x465   :  { %9940 = vmatmul.msk.f32.gmra.mxu1 %vm2446_vm2, %v3974_v18  ;;  %v12474_v25 = vadd.f32 %v3479_v0, %v3298_v63  ;;  %v12504_v0 = vpop.f32.mrf.mxu3  ;;  %v4199_v63 = vld [vmem:[#allocation2 + $0x88] sm:$0xff] }
 0x466   :  { %9966 = vmatmul.msk.f32.gmra.mxu2 %vm2446_vm2, %v4195_v9  ;;  %v12510_v9 = vpop.f32.mrf.mxu0 }
 0x469   :  { %v3482_v19 = vpop.f32.mrf.mxu2 }
 0x46a   :  { %v3262_v16 = vpop.f32.mrf.mxu1 }
 0x46b   :  { %v3299_v7 = vadd.f32 %v3262_v16, %v12329_v41  ;;  %v4509_v16 = vld [vmem:[#allocation15 + $0x8] sm:$0xff] }
 0x46c   :  { %4768 = vmatpush.msra.mxu0 %v4509_v16  ;;  %v3721_v16 = vadd.f32 %v12444_v53, %v12365_v15  ;;  %v3982_v53 = vld [vmem:[#allocation2 + $0x9f] sm:$0xff] }
 0x46d   :  { %9941 = vmatmul.msk.f32.gmra.mxu1 %vm2446_vm2, %v3975_v39  ;;  %v12483_v21 = vadd.f32 %v3482_v19, %v3299_v7  ;;  %v4536_v39 = vld [vmem:[#allocation15 + $0x28] sm:$0xff] }
 0x46e   :  { %9967 = vmatmul.msk.f32.gmra.mxu2 %vm2446_vm2, %v4196_v29  ;;  %v4200_v29 = vld [vmem:[#allocation2 + $0x90] sm:$0xff]  ;;  %4619 = vmatpush.msrb.mxu3 %v4536_v39 }
 0x471   :  { %v3485_v10 = vpop.f32.mrf.mxu2 }
 0x472   :  { %v3265_v47 = vpop.f32.mrf.mxu1 }
 0x473   :  { %v3300_v14 = vadd.f32 %v3265_v47, %v12334_v37 }
 0x475   :  { %9942 = vmatmul.msk.f32.gmra.mxu1 %vm2446_vm2, %v3976_v59  ;;  %v12490_v41 = vadd.f32 %v3485_v10, %v3300_v14  ;;  %v4508_v10 = vld [vmem:[#allocation15] sm:$0xff]  ;;  %v12517_v14 = vpop.f32.mrf.mxu3 }
 0x476   :  { %9968 = vmatmul.msk.f32.gmra.mxu2 %vm2446_vm2, %v4197_v34  ;;  %4769 = vmatpush.msra.mxu0 %v4508_v10 }
 0x479   :  { %v3488_v46 = vpop.f32.mrf.mxu2 }
 0x47a   :  { %v3268_v42 = vpop.f32.mrf.mxu1 }
 0x47b   :  { %v3301_v38 = vadd.f32 %v3268_v42, %v12339_v33  ;;  %v3980_v42 = vld [vmem:[#allocation2 + $0x8f] sm:$0xff] }
 0x47d   :  { %9943 = vmatmul.msk.f32.gmra.mxu1 %vm2446_vm2, %v3977_v58  ;;  %v12499_v37 = vadd.f32 %v3488_v46, %v3301_v38  ;;  %v4201_v38 = vld [vmem:[#allocation2 + $0x98] sm:$0xff] }
 0x47e   :  { %9969 = vmatmul.msk.f32.gmra.mxu2 %vm2446_vm2, %v4198_v11  ;;  %v4535_v58 = vld [vmem:[#allocation15 + $0x20] sm:$0xff] }
 0x47f   :  { %4620 = vmatpush.msrb.mxu3 %v4535_v58 }
 0x481   :  { %v3491_v54 = vpop.f32.mrf.mxu2 }
 0x482   :  { %v3271_v50 = vpop.f32.mrf.mxu1 }
 0x483   :  { %v3302_v52 = vadd.f32 %v3271_v50, %v12344_v32  ;;  %v3979_v32 = vld [vmem:[#allocation2 + $0x87] sm:$0xff] }
 0x485   :  { %9944 = vmatmul.msk.f32.gmra.mxu1 %vm2446_vm2, %v3978_v23  ;;  %v12508_v33 = vadd.f32 %v3491_v54, %v3302_v52  ;;  %v12526_v54 = vpop.f32.mrf.mxu3  ;;  %v3940_v52 = vadd.f32 %v12316_v56, %v12360_v6 }
 0x486   :  { %9970 = vmatmul.msk.f32.gmra.mxu2 %vm2446_vm2, %v4199_v63  ;;  %v12530_v63 = vld [vmem:[#allocation13] ss:$0 sm:$0xff] }
 0x489   :  { %v3494_v18 = vpop.f32.mrf.mxu2 }
 0x48a   :  { %v3274_v19 = vpop.f32.mrf.mxu1 }
 0x48b   :  { %v3303_v7 = vadd.f32 %v3274_v19, %v12349_v49  ;;  %v12520_v49 = vpop.f32.mrf.mxu0  ;;  %v4202_v19 = vld [vmem:[#allocation2 + $0xa0] sm:$0xff] }
 0x48d   :  { %9945 = vmatmul.msk.f32.gmra.mxu1 %vm2446_vm2, %v3979_v32  ;;  %v12515_v47 = vadd.f32 %v3494_v18, %v3303_v7  ;;  %v3981_v18 = vld [vmem:[#allocation2 + $0x97] sm:$0xff]  ;;  %v12540_v10 = vpop.f32.mrf.mxu3 }
 0x48e   :  { %9971 = vmatmul.msk.f32.gmra.mxu2 %vm2446_vm2, %v4200_v29  ;;  %v3941_v29 = vadd.f32 %v12430_v5, %v3721_v16  ;;  %v3723_v16 = vadd.f32 %v12463_v30, %v12377_v43  ;;  %v3984_v43 = vld [vmem:[#allocation2 + $0xaf] sm:$0xff]  ;;  %v4205_v30 = vld [vmem:[#allocation2 + $0xb8] sm:$0xff] }
 0x491   :  { %v3497_v59 = vpop.f32.mrf.mxu2 }
 0x492   :  { %v3277_v34 = vpop.f32.mrf.mxu1 }
 0x493   :  { %v3304_v46 = vadd.f32 %v3277_v34, %v12354_v28  ;;  %v12536_v39 = vpop.f32.mrf.mxu0  ;;  %v4203_v34 = vld [vmem:[#allocation2 + $0xa8] sm:$0xff] }
 0x495   :  { %9946 = vmatmul.msk.f32.gmra.mxu1 %vm2446_vm2, %v3980_v42  ;;  %v12524_v11 = vadd.f32 %v3497_v59, %v3304_v46  ;;  %v3722_v46 = vadd.f32 %v12453_v61, %v12371_v45  ;;  %v12553_v45 = vpop.f32.mrf.mxu3  ;;  %v3983_v61 = vld [vmem:[#allocation2 + $0xa7] sm:$0xff] }
 0x496   :  { %9972 = vmatmul.msk.f32.gmra.mxu2 %vm2446_vm2, %v4201_v38 }
 0x499   :  { %v4305_v50 = vpop.f32.mrf.mxu2 }
 0x49a   :  { %v4085_v23 = vpop.f32.mrf.mxu1 }
 0x49b   :  { %v4160_v28 = vadd.f32 %v4085_v23, %v3940_v52  ;;  %v12548_v58 = vpop.f32.mrf.mxu0  ;;  %v3942_v52 = vadd.f32 %v12438_v4, %v3722_v46  ;;  %v3724_v46 = vadd.f32 %v12476_v24, %v12383_v35 }
 0x49d   :  { %v4380_v7 = vadd.f32 %v4305_v50, %v4160_v28  ;;  %9947 = vmatmul.msk.f32.gmra.mxu1 %vm2446_vm2, %v3981_v18 }
 0x49e   :  { %9973 = vmatmul.msk.f32.gmra.mxu2 %vm2446_vm2, %v4202_v19  ;;  %v4204_v19 = vld [vmem:[#allocation2 + $0xb0] sm:$0xff] }
 0x49f   :  { %v4409_v32 = vadd.f32 %v12530_v63, %v4380_v7 }
 0x4a1   :  { %v4308_v56 = vpop.f32.mrf.mxu2  ;;  %v4434_v6 = vmax.f32 %v4409_v32, 0.0 }
 0x4a2   :  { %v4088_v59 = vpop.f32.mrf.mxu1 }
 0x4a3   :  { %4460 = vst.msk [vmem:[#allocation3] sm:$0xff] %vm4459_vm4, %v4434_v6  ;;  %v4161_v15 = vadd.f32 %v4088_v59, %v3941_v29  ;;  %v3943_v6 = vadd.f32 %v12451_v40, %v3723_v16  ;;  %v12561_v29 = vpop.f32.mrf.mxu0  ;;  %v12570_v40 = vpop.f32.mrf.mxu3  ;;  %v3985_v16 = vld [vmem:[#allocation2 + $0xb7] sm:$0xff] }
 0x4a5   :  { %v4381_v42 = vadd.f32 %v4308_v56, %v4161_v15  ;;  %9948 = vmatmul.msk.f32.gmra.mxu1 %vm2446_vm2, %v3982_v53 }
 0x4a6   :  { %9974 = vmatmul.msk.f32.gmra.mxu2 %vm2446_vm2, %v4203_v34 }
 0x4a7   :  { %v4410_v38 = vadd.f32 %v12530_v63, %v4381_v42 }
 0x4a9   :  { %v4311_v5 = vpop.f32.mrf.mxu2  ;;  %v4435_v50 = vmax.f32 %v4410_v38, 0.0 }
 0x4aa   :  { %v4091_v23 = vpop.f32.mrf.mxu1  ;;  %v4486_v28 = vld [vmem:[#allocation3] sm:$0xff] }
 0x4ab   :  { %4461 = vst.msk [vmem:[#allocation3 + $0x8] sm:$0xff] %vm4459_vm4, %v4435_v50  ;;  %v4162_v18 = vadd.f32 %v4091_v23, %v3942_v52  ;;  %10003 = vmatmul.msk.f32.vlgmr.msra.gmra.mxu0 %vm4459_vm4, %v4486_v28  ;;  %v5457_v50 = vld [vmem:[#allocation15 + $0xb8] sm:$0xff]  ;;  %v3944_v23 = vadd.f32 %v12460_v22, %v3724_v46  ;;  %v12577_v24 = vpop.f32.mrf.mxu0  ;;  %v3725_v22 = vadd.f32 %v12485_v55, %v12389_v31  ;;  %v5258_v46 = vld [vmem:[#allocation15 + $0x90] sm:$0xff] }
 0x4ac   :  { %5536 = vmatpush.msrb.mxu2 %v5457_v50  ;;  %v5257_v50 = vld [vmem:[#allocation15 + $0x88] sm:$0xff] }
 0x4ad   :  { %v4382_v7 = vadd.f32 %v4311_v5, %v4162_v18  ;;  %9949 = vmatmul.msk.f32.gmra.mxu1 %vm2446_vm2, %v3983_v61 }
 0x4ae   :  { %9975 = vmatmul.msk.f32.gmra.mxu2 %vm2446_vm2, %v4204_v19  ;;  %v5456_v19 = vld [vmem:[#allocation15 + $0xb0] sm:$0xff] }
 0x4af   :  { %v4411_v4 = vadd.f32 %v12530_v63, %v4382_v7  ;;  %v4206_v7 = vld [vmem:[#allocation2 + $0xc0] sm:$0xff]  ;;  %5537 = vmatpush.msrb.mxu2 %v5456_v19 }
 0x4b1   :  { %v4314_v32 = vpop.f32.mrf.mxu2  ;;  %v4436_v56 = vmax.f32 %v4411_v4, 0.0  ;;  %v5455_v4 = vld [vmem:[#allocation15 + $0xa8] sm:$0xff] }
 0x4b2   :  { %v4094_v59 = vpop.f32.mrf.mxu1  ;;  %v4512_v15 = vld [vmem:[#allocation3 + $0x1] sm:$0xff]  ;;  %5538 = vmatpush.msrb.mxu2 %v5455_v4 }
 0x4b3   :  { %v4487_v53 = vld [vmem:[#allocation3 + $0x8] sm:$0xff]  ;;  %4462 = vst.msk [vmem:[#allocation3 + $0x10] sm:$0xff] %vm4459_vm4, %v4436_v56  ;;  %v4163_v34 = vadd.f32 %v4094_v59, %v3943_v6  ;;  %9981 = vmatmul.msk.f32.vlgmr.msrb.gmra.mxu3 %vm4459_vm4, %v4512_v15  ;;  %v5454_v56 = vld [vmem:[#allocation15 + $0xa0] sm:$0xff]  ;;  %v12584_v59 = vpop.f32.mrf.mxu3 }
 0x4b4   :  { %10004 = vmatmul.msk.f32.gmra.mxu0 %vm4459_vm4, %v4487_v53  ;;  %5539 = vmatpush.msrb.mxu2 %v5454_v56  ;;  %v5259_v53 = vld [vmem:[#allocation15 + $0x98] sm:$0xff]  ;;  %v3727_v56 = vadd.f32 %v12504_v0, %v12401_v3 }
 0x4b5   :  { %v4383_v42 = vadd.f32 %v4314_v32, %v4163_v34  ;;  %9950 = vmatmul.msk.f32.gmra.mxu1 %vm2446_vm2, %v3984_v43  ;;  %v3945_v43 = vadd.f32 %v12469_v12, %v3725_v22  ;;  %v3726_v12 = vadd.f32 %v12494_v62, %v12395_v20  ;;  %v3987_v22 = vld [vmem:[#allocation2 + $0xc7] sm:$0xff] }
 0x4b6   :  { %9976 = vmatmul.msk.f32.gmra.mxu2 %vm2446_vm2, %v4205_v30  ;;  %5338 = vmatpush.msrb.mxu1 %v5259_v53 }
 0x4b7   :  { %v4412_v38 = vadd.f32 %v12530_v63, %v4383_v42 }
 0x4b8   :  { %5339 = vmatpush.msrb.mxu1 %v5258_v46 }
 0x4b9   :  { %v4317_v5 = vpop.f32.mrf.mxu2  ;;  %v4437_v52 = vmax.f32 %v4412_v38, 0.0  ;;  %v3986_v38 = vld [vmem:[#allocation2 + $0xbf] sm:$0xff] }
 0x4ba   :  { %v4097_v28 = vpop.f32.mrf.mxu1  ;;  %v4513_v18 = vld [vmem:[#allocation3 + $0x9] sm:$0xff]  ;;  %5340 = vmatpush.msrb.mxu1 %v5257_v50 }
 0x4bb   :  { %v4488_v61 = vld [vmem:[#allocation3 + $0x10] sm:$0xff]  ;;  %4463 = vst.msk [vmem:[#allocation3 + $0x18] sm:$0xff] %vm4459_vm4, %v4437_v52  ;;  %v4164_v35 = vadd.f32 %v4097_v28, %v3944_v23  ;;  %9982 = vmatmul.msk.f32.gmra.mxu3 %vm4459_vm4, %v4513_v18  ;;  %v12597_v23 = vpop.f32.mrf.mxu0  ;;  %v5256_v28 = vld [vmem:[#allocation15 + $0x80] sm:$0xff] }
 0x4bc   :  { %10005 = vmatmul.msk.f32.gmra.mxu0 %vm4459_vm4, %v4488_v61  ;;  %5341 = vmatpush.msrb.mxu1 %v5256_v28 }
 0x4bd   :  { %v4384_v32 = vadd.f32 %v4317_v5, %v4164_v35  ;;  %9951 = vmatmul.msk.f32.gmra.mxu1 %vm2446_vm2, %v3985_v16  ;;  %v4207_v5 = vld [vmem:[#allocation2 + $0xc8] sm:$0xff]  ;;  %v3946_v35 = vadd.f32 %v12479_v1, %v3726_v12  ;;  %v12601_v16 = vpop.f32.mrf.mxu3 }
 0x4be   :  { %9977 = vmatmul.msk.f32.gmra.mxu2 %vm2446_vm2, %v4206_v7 }
 0x4bf   :  { %v4413_v6 = vadd.f32 %v12530_v63, %v4384_v32  ;;  %v4208_v32 = vld [vmem:[#allocation2 + $0xd0] sm:$0xff] }
 0x4c1   :  { %v4320_v15 = vpop.f32.mrf.mxu2  ;;  %v4438_v34 = vmax.f32 %v4413_v6, 0.0 }
 0x4c2   :  { %v4100_v30 = vpop.f32.mrf.mxu1  ;;  %v4514_v31 = vld [vmem:[#allocation3 + $0x11] sm:$0xff] }
 0x4c3   :  { %v12587_v55 = vld [vmem:[#allocation3 + $0x18] sm:$0xff]  ;;  %4464 = vst.msk [vmem:[#allocation3 + $0x20] sm:$0xff] %vm4459_vm4, %v4438_v34  ;;  %v4165_v42 = vadd.f32 %v4100_v30, %v3945_v43  ;;  %9983 = vmatmul.msk.f32.gmra.mxu3 %vm4459_vm4, %v4514_v31  ;;  %v3947_v43 = vadd.f32 %v12492_v36, %v3727_v56 }
 0x4c4   :  { %10006 = vmatmul.msk.f32.gmra.mxu0 %vm4459_vm4, %v12587_v55 }
 0x4c5   :  { %v4385_v52 = vadd.f32 %v4320_v15, %v4165_v42  ;;  %9952 = vmatmul.msk.f32.gmra.mxu1 %vm2446_vm2, %v3986_v38  ;;  %v12614_v15 = vpop.f32.mrf.mxu0  ;;  %v12623_v0 = vpop.f32.mrf.mxu3  ;;  %v3988_v42 = vld [vmem:[#allocation2 + $0xcf] sm:$0xff]  ;;  %v4209_v38 = vld [vmem:[#allocation2 + $0xd8] sm:$0x3] }
 0x4c6   :  { %9978 = vmatmul.msk.f32.gmra.mxu2 %vm2446_vm2, %v4207_v5  ;;  %v3728_v5 = vadd.f32 %v12517_v14, %v12407_v44  ;;  %v3989_v14 = vld [vmem:[#allocation2 + $0xd7] sm:$0x3] }
 0x4c7   :  { %v4414_v18 = vadd.f32 %v12530_v63, %v4385_v52 }
 0x4c8   :  { %v3948_v28 = vadd.f32 %v12501_v2, %v3728_v5 }
 0x4c9   :  { %v4323_v61 = vpop.f32.mrf.mxu2  ;;  %v4439_v19 = vmax.f32 %v4414_v18, 0.0 }
 0x4ca   :  { %v4103_v7 = vpop.f32.mrf.mxu1  ;;  %v4515_v20 = vld [vmem:[#allocation3 + $0x19] sm:$0xff] }
 0x4cb   :  { %v12603_v62 = vld [vmem:[#allocation3 + $0x20] sm:$0xff]  ;;  %4465 = vst.msk [vmem:[#allocation3 + $0x28] sm:$0xff] %vm4459_vm4, %v4439_v19  ;;  %v4166_v4 = vadd.f32 %v4103_v7, %v3946_v35  ;;  %9984 = vmatmul.msk.f32.gmra.mxu3 %vm4459_vm4, %v4515_v20  ;;  %v5431_v7 = vld [vmem:[#allocation3 + $0xd] sm:$0xff]  ;;  %v3729_v20 = vadd.f32 %v12526_v54, %v12413_v13 }
 0x4cc   :  { %10007 = vmatmul.msk.f32.gmra.mxu0 %vm4459_vm4, %v12603_v62 }
 0x4cd   :  { %v4386_v1 = vadd.f32 %v4323_v61, %v4166_v4  ;;  %9953 = vmatmul.msk.f32.gmra.mxu1 %vm2446_vm2, %v3987_v22  ;;  %v12631_v18 = vpop.f32.mrf.mxu0  ;;  %v12643_v4 = vpop.f32.mrf.mxu3 }
 0x4ce   :  { %9979 = vmatmul.msk.f32.gmra.mxu2 %vm2446_vm2, %v4208_v32 }
 0x4cf   :  { %v4415_v6 = vadd.f32 %v12530_v63, %v4386_v1  ;;  %v3949_v1 = vadd.f32 %v12510_v9, %v3729_v20 }
 0x4d1   :  { %v4326_v53 = vpop.f32.mrf.mxu2  ;;  %v4440_v34 = vmax.f32 %v4415_v6, 0.0 }
 0x4d2   :  { %v4106_v30 = vpop.f32.mrf.mxu1  ;;  %v4516_v31 = vld [vmem:[#allocation3 + $0x21] sm:$0xff] }
 0x4d3   :  { %v12617_v46 = vld [vmem:[#allocation3 + $0x28] sm:$0xff]  ;;  %4466 = vst.msk [vmem:[#allocation3 + $0x30] sm:$0xff] %vm4459_vm4, %v4440_v34  ;;  %v4167_v3 = vadd.f32 %v4106_v30, %v3947_v43  ;;  %9985 = vmatmul.msk.f32.gmra.mxu3 %vm4459_vm4, %v4516_v31  ;;  %v5432_v30 = vld [vmem:[#allocation3 + $0x15] sm:$0xff]  ;;  %v3730_v31 = vadd.f32 %v12540_v10, %v12418_v8 }
 0x4d4   :  { %10008 = vmatmul.msk.f32.gmra.mxu0 %vm4459_vm4, %v12617_v46  ;;  %v5233_v43 = vld [vmem:[#allocation3 + $0xc] sm:$0xff]  ;;  %v5234_v10 = vld [vmem:[#allocation3 + $0x14] sm:$0xff] }
 0x4d5   :  { %v4387_v36 = vadd.f32 %v4326_v53, %v4167_v3  ;;  %9954 = vmatmul.msk.f32.gmra.mxu1 %vm2446_vm2, %v3988_v42  ;;  %v12653_v54 = vpop.f32.mrf.mxu0  ;;  %v12660_v42 = vpop.f32.mrf.mxu3 }
 0x4d6   :  { %9980 = vmatmul.msk.f32.gmra.mxu2 %vm2446_vm2, %v4209_v38 }
 0x4d7   :  { %v4416_v50 = vadd.f32 %v12530_v63, %v4387_v36  ;;  %v3950_v36 = vadd.f32 %v12520_v49, %v3730_v31 }
 0x4d9   :  { %v4329_v12 = vpop.f32.mrf.mxu2  ;;  %v4441_v52 = vmax.f32 %v4416_v50, 0.0 }
 0x4da   :  { %v4109_v61 = vpop.f32.mrf.mxu1  ;;  %v4517_v19 = vld [vmem:[#allocation3 + $0x29] sm:$0xff] }
 0x4db   :  { %v12633_v35 = vld [vmem:[#allocation3 + $0x30] sm:$0xff]  ;;  %4467 = vst.msk [vmem:[#allocation3 + $0x38] sm:$0xff] %vm4459_vm4, %v4441_v52  ;;  %v4168_v44 = vadd.f32 %v4109_v61, %v3948_v28  ;;  %9986 = vmatmul.msk.f32.gmra.mxu3 %vm4459_vm4, %v4517_v19  ;;  %v5433_v28 = vld [vmem:[#allocation3 + $0x1d] sm:$0xff]  ;;  %v3731_v61 = vadd.f32 %v12553_v45, %v12423_v48 }
 0x4dc   :  { %10009 = vmatmul.msk.f32.gmra.mxu0 %vm4459_vm4, %v12633_v35  ;;  %v4863_v45 = vld [vmem:[#allocation15 + $0x58] sm:$0xff] }
 0x4dd   :  { %v4388_v2 = vadd.f32 %v4329_v12, %v4168_v44  ;;  %9955 = vmatmul.msk.f32.gmra.mxu1 %vm2446_vm2, %v3989_v14  ;;  %v12673_v49 = vpop.f32.mrf.mxu0  ;;  %v3951_v20 = vadd.f32 %v12536_v39, %v3731_v61  ;;  %4942 = vmatpush.msra.mxu3 %v4863_v45  ;;  %v3732_v39 = vadd.f32 %v12570_v40, %v12428_v60  ;;  %v5061_v40 = vld [vmem:[#allocation15 + $0x78] sm:$0xff] }
 0x4de   :  { %10091 = vmatmul.msk.f32.vlgmr.msrb.gmra.mxu2 %vm4459_vm4, %v5431_v7  ;;  %5140 = vmatpush.msrb.mxu0 %v5061_v40 }
 0x4df   :  { %v4417_v22 = vadd.f32 %v12530_v63, %v4388_v2  ;;  %v12677_v2 = vpop.f32.mrf.mxu3 }
 0x4e1   :  { %v4332_v32 = vpop.f32.mrf.mxu2  ;;  %v4442_v56 = vmax.f32 %v4417_v22, 0.0 }
 0x4e2   :  { %v4112_v6 = vpop.f32.mrf.mxu1  ;;  %v4518_v53 = vld [vmem:[#allocation3 + $0x31] sm:$0xff] }
 0x4e3   :  { %v12647_v34 = vld [vmem:[#allocation3 + $0x38] sm:$0xff]  ;;  %4468 = vst.msk [vmem:[#allocation3 + $0x40] sm:$0xff] %vm4459_vm4, %v4442_v56  ;;  %v4169_v13 = vadd.f32 %v4112_v6, %v3949_v1  ;;  %9987 = vmatmul.msk.f32.gmra.mxu3 %vm4459_vm4, %v4518_v53  ;;  %v5434_v6 = vld [vmem:[#allocation3 + $0x25] sm:$0xff] }
 0x4e4   :  { %10010 = vmatmul.msk.f32.gmra.mxu0 %vm4459_vm4, %v12647_v34  ;;  %v5235_v1 = vld [vmem:[#allocation3 + $0x1c] sm:$0xff] }
 0x4e5   :  { %v4389_v9 = vadd.f32 %v4332_v32, %v4169_v13  ;;  %10069 = vmatmul.msk.f32.vlgmr.msrb.gmra.mxu1 %vm4459_vm4, %v5233_v43  ;;  %v12690_v43 = vpop.f32.mrf.mxu0 }
 0x4e6   :  { %10092 = vmatmul.msk.f32.gmra.mxu2 %vm4459_vm4, %v5432_v30 }
 0x4e7   :  { %v4418_v3 = vadd.f32 %v12530_v63, %v4389_v9  ;;  %v3952_v9 = vadd.f32 %v12548_v58, %v3732_v39  ;;  %v3733_v58 = vadd.f32 %v12584_v59, %v12435_v57  ;;  %v5237_v59 = vld [vmem:[#allocation3 + $0x2c] sm:$0xff] }
 0x4e9   :  { %v4335_v38 = vpop.f32.mrf.mxu2  ;;  %v4443_v5 = vmax.f32 %v4418_v3, 0.0 }
 0x4ea   :  { %v4115_v50 = vpop.f32.mrf.mxu1  ;;  %v4519_v12 = vld [vmem:[#allocation3 + $0x39] sm:$0xff] }
 0x4eb   :  { %v12663_v52 = vld [vmem:[#allocation3 + $0x40] sm:$0xff]  ;;  %4469 = vst.msk [vmem:[#allocation3 + $0x48] sm:$0xff] %vm4459_vm4, %v4443_v5  ;;  %v4170_v8 = vadd.f32 %v4115_v50, %v3950_v36  ;;  %9988 = vmatmul.msk.f32.gmra.mxu3 %vm4459_vm4, %v4519_v12  ;;  %v12699_v36 = vpop.f32.mrf.mxu3  ;;  %v5435_v12 = vld [vmem:[#allocation3 + $0x2d] sm:$0xff] }
 0x4ec   :  { %10011 = vmatmul.msk.f32.gmra.mxu0 %vm4459_vm4, %v12663_v52  ;;  %v5236_v50 = vld [vmem:[#allocation3 + $0x24] sm:$0xff] }
 0x4ed   :  { %v4390_v19 = vadd.f32 %v4335_v38, %v4170_v8  ;;  %10070 = vmatmul.msk.f32.gmra.mxu1 %vm4459_vm4, %v5234_v10 }
 0x4ee   :  { %10093 = vmatmul.msk.f32.gmra.mxu2 %vm4459_vm4, %v5433_v28 }
 0x4ef   :  { %v4419_v44 = vadd.f32 %v12530_v63, %v4390_v19  ;;  %v3953_v19 = vadd.f32 %v12561_v29, %v3733_v58 }
 0x4f1   :  { %v4338_v14 = vpop.f32.mrf.mxu2  ;;  %v4444_v7 = vmax.f32 %v4419_v44, 0.0  ;;  %v12707_v44 = vpop.f32.mrf.mxu0 }
 0x4f2   :  { %v4118_v22 = vpop.f32.mrf.mxu1  ;;  %v4520_v32 = vld [vmem:[#allocation3 + $0x41] sm:$0xff] }
 0x4f3   :  { %v12679_v56 = vld [vmem:[#allocation3 + $0x48] sm:$0xff]  ;;  %4470 = vst.msk [vmem:[#allocation3 + $0x50] sm:$0xff] %vm4459_vm4, %v4444_v7  ;;  %v4171_v48 = vadd.f32 %v4118_v22, %v3951_v20  ;;  %9989 = vmatmul.msk.f32.gmra.mxu3 %vm4459_vm4, %v4520_v32  ;;  %v5436_v22 = vld [vmem:[#allocation3 + $0x35] sm:$0xff]  ;;  %v3734_v32 = vadd.f32 %v12601_v16, %v12442_v17 }
 0x4f4   :  { %10012 = vmatmul.msk.f32.gmra.mxu0 %vm4459_vm4, %v12679_v56 }
 0x4f5   :  { %v4391_v53 = vadd.f32 %v4338_v14, %v4171_v48  ;;  %10071 = vmatmul.msk.f32.gmra.mxu1 %vm4459_vm4, %v5235_v1  ;;  %v12719_v48 = vpop.f32.mrf.mxu3  ;;  %v3954_v39 = vadd.f32 %v12577_v24, %v3734_v32 }
 0x4f6   :  { %10094 = vmatmul.msk.f32.gmra.mxu2 %vm4459_vm4, %v5434_v6 }
 0x4f7   :  { %v4420_v13 = vadd.f32 %v12530_v63, %v4391_v53 }
 0x4f9   :  { %v4341_v30 = vpop.f32.mrf.mxu2  ;;  %v4445_v31 = vmax.f32 %v4420_v13, 0.0  ;;  %v12729_v16 = vpop.f32.mrf.mxu0 }
 0x4fa   :  { %v4121_v3 = vpop.f32.mrf.mxu1  ;;  %v4521_v38 = vld [vmem:[#allocation3 + $0x49] sm:$0xff] }
 0x4fb   :  { %v12693_v5 = vld [vmem:[#allocation3 + $0x50] sm:$0xff]  ;;  %4471 = vst.msk [vmem:[#allocation3 + $0x58] sm:$0xff] %vm4459_vm4, %v4445_v31  ;;  %v4172_v60 = vadd.f32 %v4121_v3, %v3952_v9  ;;  %9990 = vmatmul.msk.f32.gmra.mxu3 %vm4459_vm4, %v4521_v38  ;;  %v5437_v9 = vld [vmem:[#allocation3 + $0x3d] sm:$0xff]  ;;  %v3735_v3 = vadd.f32 %v12623_v0, %v12449_v27 }
 0x4fc   :  { %10013 = vmatmul.msk.f32.gmra.mxu0 %vm4459_vm4, %v12693_v5  ;;  %v5238_v31 = vld [vmem:[#allocation3 + $0x34] sm:$0xff]  ;;  %v5239_v0 = vld [vmem:[#allocation3 + $0x3c] sm:$0xff] }
 0x4fd   :  { %v4392_v8 = vadd.f32 %v4341_v30, %v4172_v60  ;;  %10072 = vmatmul.msk.f32.gmra.mxu1 %vm4459_vm4, %v5236_v50  ;;  %v12736_v60 = vpop.f32.mrf.mxu3 }
 0x4fe   :  { %10095 = vmatmul.msk.f32.gmra.mxu2 %vm4459_vm4, %v5435_v12  ;;  %v3955_v12 = vadd.f32 %v12597_v23, %v3735_v3 }
 0x4ff   :  { %v4421_v10 = vadd.f32 %v12530_v63, %v4392_v8 }
 0x501   :  { %v4344_v28 = vpop.f32.mrf.mxu2  ;;  %v4446_v61 = vmax.f32 %v4421_v10, 0.0  ;;  %v12749_v23 = vpop.f32.mrf.mxu0 }
 0x502   :  { %v4124_v14 = vpop.f32.mrf.mxu1  ;;  %v4522_v7 = vld [vmem:[#allocation3 + $0x51] sm:$0xff] }
 0x503   :  { %v12709_v20 = vld [vmem:[#allocation3 + $0x58] sm:$0xff]  ;;  %4472 = vst.msk [vmem:[#allocation3 + $0x60] sm:$0xff] %vm4459_vm4, %v4446_v61  ;;  %v4173_v57 = vadd.f32 %v4124_v14, %v3953_v19  ;;  %9991 = vmatmul.msk.f32.gmra.mxu3 %vm4459_vm4, %v4522_v7  ;;  %v3736_v61 = vadd.f32 %v12643_v4, %v12458_v26  ;;  %v4862_v4 = vld [vmem:[#allocation15 + $0x50] sm:$0xff] }
 0x504   :  { %10014 = vmatmul.msk.f32.gmra.mxu0 %vm4459_vm4, %v12709_v20  ;;  %4943 = vmatpush.msra.mxu3 %v4862_v4 }
 0x505   :  { %v4393_v29 = vadd.f32 %v4344_v28, %v4173_v57  ;;  %10073 = vmatmul.msk.f32.gmra.mxu1 %vm4459_vm4, %v5237_v59  ;;  %v5438_v28 = vld [vmem:[#allocation3 + $0x45] sm:$0xff]  ;;  %v3956_v59 = vadd.f32 %v12614_v15, %v3736_v61  ;;  %v3737_v15 = vadd.f32 %v12660_v42, %v12467_v51  ;;  %v5060_v42 = vld [vmem:[#allocation15 + $0x70] sm:$0xff] }
 0x506   :  { %10096 = vmatmul.msk.f32.gmra.mxu2 %vm4459_vm4, %v5436_v22  ;;  %v12753_v22 = vpop.f32.mrf.mxu3  ;;  %5141 = vmatpush.msrb.mxu0 %v5060_v42 }
 0x507   :  { %v4422_v45 = vadd.f32 %v12530_v63, %v4393_v29 }
 0x509   :  { %v4347_v1 = vpop.f32.mrf.mxu2  ;;  %v4447_v6 = vmax.f32 %v4422_v45, 0.0 }
 0x50a   :  { %v4127_v53 = vpop.f32.mrf.mxu1  ;;  %v4523_v13 = vld [vmem:[#allocation3 + $0x59] sm:$0xff] }
 0x50b   :  { %v12723_v30 = vld [vmem:[#allocation3 + $0x60] sm:$0xff]  ;;  %4473 = vst.msk [vmem:[#allocation3 + $0x68] sm:$0xff] %vm4459_vm4, %v4447_v6  ;;  %v4174_v17 = vadd.f32 %v4127_v53, %v3954_v39  ;;  %9992 = vmatmul.msk.f32.gmra.mxu3 %vm4459_vm4, %v4523_v13  ;;  %v5439_v6 = vld [vmem:[#allocation3 + $0x4d] sm:$0xff]  ;;  %v12766_v13 = vpop.f32.mrf.mxu0 }
 0x50c   :  { %10015 = vmatmul.msk.f32.gmra.mxu0 %vm4459_vm4, %v12723_v30 }
 0x50d   :  { %v4394_v24 = vadd.f32 %v4347_v1, %v4174_v17  ;;  %10074 = vmatmul.msk.f32.gmra.mxu1 %vm4459_vm4, %v5238_v31  ;;  %v5240_v1 = vld [vmem:[#allocation3 + $0x44] sm:$0xff] }
 0x50e   :  { %10097 = vmatmul.msk.f32.gmra.mxu2 %vm4459_vm4, %v5437_v9  ;;  %v3957_v9 = vadd.f32 %v12631_v18, %v3737_v15  ;;  %v3738_v18 = vadd.f32 %v12677_v2, %v12474_v25  ;;  %v5242_v25 = vld [vmem:[#allocation3 + $0x54] sm:$0xff]  ;;  %v5441_v2 = vld [vmem:[#allocation3 + $0x5d] sm:$0xff] }
 0x50f   :  { %v4423_v38 = vadd.f32 %v12530_v63, %v4394_v24 }
 0x510   :  { %v3958_v61 = vadd.f32 %v12653_v54, %v3738_v18 }
 0x511   :  { %v4350_v40 = vpop.f32.mrf.mxu2  ;;  %v4448_v50 = vmax.f32 %v4423_v38, 0.0 }
 0x512   :  { %v4130_v58 = vpop.f32.mrf.mxu1  ;;  %v4524_v8 = vld [vmem:[#allocation3 + $0x61] sm:$0xff] }
 0x513   :  { %v12739_v10 = vld [vmem:[#allocation3 + $0x68] sm:$0xff]  ;;  %4474 = vst.msk [vmem:[#allocation3 + $0x70] sm:$0xff] %vm4459_vm4, %v4448_v50  ;;  %v4175_v27 = vadd.f32 %v4130_v58, %v3955_v12  ;;  %9993 = vmatmul.msk.f32.gmra.mxu3 %vm4459_vm4, %v4524_v8  ;;  %v5440_v12 = vld [vmem:[#allocation3 + $0x55] sm:$0xff] }
 0x514   :  { %10016 = vmatmul.msk.f32.gmra.mxu0 %vm4459_vm4, %v12739_v10  ;;  %v5241_v50 = vld [vmem:[#allocation3 + $0x4c] sm:$0xff] }
 0x515   :  { %v4395_v19 = vadd.f32 %v4350_v40, %v4175_v27  ;;  %10075 = vmatmul.msk.f32.gmra.mxu1 %vm4459_vm4, %v5239_v0  ;;  %v12775_v40 = vpop.f32.mrf.mxu3 }
 0x516   :  { %10098 = vmatmul.msk.f32.gmra.mxu2 %vm4459_vm4, %v5438_v28 }
 0x517   :  { %v4424_v14 = vadd.f32 %v12530_v63, %v4395_v19 }
 0x519   :  { %v4353_v7 = vpop.f32.mrf.mxu2  ;;  %v4449_v57 = vmax.f32 %v4424_v14, 0.0 }
 0x51a   :  { %v4133_v32 = vpop.f32.mrf.mxu1  ;;  %v4525_v29 = vld [vmem:[#allocation3 + $0x69] sm:$0xff] }
 0x51b   :  { %v12755_v45 = vld [vmem:[#allocation3 + $0x70] sm:$0xff]  ;;  %4475 = vst.msk [vmem:[#allocation3 + $0x78] sm:$0xff] %vm4459_vm4, %v4449_v57  ;;  %v4176_v26 = vadd.f32 %v4133_v32, %v3956_v59  ;;  %9994 = vmatmul.msk.f32.gmra.mxu3 %vm4459_vm4, %v4525_v29  ;;  %v3739_v59 = vadd.f32 %v12699_v36, %v12483_v21  ;;  %v5243_v36 = vld [vmem:[#allocation3 + $0x5c] sm:$0xff] }
 0x51c   :  { %10017 = vmatmul.msk.f32.gmra.mxu0 %vm4459_vm4, %v12755_v45 }
 0x51d   :  { %v4396_v39 = vadd.f32 %v4353_v7, %v4176_v26  ;;  %10076 = vmatmul.msk.f32.gmra.mxu1 %vm4459_vm4, %v5240_v1  ;;  %v12793_v54 = vpop.f32.mrf.mxu3 }
 0x51e   :  { %10099 = vmatmul.msk.f32.gmra.mxu2 %vm4459_vm4, %v5439_v6  ;;  %v3959_v6 = vadd.f32 %v12673_v49, %v3739_v59 }
 0x51f   :  { %v4425_v53 = vadd.f32 %v12530_v63, %v4396_v39 }
 0x521   :  { %v4356_v17 = vpop.f32.mrf.mxu2  ;;  %v4450_v31 = vmax.f32 %v4425_v53, 0.0 }
 0x522   :  { %v4136_v3 = vpop.f32.mrf.mxu1  ;;  %v4526_v24 = vld [vmem:[#allocation3 + $0x71] sm:$0xff] }
 0x523   :  { %v12769_v38 = vld [vmem:[#allocation3 + $0x78] sm:$0xff]  ;;  %4476 = vst.msk [vmem:[#allocation3 + $0x80] sm:$0xff] %vm4459_vm4, %v4450_v31  ;;  %v4177_v51 = vadd.f32 %v4136_v3, %v3957_v9  ;;  %9995 = vmatmul.msk.f32.gmra.mxu3 %vm4459_vm4, %v4526_v24  ;;  %v3740_v31 = vadd.f32 %v12719_v48, %v12490_v41  ;;  %v5059_v41 = vld [vmem:[#allocation15 + $0x68] sm:$0xff] }
 0x524   :  { %10018 = vmatmul.msk.f32.gmra.mxu0 %vm4459_vm4, %v12769_v38 }
 0x525   :  { %v4397_v58 = vadd.f32 %v4356_v17, %v4177_v51  ;;  %10077 = vmatmul.msk.f32.gmra.mxu1 %vm4459_vm4, %v5241_v50  ;;  %v5442_v17 = vld [vmem:[#allocation3 + $0x65] sm:$0xff]  ;;  %5142 = vmatpush.msrb.mxu0 %v5059_v41 }
 0x526   :  { %10100 = vmatmul.msk.f32.gmra.mxu2 %vm4459_vm4, %v5440_v12  ;;  %v3960_v12 = vadd.f32 %v12690_v43, %v3740_v31  ;;  %v3741_v43 = vadd.f32 %v12736_v60, %v12499_v37  ;;  %v4861_v37 = vld [vmem:[#allocation15 + $0x48] sm:$0xff] }
 0x527   :  { %v4426_v8 = vadd.f32 %v12530_v63, %v4397_v58  ;;  %4944 = vmatpush.msra.mxu3 %v4861_v37 }
 0x528   :  { %v4771_v0 = vpop.f32.mrf.mxu0 }
 0x529   :  { %v4359_v27 = vpop.f32.mrf.mxu2  ;;  %v4451_v28 = vmax.f32 %v4426_v8, 0.0 }
 0x52a   :  { %v4139_v19 = vpop.f32.mrf.mxu1  ;;  %v4527_v14 = vld [vmem:[#allocation3 + $0x79] sm:$0xff] }
 0x52b   :  { %v12783_v7 = vld [vmem:[#allocation3 + $0x80] sm:$0xff]  ;;  %4477 = vst.msk [vmem:[#allocation3 + $0x88] sm:$0xff] %vm4459_vm4, %v4451_v28  ;;  %v4178_v57 = vadd.f32 %v4139_v19, %v3958_v61  ;;  %9996 = vmatmul.msk.f32.gmra.mxu3 %vm4459_vm4, %v4527_v14 }
 0x52c   :  { %10019 = vmatmul.msk.f32.gmra.mxu0 %vm4459_vm4, %v12783_v7  ;;  %v5058_v28 = vld [vmem:[#allocation15 + $0x60] sm:$0xff] }
 0x52d   :  { %v4398_v32 = vadd.f32 %v4359_v27, %v4178_v57  ;;  %10078 = vmatmul.msk.f32.gmra.mxu1 %vm4459_vm4, %v5242_v25  ;;  %v5244_v27 = vld [vmem:[#allocation3 + $0x64] sm:$0xff]  ;;  %5143 = vmatpush.msrb.mxu0 %v5058_v28 }
 0x52e   :  { %10101 = vmatmul.msk.f32.gmra.mxu2 %vm4459_vm4, %v5441_v2 }
 0x52f   :  { %v4427_v29 = vadd.f32 %v12530_v63, %v4398_v32  ;;  %v3961_v32 = vadd.f32 %v12707_v44, %v3741_v43  ;;  %v3742_v44 = vadd.f32 %v12753_v22, %v12508_v33  ;;  %v5246_v22 = vld [vmem:[#allocation3 + $0x74] sm:$0xff] }
 0x531   :  { %v4362_v26 = vpop.f32.mrf.mxu2  ;;  %v4774_v4 = vpop.f32.mrf.mxu0  ;;  %v4452_v1 = vmax.f32 %v4427_v29, 0.0 }
 0x532   :  { %v4142_v15 = vpop.f32.mrf.mxu1  ;;  %v4528_v39 = vld [vmem:[#allocation3 + $0x81] sm:$0xff] }
 0x533   :  { %v12797_v53 = vld [vmem:[#allocation3 + $0x88] sm:$0xff]  ;;  %4478 = vst.msk [vmem:[#allocation3 + $0x90] sm:$0xff] %vm4459_vm4, %v4452_v1  ;;  %v4179_v21 = vadd.f32 %v4142_v15, %v3959_v6  ;;  %9997 = vmatmul.msk.f32.gmra.mxu3 %vm4459_vm4, %v4528_v39  ;;  %v5444_v15 = vld [vmem:[#allocation3 + $0x75] sm:$0xff] }
 0x534   :  { %10020 = vmatmul.msk.f32.gmra.mxu0 %vm4459_vm4, %v12797_v53  ;;  %v5245_v6 = vld [vmem:[#allocation3 + $0x6c] sm:$0xff] }
 0x535   :  { %v4399_v9 = vadd.f32 %v4362_v26, %v4179_v21  ;;  %10079 = vmatmul.msk.f32.gmra.mxu1 %vm4459_vm4, %v5243_v36 }
 0x536   :  { %10102 = vmatmul.msk.f32.gmra.mxu2 %vm4459_vm4, %v5442_v17  ;;  %v4622_v49 = vpop.f32.mrf.mxu3 }
 0x537   :  { %v4428_v3 = vadd.f32 %v12530_v63, %v4399_v9  ;;  %v12808_v24 = vadd.f32 %v4771_v0, %v4622_v49  ;;  %v5443_v0 = vld [vmem:[#allocation3 + $0x6d] sm:$0xff] }
 0x539   :  { %v4365_v51 = vpop.f32.mrf.mxu2  ;;  %v4777_v42 = vpop.f32.mrf.mxu0  ;;  %v4453_v50 = vmax.f32 %v4428_v3, 0.0  ;;  %v3962_v3 = vadd.f32 %v12729_v16, %v3742_v44  ;;  %v5248_v44 = vld [vmem:[#allocation3 + $0x84] sm:$0xff] }
 0x53a   :  { %v4145_v18 = vpop.f32.mrf.mxu1  ;;  %v4529_v58 = vld [vmem:[#allocation3 + $0x89] sm:$0xff] }
 0x53b   :  { %v12811_v8 = vld [vmem:[#allocation3 + $0x90] sm:$0xff]  ;;  %4479 = vst.msk [vmem:[#allocation3 + $0x98] sm:$0xff] %vm4459_vm4, %v4453_v50  ;;  %v4180_v48 = vadd.f32 %v4145_v18, %v3960_v12  ;;  %9998 = vmatmul.msk.f32.gmra.mxu3 %vm4459_vm4, %v4529_v58  ;;  %v3743_v18 = vadd.f32 %v12775_v40, %v12515_v47  ;;  %v5247_v40 = vld [vmem:[#allocation3 + $0x7c] sm:$0xff] }
 0x53c   :  { %10021 = vmatmul.msk.f32.gmra.mxu0 %vm4459_vm4, %v12811_v8 }
 0x53d   :  { %v4400_v61 = vadd.f32 %v4365_v51, %v4180_v48  ;;  %10080 = vmatmul.msk.f32.gmra.mxu1 %vm4459_vm4, %v5244_v27  ;;  %v3963_v28 = vadd.f32 %v12749_v23, %v3743_v18  ;;  %v4838_v18 = vld [vmem:[#allocation3 + $0xa] sm:$0xff] }
 0x53e   :  { %10103 = vmatmul.msk.f32.gmra.mxu2 %vm4459_vm4, %v5443_v0  ;;  %v4625_v19 = vpop.f32.mrf.mxu3 }
 0x53f   :  { %v4429_v14 = vadd.f32 %v12530_v63, %v4400_v61  ;;  %v12822_v57 = vadd.f32 %v4774_v4, %v4625_v19  ;;  %v4860_v4 = vld [vmem:[#allocation15 + $0x40] sm:$0xff] }
 0x540   :  { %4945 = vmatpush.msra.mxu3 %v4860_v4 }
 0x541   :  { %v4368_v25 = vpop.f32.mrf.mxu2  ;;  %v4780_v2 = vpop.f32.mrf.mxu0  ;;  %v4454_v59 = vmax.f32 %v4429_v14, 0.0 }
 0x542   :  { %v4148_v29 = vpop.f32.mrf.mxu1  ;;  %v4530_v26 = vld [vmem:[#allocation3 + $0x91] sm:$0xff] }
 0x543   :  { %v12825_v1 = vld [vmem:[#allocation3 + $0x98] sm:$0xff]  ;;  %4480 = vst.msk [vmem:[#allocation3 + $0xa0] sm:$0xff] %vm4459_vm4, %v4454_v59  ;;  %v4181_v60 = vadd.f32 %v4148_v29, %v3961_v32  ;;  %9999 = vmatmul.msk.f32.gmra.mxu3 %vm4459_vm4, %v4530_v26 }
 0x544   :  { %10022 = vmatmul.msk.f32.gmra.mxu0 %vm4459_vm4, %v12825_v1 }
 0x545   :  { %v4401_v39 = vadd.f32 %v4368_v25, %v4181_v60  ;;  %10081 = vmatmul.msk.f32.gmra.mxu1 %vm4459_vm4, %v5245_v6  ;;  %v5446_v25 = vld [vmem:[#allocation3 + $0x85] sm:$0xff] }
 0x546   :  { %10104 = vmatmul.msk.f32.gmra.mxu2 %vm4459_vm4, %v5444_v15  ;;  %v4628_v21 = vpop.f32.mrf.mxu3  ;;  %v5035_v15 = vld [vmem:[#allocation3 + $0xb] sm:$0xff] }
 0x547   :  { %v4430_v36 = vadd.f32 %v12530_v63, %v4401_v39  ;;  %v12836_v17 = vadd.f32 %v4777_v42, %v4628_v21  ;;  %v5445_v42 = vld [vmem:[#allocation3 + $0x7d] sm:$0xff]  ;;  %v5447_v39 = vld [vmem:[#allocation3 + $0x8d] sm:$0xff] }
 0x549   :  { %v4371_v31 = vpop.f32.mrf.mxu2  ;;  %v4783_v9 = vpop.f32.mrf.mxu0  ;;  %v4455_v49 = vmax.f32 %v4430_v36, 0.0 }
 0x54a   :  { %v4151_v51 = vpop.f32.mrf.mxu1  ;;  %v4531_v50 = vld [vmem:[#allocation3 + $0x99] sm:$0xff] }
 0x54b   :  { %v12839_v12 = vld [vmem:[#allocation3 + $0xa0] sm:$0xff]  ;;  %4481 = vst.msk [vmem:[#allocation3 + $0xa8] sm:$0xff] %vm4459_vm4, %v4455_v49  ;;  %v4182_v33 = vadd.f32 %v4151_v51, %v3962_v3  ;;  %10000 = vmatmul.msk.f32.gmra.mxu3 %vm4459_vm4, %v4531_v50  ;;  %v5036_v51 = vld [vmem:[#allocation3 + $0x13] sm:$0xff] }
 0x54c   :  { %10023 = vmatmul.msk.f32.gmra.mxu0 %vm4459_vm4, %v12839_v12  ;;  %v4837_v3 = vld [vmem:[#allocation3 + $0x2] sm:$0xff]  ;;  %v5249_v50 = vld [vmem:[#allocation3 + $0x8c] sm:$0xff] }
 0x54d   :  { %v4402_v58 = vadd.f32 %v4371_v31, %v4182_v33  ;;  %10082 = vmatmul.msk.f32.gmra.mxu1 %vm4459_vm4, %v5246_v22  ;;  %v5448_v33 = vld [vmem:[#allocation3 + $0x95] sm:$0xff] }
 0x54e   :  { %10105 = vmatmul.msk.f32.gmra.mxu2 %vm4459_vm4, %v5445_v42  ;;  %v4631_v16 = vpop.f32.mrf.mxu3 }
 0x54f   :  { %v4431_v41 = vadd.f32 %v12530_v63, %v4402_v58  ;;  %v12850_v48 = vadd.f32 %v4780_v2, %v4631_v16  ;;  %v3744_v2 = vadd.f32 %v12793_v54, %v12524_v11  ;;  %v5037_v58 = vld [vmem:[#allocation3 + $0x1b] sm:$0xff] }
 0x550   :  { %v5250_v16 = vld [vmem:[#allocation3 + $0x94] sm:$0xff] }
 0x551   :  { %v4786_v27 = vpop.f32.mrf.mxu0  ;;  %v4456_v0 = vmax.f32 %v4431_v41, 0.0  ;;  %v4374_v43 = vpop.f32.mrf.mxu2  ;;  %v3964_v60 = vadd.f32 %v12766_v13, %v3744_v2  ;;  %v5449_v41 = vld [vmem:[#allocation3 + $0x9d] sm:$0xff] }
 0x552   :  { %v4154_v61 = vpop.f32.mrf.mxu1  ;;  %v4532_v19 = vld [vmem:[#allocation3 + $0xa1] sm:$0xff]  ;;  %v4533_v6 = vld [vmem:[#allocation3 + $0xa9] sm:$0x3] }
 0x553   :  { %v4507_v14 = vld [vmem:[#allocation3 + $0xa8] sm:$0x3]  ;;  %4482 = vst.msk [vmem:[#allocation3 + $0xb0] sm:$0xff] %vm4459_vm4, %v4456_v0  ;;  %v4183_v47 = vadd.f32 %v4154_v61, %v3963_v28  ;;  %10001 = vmatmul.msk.f32.gmra.mxu3 %vm4459_vm4, %v4532_v19  ;;  %v6051_v28 = vld [vmem:[#allocation15 + $0x118] sm:$0xff]  ;;  %v6050_v61 = vld [vmem:[#allocation15 + $0x110] sm:$0xff] }
 0x554   :  { %10024 = vmatmul.msk.f32.gmra.mxu0 %vm4459_vm4, %v4507_v14  ;;  %6130 = vmatpush.msra.mxu1 %v6051_v28  ;;  %v4839_v19 = vld [vmem:[#allocation3 + $0x12] sm:$0xff]  ;;  %v5038_v14 = vld [vmem:[#allocation3 + $0x23] sm:$0xff] }
 0x555   :  { %v4403_v59 = vadd.f32 %v4374_v43, %v4183_v47  ;;  %10083 = vmatmul.msk.f32.gmra.mxu1 %vm4459_vm4, %v5247_v40  ;;  %v6049_v47 = vld [vmem:[#allocation15 + $0x108] sm:$0xff]  ;;  %v6048_v40 = vld [vmem:[#allocation15 + $0x100] sm:$0xff] }
 0x556   :  { %10106 = vmatmul.msk.f32.gmra.mxu2 %vm4459_vm4, %v5446_v25  ;;  %v4634_v23 = vpop.f32.mrf.mxu3  ;;  %6131 = vmatpush.msra.mxu1 %v6050_v61  ;;  %v5251_v25 = vld [vmem:[#allocation3 + $0x9c] sm:$0xff]  ;;  %v5450_v2 = vld [vmem:[#allocation3 + $0xa5] sm:$0xff] }
 0x557   :  { %v4432_v32 = vadd.f32 %v12530_v63, %v4403_v59  ;;  %v12861_v29 = vadd.f32 %v4783_v9, %v4634_v23  ;;  %v4844_v61 = vld [vmem:[#allocation3 + $0x3a] sm:$0xff] }
 0x558   :  { %6132 = vmatpush.msra.mxu1 %v6049_v47 }
 0x559   :  { %v4789_v26 = vpop.f32.mrf.mxu0  ;;  %v4457_v37 = vmax.f32 %v4432_v32, 0.0  ;;  %v4377_v54 = vpop.f32.mrf.mxu2 }
 0x55a   :  { %v4157_v4 = vpop.f32.mrf.mxu1  ;;  %6133 = vmatpush.msra.mxu1 %v6048_v40 }
 0x55b   :  { %4483 = vst.msk [vmem:[#allocation3 + $0xb8] sm:$0xff] %vm4459_vm4, %v4457_v37  ;;  %v4184_v11 = vadd.f32 %v4157_v4, %v3964_v60  ;;  %10002 = vmatmul.msk.f32.gmra.mxu3 %vm4459_vm4, %v4533_v6  ;;  %v5039_v37 = vld [vmem:[#allocation3 + $0x2b] sm:$0xff] }
 0x55c   :  { %10047 = vmatmul.msk.f32.vlgmr.msrb.gmra.mxu0 %vm4459_vm4, %v5035_v15  ;;  %v5252_v60 = vld [vmem:[#allocation3 + $0xa4] sm:$0xff]  ;;  %v5451_v4 = vld [vmem:[#allocation3 + $0xad] sm:$0xff] }
 0x55d   :  { %v4404_v21 = vadd.f32 %v4377_v54, %v4184_v11  ;;  %10084 = vmatmul.msk.f32.gmra.mxu1 %vm4459_vm4, %v5248_v44  ;;  %v4841_v44 = vld [vmem:[#allocation3 + $0x22] sm:$0xff] }
 0x55e   :  { %10107 = vmatmul.msk.f32.gmra.mxu2 %vm4459_vm4, %v5447_v39  ;;  %v4637_v36 = vpop.f32.mrf.mxu3  ;;  %v5040_v39 = vld [vmem:[#allocation3 + $0x33] sm:$0xff] }
 0x55f   :  { %v4433_v13 = vadd.f32 %v12530_v63, %v4404_v21  ;;  %v12870_v31 = vadd.f32 %v4786_v27, %v4637_v36  ;;  %v5253_v21 = vld [vmem:[#allocation3 + $0xac] sm:$0xff]  ;;  %v5452_v36 = vld [vmem:[#allocation3 + $0xb5] sm:$0x3] }
 0x561   :  { %v4792_v9 = vpop.f32.mrf.mxu0  ;;  %v4458_v49 = vmax.f32 %v4433_v13, 0.0 }
 0x562   :  { %v12894_v15 = vpop.f32.mrf.mxu1 }
 0x563   :  { %4485 = vst.msk [vmem:[#allocation3 + $0xc0] sm:$0x3] %vm4484_vm5, %v4458_v49  ;;  %10025 = vmatmul.msk.f32.vlgmr.msra.gmra.mxu3 %vm4459_vm4, %v4837_v3 }
 0x564   :  { %10048 = vmatmul.msk.f32.gmra.mxu0 %vm4459_vm4, %v5036_v51  ;;  %v4842_v51 = vld [vmem:[#allocation3 + $0x2a] sm:$0xff] }
 0x565   :  { %10085 = vmatmul.msk.f32.gmra.mxu1 %vm4459_vm4, %v5249_v50  ;;  %v5041_v50 = vld [vmem:[#allocation3 + $0x3b] sm:$0xff] }
 0x566   :  { %10108 = vmatmul.msk.f32.gmra.mxu2 %vm4459_vm4, %v5448_v33  ;;  %v4640_v22 = vpop.f32.mrf.mxu3  ;;  %v5254_v33 = vld [vmem:[#allocation3 + $0xb4] sm:$0x3] }
 0x567   :  { %v12876_v63 = vadd.f32 %v4789_v26, %v4640_v22  ;;  %v4840_v26 = vld [vmem:[#allocation3 + $0x1a] sm:$0xff] }
 0x569   :  { %v4795_v42 = vpop.f32.mrf.mxu0 }
 0x56a   :  { %v12904_v3 = vpop.f32.mrf.mxu1 }
 0x56b   :  { %10026 = vmatmul.msk.f32.gmra.mxu3 %vm4459_vm4, %v4838_v18 }
 0x56c   :  { %10049 = vmatmul.msk.f32.gmra.mxu0 %vm4459_vm4, %v5037_v58  ;;  %v4843_v58 = vld [vmem:[#allocation3 + $0x32] sm:$0xff] }
 0x56d   :  { %10086 = vmatmul.msk.f32.gmra.mxu1 %vm4459_vm4, %v5250_v16  ;;  %v5042_v16 = vld [vmem:[#allocation3 + $0x43] sm:$0xff] }
 0x56e   :  { %10109 = vmatmul.msk.f32.gmra.mxu2 %vm4459_vm4, %v5449_v41  ;;  %v4643_v27 = vpop.f32.mrf.mxu3 }
 0x56f   :  { %v12882_v0 = vadd.f32 %v4792_v9, %v4643_v27 }
 0x571   :  { %v4798_v43 = vpop.f32.mrf.mxu0 }
 0x572   :  { %v12911_v41 = vpop.f32.mrf.mxu1 }
 0x573   :  { %10027 = vmatmul.msk.f32.gmra.mxu3 %vm4459_vm4, %v4839_v19  ;;  %v5043_v19 = vld [vmem:[#allocation3 + $0x4b] sm:$0xff] }
 0x574   :  { %10050 = vmatmul.msk.f32.gmra.mxu0 %vm4459_vm4, %v5038_v14  ;;  %v5655_v14 = vld [vmem:[#allocation15 + $0xd8] sm:$0xff] }
 0x575   :  { %10087 = vmatmul.msk.f32.gmra.mxu1 %vm4459_vm4, %v5251_v25  ;;  %5734 = vmatpush.msrb.mxu3 %v5655_v14  ;;  %v4850_v14 = vld [vmem:[#allocation3 + $0x6a] sm:$0xff] }
 0x576   :  { %10110 = vmatmul.msk.f32.gmra.mxu2 %vm4459_vm4, %v5450_v2  ;;  %v4646_v59 = vpop.f32.mrf.mxu3  ;;  %v4845_v2 = vld [vmem:[#allocation3 + $0x42] sm:$0xff] }
 0x577   :  { %v12888_v23 = vadd.f32 %v4795_v42, %v4646_v59  ;;  %v5044_v59 = vld [vmem:[#allocation3 + $0x53] sm:$0xff] }
 0x579   :  { %v4801_v32 = vpop.f32.mrf.mxu0 }
 0x57a   :  { %v12921_v47 = vpop.f32.mrf.mxu1 }
 0x57b   :  { %10028 = vmatmul.msk.f32.gmra.mxu3 %vm4459_vm4, %v4840_v26 }
 0x57c   :  { %10051 = vmatmul.msk.f32.gmra.mxu0 %vm4459_vm4, %v5039_v37 }
 0x57d   :  { %10088 = vmatmul.msk.f32.gmra.mxu1 %vm4459_vm4, %v5252_v60 }
 0x57e   :  { %10111 = vmatmul.msk.f32.gmra.mxu2 %vm4459_vm4, %v5451_v4  ;;  %v4649_v6 = vpop.f32.mrf.mxu3  ;;  %v4846_v4 = vld [vmem:[#allocation3 + $0x4a] sm:$0xff] }
 0x57f   :  { %v12896_v11 = vadd.f32 %v4798_v43, %v4649_v6  ;;  %v5045_v6 = vld [vmem:[#allocation3 + $0x5b] sm:$0xff] }
 0x581   :  { %v4804_v54 = vpop.f32.mrf.mxu0 }
 0x582   :  { %v12931_v37 = vpop.f32.mrf.mxu1 }
 0x583   :  { %10029 = vmatmul.msk.f32.gmra.mxu3 %vm4459_vm4, %v4841_v44 }
 0x584   :  { %10052 = vmatmul.msk.f32.gmra.mxu0 %vm4459_vm4, %v5040_v39 }
 0x585   :  { %10089 = vmatmul.msk.f32.gmra.mxu1 %vm4459_vm4, %v5253_v21  ;;  %v4847_v21 = vld [vmem:[#allocation3 + $0x52] sm:$0xff] }
 0x586   :  { %10112 = vmatmul.msk.f32.gmra.mxu2 %vm4459_vm4, %v5452_v36  ;;  %v4652_v13 = vpop.f32.mrf.mxu3  ;;  %v5046_v36 = vld [vmem:[#allocation3 + $0x63] sm:$0xff] }
 0x587   :  { %v12902_v9 = vadd.f32 %v4801_v32, %v4652_v13  ;;  %v5853_v32 = vld [vmem:[#allocation15 + $0xf8] sm:$0xff] }
 0x588   :  { %5932 = vmatpush.msra.mxu0 %v5853_v32  ;;  %v5852_v32 = vld [vmem:[#allocation15 + $0xf0] sm:$0xff] }
 0x589   :  { %v4807_v49 = vpop.f32.mrf.mxu0 }
 0x58a   :  { %5933 = vmatpush.msra.mxu0 %v5852_v32  ;;  %v5652_v32 = vld [vmem:[#allocation15 + $0xc0] sm:$0xff] }
 0x58b   :  { %10030 = vmatmul.msk.f32.gmra.mxu3 %vm4459_vm4, %v4842_v51 }
 0x58c   :  { %10053 = vmatmul.msk.f32.gmra.mxu0 %vm4459_vm4, %v5041_v50  ;;  %v5047_v50 = vld [vmem:[#allocation3 + $0x6b] sm:$0xff] }
 0x58d   :  { %10090 = vmatmul.msk.f32.gmra.mxu1 %vm4459_vm4, %v5254_v33 }
 0x58e   :  { %v4655_v22 = vpop.f32.mrf.mxu3 }
 0x58f   :  { %v12909_v42 = vadd.f32 %v4804_v54, %v4655_v22 }
 0x591   :  { %v4810_v18 = vpop.f32.mrf.mxu0 }
 0x593   :  { %10031 = vmatmul.msk.f32.gmra.mxu3 %vm4459_vm4, %v4843_v58 }
 0x594   :  { %10054 = vmatmul.msk.f32.gmra.mxu0 %vm4459_vm4, %v5042_v16  ;;  %v5048_v16 = vld [vmem:[#allocation3 + $0x73] sm:$0xff] }
 0x595   :  { %10157 = vmatmul.msk.f32.vlgmr.msra.gmra.mxu1 %vm4459_vm4, %v12587_v55 }
 0x596   :  { %v4658_v27 = vpop.f32.mrf.mxu3 }
 0x597   :  { %v12917_v28 = vadd.f32 %v4807_v49, %v4658_v27 }
 0x599   :  { %v4813_v43 = vpop.f32.mrf.mxu0 }
 0x59b   :  { %10032 = vmatmul.msk.f32.gmra.mxu3 %vm4459_vm4, %v4844_v61 }
 0x59c   :  { %10055 = vmatmul.msk.f32.gmra.mxu0 %vm4459_vm4, %v5043_v19 }
 0x59d   :  { %10158 = vmatmul.msk.f32.gmra.mxu1 %vm4459_vm4, %v12603_v62 }
 0x59e   :  { %v4661_v40 = vpop.f32.mrf.mxu3 }
 0x59f   :  { %v12925_v25 = vadd.f32 %v4810_v18, %v4661_v40  ;;  %v5049_v40 = vld [vmem:[#allocation3 + $0x7b] sm:$0xff] }
 0x5a1   :  { %v4816_v55 = vpop.f32.mrf.mxu0 }
 0x5a3   :  { %10033 = vmatmul.msk.f32.gmra.mxu3 %vm4459_vm4, %v4845_v2 }
 0x5a4   :  { %10056 = vmatmul.msk.f32.gmra.mxu0 %vm4459_vm4, %v5044_v59 }
 0x5a5   :  { %10159 = vmatmul.msk.f32.gmra.mxu1 %vm4459_vm4, %v12617_v46  ;;  %v12941_v46 = vpop.f32.mrf.mxu1 }
 0x5a6   :  { %v4664_v26 = vpop.f32.mrf.mxu3 }
 0x5a7   :  { %v12933_v60 = vadd.f32 %v4813_v43, %v4664_v26  ;;  %v4851_v26 = vld [vmem:[#allocation3 + $0x72] sm:$0xff] }
 0x5a9   :  { %v4819_v62 = vpop.f32.mrf.mxu0 }
 0x5ab   :  { %10034 = vmatmul.msk.f32.gmra.mxu3 %vm4459_vm4, %v4846_v4 }
 0x5ac   :  { %10057 = vmatmul.msk.f32.gmra.mxu0 %vm4459_vm4, %v5045_v6 }
 0x5ad   :  { %10160 = vmatmul.msk.f32.gmra.mxu1 %vm4459_vm4, %v12633_v35  ;;  %v4848_v35 = vld [vmem:[#allocation3 + $0x5a] sm:$0xff]  ;;  %v12949_v33 = vpop.f32.mrf.mxu1 }
 0x5ae   :  { %v4667_v54 = vpop.f32.mrf.mxu3 }
 0x5af   :  { %v12939_v44 = vadd.f32 %v4816_v55, %v4667_v54 }
 0x5b1   :  { %v4822_v39 = vpop.f32.mrf.mxu0 }
 0x5b3   :  { %10035 = vmatmul.msk.f32.gmra.mxu3 %vm4459_vm4, %v4847_v21  ;;  %v5051_v21 = vld [vmem:[#allocation3 + $0x8b] sm:$0xff] }
 0x5b4   :  { %10058 = vmatmul.msk.f32.gmra.mxu0 %vm4459_vm4, %v5046_v36 }
 0x5b5   :  { %10161 = vmatmul.msk.f32.gmra.mxu1 %vm4459_vm4, %v12647_v34  ;;  %v4849_v34 = vld [vmem:[#allocation3 + $0x62] sm:$0xff]  ;;  %v12959_v27 = vpop.f32.mrf.mxu1 }
 0x5b6   :  { %v4670_v13 = vpop.f32.mrf.mxu3 }
 0x5b7   :  { %v12947_v49 = vadd.f32 %v4819_v62, %v4670_v13  ;;  %v5050_v62 = vld [vmem:[#allocation3 + $0x83] sm:$0xff] }
 0x5b9   :  { %v4825_v51 = vpop.f32.mrf.mxu0 }
 0x5bb   :  { %10036 = vmatmul.msk.f32.gmra.mxu3 %vm4459_vm4, %v4848_v35  ;;  %v5052_v35 = vld [vmem:[#allocation3 + $0x93] sm:$0xff] }
 0x5bc   :  { %10059 = vmatmul.msk.f32.gmra.mxu0 %vm4459_vm4, %v5047_v50 }
 0x5bd   :  { %10162 = vmatmul.msk.f32.gmra.mxu1 %vm4459_vm4, %v12663_v52  ;;  %v5654_v52 = vld [vmem:[#allocation15 + $0xd0] sm:$0xff]  ;;  %v12969_v2 = vpop.f32.mrf.mxu1 }
 0x5be   :  { %v4673_v22 = vpop.f32.mrf.mxu3  ;;  %5735 = vmatpush.msrb.mxu3 %v5654_v52  ;;  %v5850_v52 = vld [vmem:[#allocation15 + $0xe0] sm:$0xff] }
 0x5bf   :  { %v12955_v18 = vadd.f32 %v4822_v39, %v4673_v22  ;;  %v4852_v39 = vld [vmem:[#allocation3 + $0x7a] sm:$0xff] }
 0x5c1   :  { %v4828_v58 = vpop.f32.mrf.mxu0 }
 0x5c3   :  { %10037 = vmatmul.msk.f32.gmra.mxu3 %vm4459_vm4, %v4849_v34 }
 0x5c4   :  { %10060 = vmatmul.msk.f32.gmra.mxu0 %vm4459_vm4, %v5048_v16  ;;  %v5851_v16 = vld [vmem:[#allocation15 + $0xe8] sm:$0xff] }
 0x5c5   :  { %10163 = vmatmul.msk.f32.gmra.mxu1 %vm4459_vm4, %v12679_v56  ;;  %v12979_v54 = vpop.f32.mrf.mxu1  ;;  %5934 = vmatpush.msra.mxu0 %v5851_v16 }
 0x5c6   :  { %v4676_v43 = vpop.f32.mrf.mxu3 }
 0x5c7   :  { %v12963_v61 = vadd.f32 %v4825_v51, %v4676_v43  ;;  %v4854_v43 = vld [vmem:[#allocation3 + $0x8a] sm:$0xff]  ;;  %5935 = vmatpush.msra.mxu0 %v5850_v52 }
 0x5c9   :  { %v4831_v19 = vpop.f32.mrf.mxu0 }
 0x5cb   :  { %10038 = vmatmul.msk.f32.gmra.mxu3 %vm4459_vm4, %v4850_v14 }
 0x5cc   :  { %10061 = vmatmul.msk.f32.gmra.mxu0 %vm4459_vm4, %v5049_v40 }
 0x5cd   :  { %10164 = vmatmul.msk.f32.gmra.mxu1 %vm4459_vm4, %v12693_v5  ;;  %v12987_v50 = vpop.f32.mrf.mxu1 }
 0x5ce   :  { %v4679_v55 = vpop.f32.mrf.mxu3 }
 0x5cf   :  { %v12971_v59 = vadd.f32 %v4828_v58, %v4679_v55 }
 0x5d1   :  { %v4834_v56 = vpop.f32.mrf.mxu0 }
 0x5d3   :  { %10039 = vmatmul.msk.f32.gmra.mxu3 %vm4459_vm4, %v4851_v26  ;;  %v4855_v26 = vld [vmem:[#allocation3 + $0x92] sm:$0xff] }
 0x5d4   :  { %10062 = vmatmul.msk.f32.gmra.mxu0 %vm4459_vm4, %v5050_v62  ;;  %v5054_v62 = vld [vmem:[#allocation3 + $0xa3] sm:$0xff] }
 0x5d5   :  { %10165 = vmatmul.msk.f32.gmra.mxu1 %vm4459_vm4, %v12709_v20  ;;  %v4853_v20 = vld [vmem:[#allocation3 + $0x82] sm:$0xff]  ;;  %v12998_v14 = vpop.f32.mrf.mxu1 }
 0x5d6   :  { %v4682_v4 = vpop.f32.mrf.mxu3 }
 0x5d7   :  { %v12977_v6 = vadd.f32 %v4831_v19, %v4682_v4  ;;  %v5053_v19 = vld [vmem:[#allocation3 + $0x9b] sm:$0xff] }
 0x5d9   :  { %v5145_v5 = vpop.f32.mrf.mxu0 }
 0x5db   :  { %10040 = vmatmul.msk.f32.gmra.mxu3 %vm4459_vm4, %v4852_v39 }
 0x5dc   :  { %10063 = vmatmul.msk.f32.gmra.mxu0 %vm4459_vm4, %v5051_v21  ;;  %v4856_v21 = vld [vmem:[#allocation3 + $0x9a] sm:$0xff] }
 0x5dd   :  { %10166 = vmatmul.msk.f32.gmra.mxu1 %vm4459_vm4, %v12723_v30  ;;  %v13009_v4 = vpop.f32.mrf.mxu1 }
 0x5de   :  { %v4685_v36 = vpop.f32.mrf.mxu3 }
 0x5df   :  { %v12985_v13 = vadd.f32 %v4834_v56, %v4685_v36  ;;  %v5653_v56 = vld [vmem:[#allocation15 + $0xc8] sm:$0xff] }
 0x5e0   :  { %5736 = vmatpush.msrb.mxu3 %v5653_v56  ;;  %v5055_v36 = vld [vmem:[#allocation3 + $0xab] sm:$0xff]  ;;  %v5828_v56 = vld [vmem:[#allocation3 + $0x1f] sm:$0xff] }
 0x5e1   :  { %v5148_v51 = vpop.f32.mrf.mxu0 }
 0x5e2   :  { %5737 = vmatpush.msrb.mxu3 %v5652_v32 }
 0x5e3   :  { %10041 = vmatmul.msk.f32.gmra.mxu3 %vm4459_vm4, %v4853_v20 }
 0x5e4   :  { %10064 = vmatmul.msk.f32.gmra.mxu0 %vm4459_vm4, %v5052_v35 }
 0x5e5   :  { %10167 = vmatmul.msk.f32.gmra.mxu1 %vm4459_vm4, %v12739_v10  ;;  %v13019_v35 = vpop.f32.mrf.mxu1 }
 0x5e6   :  { %v4947_v22 = vpop.f32.mrf.mxu3 }
 0x5e7   :  { %v5013_v58 = vadd.f32 %v4947_v22, %v12808_v24 }
 0x5e9   :  { %v5151_v34 = vpop.f32.mrf.mxu0  ;;  %v12994_v30 = vadd.f32 %v5145_v5, %v5013_v58  ;;  %v5056_v58 = vld [vmem:[#allocation3 + $0xb3] sm:$0x3] }
 0x5eb   :  { %10042 = vmatmul.msk.f32.gmra.mxu3 %vm4459_vm4, %v4854_v43 }
 0x5ec   :  { %10065 = vmatmul.msk.f32.gmra.mxu0 %vm4459_vm4, %v5053_v19  ;;  %v5827_v19 = vld [vmem:[#allocation3 + $0x17] sm:$0xff] }
 0x5ed   :  { %10168 = vmatmul.msk.f32.gmra.mxu1 %vm4459_vm4, %v12755_v45  ;;  %v13030_v52 = vpop.f32.mrf.mxu1 }
 0x5ee   :  { %v4950_v10 = vpop.f32.mrf.mxu3 }
 0x5ef   :  { %v5014_v24 = vadd.f32 %v4950_v10, %v12822_v57 }
 0x5f1   :  { %v5154_v40 = vpop.f32.mrf.mxu0  ;;  %v13003_v55 = vadd.f32 %v5148_v51, %v5014_v24 }
 0x5f3   :  { %10043 = vmatmul.msk.f32.gmra.mxu3 %vm4459_vm4, %v4855_v26 }
 0x5f4   :  { %10066 = vmatmul.msk.f32.gmra.mxu0 %vm4459_vm4, %v5054_v62 }
 0x5f5   :  { %10169 = vmatmul.msk.f32.gmra.mxu1 %vm4459_vm4, %v12769_v38  ;;  %v13041_v32 = vpop.f32.mrf.mxu1 }
 0x5f6   :  { %v4953_v45 = vpop.f32.mrf.mxu3 }
 0x5f7   :  { %v5015_v57 = vadd.f32 %v4953_v45, %v12836_v17  ;;  %v4857_v17 = vld [vmem:[#allocation3 + $0xa2] sm:$0xff] }
 0x5f9   :  { %v5157_v5 = vpop.f32.mrf.mxu0  ;;  %v13012_v39 = vadd.f32 %v5151_v34, %v5015_v57  ;;  %v5829_v57 = vld [vmem:[#allocation3 + $0x27] sm:$0xff] }
 0x5fb   :  { %10044 = vmatmul.msk.f32.gmra.mxu3 %vm4459_vm4, %v4856_v21 }
 0x5fc   :  { %10067 = vmatmul.msk.f32.gmra.mxu0 %vm4459_vm4, %v5055_v36 }
 0x5fd   :  { %10170 = vmatmul.msk.f32.gmra.mxu1 %vm4459_vm4, %v12783_v7  ;;  %v13052_v21 = vpop.f32.mrf.mxu1 }
 0x5fe   :  { %v4956_v51 = vpop.f32.mrf.mxu3 }
 0x5ff   :  { %v5016_v38 = vadd.f32 %v4956_v51, %v12850_v48  ;;  %v4858_v48 = vld [vmem:[#allocation3 + $0xaa] sm:$0x3] }
 0x601   :  { %v5160_v20 = vpop.f32.mrf.mxu0  ;;  %v13021_v22 = vadd.f32 %v5154_v40, %v5016_v38  ;;  %v5830_v38 = vld [vmem:[#allocation3 + $0x2f] sm:$0xff] }
 0x603   :  { %10045 = vmatmul.msk.f32.gmra.mxu3 %vm4459_vm4, %v4857_v17 }
 0x604   :  { %10068 = vmatmul.msk.f32.gmra.mxu0 %vm4459_vm4, %v5056_v58 }
 0x605   :  { %10171 = vmatmul.msk.f32.gmra.mxu1 %vm4459_vm4, %v12797_v53 }
 0x606   :  { %v4959_v34 = vpop.f32.mrf.mxu3 }
 0x607   :  { %v5017_v7 = vadd.f32 %v4959_v34, %v12861_v29  ;;  %v5629_v29 = vld [vmem:[#allocation3 + $0x16] sm:$0xff]  ;;  %v13061_v34 = vpop.f32.mrf.mxu1 }
 0x609   :  { %v5163_v16 = vpop.f32.mrf.mxu0  ;;  %v13028_v43 = vadd.f32 %v5157_v5, %v5017_v7 }
 0x60b   :  { %10046 = vmatmul.msk.f32.gmra.mxu3 %vm4459_vm4, %v4858_v48  ;;  %v6044_v48 = vld [vmem:[#allocation3 + $0xb0] sm:$0xff] }
 0x60c   :  { %10135 = vmatmul.msk.f32.vlgmr.msra.gmra.mxu0 %vm4459_vm4, %v5827_v19 }
 0x60d   :  { %10172 = vmatmul.msk.f32.gmra.mxu1 %vm4459_vm4, %v12811_v8 }
 0x60e   :  { %v4962_v10 = vpop.f32.mrf.mxu3 }
 0x60f   :  { %v5018_v53 = vadd.f32 %v4962_v10, %v12870_v31  ;;  %v5630_v31 = vld [vmem:[#allocation3 + $0x1e] sm:$0xff] }
 0x611   :  { %v5166_v24 = vpop.f32.mrf.mxu0  ;;  %v13037_v40 = vadd.f32 %v5160_v20, %v5018_v53  ;;  %v6043_v20 = vld [vmem:[#allocation3 + $0xa8] sm:$0xff] }
 0x613   :  { %10113 = vmatmul.msk.f32.vlgmr.msrb.gmra.mxu3 %vm4459_vm4, %v5629_v29  ;;  %v5832_v29 = vld [vmem:[#allocation3 + $0x3f] sm:$0xff] }
 0x614   :  { %10136 = vmatmul.msk.f32.gmra.mxu0 %vm4459_vm4, %v5828_v56  ;;  %v13071_v56 = vpop.f32.mrf.mxu1 }
 0x615   :  { %10173 = vmatmul.msk.f32.gmra.mxu1 %vm4459_vm4, %v12825_v1  ;;  %13794 = vst [vmem:[#allocation34_spill] sm:$0xff] %v13071_v56  ;;  %v6342_v56 = vld [vmem:[#allocation18 + $0x40] sm:$0xff] }
 0x616   :  { %v4965_v26 = vpop.f32.mrf.mxu3 }
 0x617   :  { %v5019_v8 = vadd.f32 %v4965_v26, %v12876_v63  ;;  %v5631_v63 = vld [vmem:[#allocation3 + $0x26] sm:$0xff]  ;;  %v6045_v26 = vld [vmem:[#allocation3 + $0xb8] sm:$0xff] }
 0x619   :  { %v5169_v62 = vpop.f32.mrf.mxu0  ;;  %v13046_v45 = vadd.f32 %v5163_v16, %v5019_v8  ;;  %v5831_v16 = vld [vmem:[#allocation3 + $0x37] sm:$0xff] }
 0x61b   :  { %10114 = vmatmul.msk.f32.gmra.mxu3 %vm4459_vm4, %v5630_v31 }
 0x61c   :  { %10137 = vmatmul.msk.f32.gmra.mxu0 %vm4459_vm4, %v5829_v57 }
 0x61d   :  { %10174 = vmatmul.msk.f32.gmra.mxu1 %vm4459_vm4, %v12839_v12 }
 0x61e   :  { %v4968_v5 = vpop.f32.mrf.mxu3 }
 0x61f   :  { %v5020_v1 = vadd.f32 %v4968_v5, %v12882_v0  ;;  %v5632_v0 = vld [vmem:[#allocation3 + $0x2e] sm:$0xff] }
 0x620   :  { %v5833_v5 = vld [vmem:[#allocation3 + $0x47] sm:$0xff] }
 0x621   :  { %v5172_v36 = vpop.f32.mrf.mxu0  ;;  %v13055_v51 = vadd.f32 %v5166_v24, %v5020_v1  ;;  %v6349_v1 = vld [vmem:[#allocation18 + $0x78] sm:$0xff] }
 0x622   :  { %6415 = vmatpush.msra.mxu2 %v6349_v1  ;;  %v13100_v1 = vpop.f32.mrf.mxu2 }
 0x623   :  { %10115 = vmatmul.msk.f32.gmra.mxu3 %vm4459_vm4, %v5631_v63  ;;  %v13081_v63 = vpop.f32.mrf.mxu1 }
 0x624   :  { %10138 = vmatmul.msk.f32.gmra.mxu0 %vm4459_vm4, %v5830_v38  ;;  %13795 = vst [vmem:[#allocation35_spill] sm:$0xff] %v13081_v63 }
 0x625   :  { %10175 = vmatmul.msk.f32.gmra.mxu1 %vm4459_vm4, %v6043_v20 }
 0x626   :  { %v4971_v17 = vpop.f32.mrf.mxu3 }
 0x627   :  { %v5021_v12 = vadd.f32 %v4971_v17, %v12888_v23  ;;  %v5633_v23 = vld [vmem:[#allocation3 + $0x36] sm:$0xff] }
 0x629   :  { %v5175_v58 = vpop.f32.mrf.mxu0  ;;  %v13063_v7 = vadd.f32 %v5169_v62, %v5021_v12  ;;  %v5635_v12 = vld [vmem:[#allocation3 + $0x46] sm:$0xff] }
 0x62b   :  { %10116 = vmatmul.msk.f32.gmra.mxu3 %vm4459_vm4, %v5632_v0 }
 0x62c   :  { %10139 = vmatmul.msk.f32.gmra.mxu0 %vm4459_vm4, %v5831_v16 }
 0x62d   :  { %10176 = vmatmul.msk.f32.gmra.mxu1 %vm4459_vm4, %v6044_v48 }
 0x62e   :  { %v4974_v19 = vpop.f32.mrf.mxu3 }
 0x62f   :  { %v5022_v10 = vadd.f32 %v4974_v19, %v12896_v11  ;;  %v5634_v11 = vld [vmem:[#allocation3 + $0x3e] sm:$0xff] }
 0x631   :  { %v5178_v53 = vpop.f32.mrf.mxu0  ;;  %v13069_v24 = vadd.f32 %v5172_v36, %v5022_v10  ;;  %v6046_v36 = vld [vmem:[#allocation3 + $0xc0] sm:$0x3]  ;;  %v5636_v10 = vld [vmem:[#allocation3 + $0x4e] sm:$0xff] }
 0x633   :  { %10117 = vmatmul.msk.f32.gmra.mxu3 %vm4459_vm4, %v5633_v23  ;;  %v5835_v23 = vld [vmem:[#allocation3 + $0x57] sm:$0xff] }
 0x634   :  { %10140 = vmatmul.msk.f32.gmra.mxu0 %vm4459_vm4, %v5832_v29 }
 0x635   :  { %10177 = vmatmul.msk.f32.gmra.mxu1 %vm4459_vm4, %v6045_v26 }
 0x636   :  { %v4977_v8 = vpop.f32.mrf.mxu3 }
 0x637   :  { %v5023_v62 = vadd.f32 %v4977_v8, %v12902_v9  ;;  %v6348_v8 = vld [vmem:[#allocation18 + $0x70] sm:$0xff] }
 0x638   :  { %6416 = vmatpush.msra.mxu2 %v6348_v8 }
 0x639   :  { %v5181_v31 = vpop.f32.mrf.mxu0  ;;  %v13077_v57 = vadd.f32 %v5175_v58, %v5023_v62  ;;  %v5834_v58 = vld [vmem:[#allocation3 + $0x4f] sm:$0xff] }
 0x63a   :  { %v5637_v62 = vld [vmem:[#allocation3 + $0x56] sm:$0xff] }
 0x63b   :  { %10118 = vmatmul.msk.f32.gmra.mxu3 %vm4459_vm4, %v5634_v11  ;;  %v5836_v11 = vld [vmem:[#allocation3 + $0x5f] sm:$0xff] }
 0x63c   :  { %10141 = vmatmul.msk.f32.gmra.mxu0 %vm4459_vm4, %v5833_v5 }
 0x63d   :  { %10178 = vmatmul.msk.f32.gmra.mxu1 %vm4459_vm4, %v6046_v36 }
 0x63e   :  { %v4980_v38 = vpop.f32.mrf.mxu3 }
 0x63f   :  { %v5024_v20 = vadd.f32 %v4980_v38, %v12909_v42  ;;  %v5837_v38 = vld [vmem:[#allocation3 + $0x67] sm:$0xff] }
 0x641   :  { %v5184_v9 = vpop.f32.mrf.mxu0  ;;  %v13085_v17 = vadd.f32 %v5178_v53, %v5024_v20  ;;  %v13106_v20 = vpop.f32.mrf.mxu1 }
 0x642   :  { %13796 = vst [vmem:[#allocation36_spill] sm:$0xff] %v13106_v20  ;;  %v6344_v20 = vld [vmem:[#allocation18 + $0x50] sm:$0xff] }
 0x643   :  { %10119 = vmatmul.msk.f32.gmra.mxu3 %vm4459_vm4, %v5635_v12 }
 0x644   :  { %10142 = vmatmul.msk.f32.gmra.mxu0 %vm4459_vm4, %v5834_v58 }
 0x646   :  { %v4983_v0 = vpop.f32.mrf.mxu3 }
 0x647   :  { %v5025_v16 = vadd.f32 %v4983_v0, %v12917_v28 }
 0x649   :  { %v5187_v48 = vpop.f32.mrf.mxu0  ;;  %v13090_v19 = vadd.f32 %v5181_v31, %v5025_v16  ;;  %v5838_v16 = vld [vmem:[#allocation3 + $0x6f] sm:$0xff] }
 0x64b   :  { %10120 = vmatmul.msk.f32.gmra.mxu3 %vm4459_vm4, %v5636_v10  ;;  %v13111_v10 = vpop.f32.mrf.mxu2 }
 0x64c   :  { %10143 = vmatmul.msk.f32.gmra.mxu0 %vm4459_vm4, %v5835_v23 }
 0x64e   :  { %v4986_v42 = vpop.f32.mrf.mxu3 }
 0x64f   :  { %v5026_v53 = vadd.f32 %v4986_v42, %v12925_v25  ;;  %v5638_v25 = vld [vmem:[#allocation3 + $0x5e] sm:$0xff] }
 0x651   :  { %v5190_v29 = vpop.f32.mrf.mxu0  ;;  %v13095_v26 = vadd.f32 %v5184_v9, %v5026_v53 }
 0x653   :  { %10121 = vmatmul.msk.f32.gmra.mxu3 %vm4459_vm4, %v5637_v62  ;;  %v5640_v62 = vld [vmem:[#allocation3 + $0x6e] sm:$0xff] }
 0x654   :  { %10144 = vmatmul.msk.f32.gmra.mxu0 %vm4459_vm4, %v5836_v11  ;;  %v13122_v11 = vpop.f32.mrf.mxu2 }
 0x656   :  { %v4989_v28 = vpop.f32.mrf.mxu3 }
 0x657   :  { %v5027_v31 = vadd.f32 %v4989_v28, %v12933_v60  ;;  %v5639_v60 = vld [vmem:[#allocation3 + $0x66] sm:$0xff] }
 0x659   :  { %v5193_v5 = vpop.f32.mrf.mxu0  ;;  %v13102_v36 = vadd.f32 %v5187_v48, %v5027_v31  ;;  %v13115_v48 = vpop.f32.mrf.mxu1 }
 0x65a   :  { %13797 = vst [vmem:[#allocation37_spill] sm:$0xff] %v13115_v48  ;;  %v5843_v48 = vld [vmem:[#allocation3 + $0x97] sm:$0xff] }
 0x65b   :  { %10122 = vmatmul.msk.f32.gmra.mxu3 %vm4459_vm4, %v5638_v25 }
 0x65c   :  { %10145 = vmatmul.msk.f32.gmra.mxu0 %vm4459_vm4, %v5837_v38 }
 0x65e   :  { %v4992_v9 = vpop.f32.mrf.mxu3 }
 0x65f   :  { %v5028_v12 = vadd.f32 %v4992_v9, %v12939_v44  ;;  %v6347_v44 = vld [vmem:[#allocation18 + $0x68] sm:$0xff]  ;;  %v5840_v9 = vld [vmem:[#allocation3 + $0x7f] sm:$0xff] }
 0x660   :  { %6417 = vmatpush.msra.mxu2 %v6347_v44  ;;  %v5642_v44 = vld [vmem:[#allocation3 + $0x7e] sm:$0xff] }
 0x661   :  { %v5196_v58 = vpop.f32.mrf.mxu0  ;;  %v13109_v0 = vadd.f32 %v5190_v29, %v5028_v12  ;;  %v5839_v29 = vld [vmem:[#allocation3 + $0x77] sm:$0xff]  ;;  %v13125_v25 = vpop.f32.mrf.mxu1 }
 0x663   :  { %10123 = vmatmul.msk.f32.gmra.mxu3 %vm4459_vm4, %v5639_v60  ;;  %v13131_v60 = vpop.f32.mrf.mxu2 }
 0x664   :  { %10146 = vmatmul.msk.f32.gmra.mxu0 %vm4459_vm4, %v5838_v16 }
 0x666   :  { %v4995_v23 = vpop.f32.mrf.mxu3 }
 0x667   :  { %v5029_v42 = vadd.f32 %v4995_v23, %v12947_v49 }
 0x669   :  { %v5199_v53 = vpop.f32.mrf.mxu0  ;;  %v13118_v8 = vadd.f32 %v5193_v5, %v5029_v42  ;;  %v5641_v5 = vld [vmem:[#allocation3 + $0x76] sm:$0xff] }
 0x66b   :  { %10124 = vmatmul.msk.f32.gmra.mxu3 %vm4459_vm4, %v5640_v62  ;;  %v5841_v62 = vld [vmem:[#allocation3 + $0x87] sm:$0xff] }
 0x66c   :  { %10147 = vmatmul.msk.f32.gmra.mxu0 %vm4459_vm4, %v5839_v29 }
 0x66e   :  { %v4998_v28 = vpop.f32.mrf.mxu3 }
 0x66f   :  { %v5030_v31 = vadd.f32 %v4998_v28, %v12955_v18  ;;  %v13136_v18 = vpop.f32.mrf.mxu1 }
 0x671   :  { %v5202_v38 = vpop.f32.mrf.mxu0  ;;  %v13127_v49 = vadd.f32 %v5196_v58, %v5030_v31  ;;  %v13141_v31 = vpop.f32.mrf.mxu2 }
 0x673   :  { %10125 = vmatmul.msk.f32.gmra.mxu3 %vm4459_vm4, %v5641_v5 }
 0x674   :  { %10148 = vmatmul.msk.f32.gmra.mxu0 %vm4459_vm4, %v5840_v9  ;;  %v5643_v9 = vld [vmem:[#allocation3 + $0x86] sm:$0xff] }
 0x676   :  { %v5001_v12 = vpop.f32.mrf.mxu3 }
 0x677   :  { %v5031_v16 = vadd.f32 %v5001_v12, %v12963_v61  ;;  %v6346_v61 = vld [vmem:[#allocation18 + $0x60] sm:$0xff]  ;;  %v13147_v12 = vpop.f32.mrf.mxu1 }
 0x678   :  { %6418 = vmatpush.msra.mxu2 %v6346_v61  ;;  %v6995_v61 = vld [vmem:[#allocation18 + $0x138] sm:$0xff] }
 0x679   :  { %v5205_v23 = vpop.f32.mrf.mxu0  ;;  %v13134_v42 = vadd.f32 %v5199_v53, %v5031_v16  ;;  %v5842_v53 = vld [vmem:[#allocation3 + $0x8f] sm:$0xff]  ;;  %7061 = vmatpush.msrb.mxu1 %v6995_v61  ;;  %v5844_v61 = vld [vmem:[#allocation3 + $0x9f] sm:$0xff] }
 0x67b   :  { %13798 = vst [vmem:[#allocation38_spill] sm:$0xff] %v13134_v42  ;;  %10126 = vmatmul.msk.f32.gmra.mxu3 %vm4459_vm4, %v5642_v44  ;;  %v5646_v42 = vld [vmem:[#allocation3 + $0x9e] sm:$0xff] }
 0x67c   :  { %10149 = vmatmul.msk.f32.gmra.mxu0 %vm4459_vm4, %v5841_v62 }
 0x67e   :  { %v5004_v58 = vpop.f32.mrf.mxu3 }
 0x67f   :  { %v5032_v29 = vadd.f32 %v5004_v58, %v12971_v59  ;;  %v5644_v58 = vld [vmem:[#allocation3 + $0x8e] sm:$0xff] }
 0x681   :  { %v5208_v28 = vpop.f32.mrf.mxu0  ;;  %v13143_v5 = vadd.f32 %v5202_v38, %v5032_v29  ;;  %v13152_v38 = vpop.f32.mrf.mxu2  ;;  %v6345_v29 = vld [vmem:[#allocation18 + $0x58] sm:$0xff] }
 0x682   :  { %6419 = vmatpush.msra.mxu2 %v6345_v29  ;;  %v5645_v29 = vld [vmem:[#allocation3 + $0x96] sm:$0xff] }
 0x683   :  { %13799 = vst [vmem:[#allocation39_spill] sm:$0xff] %v13143_v5  ;;  %10127 = vmatmul.msk.f32.gmra.mxu3 %vm4459_vm4, %v5643_v9  ;;  %v13156_v9 = vpop.f32.mrf.mxu1  ;;  %v5409_v5 = vadd.f32 %v12894_v15, %v12994_v30  ;;  %v6639_v30 = vld [vmem:[#allocation18 + $0xb8] sm:$0xff] }
 0x684   :  { %10150 = vmatmul.msk.f32.gmra.mxu0 %vm4459_vm4, %v5842_v53  ;;  %6420 = vmatpush.msra.mxu2 %v6344_v20  ;;  %v6992_v20 = vld [vmem:[#allocation18 + $0x120] sm:$0xff] }
 0x685   :  { %6705 = vmatpush.msra.mxu3 %v6639_v30  ;;  %v6810_v30 = vld [vmem:[#allocation18 + $0xc0] sm:$0xff] }
 0x686   :  { %v5007_v16 = vpop.f32.mrf.mxu3 }
 0x687   :  { %v5033_v44 = vadd.f32 %v5007_v16, %v12977_v6  ;;  %v6817_v6 = vld [vmem:[#allocation18 + $0xf8] sm:$0xff]  ;;  %v6994_v16 = vld [vmem:[#allocation18 + $0x130] sm:$0xff] }
 0x688   :  { %6883 = vmatpush.msrb.mxu0 %v6817_v6  ;;  %7062 = vmatpush.msrb.mxu1 %v6994_v16  ;;  %v5607_v16 = vadd.f32 %v13100_v1, %v5409_v5  ;;  %v5410_v1 = vadd.f32 %v12904_v3, %v13003_v55  ;;  %v6989_v5 = vld [vmem:[#allocation18 + $0x108] sm:$0xff] }
 0x689   :  { %v5937_v62 = vpop.f32.mrf.mxu0  ;;  %v13150_v59 = vadd.f32 %v5205_v23, %v5033_v44  ;;  %v13167_v6 = vpop.f32.mrf.mxu2 }
 0x68a   :  { %v5608_v55 = vadd.f32 %v13111_v10, %v5410_v1  ;;  %v5411_v10 = vadd.f32 %v12911_v41, %v13012_v39 }
 0x68b   :  { %13800 = vst [vmem:[#allocation40_spill] sm:$0xff] %v13150_v59  ;;  %10128 = vmatmul.msk.f32.gmra.mxu3 %vm4459_vm4, %v5644_v58  ;;  %v6343_v58 = vld [vmem:[#allocation18 + $0x48] sm:$0xff]  ;;  %v6816_v59 = vld [vmem:[#allocation18 + $0xf0] sm:$0xff] }
 0x68c   :  { %10151 = vmatmul.msk.f32.gmra.mxu0 %vm4459_vm4, %v5843_v48  ;;  %v6993_v48 = vld [vmem:[#allocation18 + $0x128] sm:$0xff]  ;;  %6421 = vmatpush.msra.mxu2 %v6343_v58 }
 0x68d   :  { %6884 = vmatpush.msrb.mxu0 %v6816_v59  ;;  %7063 = vmatpush.msrb.mxu1 %v6993_v48  ;;  %v6813_v59 = vld [vmem:[#allocation18 + $0xd8] sm:$0xff]  ;;  %v13170_v48 = vpop.f32.mrf.mxu1 }
 0x68e   :  { %v5010_v53 = vpop.f32.mrf.mxu3  ;;  %6422 = vmatpush.msra.mxu2 %v6342_v56  ;;  %v6638_v56 = vld [vmem:[#allocation18 + $0xb0] sm:$0xff] }
 0x68f   :  { %v5034_v23 = vadd.f32 %v5010_v53, %v12985_v13  ;;  %v6815_v13 = vld [vmem:[#allocation18 + $0xe8] sm:$0xff]  ;;  %v6814_v53 = vld [vmem:[#allocation18 + $0xe0] sm:$0xff]  ;;  %7064 = vmatpush.msrb.mxu1 %v6992_v20  ;;  %6706 = vmatpush.msra.mxu3 %v6638_v56 }
 0x690   :  { %6885 = vmatpush.msrb.mxu0 %v6815_v13  ;;  %v5845_v20 = vld [vmem:[#allocation3 + $0xa7] sm:$0xff] }
 0x691   :  { %v13159_v44 = vpop.f32.mrf.mxu0  ;;  %v13161_v63 = vadd.f32 %v5208_v28, %v5034_v23  ;;  %v6991_v28 = vld [vmem:[#allocation18 + $0x118] sm:$0xff]  ;;  %v6990_v23 = vld [vmem:[#allocation18 + $0x110] sm:$0xff] }
 0x692   :  { %6886 = vmatpush.msrb.mxu0 %v6814_v53  ;;  %7065 = vmatpush.msrb.mxu1 %v6991_v28  ;;  %v6637_v53 = vld [vmem:[#allocation18 + $0xa8] sm:$0xff] }
 0x693   :  { %13801 = vst [vmem:[#allocation41_spill] sm:$0xff] %v13161_v63  ;;  %10129 = vmatmul.msk.f32.gmra.mxu3 %vm4459_vm4, %v5645_v29  ;;  %v13172_v63 = vld [vmem:[#allocation16] ss:$0 sm:$0xff]  ;;  %v6811_v28 = vld [vmem:[#allocation18 + $0xc8] sm:$0xff] }
 0x694   :  { %10152 = vmatmul.msk.f32.gmra.mxu0 %vm4459_vm4, %v5844_v61  ;;  %v6812_v61 = vld [vmem:[#allocation18 + $0xd0] sm:$0xff]  ;;  %7066 = vmatpush.msrb.mxu1 %v6990_v23  ;;  %v6635_v23 = vld [vmem:[#allocation18 + $0x98] sm:$0xff] }
 0x695   :  { %6887 = vmatpush.msrb.mxu0 %v6813_v59  ;;  %6707 = vmatpush.msra.mxu3 %v6637_v53  ;;  %v13187_v1 = vpop.f32.mrf.mxu1  ;;  %v6633_v53 = vld [vmem:[#allocation18 + $0x88] sm:$0xff] }
 0x696   :  { %v5739_v15 = vpop.f32.mrf.mxu3  ;;  %7067 = vmatpush.msrb.mxu1 %v6989_v5  ;;  %v5647_v5 = vld [vmem:[#allocation3 + $0xa6] sm:$0xff] }
 0x697   :  { %v5805_v58 = vadd.f32 %v5739_v15, %v5607_v16  ;;  %6888 = vmatpush.msrb.mxu0 %v6812_v61  ;;  %v6636_v15 = vld [vmem:[#allocation18 + $0xa0] sm:$0xff]  ;;  %v6634_v61 = vld [vmem:[#allocation18 + $0x90] sm:$0xff] }
 0x698   :  { %6708 = vmatpush.msra.mxu3 %v6636_v15 }
 0x699   :  { %v5943_v29 = vpop.f32.mrf.mxu0  ;;  %v6003_v13 = vadd.f32 %v5937_v62, %v5805_v58  ;;  %v6988_v62 = vld [vmem:[#allocation18 + $0x100] sm:$0xff]  ;;  %6889 = vmatpush.msrb.mxu0 %v6811_v28 }
 0x69a   :  { %7068 = vmatpush.msrb.mxu1 %v6988_v62  ;;  %6709 = vmatpush.msra.mxu3 %v6635_v23  ;;  %v5847_v23 = vld [vmem:[#allocation3 + $0xb7] sm:$0xff] }
 0x69b   :  { %v6201_v16 = vadd.f32 %v13125_v25, %v6003_v13  ;;  %10130 = vmatmul.msk.f32.gmra.mxu3 %vm4459_vm4, %v5646_v42  ;;  %v13181_v25 = vpop.f32.mrf.mxu2  ;;  %6890 = vmatpush.msrb.mxu0 %v6810_v30 }
 0x69c   :  { %10153 = vmatmul.msk.f32.gmra.mxu0 %vm4459_vm4, %v5845_v20  ;;  %v5846_v20 = vld [vmem:[#allocation3 + $0xaf] sm:$0xff]  ;;  %6710 = vmatpush.msra.mxu3 %v6634_v61 }
 0x69d   :  { %v6227_v3 = vadd.f32 %v13172_v63, %v6201_v16  ;;  %v6632_v16 = vld [vmem:[#allocation18 + $0x80] sm:$0xff] }
 0x69e   :  { %v5742_v59 = vpop.f32.mrf.mxu3  ;;  %6711 = vmatpush.msra.mxu3 %v6633_v53  ;;  %v5848_v53 = vld [vmem:[#allocation3 + $0xbf] sm:$0x3] }
 0x69f   :  { %v6249_v42 = vmax.f32 %v6227_v3, 0.0  ;;  %v5806_v58 = vadd.f32 %v5742_v59, %v5608_v55  ;;  %v5412_v55 = vadd.f32 %v12921_v47, %v13021_v22  ;;  %v5648_v59 = vld [vmem:[#allocation3 + $0xae] sm:$0xff]  ;;  %v5413_v22 = vadd.f32 %v12931_v37, %v13028_v43 }
 0x6a0   :  { %6712 = vmatpush.msra.mxu3 %v6632_v16 }
 0x6a1   :  { %v5946_v56 = vpop.f32.mrf.mxu0  ;;  %6272 = vst.msk [vmem:[#allocation4] sm:$0xff] %vm6271_vm6, %v6249_v42  ;;  %v6004_v13 = vadd.f32 %v13159_v44, %v5806_v58  ;;  %v5609_v44 = vadd.f32 %v13122_v11, %v5411_v10  ;;  %v13202_v11 = vpop.f32.mrf.mxu1  ;;  %v5610_v61 = vadd.f32 %v13131_v60, %v5412_v55  ;;  %v5650_v55 = vld [vmem:[#allocation3 + $0xbe] sm:$0x3] }
 0x6a3   :  { %v6202_v28 = vadd.f32 %v13136_v18, %v6004_v13  ;;  %10131 = vmatmul.msk.f32.gmra.mxu3 %vm4459_vm4, %v5647_v5  ;;  %v13194_v3 = vpop.f32.mrf.mxu2 }
 0x6a4   :  { %10154 = vmatmul.msk.f32.gmra.mxu0 %vm4459_vm4, %v5846_v20 }
 0x6a5   :  { %v6228_v62 = vadd.f32 %v13172_v63, %v6202_v28 }
 0x6a6   :  { %v5745_v15 = vpop.f32.mrf.mxu3 }
 0x6a7   :  { %v6250_v41 = vmax.f32 %v6228_v62, 0.0  ;;  %v5807_v39 = vadd.f32 %v5745_v15, %v5609_v44  ;;  %v5611_v62 = vadd.f32 %v13141_v31, %v5413_v22 }
 0x6a9   :  { %v5949_v30 = vpop.f32.mrf.mxu0  ;;  %6273 = vst.msk [vmem:[#allocation4 + $0x8] sm:$0xff] %vm6271_vm6, %v6250_v41  ;;  %v6005_v18 = vadd.f32 %v5943_v29, %v5807_v39 }
 0x6ab   :  { %v6203_v42 = vadd.f32 %v13147_v12, %v6005_v18  ;;  %10132 = vmatmul.msk.f32.gmra.mxu3 %vm4459_vm4, %v5648_v59  ;;  %v5649_v12 = vld [vmem:[#allocation3 + $0xb6] sm:$0xff]  ;;  %v13210_v28 = vpop.f32.mrf.mxu2 }
 0x6ac   :  { %10155 = vmatmul.msk.f32.gmra.mxu0 %vm4459_vm4, %v5847_v23 }
 0x6ad   :  { %v6229_v58 = vadd.f32 %v13172_v63, %v6203_v42 }
 0x6ae   :  { %v5748_v13 = vpop.f32.mrf.mxu3 }
 0x6af   :  { %v6251_v10 = vmax.f32 %v6229_v58, 0.0  ;;  %v5808_v29 = vadd.f32 %v5748_v13, %v5610_v61 }
 0x6b0   :  { %v6322_v20 = vld [vmem:[#allocation4 + $0x1] sm:$0xff] }
 0x6b1   :  { %v5952_v5 = vpop.f32.mrf.mxu0  ;;  %6274 = vst.msk [vmem:[#allocation4 + $0x10] sm:$0xff] %vm6271_vm6, %v6251_v10  ;;  %v6006_v47 = vadd.f32 %v5946_v56, %v5808_v29  ;;  %10179 = vmatmul.msk.f32.vlgmr.msra.gmra.mxu2 %vm6271_vm6, %v6322_v20  ;;  %v13217_v56 = vpop.f32.mrf.mxu1  ;;  %v5415_v20 = vadd.f32 %v12949_v33, %v13046_v45 }
 0x6b3   :  { %v6204_v16 = vadd.f32 %v13156_v9, %v6006_v47  ;;  %10133 = vmatmul.msk.f32.gmra.mxu3 %vm4459_vm4, %v5649_v12  ;;  %v5414_v9 = vadd.f32 %v12941_v46, %v13037_v40  ;;  %v13227_v23 = vpop.f32.mrf.mxu2  ;;  %v6612_v47 = vld [vmem:[#allocation4 + $0x2] sm:$0xff] }
 0x6b4   :  { %10156 = vmatmul.msk.f32.gmra.mxu0 %vm4459_vm4, %v5848_v53  ;;  %v5613_v53 = vadd.f32 %v13167_v6, %v5415_v20 }
 0x6b5   :  { %v6230_v60 = vadd.f32 %v13172_v63, %v6204_v16 }
 0x6b6   :  { %v5751_v44 = vpop.f32.mrf.mxu3 }
 0x6b7   :  { %v6252_v15 = vmax.f32 %v6230_v60, 0.0  ;;  %v5809_v41 = vadd.f32 %v5751_v44, %v5611_v62 }
 0x6b8   :  { %v6323_v43 = vld [vmem:[#allocation4 + $0x9] sm:$0xff] }
 0x6b9   :  { %v5955_v37 = vpop.f32.mrf.mxu0  ;;  %v6968_v39 = vld [vmem:[#allocation4 + $0xc] sm:$0xff]  ;;  %6275 = vst.msk [vmem:[#allocation4 + $0x18] sm:$0xff] %vm6271_vm6, %v6252_v15  ;;  %v6007_v18 = vadd.f32 %v5949_v30, %v5809_v41  ;;  %10180 = vmatmul.msk.f32.gmra.mxu2 %vm6271_vm6, %v6323_v43  ;;  %v5612_v30 = vadd.f32 %v13152_v38, %v5414_v9  ;;  %v13231_v10 = vpop.f32.mrf.mxu1 }
 0x6ba   :  { %10255 = vmatmul.msk.f32.vlgmr.msrb.gmra.mxu1 %vm6271_vm6, %v6968_v39  ;;  %v6790_v31 = vld [vmem:[#allocation4 + $0xb] sm:$0xff] }
 0x6bb   :  { %v6205_v59 = vadd.f32 %v13170_v48, %v6007_v18  ;;  %10134 = vmatmul.msk.f32.gmra.mxu3 %vm4459_vm4, %v5650_v55  ;;  %v13243_v16 = vpop.f32.mrf.mxu2  ;;  %v6613_v6 = vld [vmem:[#allocation4 + $0xa] sm:$0xff] }
 0x6bc   :  { %10236 = vmatmul.msk.f32.vlgmr.msrb.gmra.mxu0 %vm6271_vm6, %v6790_v31 }
 0x6bd   :  { %v6231_v42 = vadd.f32 %v13172_v63, %v6205_v59 }
 0x6be   :  { %v5754_v58 = vpop.f32.mrf.mxu3 }
 0x6bf   :  { %v6253_v61 = vmax.f32 %v6231_v42, 0.0  ;;  %v5810_v13 = vadd.f32 %v5754_v58, %v5612_v30 }
 0x6c0   :  { %v6324_v40 = vld [vmem:[#allocation4 + $0x11] sm:$0xff] }
 0x6c1   :  { %v5958_v46 = vpop.f32.mrf.mxu0  ;;  %v6969_v29 = vld [vmem:[#allocation4 + $0x14] sm:$0xff]  ;;  %6276 = vst.msk [vmem:[#allocation4 + $0x20] sm:$0xff] %vm6271_vm6, %v6253_v61  ;;  %v6008_v48 = vadd.f32 %v5952_v5, %v5810_v13  ;;  %10181 = vmatmul.msk.f32.gmra.mxu2 %vm6271_vm6, %v6324_v40  ;;  %v6162_v41 = vpop.f32.mrf.mxu1 }
 0x6c2   :  { %10256 = vmatmul.msk.f32.gmra.mxu1 %vm6271_vm6, %v6969_v29  ;;  %v6791_v38 = vld [vmem:[#allocation4 + $0x13] sm:$0xff] }
 0x6c3   :  { %v6206_v22 = vadd.f32 %v13187_v1, %v6008_v48  ;;  %10217 = vmatmul.msk.f32.vlgmr.msra.gmra.mxu3 %vm6271_vm6, %v6612_v47  ;;  %v5416_v1 = vadd.f32 %v12959_v27, %v13055_v51  ;;  %v13255_v27 = vpop.f32.mrf.mxu2  ;;  %v6614_v58 = vld [vmem:[#allocation4 + $0x12] sm:$0xff] }
 0x6c4   :  { %10237 = vmatmul.msk.f32.gmra.mxu0 %vm6271_vm6, %v6791_v38 }
 0x6c5   :  { %v6232_v12 = vadd.f32 %v13172_v63, %v6206_v22 }
 0x6c6   :  { %v5757_v5 = vpop.f32.mrf.mxu3 }
 0x6c7   :  { %v6254_v60 = vmax.f32 %v6232_v12, 0.0  ;;  %v5811_v62 = vadd.f32 %v5757_v5, %v5613_v53 }
 0x6c8   :  { %v6325_v15 = vld [vmem:[#allocation4 + $0x19] sm:$0xff] }
 0x6c9   :  { %v5961_v44 = vpop.f32.mrf.mxu0  ;;  %v6970_v33 = vld [vmem:[#allocation4 + $0x1c] sm:$0xff]  ;;  %6277 = vst.msk [vmem:[#allocation4 + $0x28] sm:$0xff] %vm6271_vm6, %v6254_v60  ;;  %v6009_v45 = vadd.f32 %v5955_v37, %v5811_v62  ;;  %10182 = vmatmul.msk.f32.gmra.mxu2 %vm6271_vm6, %v6325_v15  ;;  %v5614_v37 = vadd.f32 %v13181_v25, %v5416_v1  ;;  %v6165_v13 = vpop.f32.mrf.mxu1 }
 0x6ca   :  { %10257 = vmatmul.msk.f32.gmra.mxu1 %vm6271_vm6, %v6970_v33  ;;  %v6792_v43 = vld [vmem:[#allocation4 + $0x1b] sm:$0xff] }
 0x6cb   :  { %v6207_v39 = vadd.f32 %v13202_v11, %v6009_v45  ;;  %10218 = vmatmul.msk.f32.gmra.mxu3 %vm6271_vm6, %v6613_v6  ;;  %v5417_v11 = vadd.f32 %v12969_v2, %v13063_v7  ;;  %v5418_v7 = vadd.f32 %v12979_v54, %v13069_v24  ;;  %v13272_v53 = vpop.f32.mrf.mxu2 }
 0x6cc   :  { %10238 = vmatmul.msk.f32.gmra.mxu0 %vm6271_vm6, %v6792_v43 }
 0x6cd   :  { %v6233_v18 = vadd.f32 %v13172_v63, %v6207_v39  ;;  %v5616_v60 = vadd.f32 %v13210_v28, %v5418_v7 }
 0x6ce   :  { %v5760_v9 = vpop.f32.mrf.mxu3 }
 0x6cf   :  { %v6255_v55 = vmax.f32 %v6233_v18, 0.0  ;;  %v5812_v31 = vadd.f32 %v5760_v9, %v5614_v37 }
 0x6d0   :  { %v6326_v42 = vld [vmem:[#allocation4 + $0x21] sm:$0xff] }
 0x6d1   :  { %v5964_v59 = vpop.f32.mrf.mxu0  ;;  %v6971_v30 = vld [vmem:[#allocation4 + $0x24] sm:$0xff]  ;;  %6278 = vst.msk [vmem:[#allocation4 + $0x30] sm:$0xff] %vm6271_vm6, %v6255_v55  ;;  %v6010_v51 = vadd.f32 %v5958_v46, %v5812_v31  ;;  %10183 = vmatmul.msk.f32.gmra.mxu2 %vm6271_vm6, %v6326_v42  ;;  %v5615_v46 = vadd.f32 %v13194_v3, %v5417_v11  ;;  %v6168_v62 = vpop.f32.mrf.mxu1 }
 0x6d2   :  { %10258 = vmatmul.msk.f32.gmra.mxu1 %vm6271_vm6, %v6971_v30  ;;  %v6793_v25 = vld [vmem:[#allocation4 + $0x23] sm:$0xff] }
 0x6d3   :  { %v6208_v61 = vadd.f32 %v13217_v56, %v6010_v51  ;;  %10219 = vmatmul.msk.f32.gmra.mxu3 %vm6271_vm6, %v6614_v58  ;;  %v6615_v56 = vld [vmem:[#allocation4 + $0x1a] sm:$0xff]  ;;  %v6616_v6 = vld [vmem:[#allocation4 + $0x22] sm:$0xff]  ;;  %v13286_v39 = vpop.f32.mrf.mxu2 }
 0x6d4   :  { %10239 = vmatmul.msk.f32.gmra.mxu0 %vm6271_vm6, %v6793_v25 }
 0x6d5   :  { %v6234_v40 = vadd.f32 %v13172_v63, %v6208_v61 }
 0x6d6   :  { %v5763_v29 = vpop.f32.mrf.mxu3 }
 0x6d7   :  { %v6256_v48 = vmax.f32 %v6234_v40, 0.0  ;;  %v5813_v20 = vadd.f32 %v5763_v29, %v5615_v46 }
 0x6d8   :  { %v6327_v38 = vld [vmem:[#allocation4 + $0x29] sm:$0xff] }
 0x6d9   :  { %v5967_v47 = vpop.f32.mrf.mxu0  ;;  %v6972_v22 = vld [vmem:[#allocation4 + $0x2c] sm:$0xff]  ;;  %6279 = vst.msk [vmem:[#allocation4 + $0x38] sm:$0xff] %vm6271_vm6, %v6256_v48  ;;  %v6011_v2 = vadd.f32 %v5961_v44, %v5813_v20  ;;  %10184 = vmatmul.msk.f32.gmra.mxu2 %vm6271_vm6, %v6327_v38 }
 0x6da   :  { %10259 = vmatmul.msk.f32.gmra.mxu1 %vm6271_vm6, %v6972_v22  ;;  %v6794_v12 = vld [vmem:[#allocation4 + $0x2b] sm:$0xff] }
 0x6db   :  { %v6209_v3 = vadd.f32 %v13231_v10, %v6011_v2  ;;  %10220 = vmatmul.msk.f32.gmra.mxu3 %vm6271_vm6, %v6615_v56  ;;  %v5419_v10 = vadd.f32 %v12987_v50, %v13077_v57  ;;  %v6617_v51 = vld [vmem:[#allocation4 + $0x2a] sm:$0xff]  ;;  %v13299_v40 = vpop.f32.mrf.mxu2 }
 0x6dc   :  { %10240 = vmatmul.msk.f32.gmra.mxu0 %vm6271_vm6, %v6794_v12 }
 0x6dd   :  { %v6235_v5 = vadd.f32 %v13172_v63, %v6209_v3  ;;  %v5617_v37 = vadd.f32 %v13227_v23, %v5419_v10 }
 0x6de   :  { %v5766_v44 = vpop.f32.mrf.mxu3 }
 0x6df   :  { %v6257_v15 = vmax.f32 %v6235_v5, 0.0  ;;  %v5814_v33 = vadd.f32 %v5766_v44, %v5616_v60 }
 0x6e0   :  { %v6328_v54 = vld [vmem:[#allocation4 + $0x31] sm:$0xff] }
 0x6e1   :  { %v5970_v45 = vpop.f32.mrf.mxu0  ;;  %v6973_v24 = vld [vmem:[#allocation4 + $0x34] sm:$0xff]  ;;  %6280 = vst.msk [vmem:[#allocation4 + $0x40] sm:$0xff] %vm6271_vm6, %v6257_v15  ;;  %v6012_v1 = vadd.f32 %v5964_v59, %v5814_v33  ;;  %10185 = vmatmul.msk.f32.gmra.mxu2 %vm6271_vm6, %v6328_v54  ;;  %v6171_v59 = vpop.f32.mrf.mxu1 }
 0x6e2   :  { %10260 = vmatmul.msk.f32.gmra.mxu1 %vm6271_vm6, %v6973_v24  ;;  %v6795_v43 = vld [vmem:[#allocation4 + $0x33] sm:$0xff] }
 0x6e3   :  { %v6210_v28 = vadd.f32 %v6162_v41, %v6012_v1  ;;  %10221 = vmatmul.msk.f32.gmra.mxu3 %vm6271_vm6, %v6616_v6  ;;  %v5420_v41 = vadd.f32 %v12998_v14, %v13085_v17  ;;  %v5421_v17 = vadd.f32 %v13009_v4, %v13090_v19  ;;  %v6618_v38 = vld [vmem:[#allocation4 + $0x32] sm:$0xff]  ;;  %v13310_v4 = vpop.f32.mrf.mxu2 }
 0x6e4   :  { %10241 = vmatmul.msk.f32.gmra.mxu0 %vm6271_vm6, %v6795_v43 }
 0x6e5   :  { %v6236_v18 = vadd.f32 %v13172_v63, %v6210_v28  ;;  %v5618_v25 = vadd.f32 %v13243_v16, %v5420_v41  ;;  %v5619_v56 = vadd.f32 %v13255_v27, %v5421_v17 }
 0x6e6   :  { %v5769_v9 = vpop.f32.mrf.mxu3 }
 0x6e7   :  { %v6258_v55 = vmax.f32 %v6236_v18, 0.0  ;;  %v5815_v31 = vadd.f32 %v5769_v9, %v5617_v37 }
 0x6e8   :  { %v6329_v30 = vld [vmem:[#allocation4 + $0x39] sm:$0xff] }
 0x6e9   :  { %v5973_v42 = vpop.f32.mrf.mxu0  ;;  %v6974_v50 = vld [vmem:[#allocation4 + $0x3c] sm:$0xff]  ;;  %6281 = vst.msk [vmem:[#allocation4 + $0x48] sm:$0xff] %vm6271_vm6, %v6258_v55  ;;  %v6013_v57 = vadd.f32 %v5967_v47, %v5815_v31  ;;  %10186 = vmatmul.msk.f32.gmra.mxu2 %vm6271_vm6, %v6329_v30  ;;  %v6174_v16 = vpop.f32.mrf.mxu1 }
 0x6ea   :  { %10261 = vmatmul.msk.f32.gmra.mxu1 %vm6271_vm6, %v6974_v50  ;;  %v6796_v11 = vld [vmem:[#allocation4 + $0x3b] sm:$0xff] }
 0x6eb   :  { %v6211_v23 = vadd.f32 %v6165_v13, %v6013_v57  ;;  %10222 = vmatmul.msk.f32.gmra.mxu3 %vm6271_vm6, %v6617_v51  ;;  %v6321_v13 = vld [vmem:[#allocation18 + $0x38] sm:$0xff]  ;;  %v6619_v33 = vld [vmem:[#allocation4 + $0x3a] sm:$0xff]  ;;  %v13326_v55 = vpop.f32.mrf.mxu2 }
 0x6ec   :  { %10242 = vmatmul.msk.f32.gmra.mxu0 %vm6271_vm6, %v6796_v11  ;;  %6546 = vmatpush.msrb.mxu2 %v6321_v13  ;;  %v5424_v11 = vadd.f32 %v13041_v32, %v13109_v0 }
 0x6ed   :  { %v6237_v58 = vadd.f32 %v13172_v63, %v6211_v23  ;;  %v6320_v23 = vld [vmem:[#allocation18 + $0x30] sm:$0xff] }
 0x6ee   :  { %v5772_v61 = vpop.f32.mrf.mxu3  ;;  %6547 = vmatpush.msrb.mxu2 %v6320_v23 }
 0x6ef   :  { %v6259_v46 = vmax.f32 %v6237_v58, 0.0  ;;  %v5816_v29 = vadd.f32 %v5772_v61, %v5618_v25 }
 0x6f0   :  { %v6330_v20 = vld [vmem:[#allocation4 + $0x41] sm:$0xff] }
 0x6f1   :  { %v5976_v48 = vpop.f32.mrf.mxu0  ;;  %v6975_v47 = vld [vmem:[#allocation4 + $0x44] sm:$0xff]  ;;  %6282 = vst.msk [vmem:[#allocation4 + $0x50] sm:$0xff] %vm6271_vm6, %v6259_v46  ;;  %v6014_v14 = vadd.f32 %v5970_v45, %v5816_v29  ;;  %10187 = vmatmul.msk.f32.gmra.mxu2 %vm6271_vm6, %v6330_v20  ;;  %v6177_v54 = vpop.f32.mrf.mxu1  ;;  %v5622_v29 = vadd.f32 %v13299_v40, %v5424_v11 }
 0x6f2   :  { %10262 = vmatmul.msk.f32.gmra.mxu1 %vm6271_vm6, %v6975_v47  ;;  %v6797_v22 = vld [vmem:[#allocation4 + $0x43] sm:$0xff] }
 0x6f3   :  { %v6212_v2 = vadd.f32 %v6168_v62, %v6014_v14  ;;  %10223 = vmatmul.msk.f32.gmra.mxu3 %vm6271_vm6, %v6618_v38  ;;  %v5422_v62 = vadd.f32 %v13019_v35, %v13095_v26  ;;  %v5423_v26 = vadd.f32 %v13030_v52, %v13102_v36  ;;  %v6620_v37 = vld [vmem:[#allocation4 + $0x42] sm:$0xff]  ;;  %v13339_v61 = vpop.f32.mrf.mxu2 }
 0x6f4   :  { %10243 = vmatmul.msk.f32.gmra.mxu0 %vm6271_vm6, %v6797_v22 }
 0x6f5   :  { %v6238_v7 = vadd.f32 %v13172_v63, %v6212_v2  ;;  %v5620_v1 = vadd.f32 %v13272_v53, %v5422_v62  ;;  %v6319_v62 = vld [vmem:[#allocation18 + $0x28] sm:$0xff] }
 0x6f6   :  { %v5775_v12 = vpop.f32.mrf.mxu3  ;;  %6548 = vmatpush.msrb.mxu2 %v6319_v62 }
 0x6f7   :  { %v6260_v3 = vmax.f32 %v6238_v7, 0.0  ;;  %v5817_v5 = vadd.f32 %v5775_v12, %v5619_v56 }
 0x6f8   :  { %v6331_v60 = vld [vmem:[#allocation4 + $0x49] sm:$0xff] }
 0x6f9   :  { %v6976_v44 = vld [vmem:[#allocation4 + $0x4c] sm:$0xff]  ;;  %6283 = vst.msk [vmem:[#allocation4 + $0x58] sm:$0xff] %vm6271_vm6, %v6260_v3  ;;  %v6015_v19 = vadd.f32 %v5973_v42, %v5817_v5  ;;  %10188 = vmatmul.msk.f32.gmra.mxu2 %vm6271_vm6, %v6331_v60  ;;  %v5979_v15 = vpop.f32.mrf.mxu0  ;;  %v5621_v42 = vadd.f32 %v13286_v39, %v5423_v26  ;;  %v6180_v30 = vpop.f32.mrf.mxu1 }
 0x6fa   :  { %10263 = vmatmul.msk.f32.gmra.mxu1 %vm6271_vm6, %v6976_v44  ;;  %v6798_v27 = vld [vmem:[#allocation4 + $0x4b] sm:$0xff] }
 0x6fb   :  { %v6213_v45 = vadd.f32 %v6171_v59, %v6015_v19  ;;  %10224 = vmatmul.msk.f32.gmra.mxu3 %vm6271_vm6, %v6619_v33  ;;  %v6621_v58 = vld [vmem:[#allocation4 + $0x4a] sm:$0xff]  ;;  %v13352_v5 = vpop.f32.mrf.mxu2 }
 0x6fc   :  { %10244 = vmatmul.msk.f32.gmra.mxu0 %vm6271_vm6, %v6798_v27 }
 0x6fd   :  { %v6239_v24 = vadd.f32 %v13172_v63, %v6213_v45 }
 0x6fe   :  { %v5778_v10 = vpop.f32.mrf.mxu3 }
 0x6ff   :  { %v6261_v6 = vmax.f32 %v6239_v24, 0.0  ;;  %v5818_v43 = vadd.f32 %v5778_v10, %v5620_v1 }
 0x700   :  { %v6332_v28 = vld [vmem:[#allocation4 + $0x51] sm:$0xff] }
 0x701   :  { %v6977_v18 = vld [vmem:[#allocation4 + $0x54] sm:$0xff]  ;;  %6284 = vst.msk [vmem:[#allocation4 + $0x60] sm:$0xff] %vm6271_vm6, %v6261_v6  ;;  %v6016_v35 = vadd.f32 %v5976_v48, %v5818_v43  ;;  %10189 = vmatmul.msk.f32.gmra.mxu2 %vm6271_vm6, %v6332_v28  ;;  %v5982_v31 = vpop.f32.mrf.mxu0  ;;  %v6183_v32 = vpop.f32.mrf.mxu1  ;;  %v13803_v28 = vld [vmem:[#allocation34_spill] sm:$0xff] }
 0x702   :  { %10264 = vmatmul.msk.f32.gmra.mxu1 %vm6271_vm6, %v6977_v18  ;;  %v6799_v9 = vld [vmem:[#allocation4 + $0x53] sm:$0xff] }
 0x703   :  { %v6214_v53 = vadd.f32 %v6174_v16, %v6016_v35  ;;  %10225 = vmatmul.msk.f32.gmra.mxu3 %vm6271_vm6, %v6620_v37  ;;  %v5425_v16 = vadd.f32 %v13052_v21, %v13118_v8  ;;  %v6622_v38 = vld [vmem:[#allocation4 + $0x52] sm:$0xff]  ;;  %v5426_v8 = vadd.f32 %v13061_v34, %v13127_v49  ;;  %v13802_v49 = vld [vmem:[#allocation38_spill] sm:$0xff]  ;;  %v13368_v35 = vpop.f32.mrf.mxu2 }
 0x704   :  { %10245 = vmatmul.msk.f32.gmra.mxu0 %vm6271_vm6, %v6799_v9  ;;  %v5427_v18 = vadd.f32 %v13803_v28, %v13802_v49  ;;  %v7348_v28 = vld [vmem:[#allocation18 + $0x1a0] sm:$0xff] }
 0x705   :  { %v6240_v59 = vadd.f32 %v13172_v63, %v6214_v53  ;;  %v5623_v7 = vadd.f32 %v13310_v4, %v5425_v16 }
 0x706   :  { %v5781_v50 = vpop.f32.mrf.mxu3 }
 0x707   :  { %v6262_v57 = vmax.f32 %v6240_v59, 0.0  ;;  %v5819_v41 = vadd.f32 %v5781_v50, %v5621_v42  ;;  %v6317_v59 = vld [vmem:[#allocation18 + $0x18] sm:$0xff]  ;;  %v5625_v50 = vadd.f32 %v13339_v61, %v5427_v18 }
 0x708   :  { %v6333_v51 = vld [vmem:[#allocation4 + $0x59] sm:$0xff]  ;;  %v7707_v42 = vld [vmem:[#allocation18 + $0x238] sm:$0xff] }
 0x709   :  { %v6978_v52 = vld [vmem:[#allocation4 + $0x5c] sm:$0xff]  ;;  %6285 = vst.msk [vmem:[#allocation4 + $0x68] sm:$0xff] %vm6271_vm6, %v6262_v57  ;;  %v6017_v36 = vadd.f32 %v5979_v15, %v5819_v41  ;;  %10190 = vmatmul.msk.f32.gmra.mxu2 %vm6271_vm6, %v6333_v51  ;;  %v5985_v48 = vpop.f32.mrf.mxu0  ;;  %v6186_v4 = vpop.f32.mrf.mxu1  ;;  %7773 = vmatpush.msra.mxu1 %v7707_v42  ;;  %v6316_v41 = vld [vmem:[#allocation18 + $0x10] sm:$0xff]  ;;  %v7529_v51 = vld [vmem:[#allocation18 + $0x1f8] sm:$0xff] }
 0x70a   :  { %10265 = vmatmul.msk.f32.gmra.mxu1 %vm6271_vm6, %v6978_v52  ;;  %v6800_v25 = vld [vmem:[#allocation4 + $0x5b] sm:$0xff]  ;;  %v7706_v52 = vld [vmem:[#allocation18 + $0x230] sm:$0xff]  ;;  %7595 = vmatpush.msra.mxu0 %v7529_v51 }
 0x70b   :  { %v6215_v39 = vadd.f32 %v6177_v54, %v6017_v36  ;;  %10226 = vmatmul.msk.f32.gmra.mxu3 %vm6271_vm6, %v6621_v58  ;;  %v6623_v15 = vld [vmem:[#allocation4 + $0x5a] sm:$0xff]  ;;  %v5624_v54 = vadd.f32 %v13326_v55, %v5426_v8  ;;  %7774 = vmatpush.msra.mxu1 %v7706_v52  ;;  %v13381_v16 = vpop.f32.mrf.mxu2  ;;  %v7702_v8 = vld [vmem:[#allocation18 + $0x210] sm:$0xff] }
 0x70c   :  { %10246 = vmatmul.msk.f32.gmra.mxu0 %vm6271_vm6, %v6800_v25  ;;  %v6318_v55 = vld [vmem:[#allocation18 + $0x20] sm:$0xff]  ;;  %v7346_v52 = vld [vmem:[#allocation18 + $0x190] sm:$0xff] }
 0x70d   :  { %v6241_v46 = vadd.f32 %v13172_v63, %v6215_v39  ;;  %6549 = vmatpush.msrb.mxu2 %v6318_v55 }
 0x70e   :  { %v5784_v20 = vpop.f32.mrf.mxu3 }
 0x70f   :  { %v6263_v47 = vmax.f32 %v6241_v46, 0.0  ;;  %v5820_v14 = vadd.f32 %v5784_v20, %v5622_v29  ;;  %6550 = vmatpush.msrb.mxu2 %v6317_v59  ;;  %v13804_v46 = vld [vmem:[#allocation39_spill] sm:$0xff]  ;;  %v6315_v20 = vld [vmem:[#allocation18 + $0x8] sm:$0xff]  ;;  %v7347_v59 = vld [vmem:[#allocation18 + $0x198] sm:$0xff] }
 0x710   :  { %v6334_v0 = vld [vmem:[#allocation4 + $0x61] sm:$0xff]  ;;  %v13805_v29 = vld [vmem:[#allocation35_spill] sm:$0xff] }
 0x711   :  { %v6979_v17 = vld [vmem:[#allocation4 + $0x64] sm:$0xff]  ;;  %6286 = vst.msk [vmem:[#allocation4 + $0x70] sm:$0xff] %vm6271_vm6, %v6263_v47  ;;  %v6018_v13 = vadd.f32 %v5982_v31, %v5820_v14  ;;  %10191 = vmatmul.msk.f32.gmra.mxu2 %vm6271_vm6, %v6334_v0  ;;  %v5988_v60 = vpop.f32.mrf.mxu0  ;;  %v6189_v31 = vpop.f32.mrf.mxu1 }
 0x712   :  { %10266 = vmatmul.msk.f32.gmra.mxu1 %vm6271_vm6, %v6979_v17  ;;  %v6801_v22 = vld [vmem:[#allocation4 + $0x63] sm:$0xff]  ;;  %6551 = vmatpush.msrb.mxu2 %v6316_v41  ;;  %v13809_v41 = vld [vmem:[#allocation37_spill] sm:$0xff] }
 0x713   :  { %v6216_v40 = vadd.f32 %v6180_v30, %v6018_v13  ;;  %10227 = vmatmul.msk.f32.gmra.mxu3 %vm6271_vm6, %v6622_v38  ;;  %v6624_v37 = vld [vmem:[#allocation4 + $0x62] sm:$0xff]  ;;  %v7704_v13 = vld [vmem:[#allocation18 + $0x220] sm:$0xff] }
 0x714   :  { %10247 = vmatmul.msk.f32.gmra.mxu0 %vm6271_vm6, %v6801_v22  ;;  %v7528_v47 = vld [vmem:[#allocation18 + $0x1f0] sm:$0xff]  ;;  %6552 = vmatpush.msrb.mxu2 %v6315_v20  ;;  %v7705_v14 = vld [vmem:[#allocation18 + $0x228] sm:$0xff]  ;;  %v7526_v22 = vld [vmem:[#allocation18 + $0x1e0] sm:$0xff] }
 0x715   :  { %v6242_v2 = vadd.f32 %v13172_v63, %v6216_v40  ;;  %7596 = vmatpush.msra.mxu0 %v7528_v47  ;;  %v7527_v0 = vld [vmem:[#allocation18 + $0x1e8] sm:$0xff]  ;;  %7775 = vmatpush.msra.mxu1 %v7705_v14  ;;  %v7351_v40 = vld [vmem:[#allocation18 + $0x1b8] sm:$0xff] }
 0x716   :  { %v5787_v56 = vpop.f32.mrf.mxu3  ;;  %7417 = vmatpush.msrb.mxu3 %v7351_v40 }
 0x717   :  { %v6264_v12 = vmax.f32 %v6242_v2, 0.0  ;;  %v5821_v3 = vadd.f32 %v5787_v56, %v5623_v7  ;;  %7597 = vmatpush.msra.mxu0 %v7527_v0  ;;  %v7703_v56 = vld [vmem:[#allocation18 + $0x218] sm:$0xff]  ;;  %7776 = vmatpush.msra.mxu1 %v7704_v13 }
 0x718   :  { %v6335_v44 = vld [vmem:[#allocation4 + $0x69] sm:$0xff] }
 0x719   :  { %v6980_v19 = vld [vmem:[#allocation4 + $0x6c] sm:$0xff]  ;;  %6287 = vst.msk [vmem:[#allocation4 + $0x78] sm:$0xff] %vm6271_vm6, %v6264_v12  ;;  %v6019_v21 = vadd.f32 %v5985_v48, %v5821_v3  ;;  %10192 = vmatmul.msk.f32.gmra.mxu2 %vm6271_vm6, %v6335_v44  ;;  %v5991_v26 = vpop.f32.mrf.mxu0  ;;  %v5428_v48 = vadd.f32 %v13805_v29, %v13804_v46  ;;  %v6192_v12 = vpop.f32.mrf.mxu1  ;;  %7598 = vmatpush.msra.mxu0 %v7526_v22  ;;  %v7344_v46 = vld [vmem:[#allocation18 + $0x180] sm:$0xff] }
 0x71a   :  { %10267 = vmatmul.msk.f32.gmra.mxu1 %vm6271_vm6, %v6980_v19  ;;  %v6802_v33 = vld [vmem:[#allocation4 + $0x6b] sm:$0xff] }
 0x71b   :  { %v6217_v27 = vadd.f32 %v6183_v32, %v6019_v21  ;;  %10228 = vmatmul.msk.f32.gmra.mxu3 %vm6271_vm6, %v6623_v15  ;;  %v6625_v25 = vld [vmem:[#allocation4 + $0x6a] sm:$0xff]  ;;  %v6314_v32 = vld [vmem:[#allocation18] sm:$0xff]  ;;  %v5626_v7 = vadd.f32 %v13352_v5, %v5428_v48  ;;  %7777 = vmatpush.msra.mxu1 %v7703_v56 }
 0x71c   :  { %10248 = vmatmul.msk.f32.gmra.mxu0 %vm6271_vm6, %v6802_v33  ;;  %6553 = vmatpush.msrb.mxu2 %v6314_v32  ;;  %v7525_v21 = vld [vmem:[#allocation18 + $0x1d8] sm:$0xff] }
 0x71d   :  { %v6243_v45 = vadd.f32 %v13172_v63, %v6217_v27  ;;  %v13806_v5 = vld [vmem:[#allocation40_spill] sm:$0xff]  ;;  %7599 = vmatpush.msra.mxu0 %v7525_v21  ;;  %7778 = vmatpush.msra.mxu1 %v7702_v8 }
 0x71e   :  { %v5790_v24 = vpop.f32.mrf.mxu3  ;;  %v13807_v33 = vld [vmem:[#allocation36_spill] sm:$0xff] }
 0x71f   :  { %v6265_v1 = vmax.f32 %v6243_v45, 0.0  ;;  %v5822_v10 = vadd.f32 %v5790_v24, %v5624_v54  ;;  %v5429_v27 = vadd.f32 %v13807_v33, %v13806_v5  ;;  %v7524_v45 = vld [vmem:[#allocation18 + $0x1d0] sm:$0xff]  ;;  %v7701_v54 = vld [vmem:[#allocation18 + $0x208] sm:$0xff]  ;;  %v7502_v21 = vld [vmem:[#allocation4 + $0x17] sm:$0xff] }
 0x720   :  { %v6336_v6 = vld [vmem:[#allocation4 + $0x71] sm:$0xff]  ;;  %7600 = vmatpush.msra.mxu0 %v7524_v45  ;;  %7779 = vmatpush.msra.mxu1 %v7701_v54  ;;  %v7503_v5 = vld [vmem:[#allocation4 + $0x1f] sm:$0xff]  ;;  %v7682_v45 = vld [vmem:[#allocation4 + $0x28] sm:$0xff] }
 0x721   :  { %v6981_v43 = vld [vmem:[#allocation4 + $0x74] sm:$0xff]  ;;  %6288 = vst.msk [vmem:[#allocation4 + $0x80] sm:$0xff] %vm6271_vm6, %v6265_v1  ;;  %v6020_v34 = vadd.f32 %v5988_v60, %v5822_v10  ;;  %10193 = vmatmul.msk.f32.gmra.mxu2 %vm6271_vm6, %v6336_v6  ;;  %v5994_v38 = vpop.f32.mrf.mxu0  ;;  %v7350_v60 = vld [vmem:[#allocation18 + $0x1b0] sm:$0xff]  ;;  %v7349_v10 = vld [vmem:[#allocation18 + $0x1a8] sm:$0xff]  ;;  %v6195_v42 = vpop.f32.mrf.mxu1 }
 0x722   :  { %10268 = vmatmul.msk.f32.gmra.mxu1 %vm6271_vm6, %v6981_v43  ;;  %v6803_v9 = vld [vmem:[#allocation4 + $0x73] sm:$0xff]  ;;  %7418 = vmatpush.msrb.mxu3 %v7350_v60  ;;  %v7523_v43 = vld [vmem:[#allocation18 + $0x1c8] sm:$0xff] }
 0x723   :  { %v6218_v53 = vadd.f32 %v6186_v4, %v6020_v34  ;;  %10229 = vmatmul.msk.f32.gmra.mxu3 %vm6271_vm6, %v6624_v37  ;;  %v6626_v24 = vld [vmem:[#allocation4 + $0x72] sm:$0xff]  ;;  %7601 = vmatpush.msra.mxu0 %v7523_v43 }
 0x724   :  { %10249 = vmatmul.msk.f32.gmra.mxu0 %vm6271_vm6, %v6803_v9  ;;  %v7700_v34 = vld [vmem:[#allocation18 + $0x200] sm:$0xff]  ;;  %7419 = vmatpush.msrb.mxu3 %v7349_v10 }
 0x725   :  { %v6244_v30 = vadd.f32 %v13172_v63, %v6218_v53  ;;  %v7522_v37 = vld [vmem:[#allocation18 + $0x1c0] sm:$0xff]  ;;  %7780 = vmatpush.msra.mxu1 %v7700_v34 }
 0x726   :  { %v5793_v57 = vpop.f32.mrf.mxu3  ;;  %7420 = vmatpush.msrb.mxu3 %v7348_v28  ;;  %7602 = vmatpush.msra.mxu0 %v7522_v37  ;;  %v7326_v28 = vld [vmem:[#allocation4 + $0x26] sm:$0xff] }
 0x727   :  { %v6266_v36 = vmax.f32 %v6244_v30, 0.0  ;;  %v5823_v11 = vadd.f32 %v5793_v57, %v5625_v50 }
 0x728   :  { %v6337_v23 = vld [vmem:[#allocation4 + $0x79] sm:$0xff]  ;;  %7421 = vmatpush.msrb.mxu3 %v7347_v59 }
 0x729   :  { %v6982_v58 = vld [vmem:[#allocation4 + $0x7c] sm:$0xff]  ;;  %6289 = vst.msk [vmem:[#allocation4 + $0x88] sm:$0xff] %vm6271_vm6, %v6266_v36  ;;  %v6021_v39 = vadd.f32 %v5991_v26, %v5823_v11  ;;  %10194 = vmatmul.msk.f32.gmra.mxu2 %vm6271_vm6, %v6337_v23  ;;  %v5627_v26 = vadd.f32 %v13368_v35, %v5429_v27  ;;  %v5997_v9 = vpop.f32.mrf.mxu0 }
 0x72a   :  { %10269 = vmatmul.msk.f32.gmra.mxu1 %vm6271_vm6, %v6982_v58  ;;  %v6804_v61 = vld [vmem:[#allocation4 + $0x7b] sm:$0xff]  ;;  %7422 = vmatpush.msrb.mxu3 %v7346_v52 }
 0x72b   :  { %v6219_v17 = vadd.f32 %v6189_v31, %v6021_v39  ;;  %10230 = vmatmul.msk.f32.gmra.mxu3 %vm6271_vm6, %v6625_v25  ;;  %v13808_v35 = vld [vmem:[#allocation41_spill] sm:$0xff]  ;;  %v7345_v58 = vld [vmem:[#allocation18 + $0x188] sm:$0xff] }
 0x72c   :  { %10250 = vmatmul.msk.f32.gmra.mxu0 %vm6271_vm6, %v6804_v61  ;;  %v5430_v51 = vadd.f32 %v13809_v41, %v13808_v35  ;;  %v6627_v36 = vld [vmem:[#allocation4 + $0x7a] sm:$0xff]  ;;  %7423 = vmatpush.msrb.mxu3 %v7345_v58 }
 0x72d   :  { %v6245_v2 = vadd.f32 %v13172_v63, %v6219_v17  ;;  %v6198_v17 = vpop.f32.mrf.mxu1  ;;  %v7507_v35 = vld [vmem:[#allocation4 + $0x3f] sm:$0xff] }
 0x72e   :  { %v5796_v3 = vpop.f32.mrf.mxu3  ;;  %v5628_v61 = vadd.f32 %v13381_v16, %v5430_v51  ;;  %7424 = vmatpush.msrb.mxu3 %v7344_v46  ;;  %v7329_v58 = vld [vmem:[#allocation4 + $0x3e] sm:$0xff] }
 0x72f   :  { %v6267_v44 = vmax.f32 %v6245_v2, 0.0  ;;  %v5824_v19 = vadd.f32 %v5796_v3, %v5626_v7  ;;  %v6295_v7 = vld [vmem:[#allocation4] sm:$0xff] }
 0x730   :  { %v6338_v62 = vld [vmem:[#allocation4 + $0x81] sm:$0xff] }
 0x731   :  { %v6983_v4 = vld [vmem:[#allocation4 + $0x84] sm:$0xff]  ;;  %6290 = vst.msk [vmem:[#allocation4 + $0x90] sm:$0xff] %vm6271_vm6, %v6267_v44  ;;  %v6022_v15 = vadd.f32 %v5994_v38, %v5824_v19  ;;  %10195 = vmatmul.msk.f32.gmra.mxu2 %vm6271_vm6, %v6338_v62  ;;  %v6000_v47 = vpop.f32.mrf.mxu0  ;;  %v7680_v19 = vld [vmem:[#allocation4 + $0x18] sm:$0xff]  ;;  %v6297_v62 = vld [vmem:[#allocation4 + $0x10] sm:$0xff] }
 0x732   :  { %10270 = vmatmul.msk.f32.gmra.mxu1 %vm6271_vm6, %v6983_v4  ;;  %v6805_v1 = vld [vmem:[#allocation4 + $0x83] sm:$0xff] }
 0x733   :  { %v6220_v6 = vadd.f32 %v6192_v12, %v6022_v15  ;;  %10231 = vmatmul.msk.f32.gmra.mxu3 %vm6271_vm6, %v6626_v24  ;;  %v6628_v13 = vld [vmem:[#allocation4 + $0x82] sm:$0xff]  ;;  %v7324_v15 = vld [vmem:[#allocation4 + $0x16] sm:$0xff] }
 0x734   :  { %10251 = vmatmul.msk.f32.gmra.mxu0 %vm6271_vm6, %v6805_v1  ;;  %v13392_v49 = vpop.f32.mrf.mxu2  ;;  %v6296_v44 = vld [vmem:[#allocation4 + $0x8] sm:$0xff]  ;;  %v7681_v4 = vld [vmem:[#allocation4 + $0x20] sm:$0xff] }
 0x735   :  { %v6246_v18 = vadd.f32 %v13172_v63, %v6220_v6  ;;  %v7325_v24 = vld [vmem:[#allocation4 + $0x1e] sm:$0xff]  ;;  %v7504_v1 = vld [vmem:[#allocation4 + $0x27] sm:$0xff]  ;;  %v7683_v6 = vld [vmem:[#allocation4 + $0x30] sm:$0xff] }
 0x736   :  { %v5799_v55 = vpop.f32.mrf.mxu3 }
 0x737   :  { %v6268_v53 = vmax.f32 %v6246_v18, 0.0  ;;  %v5825_v31 = vadd.f32 %v5799_v55, %v5627_v26  ;;  %v13429_v27 = vpop.f32.mrf.mxu1  ;;  %v7505_v18 = vld [vmem:[#allocation4 + $0x2f] sm:$0xff] }
 0x738   :  { %v6339_v30 = vld [vmem:[#allocation4 + $0x89] sm:$0xff]  ;;  %v6340_v14 = vld [vmem:[#allocation4 + $0x91] sm:$0x3] }
 0x739   :  { %v6984_v50 = vld [vmem:[#allocation4 + $0x8c] sm:$0xff]  ;;  %6291 = vst.msk [vmem:[#allocation4 + $0x98] sm:$0xff] %vm6271_vm6, %v6268_v53  ;;  %v6023_v57 = vadd.f32 %v5997_v9, %v5825_v31  ;;  %10196 = vmatmul.msk.f32.gmra.mxu2 %vm6271_vm6, %v6339_v30  ;;  %v13431_v54 = vpop.f32.mrf.mxu0  ;;  %v7684_v9 = vld [vmem:[#allocation4 + $0x38] sm:$0xff] }
 0x73a   :  { %10271 = vmatmul.msk.f32.gmra.mxu1 %vm6271_vm6, %v6984_v50  ;;  %v6806_v11 = vld [vmem:[#allocation4 + $0x8b] sm:$0xff]  ;;  %v7506_v53 = vld [vmem:[#allocation4 + $0x37] sm:$0xff]  ;;  %v7685_v50 = vld [vmem:[#allocation4 + $0x40] sm:$0xff] }
 0x73b   :  { %v6221_v23 = vadd.f32 %v6195_v42, %v6023_v57  ;;  %10232 = vmatmul.msk.f32.gmra.mxu3 %vm6271_vm6, %v6627_v36  ;;  %v6629_v12 = vld [vmem:[#allocation4 + $0x8a] sm:$0xff]  ;;  %v7328_v57 = vld [vmem:[#allocation4 + $0x36] sm:$0xff] }
 0x73c   :  { %10252 = vmatmul.msk.f32.gmra.mxu0 %vm6271_vm6, %v6806_v11  ;;  %v13403_v25 = vpop.f32.mrf.mxu2  ;;  %v7327_v55 = vld [vmem:[#allocation4 + $0x2e] sm:$0xff] }
 0x73d   :  { %v6247_v39 = vadd.f32 %v13172_v63, %v6221_v23  ;;  %v7686_v11 = vld [vmem:[#allocation4 + $0x48] sm:$0xff]  ;;  %v7173_v23 = vld [vmem:[#allocation18 + $0x178] sm:$0xff] }
 0x73e   :  { %v5802_v29 = vpop.f32.mrf.mxu3  ;;  %7239 = vmatpush.msra.mxu2 %v7173_v23  ;;  %v7169_v23 = vld [vmem:[#allocation18 + $0x158] sm:$0xff] }
 0x73f   :  { %v6269_v48 = vmax.f32 %v6247_v39, 0.0  ;;  %v5826_v20 = vadd.f32 %v5802_v29, %v5628_v61  ;;  %v13437_v43 = vpop.f32.mrf.mxu1  ;;  %v7508_v39 = vld [vmem:[#allocation4 + $0x47] sm:$0xff] }
 0x740   :  { %v6985_v32 = vld [vmem:[#allocation4 + $0x94] sm:$0xff]  ;;  %v6986_v56 = vld [vmem:[#allocation4 + $0x9c] sm:$0x3] }
 0x741   :  { %6292 = vst.msk [vmem:[#allocation4 + $0xa0] sm:$0xff] %vm6271_vm6, %v6269_v48  ;;  %v6024_v0 = vadd.f32 %v6000_v47, %v5826_v20  ;;  %10197 = vmatmul.msk.f32.gmra.mxu2 %vm6271_vm6, %v6340_v14  ;;  %v6807_v38 = vld [vmem:[#allocation4 + $0x93] sm:$0xff]  ;;  %v6808_v3 = vld [vmem:[#allocation4 + $0x9b] sm:$0x3]  ;;  %v13443_v26 = vpop.f32.mrf.mxu0  ;;  %v7330_v47 = vld [vmem:[#allocation4 + $0x46] sm:$0xff] }
 0x742   :  { %10272 = vmatmul.msk.f32.gmra.mxu1 %vm6271_vm6, %v6985_v32  ;;  %v7687_v48 = vld [vmem:[#allocation4 + $0x50] sm:$0xff] }
 0x743   :  { %v6222_v16 = vadd.f32 %v6198_v17, %v6024_v0  ;;  %10233 = vmatmul.msk.f32.gmra.mxu3 %vm6271_vm6, %v6628_v13  ;;  %v7509_v14 = vld [vmem:[#allocation4 + $0x4f] sm:$0xff]  ;;  %v7688_v0 = vld [vmem:[#allocation4 + $0x58] sm:$0xff] }
 0x744   :  { %10253 = vmatmul.msk.f32.gmra.mxu0 %vm6271_vm6, %v6807_v38  ;;  %v13412_v22 = vpop.f32.mrf.mxu2  ;;  %v7331_v38 = vld [vmem:[#allocation4 + $0x4e] sm:$0xff] }
 0x745   :  { %v6248_v40 = vadd.f32 %v13172_v63, %v6222_v16  ;;  %v6630_v63 = vld [vmem:[#allocation4 + $0x92] sm:$0x3]  ;;  %v7510_v16 = vld [vmem:[#allocation4 + $0x57] sm:$0xff] }
 0x746   :  { %v13439_v34 = vpop.f32.mrf.mxu3 }
 0x747   :  { %v6270_v2 = vmax.f32 %v6248_v40, 0.0  ;;  %v13449_v31 = vpop.f32.mrf.mxu1 }
 0x749   :  { %6294 = vst.msk [vmem:[#allocation4 + $0xa8] sm:$0x3] %vm6293_vm7, %v6270_v2  ;;  %10198 = vmatmul.msk.f32.vlgmr.msrb.gmra.mxu2 %vm6271_vm6, %v6295_v7  ;;  %v13455_v30 = vpop.f32.mrf.mxu0  ;;  %v7172_v7 = vld [vmem:[#allocation18 + $0x170] sm:$0xff] }
 0x74a   :  { %10273 = vmatmul.msk.f32.gmra.mxu1 %vm6271_vm6, %v6986_v56  ;;  %7240 = vmatpush.msra.mxu2 %v7172_v7  ;;  %v7689_v56 = vld [vmem:[#allocation4 + $0x60] sm:$0xff]  ;;  %v7517_v7 = vld [vmem:[#allocation4 + $0x8f] sm:$0xff] }
 0x74b   :  { %10234 = vmatmul.msk.f32.gmra.mxu3 %vm6271_vm6, %v6629_v12  ;;  %v7332_v12 = vld [vmem:[#allocation4 + $0x56] sm:$0xff] }
 0x74c   :  { %10254 = vmatmul.msk.f32.gmra.mxu0 %vm6271_vm6, %v6808_v3  ;;  %v13419_v60 = vpop.f32.mrf.mxu2  ;;  %v7511_v3 = vld [vmem:[#allocation4 + $0x5f] sm:$0xff] }
 0x74e   :  { %v13451_v59 = vpop.f32.mrf.mxu3 }
 0x74f   :  { %v13461_v51 = vpop.f32.mrf.mxu1 }
 0x751   :  { %10199 = vmatmul.msk.f32.gmra.mxu2 %vm6271_vm6, %v6296_v44  ;;  %v13465_v36 = vpop.f32.mrf.mxu0 }
 0x752   :  { %10331 = vmatmul.msk.f32.vlgmr.msra.gmra.mxu1 %vm6271_vm6, %v7680_v19 }
 0x753   :  { %10235 = vmatmul.msk.f32.gmra.mxu3 %vm6271_vm6, %v6630_v63 }
 0x754   :  { %10312 = vmatmul.msk.f32.vlgmr.msra.gmra.mxu0 %vm6271_vm6, %v7502_v21  ;;  %v6436_v8 = vpop.f32.mrf.mxu2 }
 0x755   :  { %v7690_v8 = vld [vmem:[#allocation4 + $0x68] sm:$0xff] }
 0x756   :  { %v13463_v52 = vpop.f32.mrf.mxu3 }
 0x757   :  { %v7082_v46 = vpop.f32.mrf.mxu1 }
 0x759   :  { %10200 = vmatmul.msk.f32.gmra.mxu2 %vm6271_vm6, %v6297_v62  ;;  %v6904_v20 = vpop.f32.mrf.mxu0  ;;  %v7333_v62 = vld [vmem:[#allocation4 + $0x5e] sm:$0xff] }
 0x75a   :  { %10332 = vmatmul.msk.f32.gmra.mxu1 %vm6271_vm6, %v7681_v4  ;;  %v7167_v20 = vld [vmem:[#allocation18 + $0x148] sm:$0xff] }
 0x75b   :  { %10293 = vmatmul.msk.f32.vlgmr.msrb.gmra.mxu3 %vm6271_vm6, %v7324_v15 }
 0x75c   :  { %10313 = vmatmul.msk.f32.gmra.mxu0 %vm6271_vm6, %v7503_v5  ;;  %v6439_v33 = vpop.f32.mrf.mxu2 }
 0x75e   :  { %v13471_v29 = vpop.f32.mrf.mxu3 }
 0x75f   :  { %v7085_v17 = vpop.f32.mrf.mxu1 }
 0x761   :  { %10201 = vmatmul.msk.f32.gmra.mxu2 %vm6271_vm6, %v7680_v19  ;;  %v6907_v40 = vpop.f32.mrf.mxu0 }
 0x762   :  { %10333 = vmatmul.msk.f32.gmra.mxu1 %vm6271_vm6, %v7682_v45  ;;  %v7695_v40 = vld [vmem:[#allocation4 + $0x90] sm:$0xff] }
 0x763   :  { %10294 = vmatmul.msk.f32.gmra.mxu3 %vm6271_vm6, %v7325_v24  ;;  %v7691_v24 = vld [vmem:[#allocation4 + $0x70] sm:$0xff] }
 0x764   :  { %10314 = vmatmul.msk.f32.gmra.mxu0 %vm6271_vm6, %v7504_v1  ;;  %v6442_v10 = vpop.f32.mrf.mxu2  ;;  %v7171_v1 = vld [vmem:[#allocation18 + $0x168] sm:$0xff] }
 0x765   :  { %v7334_v10 = vld [vmem:[#allocation4 + $0x66] sm:$0xff]  ;;  %7241 = vmatpush.msra.mxu2 %v7171_v1 }
 0x766   :  { %v6726_v13 = vpop.f32.mrf.mxu3 }
 0x767   :  { %v7088_v44 = vpop.f32.mrf.mxu1 }
 0x769   :  { %10202 = vmatmul.msk.f32.gmra.mxu2 %vm6271_vm6, %v7681_v4  ;;  %v6910_v21 = vpop.f32.mrf.mxu0  ;;  %v7512_v4 = vld [vmem:[#allocation4 + $0x67] sm:$0xff] }
 0x76a   :  { %10334 = vmatmul.msk.f32.gmra.mxu1 %vm6271_vm6, %v7683_v6  ;;  %v7518_v21 = vld [vmem:[#allocation4 + $0x97] sm:$0xff] }
 0x76b   :  { %10295 = vmatmul.msk.f32.gmra.mxu3 %vm6271_vm6, %v7326_v28 }
 0x76c   :  { %10315 = vmatmul.msk.f32.gmra.mxu0 %vm6271_vm6, %v7505_v18  ;;  %v6445_v37 = vpop.f32.mrf.mxu2 }
 0x76e   :  { %v6729_v19 = vpop.f32.mrf.mxu3 }
 0x76f   :  { %v7091_v5 = vpop.f32.mrf.mxu1  ;;  %v7696_v19 = vld [vmem:[#allocation4 + $0x98] sm:$0xff] }
 0x770   :  { %v7697_v5 = vld [vmem:[#allocation4 + $0xa0] sm:$0xff] }
 0x771   :  { %10203 = vmatmul.msk.f32.gmra.mxu2 %vm6271_vm6, %v7682_v45  ;;  %v6913_v45 = vpop.f32.mrf.mxu0 }
 0x772   :  { %10335 = vmatmul.msk.f32.gmra.mxu1 %vm6271_vm6, %v7684_v9  ;;  %v7340_v45 = vld [vmem:[#allocation4 + $0x96] sm:$0xff] }
 0x773   :  { %10296 = vmatmul.msk.f32.gmra.mxu3 %vm6271_vm6, %v7327_v55 }
 0x774   :  { %10316 = vmatmul.msk.f32.gmra.mxu0 %vm6271_vm6, %v7506_v53  ;;  %v6448_v42 = vpop.f32.mrf.mxu2  ;;  %v7335_v53 = vld [vmem:[#allocation4 + $0x6e] sm:$0xff] }
 0x775   :  { %v7514_v42 = vld [vmem:[#allocation4 + $0x77] sm:$0xff] }
 0x776   :  { %v6732_v33 = vpop.f32.mrf.mxu3 }
 0x777   :  { %v7094_v18 = vpop.f32.mrf.mxu1 }
 0x779   :  { %10204 = vmatmul.msk.f32.gmra.mxu2 %vm6271_vm6, %v7683_v6  ;;  %v7513_v6 = vld [vmem:[#allocation4 + $0x6f] sm:$0xff]  ;;  %v6916_v55 = vpop.f32.mrf.mxu0 }
 0x77a   :  { %10336 = vmatmul.msk.f32.gmra.mxu1 %vm6271_vm6, %v7685_v50  ;;  %v7520_v55 = vld [vmem:[#allocation4 + $0xa7] sm:$0x3] }
 0x77b   :  { %10297 = vmatmul.msk.f32.gmra.mxu3 %vm6271_vm6, %v7328_v57  ;;  %v7170_v57 = vld [vmem:[#allocation18 + $0x160] sm:$0xff] }
 0x77c   :  { %10317 = vmatmul.msk.f32.gmra.mxu0 %vm6271_vm6, %v7507_v35  ;;  %v6451_v41 = vpop.f32.mrf.mxu2  ;;  %v7693_v35 = vld [vmem:[#allocation4 + $0x80] sm:$0xff]  ;;  %7242 = vmatpush.msra.mxu2 %v7170_v57  ;;  %v7147_v57 = vld [vmem:[#allocation4 + $0x15] sm:$0xff] }
 0x77e   :  { %v6735_v37 = vpop.f32.mrf.mxu3  ;;  %7243 = vmatpush.msra.mxu2 %v7169_v23  ;;  %v7148_v23 = vld [vmem:[#allocation4 + $0x1d] sm:$0xff] }
 0x77f   :  { %v7097_v41 = vpop.f32.mrf.mxu1 }
 0x781   :  { %10205 = vmatmul.msk.f32.gmra.mxu2 %vm6271_vm6, %v7684_v9  ;;  %v7692_v9 = vld [vmem:[#allocation4 + $0x78] sm:$0xff] }
 0x782   :  { %10337 = vmatmul.msk.f32.gmra.mxu1 %vm6271_vm6, %v7686_v11 }
 0x783   :  { %10298 = vmatmul.msk.f32.gmra.mxu3 %vm6271_vm6, %v7329_v58  ;;  %v7336_v58 = vld [vmem:[#allocation4 + $0x76] sm:$0xff] }
 0x784   :  { %10318 = vmatmul.msk.f32.gmra.mxu0 %vm6271_vm6, %v7508_v39  ;;  %v6454_v61 = vpop.f32.mrf.mxu2  ;;  %v7515_v39 = vld [vmem:[#allocation4 + $0x7f] sm:$0xff] }
 0x785   :  { %v6919_v61 = vpop.f32.mrf.mxu0 }
 0x787   :  { %v7100_v17 = vpop.f32.mrf.mxu1 }
 0x789   :  { %10206 = vmatmul.msk.f32.gmra.mxu2 %vm6271_vm6, %v7685_v50 }
 0x78a   :  { %10338 = vmatmul.msk.f32.gmra.mxu1 %vm6271_vm6, %v7687_v48 }
 0x78b   :  { %10299 = vmatmul.msk.f32.gmra.mxu3 %vm6271_vm6, %v7330_v47  ;;  %v7694_v47 = vld [vmem:[#allocation4 + $0x88] sm:$0xff] }
 0x78c   :  { %10319 = vmatmul.msk.f32.gmra.mxu0 %vm6271_vm6, %v7509_v14  ;;  %v6457_v32 = vpop.f32.mrf.mxu2  ;;  %v7166_v14 = vld [vmem:[#allocation18 + $0x140] sm:$0xff] }
 0x78d   :  { %v7337_v32 = vld [vmem:[#allocation4 + $0x7e] sm:$0xff] }
 0x791   :  { %10207 = vmatmul.msk.f32.gmra.mxu2 %vm6271_vm6, %v7686_v11  ;;  %v6738_v11 = vpop.f32.mrf.mxu3 }
 0x792   :  { %10339 = vmatmul.msk.f32.gmra.mxu1 %vm6271_vm6, %v7688_v0 }
 0x793   :  { %10300 = vmatmul.msk.f32.gmra.mxu3 %vm6271_vm6, %v7331_v38 }
 0x794   :  { %10320 = vmatmul.msk.f32.gmra.mxu0 %vm6271_vm6, %v7510_v16  ;;  %v6460_v2 = vpop.f32.mrf.mxu2  ;;  %v6922_v16 = vpop.f32.mrf.mxu0 }
 0x795   :  { %v7338_v2 = vld [vmem:[#allocation4 + $0x86] sm:$0xff] }
 0x799   :  { %10208 = vmatmul.msk.f32.gmra.mxu2 %vm6271_vm6, %v7687_v48  ;;  %v7168_v48 = vld [vmem:[#allocation18 + $0x150] sm:$0xff]  ;;  %v6741_v13 = vpop.f32.mrf.mxu3 }
 0x79a   :  { %10340 = vmatmul.msk.f32.gmra.mxu1 %vm6271_vm6, %v7689_v56  ;;  %7244 = vmatpush.msra.mxu2 %v7168_v48  ;;  %v7150_v48 = vld [vmem:[#allocation4 + $0x2d] sm:$0xff] }
 0x79b   :  { %10301 = vmatmul.msk.f32.gmra.mxu3 %vm6271_vm6, %v7332_v12  ;;  %v7103_v12 = vpop.f32.mrf.mxu1 }
 0x79c   :  { %10321 = vmatmul.msk.f32.gmra.mxu0 %vm6271_vm6, %v7511_v3  ;;  %v6463_v63 = vpop.f32.mrf.mxu2  ;;  %7245 = vmatpush.msra.mxu2 %v7167_v20  ;;  %v6925_v44 = vpop.f32.mrf.mxu0 }
 0x79d   :  { %v7339_v63 = vld [vmem:[#allocation4 + $0x8e] sm:$0xff] }
 0x79e   :  { %7246 = vmatpush.msra.mxu2 %v7166_v14  ;;  %v7154_v44 = vld [vmem:[#allocation4 + $0x4d] sm:$0xff] }
 0x7a1   :  { %10209 = vmatmul.msk.f32.gmra.mxu2 %vm6271_vm6, %v7688_v0  ;;  %v7516_v0 = vld [vmem:[#allocation4 + $0x87] sm:$0xff]  ;;  %v6744_v3 = vpop.f32.mrf.mxu3 }
 0x7a2   :  { %10341 = vmatmul.msk.f32.gmra.mxu1 %vm6271_vm6, %v7690_v8 }
 0x7a3   :  { %10302 = vmatmul.msk.f32.gmra.mxu3 %vm6271_vm6, %v7333_v62  ;;  %v7106_v62 = vpop.f32.mrf.mxu1 }
 0x7a4   :  { %10322 = vmatmul.msk.f32.gmra.mxu0 %vm6271_vm6, %v7512_v4  ;;  %v6466_v15 = vpop.f32.mrf.mxu2  ;;  %v6928_v33 = vpop.f32.mrf.mxu0 }
 0x7a5   :  { %v6313_v15 = vld [vmem:[#allocation4 + $0x90] sm:$0x3] }
 0x7a9   :  { %10210 = vmatmul.msk.f32.gmra.mxu2 %vm6271_vm6, %v7689_v56  ;;  %v6747_v4 = vpop.f32.mrf.mxu3 }
 0x7aa   :  { %10342 = vmatmul.msk.f32.gmra.mxu1 %vm6271_vm6, %v7691_v24  ;;  %v7155_v4 = vld [vmem:[#allocation4 + $0x55] sm:$0xff] }
 0x7ab   :  { %10303 = vmatmul.msk.f32.gmra.mxu3 %vm6271_vm6, %v7334_v10  ;;  %v7146_v10 = vld [vmem:[#allocation4 + $0xd] sm:$0xff]  ;;  %v7109_v18 = vpop.f32.mrf.mxu1 }
 0x7ac   :  { %10323 = vmatmul.msk.f32.gmra.mxu0 %vm6271_vm6, %v7513_v6  ;;  %v13493_v28 = vpop.f32.mrf.mxu2  ;;  %v7698_v6 = vld [vmem:[#allocation4 + $0xa8] sm:$0x3] }
 0x7ad   :  { %v7157_v18 = vld [vmem:[#allocation4 + $0x65] sm:$0xff] }
 0x7b1   :  { %10211 = vmatmul.msk.f32.gmra.mxu2 %vm6271_vm6, %v7690_v8  ;;  %v6750_v37 = vpop.f32.mrf.mxu3 }
 0x7b2   :  { %10343 = vmatmul.msk.f32.gmra.mxu1 %vm6271_vm6, %v7692_v9 }
 0x7b3   :  { %10304 = vmatmul.msk.f32.gmra.mxu3 %vm6271_vm6, %v7335_v53  ;;  %v6931_v53 = vpop.f32.mrf.mxu0  ;;  %v7112_v13 = vpop.f32.mrf.mxu1 }
 0x7b4   :  { %10324 = vmatmul.msk.f32.gmra.mxu0 %vm6271_vm6, %v7514_v42  ;;  %v13499_v50 = vpop.f32.mrf.mxu2  ;;  %v7158_v53 = vld [vmem:[#allocation4 + $0x6d] sm:$0xff] }
 0x7b9   :  { %10212 = vmatmul.msk.f32.gmra.mxu2 %vm6271_vm6, %v7691_v24  ;;  %v7519_v24 = vld [vmem:[#allocation4 + $0x9f] sm:$0xff]  ;;  %v6753_v41 = vpop.f32.mrf.mxu3 }
 0x7ba   :  { %10344 = vmatmul.msk.f32.gmra.mxu1 %vm6271_vm6, %v7693_v35 }
 0x7bb   :  { %10305 = vmatmul.msk.f32.gmra.mxu3 %vm6271_vm6, %v7336_v58  ;;  %v6934_v17 = vpop.f32.mrf.mxu0  ;;  %v13549_v3 = vpop.f32.mrf.mxu1 }
 0x7bc   :  { %10325 = vmatmul.msk.f32.gmra.mxu0 %vm6271_vm6, %v7515_v39  ;;  %v13505_v46 = vpop.f32.mrf.mxu2  ;;  %v7149_v39 = vld [vmem:[#allocation4 + $0x25] sm:$0xff] }
 0x7bd   :  { %v7161_v17 = vld [vmem:[#allocation4 + $0x85] sm:$0xff] }
 0x7c1   :  { %10213 = vmatmul.msk.f32.gmra.mxu2 %vm6271_vm6, %v7692_v9  ;;  %v7341_v9 = vld [vmem:[#allocation4 + $0x9e] sm:$0xff] }
 0x7c2   :  { %10345 = vmatmul.msk.f32.gmra.mxu1 %vm6271_vm6, %v7694_v47 }
 0x7c3   :  { %10306 = vmatmul.msk.f32.gmra.mxu3 %vm6271_vm6, %v7337_v32  ;;  %v6756_v32 = vpop.f32.mrf.mxu3  ;;  %v13556_v62 = vpop.f32.mrf.mxu1 }
 0x7c4   :  { %10326 = vmatmul.msk.f32.gmra.mxu0 %vm6271_vm6, %v7516_v0  ;;  %v13511_v38 = vpop.f32.mrf.mxu2  ;;  %v7152_v0 = vld [vmem:[#allocation4 + $0x3d] sm:$0xff] }
 0x7c9   :  { %10214 = vmatmul.msk.f32.gmra.mxu2 %vm6271_vm6, %v7693_v35  ;;  %v7342_v35 = vld [vmem:[#allocation4 + $0xa6] sm:$0x3] }
 0x7ca   :  { %10346 = vmatmul.msk.f32.gmra.mxu1 %vm6271_vm6, %v7695_v40  ;;  %v7153_v40 = vld [vmem:[#allocation4 + $0x45] sm:$0xff] }
 0x7cb   :  { %10307 = vmatmul.msk.f32.gmra.mxu3 %vm6271_vm6, %v7338_v2  ;;  %v13545_v2 = vpop.f32.mrf.mxu3 }
 0x7cc   :  { %10327 = vmatmul.msk.f32.gmra.mxu0 %vm6271_vm6, %v7517_v7  ;;  %v13517_v56 = vpop.f32.mrf.mxu2  ;;  %v13547_v7 = vpop.f32.mrf.mxu0 }
 0x7cd   :  { %v6556_v32 = vadd.f32 %v13517_v56, %v13392_v49 }
 0x7d1   :  { %10215 = vmatmul.msk.f32.gmra.mxu2 %vm6271_vm6, %v7694_v47  ;;  %v7151_v47 = vld [vmem:[#allocation4 + $0x35] sm:$0xff] }
 0x7d2   :  { %10347 = vmatmul.msk.f32.gmra.mxu1 %vm6271_vm6, %v7696_v19 }
 0x7d3   :  { %10308 = vmatmul.msk.f32.gmra.mxu3 %vm6271_vm6, %v7339_v63  ;;  %v13552_v19 = vpop.f32.mrf.mxu3 }
 0x7d4   :  { %10328 = vmatmul.msk.f32.gmra.mxu0 %vm6271_vm6, %v7518_v21  ;;  %v13523_v8 = vpop.f32.mrf.mxu2  ;;  %v13554_v21 = vpop.f32.mrf.mxu0 }
 0x7d9   :  { %10216 = vmatmul.msk.f32.gmra.mxu2 %vm6271_vm6, %v6313_v15 }
 0x7da   :  { %10348 = vmatmul.msk.f32.gmra.mxu1 %vm6271_vm6, %v7697_v5 }
 0x7db   :  { %10309 = vmatmul.msk.f32.gmra.mxu3 %vm6271_vm6, %v7340_v45  ;;  %v13559_v5 = vpop.f32.mrf.mxu3  ;;  %v7156_v45 = vld [vmem:[#allocation4 + $0x5d] sm:$0xff] }
 0x7dc   :  { %10329 = vmatmul.msk.f32.gmra.mxu0 %vm6271_vm6, %v7519_v24  ;;  %v13529_v1 = vpop.f32.mrf.mxu2  ;;  %v13561_v33 = vpop.f32.mrf.mxu0 }
 0x7dd   :  { %v13564_v24 = vpop.f32.mrf.mxu1 }
 0x7e1   :  { %10274 = vmatmul.msk.f32.vlgmr.msra.gmra.mxu2 %vm6271_vm6, %v7146_v10 }
 0x7e2   :  { %10349 = vmatmul.msk.f32.gmra.mxu1 %vm6271_vm6, %v7698_v6 }
 0x7e3   :  { %10310 = vmatmul.msk.f32.gmra.mxu3 %vm6271_vm6, %v7341_v9  ;;  %v13566_v6 = vpop.f32.mrf.mxu3 }
 0x7e4   :  { %10330 = vmatmul.msk.f32.gmra.mxu0 %vm6271_vm6, %v7520_v55  ;;  %v13535_v42 = vpop.f32.mrf.mxu2  ;;  %v13569_v37 = vpop.f32.mrf.mxu0 }
 0x7e5   :  { %v13571_v9 = vpop.f32.mrf.mxu1 }
 0x7e9   :  { %10275 = vmatmul.msk.f32.gmra.mxu2 %vm6271_vm6, %v7147_v57 }
 0x7eb   :  { %10311 = vmatmul.msk.f32.gmra.mxu3 %vm6271_vm6, %v7342_v35  ;;  %v7426_v57 = vpop.f32.mrf.mxu3 }
 0x7ec   :  { %v6567_v11 = vpop.f32.mrf.mxu2  ;;  %v7604_v35 = vpop.f32.mrf.mxu0 }
 0x7ed   :  { %v7782_v11 = vpop.f32.mrf.mxu1 }
 0x7f1   :  { %10276 = vmatmul.msk.f32.gmra.mxu2 %vm6271_vm6, %v7148_v23  ;;  %v7159_v23 = vld [vmem:[#allocation4 + $0x75] sm:$0xff] }
 0x7f4   :  { %v6570_v58 = vpop.f32.mrf.mxu2 }
 0x7f5   :  { %v7429_v58 = vpop.f32.mrf.mxu3 }
 0x7f9   :  { %10277 = vmatmul.msk.f32.gmra.mxu2 %vm6271_vm6, %v7149_v39 }
 0x7fc   :  { %v6573_v61 = vpop.f32.mrf.mxu2 }
 0x7fd   :  { %v7607_v61 = vpop.f32.mrf.mxu0 }
 0x801   :  { %10278 = vmatmul.msk.f32.gmra.mxu2 %vm6271_vm6, %v7150_v48  ;;  %v7785_v48 = vpop.f32.mrf.mxu1 }
 0x804   :  { %v6576_v20 = vpop.f32.mrf.mxu2 }
 0x805   :  { %v7160_v20 = vld [vmem:[#allocation4 + $0x7d] sm:$0xff] }
 0x809   :  { %10279 = vmatmul.msk.f32.gmra.mxu2 %vm6271_vm6, %v7151_v47  ;;  %v7788_v13 = vpop.f32.mrf.mxu1 }
 0x80c   :  { %v6579_v14 = vpop.f32.mrf.mxu2 }
 0x80d   :  { %v7432_v14 = vpop.f32.mrf.mxu3 }
 0x811   :  { %10280 = vmatmul.msk.f32.gmra.mxu2 %vm6271_vm6, %v7152_v0  ;;  %v7610_v0 = vpop.f32.mrf.mxu0 }
 0x814   :  { %v6582_v16 = vpop.f32.mrf.mxu2 }
 0x815   :  { %v6771_v16 = vadd.f32 %v13439_v34, %v6556_v32  ;;  %v6562_v34 = vadd.f32 %v13529_v1, %v13412_v22 }
 0x819   :  { %10281 = vmatmul.msk.f32.gmra.mxu2 %vm6271_vm6, %v7153_v40 }
 0x81c   :  { %v6585_v12 = vpop.f32.mrf.mxu2 }
 0x81d   :  { %v6559_v12 = vadd.f32 %v13523_v8, %v13403_v25  ;;  %v7163_v8 = vld [vmem:[#allocation4 + $0x95] sm:$0xff] }
 0x81f   :  { %v6772_v49 = vadd.f32 %v13451_v59, %v6559_v12  ;;  %v6773_v59 = vadd.f32 %v13463_v52, %v6562_v34 }
 0x821   :  { %10282 = vmatmul.msk.f32.gmra.mxu2 %vm6271_vm6, %v7154_v44  ;;  %v6949_v44 = vadd.f32 %v13431_v54, %v6771_v16  ;;  %v6950_v25 = vadd.f32 %v13443_v26, %v6772_v49  ;;  %v6565_v26 = vadd.f32 %v13535_v42, %v13419_v60  ;;  %v6951_v12 = vadd.f32 %v13455_v30, %v6773_v59 }
 0x823   :  { %v7127_v56 = vadd.f32 %v13429_v27, %v6949_v44  ;;  %v7128_v27 = vadd.f32 %v13437_v43, %v6950_v25  ;;  %v7164_v44 = vld [vmem:[#allocation4 + $0x9d] sm:$0x3]  ;;  %v6774_v43 = vadd.f32 %v13471_v29, %v6565_v26 }
 0x824   :  { %v6588_v63 = vpop.f32.mrf.mxu2 }
 0x825   :  { %v7435_v63 = vpop.f32.mrf.mxu3  ;;  %v6952_v30 = vadd.f32 %v13465_v36, %v6774_v43 }
 0x829   :  { %10283 = vmatmul.msk.f32.gmra.mxu2 %vm6271_vm6, %v7155_v4  ;;  %v7162_v4 = vld [vmem:[#allocation4 + $0x8d] sm:$0xff] }
 0x82c   :  { %v6591_v15 = vpop.f32.mrf.mxu2 }
 0x82d   :  { %v7613_v15 = vpop.f32.mrf.mxu0 }
 0x831   :  { %10284 = vmatmul.msk.f32.gmra.mxu2 %vm6271_vm6, %v7156_v45  ;;  %v7791_v45 = vpop.f32.mrf.mxu1 }
 0x834   :  { %v6594_v10 = vpop.f32.mrf.mxu2 }
 0x835   :  { %v7616_v32 = vpop.f32.mrf.mxu0 }
 0x839   :  { %10285 = vmatmul.msk.f32.gmra.mxu2 %vm6271_vm6, %v7157_v18  ;;  %v7794_v1 = vpop.f32.mrf.mxu1 }
 0x83c   :  { %v6597_v55 = vpop.f32.mrf.mxu2 }
 0x83d   :  { %v7619_v60 = vpop.f32.mrf.mxu0 }
 0x841   :  { %10286 = vmatmul.msk.f32.gmra.mxu2 %vm6271_vm6, %v7158_v53  ;;  %v13597_v53 = vld [vmem:[#allocation19] ss:$0 sm:$0xff]  ;;  %v7797_v34 = vpop.f32.mrf.mxu1 }
 0x844   :  { %v13574_v41 = vpop.f32.mrf.mxu2 }
 0x845   :  { %v7622_v36 = vpop.f32.mrf.mxu0 }
 0x846   :  { %v8074_v36 = vld [vmem:[#allocation21 + $0x3a0] sm:$0xff] }
 0x849   :  { %10287 = vmatmul.msk.f32.gmra.mxu2 %vm6271_vm6, %v7159_v23  ;;  %v7438_v23 = vpop.f32.mrf.mxu3  ;;  %v7800_v32 = vpop.f32.mrf.mxu1 }
 0x84a   :  { %v8202_v32 = vld [vmem:[#allocation21 + $0x7a0] sm:$0xff] }
 0x84c   :  { %v13577_v39 = vpop.f32.mrf.mxu2 }
 0x851   :  { %10288 = vmatmul.msk.f32.gmra.mxu2 %vm6271_vm6, %v7160_v20  ;;  %v7441_v49 = vpop.f32.mrf.mxu3 }
 0x854   :  { %v13580_v47 = vpop.f32.mrf.mxu2 }
 0x859   :  { %10289 = vmatmul.msk.f32.gmra.mxu2 %vm6271_vm6, %v7161_v17  ;;  %v7444_v59 = vpop.f32.mrf.mxu3 }
 0x85c   :  { %v13586_v40 = vpop.f32.mrf.mxu2 }
 0x861   :  { %10290 = vmatmul.msk.f32.gmra.mxu2 %vm6271_vm6, %v7162_v4  ;;  %v7447_v26 = vpop.f32.mrf.mxu3 }
 0x864   :  { %v7248_v10 = vpop.f32.mrf.mxu2 }
 0x865   :  { %v7305_v18 = vadd.f32 %v7248_v10, %v7127_v56 }
 0x867   :  { %v7483_v55 = vadd.f32 %v7426_v57, %v7305_v18 }
 0x869   :  { %v7661_v54 = vadd.f32 %v7604_v35, %v7483_v55  ;;  %10291 = vmatmul.msk.f32.gmra.mxu2 %vm6271_vm6, %v7163_v8 }
 0x86b   :  { %v7839_v20 = vadd.f32 %v7782_v11, %v7661_v54  ;;  %v7129_v11 = vadd.f32 %v13449_v31, %v6951_v12  ;;  %v7130_v31 = vadd.f32 %v13461_v51, %v6952_v30 }
 0x86c   :  { %v7251_v17 = vpop.f32.mrf.mxu2 }
 0x86d   :  { %v7862_v16 = vadd.f32 %v13597_v53, %v7839_v20  ;;  %v7306_v22 = vadd.f32 %v7251_v17, %v7128_v27 }
 0x86f   :  { %v7881_v57 = vmax.f32 %v7862_v16, 0.0  ;;  %v7484_v35 = vadd.f32 %v7429_v58, %v7306_v22 }
 0x871   :  { %7900 = vst [vmem:[#allocation5] sm:$0xff] %v7881_v57  ;;  %v7662_v4 = vadd.f32 %v7607_v61, %v7484_v35  ;;  %10292 = vmatmul.msk.f32.gmra.mxu2 %vm6271_vm6, %v7164_v44  ;;  %v7450_v44 = vpop.f32.mrf.mxu3 }
 0x873   :  { %v7840_v52 = vadd.f32 %v7785_v48, %v7662_v4 }
 0x874   :  { %v7254_v56 = vpop.f32.mrf.mxu2 }
 0x875   :  { %v7863_v10 = vadd.f32 %v13597_v53, %v7840_v52  ;;  %v7307_v18 = vadd.f32 %v7254_v56, %v7129_v11 }
 0x877   :  { %v7882_v42 = vmax.f32 %v7863_v10, 0.0  ;;  %v7485_v58 = vadd.f32 %v7432_v14, %v7307_v18 }
 0x878   :  { %v7919_v55 = vld [vmem:[#allocation5] sm:$0x1]  ;;  %v7921_v61 = vld [vmem:[#allocation5 + $0x1] sm:$0x1]  ;;  %v7923_v25 = vld [vmem:[#allocation5 + $0x2] sm:$0x1] }
 0x879   :  { %7920 = vst [vmem:[#allocation6] sm:$0x1] %v7919_v55  ;;  %v7663_v8 = vadd.f32 %v7610_v0, %v7485_v58  ;;  %v7453_v11 = vpop.f32.mrf.mxu3  ;;  %v8018_v55 = vld [vmem:[#allocation21 + $0x1e0] sm:$0xff] }
 0x87a   :  { %7922 = vst [vmem:[#allocation6 + $0x2] sm:$0x1] %v7921_v61  ;;  %v8082_v61 = vld [vmem:[#allocation21 + $0x3e0] sm:$0xff]  ;;  %8569 = vmatpush.msrb.mxu2 %v8018_v55 }
 0x87b   :  { %7924 = vst [vmem:[#allocation6 + $0x4] sm:$0x1] %v7923_v25  ;;  %v7841_v29 = vadd.f32 %v7788_v13, %v7663_v8  ;;  %v8146_v25 = vld [vmem:[#allocation21 + $0x5e0] sm:$0xff]  ;;  %8589 = vmatpush.msra.mxu3 %v8082_v61 }
 0x87c   :  { %7901 = vst [vmem:[#allocation5 + $0x8] sm:$0xff] %v7882_v42  ;;  %v7257_v48 = vpop.f32.mrf.mxu2  ;;  %8609 = vmatpush.msrb.mxu0 %v8146_v25  ;;  %v7982_v55 = vld [vmem:[#allocation21 + $0xc0] sm:$0xff] }
 0x87d   :  { %v7864_v54 = vadd.f32 %v13597_v53, %v7841_v29  ;;  %v7308_v23 = vadd.f32 %v7257_v48, %v7130_v31  ;;  %v8210_v29 = vld [vmem:[#allocation21 + $0x7e0] sm:$0xff] }
 0x87e   :  { %8629 = vmatpush.msrb.mxu1 %v8210_v29  ;;  %v8014_v31 = vld [vmem:[#allocation21 + $0x1c0] sm:$0xff] }
 0x87f   :  { %v7883_v14 = vmax.f32 %v7864_v54, 0.0  ;;  %v7486_v20 = vadd.f32 %v7435_v63, %v7308_v23  ;;  %v7625_v63 = vpop.f32.mrf.mxu0  ;;  %v8078_v48 = vld [vmem:[#allocation21 + $0x3c0] sm:$0xff]  ;;  %8570 = vmatpush.msrb.mxu2 %v8014_v31 }
 0x880   :  { %v8142_v54 = vld [vmem:[#allocation21 + $0x5c0] sm:$0xff]  ;;  %8590 = vmatpush.msra.mxu3 %v8078_v48 }
 0x881   :  { %7902 = vst [vmem:[#allocation5 + $0x10] sm:$0xff] %v7883_v14  ;;  %v7664_v27 = vadd.f32 %v7613_v15, %v7486_v20  ;;  %v7803_v15 = vpop.f32.mrf.mxu1  ;;  %v7456_v60 = vpop.f32.mrf.mxu3  ;;  %v8206_v14 = vld [vmem:[#allocation21 + $0x7c0] sm:$0xff]  ;;  %8610 = vmatpush.msrb.mxu0 %v8142_v54 }
 0x882   :  { %8630 = vmatpush.msrb.mxu1 %v8206_v14  ;;  %v8010_v20 = vld [vmem:[#allocation21 + $0x1a0] sm:$0xff]  ;;  %8591 = vmatpush.msra.mxu3 %v8074_v36 }
 0x883   :  { %v7925_v17 = vld [vmem:[#allocation5 + $0xb] sm:$0x1]  ;;  %v7927_v16 = vld [vmem:[#allocation5 + $0xc] sm:$0x1]  ;;  %v7929_v0 = vld [vmem:[#allocation5 + $0xd] sm:$0x1]  ;;  %v7842_v22 = vadd.f32 %v7791_v45, %v7664_v27  ;;  %8571 = vmatpush.msrb.mxu2 %v8010_v20 }
 0x884   :  { %7926 = vst [vmem:[#allocation6 + $0x6] sm:$0x1] %v7925_v17  ;;  %v7260_v13 = vpop.f32.mrf.mxu2  ;;  %v8138_v27 = vld [vmem:[#allocation21 + $0x5a0] sm:$0xff]  ;;  %8631 = vmatpush.msrb.mxu1 %v8202_v32 }
 0x885   :  { %7928 = vst [vmem:[#allocation6 + $0x8] sm:$0x1] %v7927_v16  ;;  %v7865_v51 = vadd.f32 %v13597_v53, %v7842_v22  ;;  %8611 = vmatpush.msrb.mxu0 %v8138_v27  ;;  %v8006_v17 = vld [vmem:[#allocation21 + $0x180] sm:$0xff] }
 0x886   :  { %7930 = vst [vmem:[#allocation6 + $0xa] sm:$0x1] %v7929_v0  ;;  %v8070_v16 = vld [vmem:[#allocation21 + $0x380] sm:$0xff]  ;;  %8572 = vmatpush.msrb.mxu2 %v8006_v17 }
 0x887   :  { %v7884_v1 = vmax.f32 %v7865_v51, 0.0  ;;  %v7628_v45 = vpop.f32.mrf.mxu0  ;;  %v8134_v0 = vld [vmem:[#allocation21 + $0x580] sm:$0xff]  ;;  %8592 = vmatpush.msra.mxu3 %v8070_v16 }
 0x888   :  { %v7931_v57 = vld [vmem:[#allocation5 + $0x16] sm:$0x1]  ;;  %v7933_v35 = vld [vmem:[#allocation5 + $0x17] sm:$0x1]  ;;  %v8198_v22 = vld [vmem:[#allocation21 + $0x780] sm:$0xff]  ;;  %8612 = vmatpush.msrb.mxu0 %v8134_v0 }
 0x889   :  { %7932 = vst [vmem:[#allocation6 + $0xc] sm:$0x1] %v7931_v57  ;;  %v7806_v52 = vpop.f32.mrf.mxu1  ;;  %v7459_v34 = vpop.f32.mrf.mxu3  ;;  %8632 = vmatpush.msrb.mxu1 %v8198_v22  ;;  %v8002_v13 = vld [vmem:[#allocation21 + $0x160] sm:$0xff] }
 0x88a   :  { %7934 = vst [vmem:[#allocation6 + $0xe] sm:$0x1] %v7933_v35  ;;  %v8066_v51 = vld [vmem:[#allocation21 + $0x360] sm:$0xff]  ;;  %8573 = vmatpush.msrb.mxu2 %v8002_v13 }
 0x88b   :  { %7903 = vst [vmem:[#allocation5 + $0x18] sm:$0xff] %v7884_v1  ;;  %v8130_v1 = vld [vmem:[#allocation21 + $0x560] sm:$0xff]  ;;  %8593 = vmatpush.msra.mxu3 %v8066_v51 }
 0x88c   :  { %v7263_v12 = vpop.f32.mrf.mxu2  ;;  %v8194_v57 = vld [vmem:[#allocation21 + $0x760] sm:$0xff]  ;;  %8613 = vmatpush.msrb.mxu0 %v8130_v1 }
 0x88d   :  { %8633 = vmatpush.msrb.mxu1 %v8194_v57  ;;  %v7998_v35 = vld [vmem:[#allocation21 + $0x140] sm:$0xff] }
 0x88e   :  { %v8062_v63 = vld [vmem:[#allocation21 + $0x340] sm:$0xff]  ;;  %8574 = vmatpush.msrb.mxu2 %v7998_v35 }
 0x88f   :  { %v7631_v56 = vpop.f32.mrf.mxu0  ;;  %v8126_v15 = vld [vmem:[#allocation21 + $0x540] sm:$0xff]  ;;  %8594 = vmatpush.msra.mxu3 %v8062_v63 }
 0x890   :  { %8614 = vmatpush.msrb.mxu0 %v8126_v15  ;;  %v7994_v45 = vld [vmem:[#allocation21 + $0x120] sm:$0xff] }
 0x891   :  { %v7809_v10 = vpop.f32.mrf.mxu1  ;;  %v7462_v26 = vpop.f32.mrf.mxu3  ;;  %v8122_v52 = vld [vmem:[#allocation21 + $0x520] sm:$0xff]  ;;  %8575 = vmatpush.msrb.mxu2 %v7994_v45  ;;  %v6601_v45 = vadd.f32 %v13574_v41, %v13493_v28 }
 0x892   :  { %v7935_v4 = vld [vmem:[#allocation5 + $0x18] sm:$0x1]  ;;  %8615 = vmatpush.msrb.mxu0 %v8122_v52  ;;  %v7990_v56 = vld [vmem:[#allocation21 + $0x100] sm:$0xff] }
 0x893   :  { %7936 = vst [vmem:[#allocation6 + $0x10] sm:$0x1] %v7935_v4  ;;  %v8190_v4 = vld [vmem:[#allocation21 + $0x740] sm:$0xff]  ;;  %8576 = vmatpush.msrb.mxu2 %v7990_v56 }
 0x894   :  { %v7266_v43 = vpop.f32.mrf.mxu2  ;;  %8634 = vmatpush.msrb.mxu1 %v8190_v4  ;;  %v8054_v10 = vld [vmem:[#allocation21 + $0x300] sm:$0xff] }
 0x895   :  { %v8058_v43 = vld [vmem:[#allocation21 + $0x320] sm:$0xff] }
 0x896   :  { %8595 = vmatpush.msra.mxu3 %v8058_v43  ;;  %v8182_v60 = vld [vmem:[#allocation21 + $0x700] sm:$0xff] }
 0x897   :  { %v7634_v42 = vpop.f32.mrf.mxu0  ;;  %v8178_v34 = vld [vmem:[#allocation21 + $0x6e0] sm:$0xff] }
 0x898   :  { %8596 = vmatpush.msra.mxu3 %v8054_v10  ;;  %v7986_v42 = vld [vmem:[#allocation21 + $0xe0] sm:$0xff] }
 0x899   :  { %v7812_v58 = vpop.f32.mrf.mxu1  ;;  %8577 = vmatpush.msrb.mxu2 %v7986_v42  ;;  %v8046_v61 = vld [vmem:[#allocation21 + $0x2c0] sm:$0xff] }
 0x89a   :  { %v8050_v58 = vld [vmem:[#allocation21 + $0x2e0] sm:$0xff] }
 0x89b   :  { %8597 = vmatpush.msra.mxu3 %v8050_v58  ;;  %v8110_v25 = vld [vmem:[#allocation21 + $0x4c0] sm:$0xff]  ;;  %8578 = vmatpush.msrb.mxu2 %v7982_v55 }
 0x89c   :  { %v7269_v49 = vpop.f32.mrf.mxu2  ;;  %v8174_v31 = vld [vmem:[#allocation21 + $0x6c0] sm:$0xff] }
 0x89d   :  { %v8186_v49 = vld [vmem:[#allocation21 + $0x720] sm:$0xff]  ;;  %8598 = vmatpush.msra.mxu3 %v8046_v61 }
 0x89e   :  { %8635 = vmatpush.msrb.mxu1 %v8186_v49  ;;  %v7978_v48 = vld [vmem:[#allocation21 + $0xa0] sm:$0xff] }
 0x89f   :  { %v7637_v8 = vpop.f32.mrf.mxu0  ;;  %v8042_v54 = vld [vmem:[#allocation21 + $0x2a0] sm:$0xff]  ;;  %8579 = vmatpush.msrb.mxu2 %v7978_v48 }
 0x8a0   :  { %8636 = vmatpush.msrb.mxu1 %v8182_v60  ;;  %v7465_v8 = vpop.f32.mrf.mxu3  ;;  %8599 = vmatpush.msra.mxu3 %v8042_v54  ;;  %v8170_v14 = vld [vmem:[#allocation21 + $0x6a0] sm:$0xff] }
 0x8a1   :  { %v7815_v23 = vpop.f32.mrf.mxu1  ;;  %v7974_v20 = vld [vmem:[#allocation21 + $0x80] sm:$0xff] }
 0x8a2   :  { %8637 = vmatpush.msrb.mxu1 %v8178_v34  ;;  %v8106_v23 = vld [vmem:[#allocation21 + $0x4a0] sm:$0xff]  ;;  %8580 = vmatpush.msrb.mxu2 %v7974_v20  ;;  %v6786_v34 = vadd.f32 %v13545_v2, %v6601_v45  ;;  %v6604_v2 = vadd.f32 %v13577_v39, %v13499_v50 }
 0x8a3   :  { %v8038_v36 = vld [vmem:[#allocation21 + $0x280] sm:$0xff] }
 0x8a4   :  { %v7272_v18 = vpop.f32.mrf.mxu2  ;;  %8638 = vmatpush.msrb.mxu1 %v8174_v31  ;;  %v8102_v27 = vld [vmem:[#allocation21 + $0x480] sm:$0xff]  ;;  %8600 = vmatpush.msra.mxu3 %v8038_v36 }
 0x8a5   :  { %v8118_v18 = vld [vmem:[#allocation21 + $0x500] sm:$0xff] }
 0x8a6   :  { %8616 = vmatpush.msrb.mxu0 %v8118_v18  ;;  %8639 = vmatpush.msrb.mxu1 %v8170_v14  ;;  %v8166_v17 = vld [vmem:[#allocation21 + $0x680] sm:$0xff] }
 0x8a7   :  { %v7640_v12 = vpop.f32.mrf.mxu0  ;;  %v7970_v16 = vld [vmem:[#allocation21 + $0x60] sm:$0xff] }
 0x8a8   :  { %8640 = vmatpush.msrb.mxu1 %v8166_v17  ;;  %v8034_v0 = vld [vmem:[#allocation21 + $0x260] sm:$0xff]  ;;  %8581 = vmatpush.msrb.mxu2 %v7970_v16 }
 0x8a9   :  { %v7818_v11 = vpop.f32.mrf.mxu1  ;;  %v8098_v22 = vld [vmem:[#allocation21 + $0x460] sm:$0xff]  ;;  %8601 = vmatpush.msra.mxu3 %v8034_v0 }
 0x8aa   :  { %v8162_v13 = vld [vmem:[#allocation21 + $0x660] sm:$0xff] }
 0x8ab   :  { %8641 = vmatpush.msrb.mxu1 %v8162_v13  ;;  %v7966_v51 = vld [vmem:[#allocation21 + $0x40] sm:$0xff] }
 0x8ac   :  { %v7275_v30 = vpop.f32.mrf.mxu2  ;;  %v8030_v1 = vld [vmem:[#allocation21 + $0x240] sm:$0xff]  ;;  %8582 = vmatpush.msrb.mxu2 %v7966_v51 }
 0x8ad   :  { %v8114_v30 = vld [vmem:[#allocation21 + $0x4e0] sm:$0xff]  ;;  %8602 = vmatpush.msra.mxu3 %v8030_v1 }
 0x8ae   :  { %8617 = vmatpush.msrb.mxu0 %v8114_v30  ;;  %v8094_v26 = vld [vmem:[#allocation21 + $0x440] sm:$0xff] }
 0x8af   :  { %v8158_v35 = vld [vmem:[#allocation21 + $0x640] sm:$0xff] }
 0x8b0   :  { %8618 = vmatpush.msrb.mxu0 %v8110_v25  ;;  %8642 = vmatpush.msrb.mxu1 %v8158_v35  ;;  %v7962_v63 = vld [vmem:[#allocation21 + $0x20] sm:$0xff] }
 0x8b1   :  { %v7821_v32 = vpop.f32.mrf.mxu1  ;;  %v8026_v15 = vld [vmem:[#allocation21 + $0x220] sm:$0xff]  ;;  %8583 = vmatpush.msrb.mxu2 %v7962_v63 }
 0x8b2   :  { %8619 = vmatpush.msrb.mxu0 %v8106_v23  ;;  %v8090_v12 = vld [vmem:[#allocation21 + $0x420] sm:$0xff]  ;;  %8603 = vmatpush.msra.mxu3 %v8026_v15 }
 0x8b3   :  { %v8154_v4 = vld [vmem:[#allocation21 + $0x620] sm:$0xff] }
 0x8b4   :  { %v7278_v59 = vpop.f32.mrf.mxu2  ;;  %8620 = vmatpush.msrb.mxu0 %v8102_v27  ;;  %8643 = vmatpush.msrb.mxu1 %v8154_v4  ;;  %v7958_v43 = vld [vmem:[#allocation21] sm:$0xff] }
 0x8b5   :  { %v7643_v59 = vpop.f32.mrf.mxu0  ;;  %v8022_v52 = vld [vmem:[#allocation21 + $0x200] sm:$0xff]  ;;  %8584 = vmatpush.msrb.mxu2 %v7958_v43 }
 0x8b6   :  { %8621 = vmatpush.msrb.mxu0 %v8098_v22  ;;  %v8086_v11 = vld [vmem:[#allocation21 + $0x400] sm:$0xff]  ;;  %8604 = vmatpush.msra.mxu3 %v8022_v52  ;;  %v6964_v59 = vadd.f32 %v13547_v7, %v6786_v34  ;;  %v6787_v7 = vadd.f32 %v13552_v19, %v6604_v2 }
 0x8b7   :  { %v8150_v56 = vld [vmem:[#allocation21 + $0x600] sm:$0xff] }
 0x8b8   :  { %8622 = vmatpush.msrb.mxu0 %v8094_v26  ;;  %v8274_v10 = vld [vmem:[#allocation21 + $0x9e0] sm:$0xff]  ;;  %8644 = vmatpush.msrb.mxu1 %v8150_v56  ;;  %v7142_v39 = vadd.f32 %v13549_v3, %v6964_v59  ;;  %v6607_v3 = vadd.f32 %v13580_v47, %v13505_v46  ;;  %v6965_v45 = vadd.f32 %v13554_v21, %v6787_v7 }
 0x8b9   :  { %v8338_v18 = vld [vmem:[#allocation21 + $0xbe0] sm:$0xff]  ;;  %v7824_v58 = vpop.f32.mrf.mxu1  ;;  %8649 = vmatpush.msra.mxu2 %v8274_v10 }
 0x8ba   :  { %8623 = vmatpush.msrb.mxu0 %v8090_v12  ;;  %v8402_v60 = vld [vmem:[#allocation21 + $0xde0] sm:$0xff]  ;;  %8669 = vmatpush.msrb.mxu3 %v8338_v18  ;;  %v6788_v21 = vadd.f32 %v13559_v5, %v6607_v3  ;;  %v7143_v58 = vadd.f32 %v13556_v62, %v6965_v45 }
 0x8bb   :  { %v8466_v42 = vld [vmem:[#allocation21 + $0xfe0] sm:$0xff] }
 0x8bc   :  { %v7281_v44 = vpop.f32.mrf.mxu2  ;;  %8624 = vmatpush.msrb.mxu0 %v8086_v11  ;;  %v8270_v30 = vld [vmem:[#allocation21 + $0x9c0] sm:$0xff]  ;;  %8709 = vmatpush.msra.mxu1 %v8466_v42  ;;  %v6966_v59 = vadd.f32 %v13561_v33, %v6788_v21 }
 0x8bd   :  { %v7468_v44 = vpop.f32.mrf.mxu3  ;;  %v7646_v49 = vpop.f32.mrf.mxu0  ;;  %v8334_v28 = vld [vmem:[#allocation21 + $0xbc0] sm:$0xff]  ;;  %8650 = vmatpush.msra.mxu2 %v8270_v30 }
 0x8be   :  { %v8398_v41 = vld [vmem:[#allocation21 + $0xdc0] sm:$0xff]  ;;  %8689 = vmatpush.msra.mxu0 %v8402_v60  ;;  %8670 = vmatpush.msrb.mxu3 %v8334_v28 }
 0x8bf   :  { %v8462_v55 = vld [vmem:[#allocation21 + $0xfc0] sm:$0xff] }
 0x8c0   :  { %v8266_v25 = vld [vmem:[#allocation21 + $0x9a0] sm:$0xff]  ;;  %8690 = vmatpush.msra.mxu0 %v8398_v41  ;;  %8710 = vmatpush.msra.mxu1 %v8462_v55 }
 0x8c1   :  { %v8330_v8 = vld [vmem:[#allocation21 + $0xba0] sm:$0xff]  ;;  %8651 = vmatpush.msra.mxu2 %v8266_v25  ;;  %v7827_v51 = vpop.f32.mrf.mxu1 }
 0x8c2   :  { %v8458_v31 = vld [vmem:[#allocation21 + $0xfa0] sm:$0xff]  ;;  %8671 = vmatpush.msrb.mxu3 %v8330_v8 }
 0x8c3   :  { %v8262_v48 = vld [vmem:[#allocation21 + $0x980] sm:$0xff]  ;;  %8711 = vmatpush.msra.mxu1 %v8458_v31 }
 0x8c4   :  { %v7284_v29 = vpop.f32.mrf.mxu2  ;;  %v8326_v54 = vld [vmem:[#allocation21 + $0xb80] sm:$0xff]  ;;  %8652 = vmatpush.msra.mxu2 %v8262_v48 }
 0x8c5   :  { %v8394_v29 = vld [vmem:[#allocation21 + $0xda0] sm:$0xff]  ;;  %v7471_v20 = vpop.f32.mrf.mxu3  ;;  %8672 = vmatpush.msrb.mxu3 %v8326_v54  ;;  %v7649_v16 = vpop.f32.mrf.mxu0  ;;  %v6610_v54 = vadd.f32 %v13586_v40, %v13511_v38 }
 0x8c6   :  { %v8390_v23 = vld [vmem:[#allocation21 + $0xd80] sm:$0xff]  ;;  %8691 = vmatpush.msra.mxu0 %v8394_v29 }
 0x8c7   :  { %v8454_v14 = vld [vmem:[#allocation21 + $0xf80] sm:$0xff]  ;;  %v6789_v33 = vadd.f32 %v13566_v6, %v6610_v54 }
 0x8c8   :  { %v8258_v36 = vld [vmem:[#allocation21 + $0x960] sm:$0xff]  ;;  %8692 = vmatpush.msra.mxu0 %v8390_v23  ;;  %8712 = vmatpush.msra.mxu1 %v8454_v14 }
 0x8c9   :  { %v8322_v27 = vld [vmem:[#allocation21 + $0xb60] sm:$0xff]  ;;  %8653 = vmatpush.msra.mxu2 %v8258_v36  ;;  %v7830_v5 = vpop.f32.mrf.mxu1  ;;  %v6967_v3 = vadd.f32 %v13569_v37, %v6789_v33  ;;  %v10373_v37 = vld [vmem:[#allocation19] ss:$0 sm:$0xff] }
 0x8ca   :  { %v8386_v32 = vld [vmem:[#allocation21 + $0xd60] sm:$0xff]  ;;  %8673 = vmatpush.msrb.mxu3 %v8322_v27 }
 0x8cb   :  { %v8450_v17 = vld [vmem:[#allocation21 + $0xf60] sm:$0xff]  ;;  %8693 = vmatpush.msra.mxu0 %v8386_v32 }
 0x8cc   :  { %v7287_v57 = vpop.f32.mrf.mxu2  ;;  %v8254_v0 = vld [vmem:[#allocation21 + $0x940] sm:$0xff]  ;;  %8713 = vmatpush.msra.mxu1 %v8450_v17 }
 0x8cd   :  { %v8318_v22 = vld [vmem:[#allocation21 + $0xb40] sm:$0xff]  ;;  %8654 = vmatpush.msra.mxu2 %v8254_v0  ;;  %v7474_v18 = vpop.f32.mrf.mxu3  ;;  %v7652_v28 = vpop.f32.mrf.mxu0 }
 0x8ce   :  { %v8382_v50 = vld [vmem:[#allocation21 + $0xd40] sm:$0xff]  ;;  %8674 = vmatpush.msrb.mxu3 %v8318_v22  ;;  %v7144_v22 = vadd.f32 %v13564_v24, %v6966_v59  ;;  %v8147_v59 = vld [vmem:[#allocation21 + $0x5e8] sm:$0xff] }
 0x8cf   :  { %v8446_v13 = vld [vmem:[#allocation21 + $0xf40] sm:$0xff]  ;;  %8694 = vmatpush.msra.mxu0 %v8382_v50 }
 0x8d0   :  { %v8250_v26 = vld [vmem:[#allocation21 + $0x920] sm:$0xff]  ;;  %8714 = vmatpush.msra.mxu1 %v8446_v13 }
 0x8d1   :  { %v8314_v57 = vld [vmem:[#allocation21 + $0xb20] sm:$0xff]  ;;  %8655 = vmatpush.msra.mxu2 %v8250_v26 }
 0x8d2   :  { %v8378_v35 = vld [vmem:[#allocation21 + $0xd20] sm:$0xff]  ;;  %8675 = vmatpush.msrb.mxu3 %v8314_v57 }
 0x8d3   :  { %v8442_v15 = vld [vmem:[#allocation21 + $0xf20] sm:$0xff]  ;;  %8695 = vmatpush.msra.mxu0 %v8378_v35 }
 0x8d4   :  { %v7290_v61 = vpop.f32.mrf.mxu2  ;;  %v8246_v12 = vld [vmem:[#allocation21 + $0x900] sm:$0xff]  ;;  %8715 = vmatpush.msra.mxu1 %v8442_v15 }
 0x8d5   :  { %v8310_v19 = vld [vmem:[#allocation21 + $0xb00] sm:$0xff]  ;;  %8656 = vmatpush.msra.mxu2 %v8246_v12  ;;  %v7477_v13 = vpop.f32.mrf.mxu3  ;;  %v7655_v15 = vpop.f32.mrf.mxu0 }
 0x8d6   :  { %v8374_v44 = vld [vmem:[#allocation21 + $0xd00] sm:$0xff]  ;;  %8676 = vmatpush.msrb.mxu3 %v8310_v19 }
 0x8d7   :  { %v8438_v43 = vld [vmem:[#allocation21 + $0xf00] sm:$0xff]  ;;  %8696 = vmatpush.msra.mxu0 %v8374_v44 }
 0x8d8   :  { %v8242_v52 = vld [vmem:[#allocation21 + $0x8e0] sm:$0xff]  ;;  %8716 = vmatpush.msra.mxu1 %v8438_v43 }
 0x8d9   :  { %v8306_v11 = vld [vmem:[#allocation21 + $0xae0] sm:$0xff]  ;;  %8657 = vmatpush.msra.mxu2 %v8242_v52 }
 0x8da   :  { %v8370_v49 = vld [vmem:[#allocation21 + $0xce0] sm:$0xff]  ;;  %8677 = vmatpush.msrb.mxu3 %v8306_v11 }
 0x8db   :  { %v8434_v10 = vld [vmem:[#allocation21 + $0xee0] sm:$0xff]  ;;  %8697 = vmatpush.msra.mxu0 %v8370_v49  ;;  %v7145_v49 = vadd.f32 %v13571_v9, %v6967_v3  ;;  %v8055_v3 = vld [vmem:[#allocation21 + $0x308] sm:$0xff] }
 0x8dc   :  { %v7293_v1 = vpop.f32.mrf.mxu2  ;;  %v8238_v60 = vld [vmem:[#allocation21 + $0x8c0] sm:$0xff]  ;;  %8717 = vmatpush.msra.mxu1 %v8434_v10 }
 0x8dd   :  { %v7320_v63 = vadd.f32 %v7293_v1, %v7142_v39  ;;  %v8302_v46 = vld [vmem:[#allocation21 + $0xac0] sm:$0xff]  ;;  %8658 = vmatpush.msra.mxu2 %v8238_v60  ;;  %v7480_v60 = vpop.f32.mrf.mxu3  ;;  %v7658_v21 = vpop.f32.mrf.mxu0 }
 0x8de   :  { %v8366_v47 = vld [vmem:[#allocation21 + $0xcc0] sm:$0xff]  ;;  %8678 = vmatpush.msrb.mxu3 %v8302_v46 }
 0x8df   :  { %v7498_v4 = vadd.f32 %v7471_v20, %v7320_v63  ;;  %v8430_v30 = vld [vmem:[#allocation21 + $0xec0] sm:$0xff]  ;;  %8698 = vmatpush.msra.mxu0 %v8366_v47 }
 0x8e0   :  { %v8234_v34 = vld [vmem:[#allocation21 + $0x8a0] sm:$0xff]  ;;  %8718 = vmatpush.msra.mxu1 %v8430_v30 }
 0x8e1   :  { %v7676_v56 = vadd.f32 %v7649_v16, %v7498_v4  ;;  %v8298_v55 = vld [vmem:[#allocation21 + $0xaa0] sm:$0xff]  ;;  %8659 = vmatpush.msra.mxu2 %v8234_v34  ;;  %v7833_v4 = vpop.f32.mrf.mxu1 }
 0x8e2   :  { %v8362_v61 = vld [vmem:[#allocation21 + $0xca0] sm:$0xff]  ;;  %8679 = vmatpush.msrb.mxu3 %v8298_v55 }
 0x8e3   :  { %v7854_v42 = vadd.f32 %v7827_v51, %v7676_v56  ;;  %v8426_v29 = vld [vmem:[#allocation21 + $0xea0] sm:$0xff]  ;;  %8699 = vmatpush.msra.mxu0 %v8362_v61 }
 0x8e4   :  { %v7296_v41 = vpop.f32.mrf.mxu2  ;;  %v8230_v62 = vld [vmem:[#allocation21 + $0x880] sm:$0xff]  ;;  %8719 = vmatpush.msra.mxu1 %v8426_v29 }
 0x8e5   :  { %v7877_v25 = vadd.f32 %v13597_v53, %v7854_v42  ;;  %v7321_v8 = vadd.f32 %v7296_v41, %v7143_v58  ;;  %v8294_v31 = vld [vmem:[#allocation21 + $0xa80] sm:$0xff]  ;;  %8660 = vmatpush.msra.mxu2 %v8230_v62  ;;  %v8019_v62 = vld [vmem:[#allocation21 + $0x1e8] sm:$0xff] }
 0x8e6   :  { %v8358_v48 = vld [vmem:[#allocation21 + $0xc80] sm:$0xff]  ;;  %8680 = vmatpush.msrb.mxu3 %v8294_v31 }
 0x8e7   :  { %v7896_v23 = vmax.f32 %v7877_v25, 0.0  ;;  %v7499_v2 = vadd.f32 %v7474_v18, %v7321_v8  ;;  %v8422_v14 = vld [vmem:[#allocation21 + $0xe80] sm:$0xff]  ;;  %8700 = vmatpush.msra.mxu0 %v8358_v48  ;;  %v8083_v48 = vld [vmem:[#allocation21 + $0x3e8] sm:$0xff] }
 0x8e8   :  { %v8226_v20 = vld [vmem:[#allocation21 + $0x860] sm:$0xff]  ;;  %8720 = vmatpush.msra.mxu1 %v8422_v14 }
 0x8e9   :  { %v8290_v36 = vld [vmem:[#allocation21 + $0xa60] sm:$0xff]  ;;  %7915 = vst [vmem:[#allocation5 + $0x78] sm:$0xff] %v7896_v23  ;;  %v7677_v32 = vadd.f32 %v7652_v28, %v7499_v2  ;;  %8661 = vmatpush.msra.mxu2 %v8226_v20  ;;  %v7836_v58 = vpop.f32.mrf.mxu1  ;;  %v8015_v20 = vld [vmem:[#allocation21 + $0x1c8] sm:$0xff] }
 0x8ea   :  { %v8354_v27 = vld [vmem:[#allocation21 + $0xc60] sm:$0xff]  ;;  %8681 = vmatpush.msrb.mxu3 %v8290_v36  ;;  %v8079_v36 = vld [vmem:[#allocation21 + $0x3c8] sm:$0xff] }
 0x8eb   :  { %v8418_v17 = vld [vmem:[#allocation21 + $0xe60] sm:$0xff]  ;;  %v7855_v0 = vadd.f32 %v7830_v5, %v7677_v32  ;;  %8701 = vmatpush.msra.mxu0 %v8354_v27  ;;  %v8143_v27 = vld [vmem:[#allocation21 + $0x5c8] sm:$0xff] }
 0x8ec   :  { %v8222_v38 = vld [vmem:[#allocation21 + $0x840] sm:$0xff]  ;;  %8721 = vmatpush.msra.mxu1 %v8418_v17  ;;  %v7299_v51 = vpop.f32.mrf.mxu2  ;;  %v8011_v17 = vld [vmem:[#allocation21 + $0x1a8] sm:$0xff] }
 0x8ed   :  { %v8286_v40 = vld [vmem:[#allocation21 + $0xa40] sm:$0xff]  ;;  %8662 = vmatpush.msra.mxu2 %v8222_v38  ;;  %v7878_v57 = vadd.f32 %v13597_v53, %v7855_v0  ;;  %v7322_v35 = vadd.f32 %v7299_v51, %v7144_v22  ;;  %v8075_v38 = vld [vmem:[#allocation21 + $0x3a8] sm:$0xff] }
 0x8ee   :  { %v8350_v16 = vld [vmem:[#allocation21 + $0xc40] sm:$0xff]  ;;  %8682 = vmatpush.msrb.mxu3 %v8286_v40  ;;  %v8139_v40 = vld [vmem:[#allocation21 + $0x5a8] sm:$0xff] }
 0x8ef   :  { %v8414_v50 = vld [vmem:[#allocation21 + $0xe40] sm:$0xff]  ;;  %8702 = vmatpush.msra.mxu0 %v8350_v16  ;;  %v7897_v19 = vmax.f32 %v7878_v57, 0.0  ;;  %v7500_v44 = vadd.f32 %v7477_v13, %v7322_v35  ;;  %v8007_v22 = vld [vmem:[#allocation21 + $0x188] sm:$0xff] }
 0x8f0   :  { %v8218_v7 = vld [vmem:[#allocation21 + $0x820] sm:$0xff]  ;;  %8722 = vmatpush.msra.mxu1 %v8414_v50  ;;  %v7937_v45 = vld [vmem:[#allocation5 + $0x79] sm:$0x1]  ;;  %v7939_v43 = vld [vmem:[#allocation5 + $0x7a] sm:$0x1] }
 0x8f1   :  { %v8282_v39 = vld [vmem:[#allocation21 + $0xa20] sm:$0xff]  ;;  %8663 = vmatpush.msra.mxu2 %v8218_v7  ;;  %v7941_v53 = vld [vmem:[#allocation5 + $0x7b] sm:$0x1]  ;;  %7938 = vst [vmem:[#allocation6 + $0x1] sm:$0x1] %v7937_v45  ;;  %v7678_v52 = vadd.f32 %v7655_v15, %v7500_v44  ;;  %v8071_v50 = vld [vmem:[#allocation21 + $0x388] sm:$0xff] }
 0x8f2   :  { %v8346_v1 = vld [vmem:[#allocation21 + $0xc20] sm:$0xff]  ;;  %8683 = vmatpush.msrb.mxu3 %v8282_v39  ;;  %7940 = vst [vmem:[#allocation6 + $0x3] sm:$0x1] %v7939_v43  ;;  %v8135_v7 = vld [vmem:[#allocation21 + $0x588] sm:$0xff] }
 0x8f3   :  { %v8410_v26 = vld [vmem:[#allocation21 + $0xe20] sm:$0xff]  ;;  %8703 = vmatpush.msra.mxu0 %v8346_v1  ;;  %7942 = vst [vmem:[#allocation6 + $0x5] sm:$0x1] %v7941_v53  ;;  %v7856_v11 = vadd.f32 %v7833_v4, %v7678_v52  ;;  %v8003_v13 = vld [vmem:[#allocation21 + $0x168] sm:$0xff] }
 0x8f4   :  { %v8214_v6 = vld [vmem:[#allocation21 + $0x800] sm:$0xff]  ;;  %8723 = vmatpush.msra.mxu1 %v8410_v26  ;;  %7916 = vst [vmem:[#allocation5 + $0x80] sm:$0xff] %v7897_v19  ;;  %v7302_v56 = vpop.f32.mrf.mxu2  ;;  %v8067_v51 = vld [vmem:[#allocation21 + $0x368] sm:$0xff] }
 0x8f5   :  { %v8278_v63 = vld [vmem:[#allocation21 + $0xa00] sm:$0xff]  ;;  %8664 = vmatpush.msra.mxu2 %v8214_v6  ;;  %v7879_v10 = vadd.f32 %v10373_v37, %v7856_v11  ;;  %v7323_v18 = vadd.f32 %v7302_v56, %v7145_v49  ;;  %v8131_v1 = vld [vmem:[#allocation21 + $0x568] sm:$0xff] }
 0x8f6   :  { %v8342_v24 = vld [vmem:[#allocation21 + $0xc00] sm:$0xff]  ;;  %8684 = vmatpush.msrb.mxu3 %v8278_v63  ;;  %v7999_v57 = vld [vmem:[#allocation21 + $0x148] sm:$0xff] }
 0x8f7   :  { %v8406_v12 = vld [vmem:[#allocation21 + $0xe00] sm:$0xff]  ;;  %8704 = vmatpush.msra.mxu0 %v8342_v24  ;;  %v7898_v46 = vmax.f32 %v7879_v10, 0.0  ;;  %v7501_v47 = vadd.f32 %v7480_v60, %v7323_v18  ;;  %v8063_v35 = vld [vmem:[#allocation21 + $0x348] sm:$0xff] }
 0x8f8   :  { %8724 = vmatpush.msra.mxu1 %v8406_v12  ;;  %v8530_v5 = vld [vmem:[#allocation21 + $0x11e0] sm:$0xff]  ;;  %v8127_v6 = vld [vmem:[#allocation21 + $0x548] sm:$0xff] }
 0x8f9   :  { %7917 = vst [vmem:[#allocation5 + $0x88] sm:$0xff] %v7898_v46  ;;  %v7679_v42 = vadd.f32 %v7658_v21, %v7501_v47  ;;  %v8526_v14 = vld [vmem:[#allocation21 + $0x11c0] sm:$0xff]  ;;  %v7995_v15 = vld [vmem:[#allocation21 + $0x128] sm:$0xff] }
 0x8fa   :  { %v8522_v32 = vld [vmem:[#allocation21 + $0x11a0] sm:$0xff]  ;;  %v8059_v24 = vld [vmem:[#allocation21 + $0x328] sm:$0xff] }
 0x8fb   :  { %v7943_v30 = vld [vmem:[#allocation5 + $0x84] sm:$0x1]  ;;  %v7945_v28 = vld [vmem:[#allocation5 + $0x85] sm:$0x1]  ;;  %v7947_v41 = vld [vmem:[#allocation5 + $0x86] sm:$0x1]  ;;  %v7857_v34 = vadd.f32 %v7836_v58, %v7679_v42 }
 0x8fc   :  { %7944 = vst [vmem:[#allocation6 + $0x7] sm:$0x1] %v7943_v30  ;;  %v8518_v16 = vld [vmem:[#allocation21 + $0x1180] sm:$0xff]  ;;  %v8123_v12 = vld [vmem:[#allocation21 + $0x528] sm:$0xff] }
 0x8fd   :  { %7946 = vst [vmem:[#allocation6 + $0x9] sm:$0x1] %v7945_v28  ;;  %v7880_v55 = vadd.f32 %v10373_v37, %v7857_v34  ;;  %v8514_v39 = vld [vmem:[#allocation21 + $0x1160] sm:$0xff]  ;;  %v7991_v44 = vld [vmem:[#allocation21 + $0x108] sm:$0xff] }
 0x8fe   :  { %7948 = vst [vmem:[#allocation6 + $0xb] sm:$0x1] %v7947_v41  ;;  %v8510_v26 = vld [vmem:[#allocation21 + $0x1140] sm:$0xff]  ;;  %v8119_v4 = vld [vmem:[#allocation21 + $0x508] sm:$0xff] }
 0x8ff   :  { %v7899_v9 = vmax.f32 %v7880_v55, 0.0  ;;  %v8506_v63 = vld [vmem:[#allocation21 + $0x1120] sm:$0xff]  ;;  %v7987_v49 = vld [vmem:[#allocation21 + $0xe8] sm:$0xff] }
 0x900   :  { %v7949_v61 = vld [vmem:[#allocation5 + $0x8f] sm:$0x1]  ;;  %v8051_v56 = vld [vmem:[#allocation21 + $0x2e8] sm:$0xff] }
 0x901   :  { %7950 = vst [vmem:[#allocation6 + $0xd] sm:$0x1] %v7949_v61  ;;  %v8502_v19 = vld [vmem:[#allocation21 + $0x1100] sm:$0xff]  ;;  %v8115_v37 = vld [vmem:[#allocation21 + $0x4e8] sm:$0xff] }
 0x902   :  { %7918 = vst [vmem:[#allocation5 + $0x90] sm:$0x3] %v7899_v9  ;;  %v8498_v11 = vld [vmem:[#allocation21 + $0x10e0] sm:$0xff]  ;;  %v7983_v18 = vld [vmem:[#allocation21 + $0xc8] sm:$0xff] }
 0x903   :  { %v7955_v25 = vld [vmem:[#allocation6] sm:$0xff]  ;;  %v8494_v10 = vld [vmem:[#allocation21 + $0x10c0] sm:$0xff] }
 0x904   :  { %8547 = vst [vmem:[#allocation1] ss:$4 sm:$0xff] %v7955_v25  ;;  %v8047_v60 = vld [vmem:[#allocation21 + $0x2c8] sm:$0xff]  ;;  %v8490_v47 = vld [vmem:[#allocation21 + $0x10a0] sm:$0xff] }
 0x905   :  { %v8111_v46 = vld [vmem:[#allocation21 + $0x4c8] sm:$0xff]  ;;  %v8486_v30 = vld [vmem:[#allocation21 + $0x1080] sm:$0xff] }
 0x906   :  { %v7979_v21 = vld [vmem:[#allocation21 + $0xa8] sm:$0xff]  ;;  %v8482_v55 = vld [vmem:[#allocation21 + $0x1060] sm:$0xff] }
 0x907   :  { %v8043_v42 = vld [vmem:[#allocation21 + $0x2a8] sm:$0xff] }
 0x908   :  { %v8107_v58 = vld [vmem:[#allocation21 + $0x4a8] sm:$0xff] }
 0x909   :  { %v7951_v8 = vld [vmem:[#allocation5 + $0x90] sm:$0x1]  ;;  %v7953_v29 = vld [vmem:[#allocation5 + $0x91] sm:$0x1]  ;;  %v7975_v28 = vld [vmem:[#allocation21 + $0x88] sm:$0xff] }
 0x90a   :  { %7952 = vst [vmem:[#allocation6 + $0xf] sm:$0x1] %v7951_v8  ;;  %v8039_v41 = vld [vmem:[#allocation21 + $0x288] sm:$0xff]  ;;  %v8478_v8 = vld [vmem:[#allocation21 + $0x1040] sm:$0xff] }
 0x90b   :  { %7954 = vst [vmem:[#allocation6 + $0x11] sm:$0x1] %v7953_v29  ;;  %v13636_v31 = vld.sshfl [vmem:[#allocation1] sm:$0xff pattern:$0x73625140]  ;;  %v8103_v34 = vld [vmem:[#allocation21 + $0x488] sm:$0xff] }
 0x90c   :  { %8585 = vmatmul.f32.vlgmr.msrb.gmra.mxu2 %v13636_v31  ;;  %v13639_v54 = vld.sshfl [vmem:[#allocation1 + $0x8] sm:$0xff pattern:$0x73625140]  ;;  %v13641_v23 = vld.sshfl [vmem:[#allocation1 + $0x10] sm:$0xff pattern:$0x73625140] }
 0x90d   :  { %8605 = vmatmul.f32.vlgmr.msra.gmra.mxu3 %v13639_v54  ;;  %8625 = vmatmul.f32.vlgmr.msrb.gmra.mxu0 %v13641_v23  ;;  %v13645_v2 = vld.sshfl [vmem:[#allocation1 + $0x18] sm:$0xff pattern:$0x73625140] }
 0x90e   :  { %8645 = vmatmul.f32.vlgmr.msrb.gmra.mxu1 %v13645_v2  ;;  %8729 = vmatpush.msrb.mxu2 %v8530_v5  ;;  %v7971_v9 = vld [vmem:[#allocation21 + $0x68] sm:$0xff] }
 0x90f   :  { %8749 = vmatpush.msra.mxu3 %v8019_v62  ;;  %8769 = vmatpush.msrb.mxu0 %v8083_v48  ;;  %v8035_v61 = vld [vmem:[#allocation21 + $0x268] sm:$0xff]  ;;  %v8474_v48 = vld [vmem:[#allocation21 + $0x1020] sm:$0xff] }
 0x910   :  { %8789 = vmatpush.msrb.mxu1 %v8147_v59  ;;  %8730 = vmatpush.msrb.mxu2 %v8526_v14  ;;  %v8099_v25 = vld [vmem:[#allocation21 + $0x468] sm:$0xff] }
 0x911   :  { %8750 = vmatpush.msra.mxu3 %v8015_v20  ;;  %8770 = vmatpush.msrb.mxu0 %v8079_v36  ;;  %v7956_v33 = vld [vmem:[#allocation6 + $0x8] sm:$0xff]  ;;  %v7967_v29 = vld [vmem:[#allocation21 + $0x48] sm:$0xff]  ;;  %v8470_v36 = vld [vmem:[#allocation21 + $0x1000] sm:$0xff] }
 0x912   :  { %v7957_v0 = vld [vmem:[#allocation6 + $0x10] sm:$0x3]  ;;  %8790 = vmatpush.msrb.mxu1 %v8143_v27  ;;  %8731 = vmatpush.msrb.mxu2 %v8522_v32  ;;  %8549 = vst [vmem:[#allocation1 + $0x20] ss:$4 sm:$0xff] %v7956_v33  ;;  %v8031_v5 = vld [vmem:[#allocation21 + $0x248] sm:$0xff] }
 0x913   :  { %8558 = vst [vmem:[#allocation1] ss:$4 sm:$0xff] %v7957_v0  ;;  %8751 = vmatpush.msra.mxu3 %v8011_v17  ;;  %8771 = vmatpush.msrb.mxu0 %v8075_v38  ;;  %v8095_v62 = vld [vmem:[#allocation21 + $0x448] sm:$0xff] }
 0x914   :  { %8791 = vmatpush.msrb.mxu1 %v8139_v40  ;;  %8732 = vmatpush.msrb.mxu2 %v8518_v16  ;;  %v7963_v59 = vld [vmem:[#allocation21 + $0x28] sm:$0xff] }
 0x915   :  { %8752 = vmatpush.msra.mxu3 %v8007_v22  ;;  %8772 = vmatpush.msrb.mxu0 %v8071_v50  ;;  %v8027_v14 = vld [vmem:[#allocation21 + $0x228] sm:$0xff] }
 0x916   :  { %8792 = vmatpush.msrb.mxu1 %v8135_v7  ;;  %8733 = vmatpush.msrb.mxu2 %v8514_v39  ;;  %v8091_v20 = vld [vmem:[#allocation21 + $0x428] sm:$0xff] }
 0x917   :  { %8753 = vmatpush.msra.mxu3 %v8003_v13  ;;  %8773 = vmatpush.msrb.mxu0 %v8067_v51  ;;  %v7959_v27 = vld [vmem:[#allocation21 + $0x8] sm:$0xff] }
 0x918   :  { %8793 = vmatpush.msrb.mxu1 %v8131_v1  ;;  %8734 = vmatpush.msrb.mxu2 %v8510_v26  ;;  %v8023_v32 = vld [vmem:[#allocation21 + $0x208] sm:$0xff] }
 0x919   :  { %8754 = vmatpush.msra.mxu3 %v7999_v57  ;;  %8774 = vmatpush.msrb.mxu0 %v8063_v35  ;;  %v13648_v45 = vld.sshfl [vmem:[#allocation1 + $0x20] sm:$0xff pattern:$0x73625140]  ;;  %v13650_v43 = vld.sshfl [vmem:[#allocation1 + $0x28] sm:$0xff pattern:$0x73625140] }
 0x91a   :  { %8794 = vmatpush.msrb.mxu1 %v8127_v6  ;;  %8735 = vmatpush.msrb.mxu2 %v8506_v63  ;;  %v13652_v53 = vld.sshfl [vmem:[#allocation1 + $0x30] sm:$0xff pattern:$0x73625140]  ;;  %v13654_v52 = vld.sshfl [vmem:[#allocation1 + $0x38] sm:$0xff pattern:$0x73625140] }
 0x91b   :  { %8755 = vmatpush.msra.mxu3 %v7995_v15  ;;  %8775 = vmatpush.msrb.mxu0 %v8059_v24  ;;  %v8087_v17 = vld [vmem:[#allocation21 + $0x408] sm:$0xff]  ;;  %v13660_v38 = vld.sshfl [vmem:[#allocation1] sm:$0xff pattern:$0x73625140] }
 0x91c   :  { %8795 = vmatpush.msrb.mxu1 %v8123_v12  ;;  %8736 = vmatpush.msrb.mxu2 %v8502_v19  ;;  %v8211_v40 = vld [vmem:[#allocation21 + $0x7e8] sm:$0xff] }
 0x91d   :  { %8756 = vmatpush.msra.mxu3 %v7991_v44  ;;  %8776 = vmatpush.msrb.mxu0 %v8055_v3  ;;  %v8275_v16 = vld [vmem:[#allocation21 + $0x9e8] sm:$0xff] }
 0x91e   :  { %8796 = vmatpush.msrb.mxu1 %v8119_v4  ;;  %8665 = vmatmul.f32.vlgmr.msra.gmra.mxu2 %v13648_v45  ;;  %v8339_v33 = vld [vmem:[#allocation21 + $0xbe8] sm:$0xff] }
 0x91f   :  { %8685 = vmatmul.f32.vlgmr.msrb.gmra.mxu3 %v13650_v43  ;;  %8705 = vmatmul.f32.vlgmr.msra.gmra.mxu0 %v13652_v53  ;;  %v8403_v0 = vld [vmem:[#allocation21 + $0xde8] sm:$0xff] }
 0x920   :  { %8725 = vmatmul.f32.vlgmr.msra.gmra.mxu1 %v13654_v52  ;;  %8737 = vmatpush.msrb.mxu2 %v8498_v11  ;;  %v8207_v22 = vld [vmem:[#allocation21 + $0x7c8] sm:$0xff] }
 0x921   :  { %8757 = vmatpush.msra.mxu3 %v7987_v49  ;;  %8777 = vmatpush.msrb.mxu0 %v8051_v56  ;;  %v8271_v50 = vld [vmem:[#allocation21 + $0x9c8] sm:$0xff] }
 0x922   :  { %8797 = vmatpush.msrb.mxu1 %v8115_v37  ;;  %8738 = vmatpush.msrb.mxu2 %v8494_v10  ;;  %v8335_v7 = vld [vmem:[#allocation21 + $0xbc8] sm:$0xff] }
 0x923   :  { %8758 = vmatpush.msra.mxu3 %v7983_v18  ;;  %8778 = vmatpush.msrb.mxu0 %v8047_v60  ;;  %v8399_v39 = vld [vmem:[#allocation21 + $0xdc8] sm:$0xff] }
 0x924   :  { %8798 = vmatpush.msrb.mxu1 %v8111_v46  ;;  %8739 = vmatpush.msrb.mxu2 %v8490_v47  ;;  %v8203_v13 = vld [vmem:[#allocation21 + $0x7a8] sm:$0xff] }
 0x925   :  { %8759 = vmatpush.msra.mxu3 %v7979_v21  ;;  %8779 = vmatpush.msrb.mxu0 %v8043_v42  ;;  %v8267_v51 = vld [vmem:[#allocation21 + $0x9a8] sm:$0xff] }
 0x926   :  { %8799 = vmatpush.msrb.mxu1 %v8107_v58  ;;  %8740 = vmatpush.msrb.mxu2 %v8486_v30  ;;  %v8331_v1 = vld [vmem:[#allocation21 + $0xba8] sm:$0xff] }
 0x927   :  { %8760 = vmatpush.msra.mxu3 %v7975_v28  ;;  %8780 = vmatpush.msrb.mxu0 %v8039_v41  ;;  %v8395_v26 = vld [vmem:[#allocation21 + $0xda8] sm:$0xff] }
 0x928   :  { %8800 = vmatpush.msrb.mxu1 %v8103_v34  ;;  %8741 = vmatpush.msrb.mxu2 %v8482_v55  ;;  %v8199_v57 = vld [vmem:[#allocation21 + $0x788] sm:$0xff] }
 0x929   :  { %8761 = vmatpush.msra.mxu3 %v7971_v9  ;;  %8781 = vmatpush.msrb.mxu0 %v8035_v61  ;;  %v8263_v35 = vld [vmem:[#allocation21 + $0x988] sm:$0xff] }
 0x92a   :  { %8801 = vmatpush.msrb.mxu1 %v8099_v25  ;;  %8742 = vmatpush.msrb.mxu2 %v8478_v8  ;;  %v8327_v6 = vld [vmem:[#allocation21 + $0xb88] sm:$0xff] }
 0x92b   :  { %8762 = vmatpush.msra.mxu3 %v7967_v29  ;;  %8782 = vmatpush.msrb.mxu0 %v8031_v5  ;;  %v8391_v63 = vld [vmem:[#allocation21 + $0xd88] sm:$0xff] }
 0x92c   :  { %8802 = vmatpush.msrb.mxu1 %v8095_v62  ;;  %8743 = vmatpush.msrb.mxu2 %v8474_v48  ;;  %v8195_v15 = vld [vmem:[#allocation21 + $0x768] sm:$0xff] }
 0x92d   :  { %8763 = vmatpush.msra.mxu3 %v7963_v59  ;;  %8783 = vmatpush.msrb.mxu0 %v8027_v14  ;;  %v8259_v24 = vld [vmem:[#allocation21 + $0x968] sm:$0xff] }
 0x92e   :  { %8803 = vmatpush.msrb.mxu1 %v8091_v20  ;;  %8744 = vmatpush.msrb.mxu2 %v8470_v36  ;;  %v8323_v12 = vld [vmem:[#allocation21 + $0xb68] sm:$0xff] }
 0x92f   :  { %8764 = vmatpush.msra.mxu3 %v7959_v27  ;;  %8784 = vmatpush.msrb.mxu0 %v8023_v32  ;;  %v8387_v19 = vld [vmem:[#allocation21 + $0xd68] sm:$0xff] }
 0x930   :  { %8804 = vmatpush.msrb.mxu1 %v8087_v17  ;;  %8745 = vmatmul.f32.vlgmr.msrb.gmra.mxu2 %v13660_v38  ;;  %v8191_v44 = vld [vmem:[#allocation21 + $0x748] sm:$0xff] }
 0x931   :  { %8765 = vmatmul.f32.vlgmr.msra.gmra.mxu3 %v13636_v31  ;;  %8785 = vmatmul.f32.vlgmr.msrb.gmra.mxu0 %v13639_v54  ;;  %v8255_v3 = vld [vmem:[#allocation21 + $0x948] sm:$0xff] }
 0x932   :  { %8805 = vmatmul.f32.vlgmr.msrb.gmra.mxu1 %v13641_v23  ;;  %8809 = vmatpush.msra.mxu2 %v8211_v40  ;;  %v8319_v4 = vld [vmem:[#allocation21 + $0xb48] sm:$0xff] }
 0x933   :  { %8829 = vmatpush.msrb.mxu3 %v8275_v16  ;;  %8849 = vmatpush.msra.mxu0 %v8339_v33  ;;  %v8383_v11 = vld [vmem:[#allocation21 + $0xd48] sm:$0xff] }
 0x934   :  { %8869 = vmatpush.msra.mxu1 %v8403_v0  ;;  %8810 = vmatpush.msra.mxu2 %v8207_v22  ;;  %v8187_v49 = vld [vmem:[#allocation21 + $0x728] sm:$0xff] }
 0x935   :  { %8830 = vmatpush.msrb.mxu3 %v8271_v50  ;;  %8850 = vmatpush.msra.mxu0 %v8335_v7  ;;  %v8251_v56 = vld [vmem:[#allocation21 + $0x928] sm:$0xff] }
 0x936   :  { %8870 = vmatpush.msra.mxu1 %v8399_v39  ;;  %8811 = vmatpush.msra.mxu2 %v8203_v13  ;;  %v8315_v37 = vld [vmem:[#allocation21 + $0xb28] sm:$0xff] }
 0x937   :  { %8831 = vmatpush.msrb.mxu3 %v8267_v51  ;;  %8851 = vmatpush.msra.mxu0 %v8331_v1  ;;  %v8379_v10 = vld [vmem:[#allocation21 + $0xd28] sm:$0xff] }
 0x938   :  { %8871 = vmatpush.msra.mxu1 %v8395_v26  ;;  %8812 = vmatpush.msra.mxu2 %v8199_v57  ;;  %v8183_v18 = vld [vmem:[#allocation21 + $0x708] sm:$0xff]  ;;  %v8020_v26 = vld [vmem:[#allocation21 + $0x1f0] sm:$0xff] }
 0x939   :  { %8832 = vmatpush.msrb.mxu3 %v8263_v35  ;;  %8852 = vmatpush.msra.mxu0 %v8327_v6  ;;  %v8247_v60 = vld [vmem:[#allocation21 + $0x908] sm:$0xff]  ;;  %v8084_v57 = vld [vmem:[#allocation21 + $0x3f0] sm:$0xff] }
 0x93a   :  { %8872 = vmatpush.msra.mxu1 %v8391_v63  ;;  %8813 = vmatpush.msra.mxu2 %v8195_v15  ;;  %v8311_v46 = vld [vmem:[#allocation21 + $0xb08] sm:$0xff]  ;;  %v8016_v63 = vld [vmem:[#allocation21 + $0x1d0] sm:$0xff] }
 0x93b   :  { %8833 = vmatpush.msrb.mxu3 %v8259_v24  ;;  %8853 = vmatpush.msra.mxu0 %v8323_v12  ;;  %v8375_v47 = vld [vmem:[#allocation21 + $0xd08] sm:$0xff]  ;;  %v8080_v15 = vld [vmem:[#allocation21 + $0x3d0] sm:$0xff] }
 0x93c   :  { %8873 = vmatpush.msra.mxu1 %v8387_v19  ;;  %8814 = vmatpush.msra.mxu2 %v8191_v44  ;;  %v8179_v21 = vld [vmem:[#allocation21 + $0x6e8] sm:$0xff]  ;;  %v8012_v19 = vld [vmem:[#allocation21 + $0x1b0] sm:$0xff] }
 0x93d   :  { %8834 = vmatpush.msrb.mxu3 %v8255_v3  ;;  %8854 = vmatpush.msra.mxu0 %v8319_v4  ;;  %v8243_v42 = vld [vmem:[#allocation21 + $0x8e8] sm:$0xff]  ;;  %v8076_v44 = vld [vmem:[#allocation21 + $0x3b0] sm:$0xff] }
 0x93e   :  { %8874 = vmatpush.msra.mxu1 %v8383_v11  ;;  %8815 = vmatpush.msra.mxu2 %v8187_v49  ;;  %v8307_v58 = vld [vmem:[#allocation21 + $0xae8] sm:$0xff]  ;;  %v8008_v11 = vld [vmem:[#allocation21 + $0x190] sm:$0xff] }
 0x93f   :  { %8835 = vmatpush.msrb.mxu3 %v8251_v56  ;;  %8855 = vmatpush.msra.mxu0 %v8315_v37  ;;  %v8371_v30 = vld [vmem:[#allocation21 + $0xce8] sm:$0xff]  ;;  %v8004_v37 = vld [vmem:[#allocation21 + $0x170] sm:$0xff] }
 0x940   :  { %8875 = vmatpush.msra.mxu1 %v8379_v10  ;;  %8816 = vmatpush.msra.mxu2 %v8183_v18  ;;  %v8175_v28 = vld [vmem:[#allocation21 + $0x6c8] sm:$0xff]  ;;  %v8068_v10 = vld [vmem:[#allocation21 + $0x370] sm:$0xff] }
 0x941   :  { %8836 = vmatpush.msrb.mxu3 %v8247_v60  ;;  %8856 = vmatpush.msra.mxu0 %v8311_v46  ;;  %v8239_v41 = vld [vmem:[#allocation21 + $0x8c8] sm:$0xff]  ;;  %v8000_v46 = vld [vmem:[#allocation21 + $0x150] sm:$0xff] }
 0x942   :  { %8876 = vmatpush.msra.mxu1 %v8375_v47  ;;  %8817 = vmatpush.msra.mxu2 %v8179_v21  ;;  %v8303_v34 = vld [vmem:[#allocation21 + $0xac8] sm:$0xff]  ;;  %v8064_v47 = vld [vmem:[#allocation21 + $0x350] sm:$0xff] }
 0x943   :  { %8837 = vmatpush.msrb.mxu3 %v8243_v42  ;;  %8857 = vmatpush.msra.mxu0 %v8307_v58  ;;  %v8367_v55 = vld [vmem:[#allocation21 + $0xcc8] sm:$0xff]  ;;  %v7996_v58 = vld [vmem:[#allocation21 + $0x130] sm:$0xff] }
 0x944   :  { %v8171_v9 = vld [vmem:[#allocation21 + $0x6a8] sm:$0xff]  ;;  %8877 = vmatpush.msra.mxu1 %v8371_v30  ;;  %8818 = vmatpush.msra.mxu2 %v8175_v28  ;;  %v8060_v30 = vld [vmem:[#allocation21 + $0x330] sm:$0xff] }
 0x945   :  { %v8235_v61 = vld [vmem:[#allocation21 + $0x8a8] sm:$0xff]  ;;  %8838 = vmatpush.msrb.mxu3 %v8239_v41  ;;  %8858 = vmatpush.msra.mxu0 %v8303_v34  ;;  %v7992_v34 = vld [vmem:[#allocation21 + $0x110] sm:$0xff] }
 0x946   :  { %v8299_v25 = vld [vmem:[#allocation21 + $0xaa8] sm:$0xff]  ;;  %8878 = vmatpush.msra.mxu1 %v8367_v55  ;;  %8819 = vmatpush.msra.mxu2 %v8171_v9  ;;  %v8056_v55 = vld [vmem:[#allocation21 + $0x310] sm:$0xff] }
 0x947   :  { %v8363_v8 = vld [vmem:[#allocation21 + $0xca8] sm:$0xff]  ;;  %8839 = vmatpush.msrb.mxu3 %v8235_v61  ;;  %8859 = vmatpush.msra.mxu0 %v8299_v25  ;;  %v7988_v25 = vld [vmem:[#allocation21 + $0xf0] sm:$0xff] }
 0x948   :  { %v8167_v29 = vld [vmem:[#allocation21 + $0x688] sm:$0xff]  ;;  %8879 = vmatpush.msra.mxu1 %v8363_v8  ;;  %v8052_v8 = vld [vmem:[#allocation21 + $0x2f0] sm:$0xff] }
 0x949   :  { %v8231_v5 = vld [vmem:[#allocation21 + $0x888] sm:$0xff]  ;;  %8820 = vmatpush.msra.mxu2 %v8167_v29 }
 0x94a   :  { %v8295_v62 = vld [vmem:[#allocation21 + $0xa88] sm:$0xff]  ;;  %8840 = vmatpush.msrb.mxu3 %v8231_v5 }
 0x94b   :  { %v8359_v48 = vld [vmem:[#allocation21 + $0xc88] sm:$0xff]  ;;  %8860 = vmatpush.msra.mxu0 %v8295_v62  ;;  %v7984_v62 = vld [vmem:[#allocation21 + $0xd0] sm:$0xff] }
 0x94c   :  { %v8163_v59 = vld [vmem:[#allocation21 + $0x668] sm:$0xff]  ;;  %8880 = vmatpush.msra.mxu1 %v8359_v48  ;;  %v8048_v48 = vld [vmem:[#allocation21 + $0x2d0] sm:$0xff] }
 0x94d   :  { %v8227_v14 = vld [vmem:[#allocation21 + $0x868] sm:$0xff]  ;;  %8821 = vmatpush.msra.mxu2 %v8163_v59 }
 0x94e   :  { %v8291_v20 = vld [vmem:[#allocation21 + $0xa68] sm:$0xff]  ;;  %8841 = vmatpush.msrb.mxu3 %v8227_v14 }
 0x94f   :  { %v8355_v36 = vld [vmem:[#allocation21 + $0xc68] sm:$0xff]  ;;  %8861 = vmatpush.msra.mxu0 %v8291_v20  ;;  %v7980_v20 = vld [vmem:[#allocation21 + $0xb0] sm:$0xff] }
 0x950   :  { %v8159_v27 = vld [vmem:[#allocation21 + $0x648] sm:$0xff]  ;;  %8881 = vmatpush.msra.mxu1 %v8355_v36  ;;  %v8044_v36 = vld [vmem:[#allocation21 + $0x2b0] sm:$0xff] }
 0x951   :  { %v8223_v32 = vld [vmem:[#allocation21 + $0x848] sm:$0xff]  ;;  %8822 = vmatpush.msra.mxu2 %v8159_v27 }
 0x952   :  { %v8287_v17 = vld [vmem:[#allocation21 + $0xa48] sm:$0xff]  ;;  %8842 = vmatpush.msrb.mxu3 %v8223_v32 }
 0x953   :  { %v8351_v40 = vld [vmem:[#allocation21 + $0xc48] sm:$0xff]  ;;  %8862 = vmatpush.msra.mxu0 %v8287_v17  ;;  %v7976_v17 = vld [vmem:[#allocation21 + $0x90] sm:$0xff] }
 0x954   :  { %v8155_v16 = vld [vmem:[#allocation21 + $0x628] sm:$0xff]  ;;  %8882 = vmatpush.msra.mxu1 %v8351_v40  ;;  %v8040_v40 = vld [vmem:[#allocation21 + $0x290] sm:$0xff] }
 0x955   :  { %v8219_v33 = vld [vmem:[#allocation21 + $0x828] sm:$0xff]  ;;  %8823 = vmatpush.msra.mxu2 %v8155_v16 }
 0x956   :  { %v8283_v0 = vld [vmem:[#allocation21 + $0xa28] sm:$0xff]  ;;  %8843 = vmatpush.msrb.mxu3 %v8219_v33 }
 0x957   :  { %v8347_v22 = vld [vmem:[#allocation21 + $0xc28] sm:$0xff]  ;;  %8863 = vmatpush.msra.mxu0 %v8283_v0  ;;  %v7972_v0 = vld [vmem:[#allocation21 + $0x70] sm:$0xff] }
 0x958   :  { %v8151_v50 = vld [vmem:[#allocation21 + $0x608] sm:$0xff]  ;;  %8883 = vmatpush.msra.mxu1 %v8347_v22  ;;  %v8036_v22 = vld [vmem:[#allocation21 + $0x270] sm:$0xff] }
 0x959   :  { %v8215_v7 = vld [vmem:[#allocation21 + $0x808] sm:$0xff]  ;;  %8824 = vmatpush.msra.mxu2 %v8151_v50 }
 0x95a   :  { %v8279_v39 = vld [vmem:[#allocation21 + $0xa08] sm:$0xff]  ;;  %8844 = vmatpush.msrb.mxu3 %v8215_v7  ;;  %8825 = vmatmul.f32.vlgmr.msra.gmra.mxu2 %v13645_v2 }
 0x95b   :  { %v8343_v13 = vld [vmem:[#allocation21 + $0xc08] sm:$0xff]  ;;  %8864 = vmatpush.msra.mxu0 %v8279_v39  ;;  %8845 = vmatmul.f32.vlgmr.msrb.gmra.mxu3 %v13648_v45  ;;  %v7968_v39 = vld [vmem:[#allocation21 + $0x50] sm:$0xff] }
 0x95c   :  { %v8467_v51 = vld [vmem:[#allocation21 + $0xfe8] sm:$0xff]  ;;  %8884 = vmatpush.msra.mxu1 %v8343_v13  ;;  %8865 = vmatmul.f32.vlgmr.msra.gmra.mxu0 %v13650_v43  ;;  %v8032_v13 = vld [vmem:[#allocation21 + $0x250] sm:$0xff] }
 0x95d   :  { %v8531_v1 = vld [vmem:[#allocation21 + $0x11e8] sm:$0xff]  ;;  %8885 = vmatmul.f32.vlgmr.msra.gmra.mxu1 %v13652_v53  ;;  %8889 = vmatpush.msrb.mxu2 %v8467_v51  ;;  %v8072_v53 = vld [vmem:[#allocation21 + $0x390] sm:$0xff] }
 0x95e   :  { %v8463_v35 = vld [vmem:[#allocation21 + $0xfc8] sm:$0xff]  ;;  %8909 = vmatpush.msra.mxu3 %v8531_v1  ;;  %8929 = vmatpush.msrb.mxu0 %v8020_v26  ;;  %v7964_v26 = vld [vmem:[#allocation21 + $0x30] sm:$0xff] }
 0x95f   :  { %v8527_v6 = vld [vmem:[#allocation21 + $0x11c8] sm:$0xff]  ;;  %8949 = vmatpush.msrb.mxu1 %v8084_v57  ;;  %8890 = vmatpush.msrb.mxu2 %v8463_v35  ;;  %v8028_v57 = vld [vmem:[#allocation21 + $0x230] sm:$0xff] }
 0x960   :  { %v8459_v24 = vld [vmem:[#allocation21 + $0xfa8] sm:$0xff]  ;;  %8910 = vmatpush.msra.mxu3 %v8527_v6  ;;  %8930 = vmatpush.msrb.mxu0 %v8016_v63  ;;  %v7960_v63 = vld [vmem:[#allocation21 + $0x10] sm:$0xff] }
 0x961   :  { %v8523_v12 = vld [vmem:[#allocation21 + $0x11a8] sm:$0xff]  ;;  %8950 = vmatpush.msrb.mxu1 %v8080_v15  ;;  %8891 = vmatpush.msrb.mxu2 %v8459_v24  ;;  %v8024_v15 = vld [vmem:[#allocation21 + $0x210] sm:$0xff] }
 0x962   :  { %v8455_v3 = vld [vmem:[#allocation21 + $0xf88] sm:$0xff]  ;;  %8911 = vmatpush.msra.mxu3 %v8523_v12  ;;  %8931 = vmatpush.msrb.mxu0 %v8012_v19  ;;  %v8148_v24 = vld [vmem:[#allocation21 + $0x5f0] sm:$0xff] }
 0x963   :  { %v8519_v4 = vld [vmem:[#allocation21 + $0x1188] sm:$0xff]  ;;  %8951 = vmatpush.msrb.mxu1 %v8076_v44  ;;  %8892 = vmatpush.msrb.mxu2 %v8455_v3  ;;  %v8212_v12 = vld [vmem:[#allocation21 + $0x7f0] sm:$0xff] }
 0x964   :  { %v8451_v49 = vld [vmem:[#allocation21 + $0xf68] sm:$0xff]  ;;  %8912 = vmatpush.msra.mxu3 %v8519_v4  ;;  %8932 = vmatpush.msrb.mxu0 %v8008_v11  ;;  %v8276_v19 = vld [vmem:[#allocation21 + $0x9f0] sm:$0xff] }
 0x965   :  { %v8515_v56 = vld [vmem:[#allocation21 + $0x1168] sm:$0xff]  ;;  %8952 = vmatpush.msrb.mxu1 %v8072_v53  ;;  %8893 = vmatpush.msrb.mxu2 %v8451_v49  ;;  %v8340_v44 = vld [vmem:[#allocation21 + $0xbf0] sm:$0xff] }
 0x966   :  { %v8447_v18 = vld [vmem:[#allocation21 + $0xf48] sm:$0xff]  ;;  %8913 = vmatpush.msra.mxu3 %v8515_v56  ;;  %8933 = vmatpush.msrb.mxu0 %v8004_v37  ;;  %v8144_v3 = vld [vmem:[#allocation21 + $0x5d0] sm:$0xff] }
 0x967   :  { %v8511_v60 = vld [vmem:[#allocation21 + $0x1148] sm:$0xff]  ;;  %8953 = vmatpush.msrb.mxu1 %v8068_v10  ;;  %8894 = vmatpush.msrb.mxu2 %v8447_v18  ;;  %v8208_v4 = vld [vmem:[#allocation21 + $0x7d0] sm:$0xff] }
 0x968   :  { %v8443_v21 = vld [vmem:[#allocation21 + $0xf28] sm:$0xff]  ;;  %8914 = vmatpush.msra.mxu3 %v8511_v60  ;;  %8934 = vmatpush.msrb.mxu0 %v8000_v46  ;;  %v8272_v11 = vld [vmem:[#allocation21 + $0x9d0] sm:$0xff] }
 0x969   :  { %v8507_v42 = vld [vmem:[#allocation21 + $0x1128] sm:$0xff]  ;;  %8954 = vmatpush.msrb.mxu1 %v8064_v47  ;;  %8895 = vmatpush.msrb.mxu2 %v8443_v21  ;;  %v8336_v53 = vld [vmem:[#allocation21 + $0xbd0] sm:$0xff] }
 0x96a   :  { %v8439_v28 = vld [vmem:[#allocation21 + $0xf08] sm:$0xff]  ;;  %8915 = vmatpush.msra.mxu3 %v8507_v42  ;;  %8935 = vmatpush.msrb.mxu0 %v7996_v58  ;;  %v8140_v49 = vld [vmem:[#allocation21 + $0x5b0] sm:$0xff] }
 0x96b   :  { %v8503_v41 = vld [vmem:[#allocation21 + $0x1108] sm:$0xff]  ;;  %8955 = vmatpush.msrb.mxu1 %v8060_v30  ;;  %8896 = vmatpush.msrb.mxu2 %v8439_v28  ;;  %v8268_v56 = vld [vmem:[#allocation21 + $0x9b0] sm:$0xff] }
 0x96c   :  { %v8435_v9 = vld [vmem:[#allocation21 + $0xee8] sm:$0xff]  ;;  %8916 = vmatpush.msra.mxu3 %v8503_v41  ;;  %8936 = vmatpush.msrb.mxu0 %v7992_v34  ;;  %v8136_v37 = vld [vmem:[#allocation21 + $0x590] sm:$0xff] }
 0x96d   :  { %v8499_v61 = vld [vmem:[#allocation21 + $0x10e8] sm:$0xff]  ;;  %8956 = vmatpush.msrb.mxu1 %v8056_v55  ;;  %8897 = vmatpush.msrb.mxu2 %v8435_v9  ;;  %v8200_v10 = vld [vmem:[#allocation21 + $0x790] sm:$0xff] }
 0x96e   :  { %v8431_v29 = vld [vmem:[#allocation21 + $0xec8] sm:$0xff]  ;;  %8917 = vmatpush.msra.mxu3 %v8499_v61  ;;  %8937 = vmatpush.msrb.mxu0 %v7988_v25  ;;  %v8264_v18 = vld [vmem:[#allocation21 + $0x990] sm:$0xff] }
 0x96f   :  { %v8495_v5 = vld [vmem:[#allocation21 + $0x10c8] sm:$0xff]  ;;  %8957 = vmatpush.msrb.mxu1 %v8052_v8  ;;  %8898 = vmatpush.msrb.mxu2 %v8431_v29  ;;  %v8328_v60 = vld [vmem:[#allocation21 + $0xb90] sm:$0xff] }
 0x970   :  { %v8427_v59 = vld [vmem:[#allocation21 + $0xea8] sm:$0xff]  ;;  %8918 = vmatpush.msra.mxu3 %v8495_v5  ;;  %8938 = vmatpush.msrb.mxu0 %v7984_v62  ;;  %v8132_v46 = vld [vmem:[#allocation21 + $0x570] sm:$0xff] }
 0x971   :  { %v8491_v14 = vld [vmem:[#allocation21 + $0x10a8] sm:$0xff]  ;;  %8958 = vmatpush.msrb.mxu1 %v8048_v48  ;;  %8899 = vmatpush.msrb.mxu2 %v8427_v59  ;;  %v8196_v47 = vld [vmem:[#allocation21 + $0x770] sm:$0xff] }
 0x972   :  { %v8423_v27 = vld [vmem:[#allocation21 + $0xe88] sm:$0xff]  ;;  %8919 = vmatpush.msra.mxu3 %v8491_v14  ;;  %8939 = vmatpush.msrb.mxu0 %v7980_v20  ;;  %v8260_v21 = vld [vmem:[#allocation21 + $0x970] sm:$0xff] }
 0x973   :  { %v8487_v32 = vld [vmem:[#allocation21 + $0x1088] sm:$0xff]  ;;  %8959 = vmatpush.msrb.mxu1 %v8044_v36  ;;  %8900 = vmatpush.msrb.mxu2 %v8423_v27  ;;  %v8324_v42 = vld [vmem:[#allocation21 + $0xb70] sm:$0xff] }
 0x974   :  { %v8419_v16 = vld [vmem:[#allocation21 + $0xe68] sm:$0xff]  ;;  %8920 = vmatpush.msra.mxu3 %v8487_v32  ;;  %8940 = vmatpush.msrb.mxu0 %v7976_v17  ;;  %v8128_v58 = vld [vmem:[#allocation21 + $0x550] sm:$0xff] }
 0x975   :  { %v8483_v33 = vld [vmem:[#allocation21 + $0x1068] sm:$0xff]  ;;  %8960 = vmatpush.msrb.mxu1 %v8040_v40  ;;  %8901 = vmatpush.msrb.mxu2 %v8419_v16  ;;  %v8192_v30 = vld [vmem:[#allocation21 + $0x750] sm:$0xff] }
 0x976   :  { %v8415_v50 = vld [vmem:[#allocation21 + $0xe48] sm:$0xff]  ;;  %8921 = vmatpush.msra.mxu3 %v8483_v33  ;;  %8941 = vmatpush.msrb.mxu0 %v7972_v0  ;;  %v8256_v28 = vld [vmem:[#allocation21 + $0x950] sm:$0xff] }
 0x977   :  { %v8479_v7 = vld [vmem:[#allocation21 + $0x1048] sm:$0xff]  ;;  %8961 = vmatpush.msrb.mxu1 %v8036_v22  ;;  %8902 = vmatpush.msrb.mxu2 %v8415_v50  ;;  %v8320_v41 = vld [vmem:[#allocation21 + $0xb50] sm:$0xff] }
 0x978   :  { %v8411_v51 = vld [vmem:[#allocation21 + $0xe28] sm:$0xff]  ;;  %8922 = vmatpush.msra.mxu3 %v8479_v7  ;;  %8942 = vmatpush.msrb.mxu0 %v7968_v39  ;;  %v8124_v34 = vld [vmem:[#allocation21 + $0x530] sm:$0xff] }
 0x979   :  { %v8475_v1 = vld [vmem:[#allocation21 + $0x1028] sm:$0xff]  ;;  %8962 = vmatpush.msrb.mxu1 %v8032_v13  ;;  %8903 = vmatpush.msrb.mxu2 %v8411_v51  ;;  %v8188_v55 = vld [vmem:[#allocation21 + $0x730] sm:$0xff] }
 0x97a   :  { %v8407_v35 = vld [vmem:[#allocation21 + $0xe08] sm:$0xff]  ;;  %8923 = vmatpush.msra.mxu3 %v8475_v1  ;;  %8943 = vmatpush.msrb.mxu0 %v7964_v26  ;;  %v8252_v9 = vld [vmem:[#allocation21 + $0x930] sm:$0xff] }
 0x97b   :  { %v8471_v6 = vld [vmem:[#allocation21 + $0x1008] sm:$0xff]  ;;  %8963 = vmatpush.msrb.mxu1 %v8028_v57  ;;  %8904 = vmatpush.msrb.mxu2 %v8407_v35  ;;  %v8316_v61 = vld [vmem:[#allocation21 + $0xb30] sm:$0xff] }
 0x97c   :  { %8924 = vmatpush.msra.mxu3 %v8471_v6  ;;  %8944 = vmatpush.msrb.mxu0 %v7960_v63  ;;  %v8120_v25 = vld [vmem:[#allocation21 + $0x510] sm:$0xff] }
 0x97d   :  { %8964 = vmatpush.msrb.mxu1 %v8024_v15  ;;  %8905 = vmatmul.f32.vlgmr.msrb.gmra.mxu2 %v13654_v52  ;;  %v8204_v52 = vld [vmem:[#allocation21 + $0x7b0] sm:$0xff] }
 0x97e   :  { %8925 = vmatmul.f32.vlgmr.msra.gmra.mxu3 %v13660_v38  ;;  %8945 = vmatmul.f32.vlgmr.msrb.gmra.mxu0 %v13636_v31  ;;  %v8332_v38 = vld [vmem:[#allocation21 + $0xbb0] sm:$0xff] }
 0x97f   :  { %8965 = vmatmul.f32.vlgmr.msrb.gmra.mxu1 %v13639_v54  ;;  %8969 = vmatpush.msra.mxu2 %v8148_v24  ;;  %v8184_v8 = vld [vmem:[#allocation21 + $0x710] sm:$0xff] }
 0x980   :  { %8989 = vmatpush.msrb.mxu3 %v8212_v12  ;;  %9009 = vmatpush.msra.mxu0 %v8276_v19  ;;  %v8248_v29 = vld [vmem:[#allocation21 + $0x910] sm:$0xff] }
 0x981   :  { %9029 = vmatpush.msra.mxu1 %v8340_v44  ;;  %8970 = vmatpush.msra.mxu2 %v8144_v3  ;;  %v8312_v5 = vld [vmem:[#allocation21 + $0xb10] sm:$0xff] }
 0x982   :  { %8990 = vmatpush.msrb.mxu3 %v8208_v4  ;;  %9010 = vmatpush.msra.mxu0 %v8272_v11  ;;  %v8116_v62 = vld [vmem:[#allocation21 + $0x4f0] sm:$0xff] }
 0x983   :  { %9030 = vmatpush.msra.mxu1 %v8336_v53  ;;  %8971 = vmatpush.msra.mxu2 %v8140_v49  ;;  %v8180_v48 = vld [vmem:[#allocation21 + $0x6f0] sm:$0xff] }
 0x984   :  { %8991 = vmatpush.msrb.mxu3 %v8204_v52  ;;  %9011 = vmatpush.msra.mxu0 %v8268_v56  ;;  %v8244_v59 = vld [vmem:[#allocation21 + $0x8f0] sm:$0xff]  ;;  %v8021_v52 = vld [vmem:[#allocation21 + $0x1f8] sm:$0xff] }
 0x985   :  { %9031 = vmatpush.msra.mxu1 %v8332_v38  ;;  %8972 = vmatpush.msra.mxu2 %v8136_v37  ;;  %v8308_v14 = vld [vmem:[#allocation21 + $0xaf0] sm:$0xff] }
 0x986   :  { %8992 = vmatpush.msrb.mxu3 %v8200_v10  ;;  %9012 = vmatpush.msra.mxu0 %v8264_v18  ;;  %v8112_v20 = vld [vmem:[#allocation21 + $0x4d0] sm:$0xff]  ;;  %v8017_v10 = vld [vmem:[#allocation21 + $0x1d8] sm:$0xff] }
 0x987   :  { %9032 = vmatpush.msra.mxu1 %v8328_v60  ;;  %8973 = vmatpush.msra.mxu2 %v8132_v46  ;;  %v8176_v36 = vld [vmem:[#allocation21 + $0x6d0] sm:$0xff] }
 0x988   :  { %8993 = vmatpush.msrb.mxu3 %v8196_v47  ;;  %9013 = vmatpush.msra.mxu0 %v8260_v21  ;;  %v8240_v27 = vld [vmem:[#allocation21 + $0x8d0] sm:$0xff]  ;;  %v8013_v47 = vld [vmem:[#allocation21 + $0x1b8] sm:$0xff] }
 0x989   :  { %9033 = vmatpush.msra.mxu1 %v8324_v42  ;;  %8974 = vmatpush.msra.mxu2 %v8128_v58  ;;  %v8304_v32 = vld [vmem:[#allocation21 + $0xad0] sm:$0xff] }
 0x98a   :  { %8994 = vmatpush.msrb.mxu3 %v8192_v30  ;;  %9014 = vmatpush.msra.mxu0 %v8256_v28  ;;  %v8108_v17 = vld [vmem:[#allocation21 + $0x4b0] sm:$0xff] }
 0x98b   :  { %9034 = vmatpush.msra.mxu1 %v8320_v41  ;;  %8975 = vmatpush.msra.mxu2 %v8124_v34  ;;  %v8172_v40 = vld [vmem:[#allocation21 + $0x6b0] sm:$0xff]  ;;  %v8005_v41 = vld [vmem:[#allocation21 + $0x178] sm:$0xff] }
 0x98c   :  { %8995 = vmatpush.msrb.mxu3 %v8188_v55  ;;  %9015 = vmatpush.msra.mxu0 %v8252_v9  ;;  %v8236_v16 = vld [vmem:[#allocation21 + $0x8b0] sm:$0xff] }
 0x98d   :  { %9035 = vmatpush.msra.mxu1 %v8316_v61  ;;  %8976 = vmatpush.msra.mxu2 %v8120_v25  ;;  %v8300_v33 = vld [vmem:[#allocation21 + $0xab0] sm:$0xff]  ;;  %v8001_v61 = vld [vmem:[#allocation21 + $0x158] sm:$0xff] }
 0x98e   :  { %8996 = vmatpush.msrb.mxu3 %v8184_v8  ;;  %9016 = vmatpush.msra.mxu0 %v8248_v29  ;;  %v8104_v0 = vld [vmem:[#allocation21 + $0x490] sm:$0xff] }
 0x98f   :  { %9036 = vmatpush.msra.mxu1 %v8312_v5  ;;  %8977 = vmatpush.msra.mxu2 %v8116_v62  ;;  %v8168_v22 = vld [vmem:[#allocation21 + $0x690] sm:$0xff]  ;;  %v7997_v5 = vld [vmem:[#allocation21 + $0x138] sm:$0xff] }
 0x990   :  { %8997 = vmatpush.msrb.mxu3 %v8180_v48  ;;  %9017 = vmatpush.msra.mxu0 %v8244_v59  ;;  %v8232_v50 = vld [vmem:[#allocation21 + $0x890] sm:$0xff] }
 0x991   :  { %9037 = vmatpush.msra.mxu1 %v8308_v14  ;;  %8978 = vmatpush.msra.mxu2 %v8112_v20  ;;  %v8296_v7 = vld [vmem:[#allocation21 + $0xa90] sm:$0xff]  ;;  %v7993_v14 = vld [vmem:[#allocation21 + $0x118] sm:$0xff] }
 0x992   :  { %8998 = vmatpush.msrb.mxu3 %v8176_v36  ;;  %9018 = vmatpush.msra.mxu0 %v8240_v27  ;;  %v8100_v39 = vld [vmem:[#allocation21 + $0x470] sm:$0xff] }
 0x993   :  { %9038 = vmatpush.msra.mxu1 %v8304_v32  ;;  %8979 = vmatpush.msra.mxu2 %v8108_v17  ;;  %v8164_v13 = vld [vmem:[#allocation21 + $0x670] sm:$0xff]  ;;  %v7989_v32 = vld [vmem:[#allocation21 + $0xf8] sm:$0xff] }
 0x994   :  { %8999 = vmatpush.msrb.mxu3 %v8172_v40  ;;  %9019 = vmatpush.msra.mxu0 %v8236_v16  ;;  %v8228_v51 = vld [vmem:[#allocation21 + $0x870] sm:$0xff] }
 0x995   :  { %9039 = vmatpush.msra.mxu1 %v8300_v33  ;;  %8980 = vmatpush.msra.mxu2 %v8104_v0  ;;  %v8292_v1 = vld [vmem:[#allocation21 + $0xa70] sm:$0xff]  ;;  %v7985_v33 = vld [vmem:[#allocation21 + $0xd8] sm:$0xff] }
 0x996   :  { %9000 = vmatpush.msrb.mxu3 %v8168_v22  ;;  %9020 = vmatpush.msra.mxu0 %v8232_v50  ;;  %v8096_v26 = vld [vmem:[#allocation21 + $0x450] sm:$0xff] }
 0x997   :  { %9040 = vmatpush.msra.mxu1 %v8296_v7  ;;  %8981 = vmatpush.msra.mxu2 %v8100_v39  ;;  %v8160_v57 = vld [vmem:[#allocation21 + $0x650] sm:$0xff]  ;;  %v7981_v7 = vld [vmem:[#allocation21 + $0xb8] sm:$0xff] }
 0x998   :  { %v8224_v35 = vld [vmem:[#allocation21 + $0x850] sm:$0xff]  ;;  %9001 = vmatpush.msrb.mxu3 %v8164_v13  ;;  %9021 = vmatpush.msra.mxu0 %v8228_v51 }
 0x999   :  { %v8288_v6 = vld [vmem:[#allocation21 + $0xa50] sm:$0xff]  ;;  %9041 = vmatpush.msra.mxu1 %v8292_v1  ;;  %8982 = vmatpush.msra.mxu2 %v8096_v26  ;;  %v7977_v1 = vld [vmem:[#allocation21 + $0x98] sm:$0xff] }
 0x99a   :  { %v8092_v63 = vld [vmem:[#allocation21 + $0x430] sm:$0xff]  ;;  %9002 = vmatpush.msrb.mxu3 %v8160_v57  ;;  %9022 = vmatpush.msra.mxu0 %v8224_v35 }
 0x99b   :  { %v8156_v15 = vld [vmem:[#allocation21 + $0x630] sm:$0xff]  ;;  %9042 = vmatpush.msra.mxu1 %v8288_v6  ;;  %8983 = vmatpush.msra.mxu2 %v8092_v63  ;;  %v7973_v6 = vld [vmem:[#allocation21 + $0x78] sm:$0xff] }
 0x99c   :  { %v8220_v24 = vld [vmem:[#allocation21 + $0x830] sm:$0xff]  ;;  %9003 = vmatpush.msrb.mxu3 %v8156_v15 }
 0x99d   :  { %v8284_v12 = vld [vmem:[#allocation21 + $0xa30] sm:$0xff]  ;;  %9023 = vmatpush.msra.mxu0 %v8220_v24 }
 0x99e   :  { %v8088_v19 = vld [vmem:[#allocation21 + $0x410] sm:$0xff]  ;;  %9043 = vmatpush.msra.mxu1 %v8284_v12  ;;  %v7969_v12 = vld [vmem:[#allocation21 + $0x58] sm:$0xff] }
 0x99f   :  { %v8152_v44 = vld [vmem:[#allocation21 + $0x610] sm:$0xff]  ;;  %8984 = vmatpush.msra.mxu2 %v8088_v19 }
 0x9a0   :  { %v8216_v3 = vld [vmem:[#allocation21 + $0x810] sm:$0xff]  ;;  %9004 = vmatpush.msrb.mxu3 %v8152_v44  ;;  %8985 = vmatmul.f32.vlgmr.msra.gmra.mxu2 %v13641_v23 }
 0x9a1   :  { %v8280_v4 = vld [vmem:[#allocation21 + $0xa10] sm:$0xff]  ;;  %9024 = vmatpush.msra.mxu0 %v8216_v3  ;;  %9005 = vmatmul.f32.vlgmr.msrb.gmra.mxu3 %v13645_v2 }
 0x9a2   :  { %v8404_v11 = vld [vmem:[#allocation21 + $0xdf0] sm:$0xff]  ;;  %9044 = vmatpush.msra.mxu1 %v8280_v4  ;;  %9025 = vmatmul.f32.vlgmr.msra.gmra.mxu0 %v13648_v45  ;;  %v7965_v4 = vld [vmem:[#allocation21 + $0x38] sm:$0xff] }
 0x9a3   :  { %v8468_v53 = vld [vmem:[#allocation21 + $0xff0] sm:$0xff]  ;;  %9045 = vmatmul.f32.vlgmr.msra.gmra.mxu1 %v13650_v43  ;;  %9049 = vmatpush.msrb.mxu2 %v8404_v11  ;;  %v8009_v43 = vld [vmem:[#allocation21 + $0x198] sm:$0xff] }
 0x9a4   :  { %v8532_v49 = vld [vmem:[#allocation21 + $0x11f0] sm:$0xff]  ;;  %9069 = vmatpush.msra.mxu3 %v8468_v53  ;;  %9109 = vmatpush.msrb.mxu1 %v8021_v52  ;;  %v7961_v52 = vld [vmem:[#allocation21 + $0x18] sm:$0xff] }
 0x9a5   :  { %v8400_v56 = vld [vmem:[#allocation21 + $0xdd0] sm:$0xff]  ;;  %9089 = vmatpush.msrb.mxu0 %v8532_v49 }
 0x9a6   :  { %v8464_v38 = vld [vmem:[#allocation21 + $0xfd0] sm:$0xff]  ;;  %9050 = vmatpush.msrb.mxu2 %v8400_v56  ;;  %9110 = vmatpush.msrb.mxu1 %v8017_v10  ;;  %v8085_v56 = vld [vmem:[#allocation21 + $0x3f8] sm:$0xff] }
 0x9a7   :  { %v8528_v37 = vld [vmem:[#allocation21 + $0x11d0] sm:$0xff]  ;;  %9070 = vmatpush.msra.mxu3 %v8464_v38  ;;  %v13678_v38 = vld.sshfl [vmem:[#allocation1 + $0x30] sm:$0xff pattern:$0x73625140]  ;;  %v8213_v10 = vld [vmem:[#allocation21 + $0x7f8] sm:$0xff] }
 0x9a8   :  { %v8396_v18 = vld [vmem:[#allocation21 + $0xdb0] sm:$0xff]  ;;  %9090 = vmatpush.msrb.mxu0 %v8528_v37  ;;  %9111 = vmatpush.msrb.mxu1 %v8013_v47  ;;  %v8149_v37 = vld [vmem:[#allocation21 + $0x5f8] sm:$0xff] }
 0x9a9   :  { %v8460_v60 = vld [vmem:[#allocation21 + $0xfb0] sm:$0xff]  ;;  %9051 = vmatpush.msrb.mxu2 %v8396_v18  ;;  %v8081_v47 = vld [vmem:[#allocation21 + $0x3d8] sm:$0xff] }
 0x9aa   :  { %v8524_v46 = vld [vmem:[#allocation21 + $0x11b0] sm:$0xff]  ;;  %9071 = vmatpush.msra.mxu3 %v8460_v60  ;;  %9112 = vmatpush.msrb.mxu1 %v8009_v43  ;;  %v8077_v43 = vld [vmem:[#allocation21 + $0x3b8] sm:$0xff] }
 0x9ab   :  { %v8392_v21 = vld [vmem:[#allocation21 + $0xd90] sm:$0xff]  ;;  %9091 = vmatpush.msrb.mxu0 %v8524_v46  ;;  %v8277_v46 = vld [vmem:[#allocation21 + $0x9f8] sm:$0xff] }
 0x9ac   :  { %v8456_v45 = vld [vmem:[#allocation21 + $0xf90] sm:$0xff]  ;;  %9052 = vmatpush.msrb.mxu2 %v8392_v21  ;;  %9113 = vmatpush.msrb.mxu1 %v8005_v41  ;;  %v8145_v21 = vld [vmem:[#allocation21 + $0x5d8] sm:$0xff] }
 0x9ad   :  { %v8520_v42 = vld [vmem:[#allocation21 + $0x1190] sm:$0xff]  ;;  %9072 = vmatpush.msra.mxu3 %v8456_v45  ;;  %v8209_v45 = vld [vmem:[#allocation21 + $0x7d8] sm:$0xff] }
 0x9ae   :  { %v8388_v58 = vld [vmem:[#allocation21 + $0xd70] sm:$0xff]  ;;  %9092 = vmatpush.msrb.mxu0 %v8520_v42  ;;  %9114 = vmatpush.msrb.mxu1 %v8001_v61  ;;  %v8273_v42 = vld [vmem:[#allocation21 + $0x9d8] sm:$0xff] }
 0x9af   :  { %v8452_v30 = vld [vmem:[#allocation21 + $0xf70] sm:$0xff]  ;;  %9053 = vmatpush.msrb.mxu2 %v8388_v58  ;;  %v8141_v58 = vld [vmem:[#allocation21 + $0x5b8] sm:$0xff] }
 0x9b0   :  { %v8516_v28 = vld [vmem:[#allocation21 + $0x1170] sm:$0xff]  ;;  %9073 = vmatpush.msra.mxu3 %v8452_v30  ;;  %9115 = vmatpush.msrb.mxu1 %v7997_v5  ;;  %v8205_v30 = vld [vmem:[#allocation21 + $0x7b8] sm:$0xff] }
 0x9b1   :  { %v8384_v34 = vld [vmem:[#allocation21 + $0xd50] sm:$0xff]  ;;  %9093 = vmatpush.msrb.mxu0 %v8516_v28  ;;  %v8269_v28 = vld [vmem:[#allocation21 + $0x9b8] sm:$0xff] }
 0x9b2   :  { %v8448_v55 = vld [vmem:[#allocation21 + $0xf50] sm:$0xff]  ;;  %9054 = vmatpush.msrb.mxu2 %v8384_v34  ;;  %9116 = vmatpush.msrb.mxu1 %v7993_v14  ;;  %v8073_v41 = vld [vmem:[#allocation21 + $0x398] sm:$0xff] }
 0x9b3   :  { %v8512_v9 = vld [vmem:[#allocation21 + $0x1150] sm:$0xff]  ;;  %9074 = vmatpush.msra.mxu3 %v8448_v55  ;;  %v8137_v34 = vld [vmem:[#allocation21 + $0x598] sm:$0xff] }
 0x9b4   :  { %v8380_v25 = vld [vmem:[#allocation21 + $0xd30] sm:$0xff]  ;;  %9094 = vmatpush.msrb.mxu0 %v8512_v9  ;;  %9117 = vmatpush.msrb.mxu1 %v7989_v32  ;;  %v8201_v55 = vld [vmem:[#allocation21 + $0x798] sm:$0xff] }
 0x9b5   :  { %v8444_v8 = vld [vmem:[#allocation21 + $0xf30] sm:$0xff]  ;;  %9055 = vmatpush.msrb.mxu2 %v8380_v25  ;;  %v8069_v9 = vld [vmem:[#allocation21 + $0x378] sm:$0xff] }
 0x9b6   :  { %v8508_v29 = vld [vmem:[#allocation21 + $0x1130] sm:$0xff]  ;;  %9075 = vmatpush.msra.mxu3 %v8444_v8  ;;  %9118 = vmatpush.msrb.mxu1 %v7985_v33  ;;  %v8133_v61 = vld [vmem:[#allocation21 + $0x578] sm:$0xff] }
 0x9b7   :  { %v8376_v62 = vld [vmem:[#allocation21 + $0xd10] sm:$0xff]  ;;  %9095 = vmatpush.msrb.mxu0 %v8508_v29  ;;  %v8197_v25 = vld [vmem:[#allocation21 + $0x778] sm:$0xff] }
 0x9b8   :  { %v8440_v48 = vld [vmem:[#allocation21 + $0xf10] sm:$0xff]  ;;  %9056 = vmatpush.msrb.mxu2 %v8376_v62  ;;  %9119 = vmatpush.msrb.mxu1 %v7981_v7  ;;  %v8261_v8 = vld [vmem:[#allocation21 + $0x978] sm:$0xff] }
 0x9b9   :  { %v8504_v59 = vld [vmem:[#allocation21 + $0x1110] sm:$0xff]  ;;  %9076 = vmatpush.msra.mxu3 %v8440_v48  ;;  %v8065_v29 = vld [vmem:[#allocation21 + $0x358] sm:$0xff] }
 0x9ba   :  { %v8372_v20 = vld [vmem:[#allocation21 + $0xcf0] sm:$0xff]  ;;  %9096 = vmatpush.msrb.mxu0 %v8504_v59  ;;  %9120 = vmatpush.msrb.mxu1 %v7977_v1  ;;  %v8129_v5 = vld [vmem:[#allocation21 + $0x558] sm:$0xff] }
 0x9bb   :  { %v8436_v36 = vld [vmem:[#allocation21 + $0xef0] sm:$0xff]  ;;  %9057 = vmatpush.msrb.mxu2 %v8372_v20  ;;  %v8193_v62 = vld [vmem:[#allocation21 + $0x758] sm:$0xff] }
 0x9bc   :  { %v8500_v27 = vld [vmem:[#allocation21 + $0x10f0] sm:$0xff]  ;;  %9077 = vmatpush.msra.mxu3 %v8436_v36  ;;  %9121 = vmatpush.msrb.mxu1 %v7973_v6  ;;  %v8257_v48 = vld [vmem:[#allocation21 + $0x958] sm:$0xff] }
 0x9bd   :  { %v8368_v17 = vld [vmem:[#allocation21 + $0xcd0] sm:$0xff]  ;;  %9097 = vmatpush.msrb.mxu0 %v8500_v27  ;;  %v8061_v59 = vld [vmem:[#allocation21 + $0x338] sm:$0xff] }
 0x9be   :  { %v8432_v40 = vld [vmem:[#allocation21 + $0xed0] sm:$0xff]  ;;  %9058 = vmatpush.msrb.mxu2 %v8368_v17  ;;  %9122 = vmatpush.msrb.mxu1 %v7969_v12  ;;  %v8125_v14 = vld [vmem:[#allocation21 + $0x538] sm:$0xff] }
 0x9bf   :  { %v8496_v16 = vld [vmem:[#allocation21 + $0x10d0] sm:$0xff]  ;;  %9078 = vmatpush.msra.mxu3 %v8432_v40  ;;  %v8189_v20 = vld [vmem:[#allocation21 + $0x738] sm:$0xff] }
 0x9c0   :  { %v8364_v0 = vld [vmem:[#allocation21 + $0xcb0] sm:$0xff]  ;;  %9098 = vmatpush.msrb.mxu0 %v8496_v16  ;;  %9123 = vmatpush.msrb.mxu1 %v7965_v4  ;;  %v8253_v36 = vld [vmem:[#allocation21 + $0x938] sm:$0xff] }
 0x9c1   :  { %v8428_v22 = vld [vmem:[#allocation21 + $0xeb0] sm:$0xff]  ;;  %9059 = vmatpush.msrb.mxu2 %v8364_v0  ;;  %v8057_v27 = vld [vmem:[#allocation21 + $0x318] sm:$0xff] }
 0x9c2   :  { %v8492_v50 = vld [vmem:[#allocation21 + $0x10b0] sm:$0xff]  ;;  %9079 = vmatpush.msra.mxu3 %v8428_v22  ;;  %9124 = vmatpush.msrb.mxu1 %v7961_v52  ;;  %v8121_v32 = vld [vmem:[#allocation21 + $0x518] sm:$0xff] }
 0x9c3   :  { %v8360_v39 = vld [vmem:[#allocation21 + $0xc90] sm:$0xff]  ;;  %9099 = vmatpush.msrb.mxu0 %v8492_v50  ;;  %9125 = vmatmul.f32.vlgmr.msrb.gmra.mxu1 %v13636_v31  ;;  %v8265_v31 = vld [vmem:[#allocation21 + $0x998] sm:$0xff] }
 0x9c4   :  { %v8424_v13 = vld [vmem:[#allocation21 + $0xe90] sm:$0xff]  ;;  %9060 = vmatpush.msrb.mxu2 %v8360_v39  ;;  %9189 = vmatpush.msra.mxu1 %v8277_v46  ;;  %v8185_v17 = vld [vmem:[#allocation21 + $0x718] sm:$0xff] }
 0x9c5   :  { %v8488_v51 = vld [vmem:[#allocation21 + $0x1090] sm:$0xff]  ;;  %9080 = vmatpush.msra.mxu3 %v8424_v13  ;;  %v8249_v40 = vld [vmem:[#allocation21 + $0x918] sm:$0xff] }
 0x9c6   :  { %v8356_v26 = vld [vmem:[#allocation21 + $0xc70] sm:$0xff]  ;;  %9100 = vmatpush.msrb.mxu0 %v8488_v51  ;;  %9190 = vmatpush.msra.mxu1 %v8273_v42  ;;  %v8053_v16 = vld [vmem:[#allocation21 + $0x2f8] sm:$0xff] }
 0x9c7   :  { %v8420_v57 = vld [vmem:[#allocation21 + $0xe70] sm:$0xff]  ;;  %9061 = vmatpush.msrb.mxu2 %v8356_v26  ;;  %v8117_v33 = vld [vmem:[#allocation21 + $0x4f8] sm:$0xff] }
 0x9c8   :  { %v8484_v35 = vld [vmem:[#allocation21 + $0x1070] sm:$0xff]  ;;  %9081 = vmatpush.msra.mxu3 %v8420_v57  ;;  %9191 = vmatpush.msra.mxu1 %v8269_v28  ;;  %v8181_v0 = vld [vmem:[#allocation21 + $0x6f8] sm:$0xff] }
 0x9c9   :  { %v8352_v63 = vld [vmem:[#allocation21 + $0xc50] sm:$0xff]  ;;  %9101 = vmatpush.msrb.mxu0 %v8484_v35  ;;  %v8245_v22 = vld [vmem:[#allocation21 + $0x8f8] sm:$0xff] }
 0x9ca   :  { %v8416_v15 = vld [vmem:[#allocation21 + $0xe50] sm:$0xff]  ;;  %9062 = vmatpush.msrb.mxu2 %v8352_v63  ;;  %9192 = vmatpush.msra.mxu1 %v8265_v31  ;;  %v8049_v50 = vld [vmem:[#allocation21 + $0x2d8] sm:$0xff] }
 0x9cb   :  { %v8480_v24 = vld [vmem:[#allocation21 + $0x1050] sm:$0xff]  ;;  %9082 = vmatpush.msra.mxu3 %v8416_v15  ;;  %v8113_v7 = vld [vmem:[#allocation21 + $0x4d8] sm:$0xff] }
 0x9cc   :  { %v8348_v19 = vld [vmem:[#allocation21 + $0xc30] sm:$0xff]  ;;  %9102 = vmatpush.msrb.mxu0 %v8480_v24  ;;  %9193 = vmatpush.msra.mxu1 %v8261_v8  ;;  %v8177_v39 = vld [vmem:[#allocation21 + $0x6d8] sm:$0xff] }
 0x9cd   :  { %v8412_v44 = vld [vmem:[#allocation21 + $0xe30] sm:$0xff]  ;;  %9063 = vmatpush.msrb.mxu2 %v8348_v19  ;;  %v8241_v13 = vld [vmem:[#allocation21 + $0x8d8] sm:$0xff] }
 0x9ce   :  { %v8476_v3 = vld [vmem:[#allocation21 + $0x1030] sm:$0xff]  ;;  %9083 = vmatpush.msra.mxu3 %v8412_v44  ;;  %9194 = vmatpush.msra.mxu1 %v8257_v48  ;;  %v8045_v51 = vld [vmem:[#allocation21 + $0x2b8] sm:$0xff] }
 0x9cf   :  { %v8344_v11 = vld [vmem:[#allocation21 + $0xc10] sm:$0xff]  ;;  %9103 = vmatpush.msrb.mxu0 %v8476_v3  ;;  %v8109_v1 = vld [vmem:[#allocation21 + $0x4b8] sm:$0xff] }
 0x9d0   :  { %v8408_v53 = vld [vmem:[#allocation21 + $0xe10] sm:$0xff]  ;;  %9064 = vmatpush.msrb.mxu2 %v8344_v11  ;;  %9195 = vmatpush.msra.mxu1 %v8253_v36  ;;  %v8173_v26 = vld [vmem:[#allocation21 + $0x6b8] sm:$0xff] }
 0x9d1   :  { %v8472_v49 = vld [vmem:[#allocation21 + $0x1010] sm:$0xff]  ;;  %9084 = vmatpush.msra.mxu3 %v8408_v53  ;;  %9065 = vmatmul.f32.vlgmr.msrb.gmra.mxu2 %v13678_v38  ;;  %v8237_v57 = vld [vmem:[#allocation21 + $0x8b8] sm:$0xff] }
 0x9d2   :  { %9104 = vmatpush.msrb.mxu0 %v8472_v49  ;;  %v13681_v18 = vld.sshfl [vmem:[#allocation1 + $0x38] sm:$0xff pattern:$0x73625140]  ;;  %v13684_v60 = vld.sshfl [vmem:[#allocation1] sm:$0xff pattern:$0x73625140]  ;;  %9129 = vmatpush.msra.mxu2 %v8085_v56 }
 0x9d3   :  { %9085 = vmatmul.f32.vlgmr.msra.gmra.mxu3 %v13681_v18  ;;  %9105 = vmatmul.f32.vlgmr.msrb.gmra.mxu0 %v13684_v60  ;;  %v8041_v35 = vld [vmem:[#allocation21 + $0x298] sm:$0xff] }
 0x9d4   :  { %9149 = vmatpush.msrb.mxu3 %v8149_v37  ;;  %9169 = vmatpush.msra.mxu0 %v8213_v10  ;;  %v8105_v6 = vld [vmem:[#allocation21 + $0x498] sm:$0xff] }
 0x9d5   :  { %9130 = vmatpush.msra.mxu2 %v8081_v47  ;;  %9196 = vmatpush.msra.mxu1 %v8249_v40  ;;  %v8169_v63 = vld [vmem:[#allocation21 + $0x698] sm:$0xff] }
 0x9d6   :  { %9150 = vmatpush.msrb.mxu3 %v8145_v21  ;;  %9170 = vmatpush.msra.mxu0 %v8209_v45  ;;  %v8233_v15 = vld [vmem:[#allocation21 + $0x898] sm:$0xff] }
 0x9d7   :  { %9131 = vmatpush.msra.mxu2 %v8077_v43  ;;  %9197 = vmatpush.msra.mxu1 %v8245_v22  ;;  %v8037_v24 = vld [vmem:[#allocation21 + $0x278] sm:$0xff]  ;;  %v13691_v22 = vpop.f32.mrf.mxu3 }
 0x9d8   :  { %9151 = vmatpush.msrb.mxu3 %v8141_v58  ;;  %9171 = vmatpush.msra.mxu0 %v8205_v30  ;;  %v8101_v12 = vld [vmem:[#allocation21 + $0x478] sm:$0xff] }
 0x9d9   :  { %9132 = vmatpush.msra.mxu2 %v8073_v41  ;;  %9198 = vmatpush.msra.mxu1 %v8241_v13  ;;  %v8165_v19 = vld [vmem:[#allocation21 + $0x678] sm:$0xff] }
 0x9da   :  { %9152 = vmatpush.msrb.mxu3 %v8137_v34  ;;  %9172 = vmatpush.msra.mxu0 %v8201_v55  ;;  %v8229_v44 = vld [vmem:[#allocation21 + $0x878] sm:$0xff] }
 0x9db   :  { %9133 = vmatpush.msra.mxu2 %v8069_v9  ;;  %9199 = vmatpush.msra.mxu1 %v8237_v57  ;;  %v8033_v3 = vld [vmem:[#allocation21 + $0x258] sm:$0xff] }
 0x9dc   :  { %9153 = vmatpush.msrb.mxu3 %v8133_v61  ;;  %9173 = vmatpush.msra.mxu0 %v8197_v25  ;;  %v8097_v4 = vld [vmem:[#allocation21 + $0x458] sm:$0xff] }
 0x9dd   :  { %9134 = vmatpush.msra.mxu2 %v8065_v29  ;;  %9200 = vmatpush.msra.mxu1 %v8233_v15  ;;  %v8161_v11 = vld [vmem:[#allocation21 + $0x658] sm:$0xff] }
 0x9de   :  { %9154 = vmatpush.msrb.mxu3 %v8129_v5  ;;  %9174 = vmatpush.msra.mxu0 %v8193_v62  ;;  %v8225_v53 = vld [vmem:[#allocation21 + $0x858] sm:$0xff] }
 0x9df   :  { %9135 = vmatpush.msra.mxu2 %v8061_v59  ;;  %v8029_v49 = vld [vmem:[#allocation21 + $0x238] sm:$0xff]  ;;  %9201 = vmatpush.msra.mxu1 %v8229_v44 }
 0x9e0   :  { %9155 = vmatpush.msrb.mxu3 %v8125_v14  ;;  %9175 = vmatpush.msra.mxu0 %v8189_v20  ;;  %v8093_v52 = vld [vmem:[#allocation21 + $0x438] sm:$0xff] }
 0x9e1   :  { %9136 = vmatpush.msra.mxu2 %v8057_v27  ;;  %v8157_v56 = vld [vmem:[#allocation21 + $0x638] sm:$0xff]  ;;  %9202 = vmatpush.msra.mxu1 %v8225_v53 }
 0x9e2   :  { %9156 = vmatpush.msrb.mxu3 %v8121_v32  ;;  %9176 = vmatpush.msra.mxu0 %v8185_v17  ;;  %v8221_v37 = vld [vmem:[#allocation21 + $0x838] sm:$0xff] }
 0x9e3   :  { %9137 = vmatpush.msra.mxu2 %v8053_v16  ;;  %v8025_v10 = vld [vmem:[#allocation21 + $0x218] sm:$0xff]  ;;  %9203 = vmatpush.msra.mxu1 %v8221_v37  ;;  %v13699_v37 = vpop.f32.mrf.mxu1 }
 0x9e4   :  { %9157 = vmatpush.msrb.mxu3 %v8117_v33  ;;  %9177 = vmatpush.msra.mxu0 %v8181_v0  ;;  %v8089_v46 = vld [vmem:[#allocation21 + $0x418] sm:$0xff] }
 0x9e5   :  { %9138 = vmatpush.msra.mxu2 %v8049_v50  ;;  %v8153_v47 = vld [vmem:[#allocation21 + $0x618] sm:$0xff] }
 0x9e6   :  { %9158 = vmatpush.msrb.mxu3 %v8113_v7  ;;  %9178 = vmatpush.msra.mxu0 %v8177_v39  ;;  %v8217_v21 = vld [vmem:[#allocation21 + $0x818] sm:$0xff] }
 0x9e7   :  { %9139 = vmatpush.msra.mxu2 %v8045_v51  ;;  %v8341_v45 = vld [vmem:[#allocation21 + $0xbf8] sm:$0xff]  ;;  %9204 = vmatpush.msra.mxu1 %v8217_v21  ;;  %v13693_v51 = vpop.f32.mrf.mxu2  ;;  %v13703_v21 = vld [vmem:[#allocation22] sm:$0xf] }
 0x9e8   :  { %9159 = vmatpush.msrb.mxu3 %v8109_v1  ;;  %9179 = vmatpush.msra.mxu0 %v8173_v26  ;;  %v8405_v42 = vld [vmem:[#allocation21 + $0xdf8] sm:$0xff] }
 0x9e9   :  { %9140 = vmatpush.msra.mxu2 %v8041_v35  ;;  %v8469_v43 = vld [vmem:[#allocation21 + $0xff8] sm:$0xff] }
 0x9ea   :  { %9160 = vmatpush.msrb.mxu3 %v8105_v6  ;;  %9180 = vmatpush.msra.mxu0 %v8169_v63  ;;  %v8533_v58 = vld [vmem:[#allocation21 + $0x11f8] sm:$0xff] }
 0x9eb   :  { %9141 = vmatpush.msra.mxu2 %v8037_v24  ;;  %v8337_v30 = vld [vmem:[#allocation21 + $0xbd8] sm:$0xff]  ;;  %9269 = vmatpush.msrb.mxu1 %v8533_v58 }
 0x9ec   :  { %9161 = vmatpush.msrb.mxu3 %v8101_v12  ;;  %9181 = vmatpush.msra.mxu0 %v8165_v19  ;;  %v10377_v28 = vld.sshfl [vmem:[#allocation1 + $0x20] sm:$0xff pattern:$0x73625140]  ;;  %v13695_v12 = vpop.f32.mrf.mxu0 }
 0x9ed   :  { %9142 = vmatpush.msra.mxu2 %v8033_v3  ;;  %9205 = vmatmul.f32.vlgmr.msra.gmra.mxu1 %v10377_v28  ;;  %v8401_v41 = vld [vmem:[#allocation21 + $0xdd8] sm:$0xff] }
 0x9ee   :  { %9162 = vmatpush.msrb.mxu3 %v8097_v4  ;;  %9182 = vmatpush.msra.mxu0 %v8161_v11  ;;  %v8465_v34 = vld [vmem:[#allocation21 + $0xfd8] sm:$0xff]  ;;  %v13697_v11 = vpop.f32.mrf.mxu3 }
 0x9ef   :  { %9143 = vmatpush.msra.mxu2 %v8029_v49  ;;  %v8529_v55 = vld [vmem:[#allocation21 + $0x11d8] sm:$0xff] }
 0x9f0   :  { %9163 = vmatpush.msrb.mxu3 %v8093_v52  ;;  %9183 = vmatpush.msra.mxu0 %v8157_v56  ;;  %v8333_v31 = vld [vmem:[#allocation21 + $0xbb8] sm:$0xff] }
 0x9f1   :  { %9144 = vmatpush.msra.mxu2 %v8025_v10  ;;  %v8461_v9 = vld [vmem:[#allocation21 + $0xfb8] sm:$0xff]  ;;  %9270 = vmatpush.msrb.mxu1 %v8529_v55  ;;  %v13701_v10 = vpop.f32.mrf.mxu2 }
 0x9f2   :  { %9164 = vmatpush.msrb.mxu3 %v8089_v46  ;;  %9184 = vmatpush.msra.mxu0 %v8153_v47  ;;  %v8329_v61 = vld [vmem:[#allocation21 + $0xb98] sm:$0xff] }
 0x9f3   :  { %9145 = vmatmul.f32.vlgmr.msra.gmra.mxu2 %v13639_v54  ;;  %9165 = vmatmul.f32.vlgmr.msrb.gmra.mxu3 %v13641_v23  ;;  %v8397_v54 = vld [vmem:[#allocation21 + $0xdb8] sm:$0xff] }
 0x9f4   :  { %9185 = vmatmul.f32.vlgmr.msra.gmra.mxu0 %v13645_v2  ;;  %9209 = vmatpush.msrb.mxu2 %v8341_v45  ;;  %v8525_v23 = vld [vmem:[#allocation21 + $0x11b8] sm:$0xff] }
 0x9f5   :  { %9229 = vmatpush.msra.mxu3 %v8405_v42  ;;  %9249 = vmatpush.msrb.mxu0 %v8469_v43  ;;  %v8393_v2 = vld [vmem:[#allocation21 + $0xd98] sm:$0xff] }
 0x9f6   :  { %9210 = vmatpush.msrb.mxu2 %v8337_v30  ;;  %v8457_v25 = vld [vmem:[#allocation21 + $0xf98] sm:$0xff]  ;;  %9271 = vmatpush.msrb.mxu1 %v8525_v23 }
 0x9f7   :  { %9230 = vmatpush.msra.mxu3 %v8401_v41  ;;  %9250 = vmatpush.msrb.mxu0 %v8465_v34  ;;  %v8521_v8 = vld [vmem:[#allocation21 + $0x1198] sm:$0xff]  ;;  %v8536_v41 = vperm.slane %v13703_v21, 0  ;;  %v13706_v34 = vpop.f32.mrf.mxu0 }
 0x9f8   :  { %9211 = vmatpush.msrb.mxu2 %v8333_v31  ;;  %v8325_v29 = vld [vmem:[#allocation21 + $0xb78] sm:$0xff]  ;;  %9272 = vmatpush.msrb.mxu1 %v8521_v8  ;;  %v13710_v8 = vpop.f32.mrf.mxu1 }
 0x9f9   :  { %9231 = vmatpush.msra.mxu3 %v8397_v54  ;;  %9251 = vmatpush.msrb.mxu0 %v8461_v9  ;;  %v8389_v5 = vld [vmem:[#allocation21 + $0xd78] sm:$0xff]  ;;  %v8537_v54 = vperm.slane %v13703_v21, 1 }
 0x9fa   :  { %9212 = vmatpush.msrb.mxu2 %v8329_v61  ;;  %v8453_v62 = vld [vmem:[#allocation21 + $0xf78] sm:$0xff]  ;;  %v8766_v61 = vpop.f32.mrf.mxu3 }
 0x9fb   :  { %9232 = vmatpush.msra.mxu3 %v8393_v2  ;;  %9252 = vmatpush.msrb.mxu0 %v8457_v25  ;;  %v8517_v48 = vld [vmem:[#allocation21 + $0x1178] sm:$0xff]  ;;  %v8587_v25 = vadd.f32 %v13693_v51, %v8536_v41  ;;  %v9297_v41 = vld [vmem:[#allocation24 + $0x20] sm:$0xff] }
 0x9fc   :  { %v8321_v59 = vld [vmem:[#allocation21 + $0xb58] sm:$0xff]  ;;  %9213 = vmatpush.msrb.mxu2 %v8325_v29  ;;  %9273 = vmatpush.msrb.mxu1 %v8517_v48  ;;  %v13712_v29 = vpop.f32.mrf.mxu2 }
 0x9fd   :  { %v8385_v14 = vld [vmem:[#allocation21 + $0xd58] sm:$0xff]  ;;  %9233 = vmatpush.msra.mxu3 %v8389_v5  ;;  %9253 = vmatpush.msrb.mxu0 %v8453_v62  ;;  %v8767_v62 = vadd.f32 %v8766_v61, %v8537_v54 }
 0x9fe   :  { %v8449_v20 = vld [vmem:[#allocation21 + $0xf58] sm:$0xff]  ;;  %9214 = vmatpush.msrb.mxu2 %v8321_v59 }
 0x9ff   :  { %v8513_v36 = vld [vmem:[#allocation21 + $0x1158] sm:$0xff]  ;;  %9234 = vmatpush.msra.mxu3 %v8385_v14  ;;  %9254 = vmatpush.msrb.mxu0 %v8449_v20 }
 0xa00   :  { %v8317_v27 = vld [vmem:[#allocation21 + $0xb38] sm:$0xff]  ;;  %9274 = vmatpush.msrb.mxu1 %v8513_v36 }
 0xa01   :  { %v8381_v32 = vld [vmem:[#allocation21 + $0xd38] sm:$0xff]  ;;  %9215 = vmatpush.msrb.mxu2 %v8317_v27 }
 0xa02   :  { %v8445_v17 = vld [vmem:[#allocation21 + $0xf38] sm:$0xff]  ;;  %9235 = vmatpush.msra.mxu3 %v8381_v32  ;;  %v8607_v32 = vadd.f32 %v13691_v22, %v8587_v25 }
 0xa03   :  { %v8509_v40 = vld [vmem:[#allocation21 + $0x1138] sm:$0xff]  ;;  %9255 = vmatpush.msrb.mxu0 %v8445_v17  ;;  %v8786_v17 = vpop.f32.mrf.mxu0 }
 0xa04   :  { %v8313_v16 = vld [vmem:[#allocation21 + $0xb18] sm:$0xff]  ;;  %9275 = vmatpush.msrb.mxu1 %v8509_v40  ;;  %v9306_v40 = vld [vmem:[#allocation24 + $0x68] sm:$0xff] }
 0xa05   :  { %v8377_v33 = vld [vmem:[#allocation21 + $0xd18] sm:$0xff]  ;;  %9216 = vmatpush.msrb.mxu2 %v8313_v16  ;;  %v8787_v16 = vadd.f32 %v8786_v17, %v8767_v62 }
 0xa06   :  { %v8441_v0 = vld [vmem:[#allocation21 + $0xf18] sm:$0xff]  ;;  %9236 = vmatpush.msra.mxu3 %v8377_v33  ;;  %v9322_v33 = vld [vmem:[#allocation24 + $0xe8] sm:$0xff] }
 0xa07   :  { %v8505_v50 = vld [vmem:[#allocation21 + $0x1118] sm:$0xff]  ;;  %9256 = vmatpush.msrb.mxu0 %v8441_v0  ;;  %v9338_v0 = vld [vmem:[#allocation24 + $0x168] sm:$0xff] }
 0xa08   :  { %v8309_v7 = vld [vmem:[#allocation21 + $0xaf8] sm:$0xff]  ;;  %9276 = vmatpush.msrb.mxu1 %v8505_v50  ;;  %v8627_v50 = vadd.f32 %v13695_v12, %v8607_v32  ;;  %v9334_v12 = vld [vmem:[#allocation24 + $0x148] sm:$0xff] }
 0xa09   :  { %v8373_v39 = vld [vmem:[#allocation21 + $0xcf8] sm:$0xff]  ;;  %9217 = vmatpush.msrb.mxu2 %v8309_v7  ;;  %v8806_v7 = vpop.f32.mrf.mxu1 }
 0xa0a   :  { %v8437_v13 = vld [vmem:[#allocation21 + $0xef8] sm:$0xff]  ;;  %9237 = vmatpush.msra.mxu3 %v8373_v39  ;;  %v8826_v39 = vpop.f32.mrf.mxu2 }
 0xa0b   :  { %v8501_v1 = vld [vmem:[#allocation21 + $0x10f8] sm:$0xff]  ;;  %9257 = vmatpush.msrb.mxu0 %v8437_v13  ;;  %v8807_v13 = vadd.f32 %v8806_v7, %v8787_v16 }
 0xa0c   :  { %v8305_v26 = vld [vmem:[#allocation21 + $0xad8] sm:$0xff]  ;;  %9277 = vmatpush.msrb.mxu1 %v8501_v1 }
 0xa0d   :  { %v8369_v57 = vld [vmem:[#allocation21 + $0xcd8] sm:$0xff]  ;;  %9218 = vmatpush.msrb.mxu2 %v8305_v26 }
 0xa0e   :  { %v8433_v35 = vld [vmem:[#allocation21 + $0xed8] sm:$0xff]  ;;  %9238 = vmatpush.msra.mxu3 %v8369_v57  ;;  %v8827_v57 = vadd.f32 %v8826_v39, %v8807_v13 }
 0xa0f   :  { %v8497_v6 = vld [vmem:[#allocation21 + $0x10d8] sm:$0xff]  ;;  %9258 = vmatpush.msrb.mxu0 %v8433_v35 }
 0xa10   :  { %v8301_v63 = vld [vmem:[#allocation21 + $0xab8] sm:$0xff]  ;;  %9278 = vmatpush.msrb.mxu1 %v8497_v6 }
 0xa11   :  { %v8365_v15 = vld [vmem:[#allocation21 + $0xcb8] sm:$0xff]  ;;  %9219 = vmatpush.msrb.mxu2 %v8301_v63  ;;  %v8647_v63 = vadd.f32 %v13699_v37, %v8627_v50 }
 0xa12   :  { %v8429_v24 = vld [vmem:[#allocation21 + $0xeb8] sm:$0xff]  ;;  %9239 = vmatpush.msra.mxu3 %v8365_v15  ;;  %v9302_v15 = vld [vmem:[#allocation24 + $0x48] sm:$0xff] }
 0xa13   :  { %v8493_v19 = vld [vmem:[#allocation21 + $0x10b8] sm:$0xff]  ;;  %9259 = vmatpush.msrb.mxu0 %v8429_v24  ;;  %v9318_v24 = vld [vmem:[#allocation24 + $0xc8] sm:$0xff] }
 0xa14   :  { %v8297_v44 = vld [vmem:[#allocation21 + $0xa98] sm:$0xff]  ;;  %9279 = vmatpush.msrb.mxu1 %v8493_v19  ;;  %v8667_v19 = vadd.f32 %v13701_v10, %v8647_v63 }
 0xa15   :  { %v8361_v3 = vld [vmem:[#allocation21 + $0xc98] sm:$0xff]  ;;  %9220 = vmatpush.msrb.mxu2 %v8297_v44  ;;  %v8846_v44 = vpop.f32.mrf.mxu3 }
 0xa16   :  { %v8425_v4 = vld [vmem:[#allocation21 + $0xe98] sm:$0xff]  ;;  %9240 = vmatpush.msra.mxu3 %v8361_v3  ;;  %v9301_v3 = vld [vmem:[#allocation24 + $0x40] sm:$0xff]  ;;  %v8687_v37 = vadd.f32 %v13697_v11, %v8667_v19 }
 0xa17   :  { %v8489_v53 = vld [vmem:[#allocation21 + $0x1098] sm:$0xff]  ;;  %9260 = vmatpush.msrb.mxu0 %v8425_v4  ;;  %v8847_v4 = vadd.f32 %v8846_v44, %v8827_v57  ;;  %v9313_v11 = vld [vmem:[#allocation24 + $0xa0] sm:$0xff] }
 0xa18   :  { %v8293_v49 = vld [vmem:[#allocation21 + $0xa78] sm:$0xff]  ;;  %9280 = vmatpush.msrb.mxu1 %v8489_v53  ;;  %v9317_v53 = vld [vmem:[#allocation24 + $0xc0] sm:$0xff] }
 0xa19   :  { %v8357_v52 = vld [vmem:[#allocation21 + $0xc78] sm:$0xff]  ;;  %9221 = vmatpush.msrb.mxu2 %v8293_v49  ;;  %v9333_v49 = vld [vmem:[#allocation24 + $0x140] sm:$0xff] }
 0xa1a   :  { %v8421_v56 = vld [vmem:[#allocation21 + $0xe78] sm:$0xff]  ;;  %9241 = vmatpush.msra.mxu3 %v8357_v52 }
 0xa1b   :  { %v8485_v46 = vld [vmem:[#allocation21 + $0x1078] sm:$0xff]  ;;  %9261 = vmatpush.msrb.mxu0 %v8421_v56 }
 0xa1c   :  { %v8289_v47 = vld [vmem:[#allocation21 + $0xa58] sm:$0xff]  ;;  %9281 = vmatpush.msrb.mxu1 %v8485_v46  ;;  %v8866_v46 = vpop.f32.mrf.mxu0 }
 0xa1d   :  { %v8353_v45 = vld [vmem:[#allocation21 + $0xc58] sm:$0xff]  ;;  %9222 = vmatpush.msrb.mxu2 %v8289_v47  ;;  %v8867_v10 = vadd.f32 %v8866_v46, %v8847_v4  ;;  %v8926_v25 = vpop.f32.mrf.mxu3  ;;  %v9354_v4 = vld [vmem:[#allocation24 + $0x1e8] sm:$0xff] }
 0xa1e   :  { %v8417_v42 = vld [vmem:[#allocation21 + $0xe58] sm:$0xff]  ;;  %9242 = vmatpush.msra.mxu3 %v8353_v45 }
 0xa1f   :  { %v8481_v43 = vld [vmem:[#allocation21 + $0x1058] sm:$0xff]  ;;  %9262 = vmatpush.msrb.mxu0 %v8417_v42  ;;  %v9298_v42 = vld [vmem:[#allocation24 + $0x28] sm:$0xff] }
 0xa20   :  { %v8285_v58 = vld [vmem:[#allocation21 + $0xa38] sm:$0xff]  ;;  %9282 = vmatpush.msrb.mxu1 %v8481_v43  ;;  %v9314_v43 = vld [vmem:[#allocation24 + $0xa8] sm:$0xff] }
 0xa21   :  { %v8349_v30 = vld [vmem:[#allocation21 + $0xc38] sm:$0xff]  ;;  %9223 = vmatpush.msrb.mxu2 %v8285_v58  ;;  %v8707_v58 = vadd.f32 %v13706_v34, %v8687_v37  ;;  %v9349_v37 = vld [vmem:[#allocation24 + $0x1c0] sm:$0xff] }
 0xa22   :  { %v8413_v28 = vld [vmem:[#allocation21 + $0xe38] sm:$0xff]  ;;  %9243 = vmatpush.msra.mxu3 %v8349_v30  ;;  %v8886_v30 = vpop.f32.mrf.mxu1 }
 0xa23   :  { %v8477_v55 = vld [vmem:[#allocation21 + $0x1038] sm:$0xff]  ;;  %9263 = vmatpush.msrb.mxu0 %v8413_v28  ;;  %v8906_v28 = vpop.f32.mrf.mxu2 }
 0xa24   :  { %v8281_v31 = vld [vmem:[#allocation21 + $0xa18] sm:$0xff]  ;;  %9283 = vmatpush.msrb.mxu1 %v8477_v55  ;;  %v8887_v55 = vadd.f32 %v8886_v30, %v8867_v10  ;;  %v9346_v10 = vld [vmem:[#allocation24 + $0x1a8] sm:$0xff]  ;;  %v9341_v30 = vld [vmem:[#allocation24 + $0x180] sm:$0xff] }
 0xa25   :  { %v8345_v9 = vld [vmem:[#allocation21 + $0xc18] sm:$0xff]  ;;  %9224 = vmatpush.msrb.mxu2 %v8281_v31 }
 0xa26   :  { %v8409_v23 = vld [vmem:[#allocation21 + $0xe18] sm:$0xff]  ;;  %9244 = vmatpush.msra.mxu3 %v8345_v9  ;;  %v8907_v54 = vadd.f32 %v8906_v28, %v8887_v55  ;;  %v8539_v28 = vperm.slane %v13703_v21, 3 }
 0xa27   :  { %v8473_v2 = vld [vmem:[#allocation21 + $0x1018] sm:$0xff]  ;;  %9264 = vmatpush.msrb.mxu0 %v8409_v23  ;;  %9245 = vmatmul.f32.vlgmr.msra.gmra.mxu3 %v13678_v38  ;;  %v9305_v38 = vld [vmem:[#allocation24 + $0x60] sm:$0xff]  ;;  %v8727_v23 = vadd.f32 %v13710_v8, %v8707_v58  ;;  %v9342_v58 = vld [vmem:[#allocation24 + $0x188] sm:$0xff] }
 0xa28   :  { %v9308_v5 = vld [vmem:[#allocation24 + $0x78] sm:$0xff]  ;;  %9284 = vmatpush.msrb.mxu1 %v8473_v2  ;;  %9265 = vmatmul.f32.vlgmr.msrb.gmra.mxu0 %v13681_v18  ;;  %v9307_v14 = vld [vmem:[#allocation24 + $0x70] sm:$0xff]  ;;  %v9321_v18 = vld [vmem:[#allocation24 + $0xe0] sm:$0xff]  ;;  %v8927_v62 = vadd.f32 %v8926_v25, %v8907_v54 }
 0xa29   :  { %v10378_v48 = vld.sshfl [vmem:[#allocation1 + $0x28] sm:$0xff pattern:$0x73625140]  ;;  %9285 = vmatmul.f32.vlgmr.msrb.gmra.mxu1 %v13684_v60  ;;  %9361 = vmatpush.msra.mxu2 %v9308_v5  ;;  %v9323_v20 = vld [vmem:[#allocation24 + $0xf0] sm:$0xff]  ;;  %v8747_v34 = vadd.f32 %v13712_v29, %v8727_v23  ;;  %v9294_v5 = vld [vmem:[#allocation24 + $0x8] sm:$0xff] }
 0xa2a   :  { %9225 = vmatmul.f32.vlgmr.msrb.gmra.mxu2 %v10378_v48  ;;  %v9324_v59 = vld [vmem:[#allocation24 + $0xf8] sm:$0xff]  ;;  %v9339_v27 = vld [vmem:[#allocation24 + $0x170] sm:$0xff]  ;;  %v9337_v60 = vld [vmem:[#allocation24 + $0x160] sm:$0xff]  ;;  %v9290_v32 = vmax.f32 %v8927_v62, 0.0 }
 0xa2b   :  { %v9340_v36 = vld [vmem:[#allocation24 + $0x178] sm:$0xff]  ;;  %9381 = vmatpush.msrb.mxu3 %v9324_v59  ;;  %9362 = vmatpush.msra.mxu2 %v9307_v14  ;;  %v9303_v26 = vld [vmem:[#allocation24 + $0x50] sm:$0xff]  ;;  %v9310_v48 = vld [vmem:[#allocation24 + $0x88] sm:$0xff]  ;;  %v9289_v8 = vmax.f32 %v8747_v34, 0.0  ;;  %v8986_v50 = vpop.f32.mrf.mxu2 }
 0xa2c   :  { %9401 = vmatpush.msra.mxu0 %v9340_v36  ;;  %v9304_v22 = vld [vmem:[#allocation24 + $0x58] sm:$0xff]  ;;  %v9319_v35 = vld [vmem:[#allocation24 + $0xd0] sm:$0xff]  ;;  %v9309_v36 = vld [vmem:[#allocation24 + $0x80] sm:$0xff] }
 0xa2d   :  { %9382 = vmatpush.msrb.mxu3 %v9323_v20  ;;  %9363 = vmatpush.msra.mxu2 %v9306_v40  ;;  %v9320_v51 = vld [vmem:[#allocation24 + $0xd8] sm:$0xff]  ;;  %v9335_v6 = vld [vmem:[#allocation24 + $0x150] sm:$0xff]  ;;  %v9293_v20 = vld [vmem:[#allocation24] sm:$0xff]  ;;  %v8538_v40 = vperm.slane %v13703_v21, 2 }
 0xa2e   :  { %9402 = vmatpush.msra.mxu0 %v9339_v27  ;;  %v9336_v1 = vld [vmem:[#allocation24 + $0x158] sm:$0xff]  ;;  %v9299_v47 = vld [vmem:[#allocation24 + $0x30] sm:$0xff]  ;;  %v9330_v27 = vld [vmem:[#allocation24 + $0x128] sm:$0xff] }
 0xa2f   :  { %9383 = vmatpush.msrb.mxu3 %v9322_v33  ;;  %9364 = vmatpush.msra.mxu2 %v9305_v38  ;;  %v9300_v52 = vld [vmem:[#allocation24 + $0x38] sm:$0xff]  ;;  %v9315_v45 = vld [vmem:[#allocation24 + $0xb0] sm:$0xff]  ;;  %v9329_v29 = vld [vmem:[#allocation24 + $0x120] sm:$0xff]  ;;  %v8946_v33 = vpop.f32.mrf.mxu0 }
 0xa30   :  { %9403 = vmatpush.msra.mxu0 %v9338_v0  ;;  %v9316_v56 = vld [vmem:[#allocation24 + $0xb8] sm:$0xff]  ;;  %v9295_v61 = vld [vmem:[#allocation24 + $0x10] sm:$0xff]  ;;  %v9326_v0 = vld [vmem:[#allocation24 + $0x108] sm:$0xff]  ;;  %v8947_v38 = vadd.f32 %v8946_v33, %v8538_v40 }
 0xa31   :  { %9384 = vmatpush.msrb.mxu3 %v9321_v18  ;;  %9365 = vmatpush.msra.mxu2 %v9304_v22  ;;  %v9296_v31 = vld [vmem:[#allocation24 + $0x18] sm:$0xff]  ;;  %v9311_v2 = vld [vmem:[#allocation24 + $0x90] sm:$0xff]  ;;  %v9325_v18 = vld [vmem:[#allocation24 + $0x100] sm:$0xff]  ;;  %v9006_v22 = vpop.f32.mrf.mxu3 }
 0xa32   :  { %9404 = vmatpush.msra.mxu0 %v9337_v60  ;;  %v9312_v9 = vld [vmem:[#allocation24 + $0x98] sm:$0xff]  ;;  %v9331_v14 = vld [vmem:[#allocation24 + $0x130] sm:$0xff]  ;;  %v8966_v60 = vpop.f32.mrf.mxu1  ;;  %v9452_v40 = vld [vmem:[%s13791_s13 + $0x50] sm:$0xff] }
 0xa33   :  { %9385 = vmatpush.msrb.mxu3 %v9320_v51  ;;  %9366 = vmatpush.msra.mxu2 %v9303_v26  ;;  %v9332_v59 = vld [vmem:[#allocation24 + $0x138] sm:$0xff]  ;;  %v9327_v16 = vld [vmem:[#allocation24 + $0x110] sm:$0xff]  ;;  %v8967_v7 = vadd.f32 %v8966_v60, %v8947_v38  ;;  %v9448_v38 = vld [vmem:[%s13791_s13 + $0x30] sm:$0xff] }
 0xa34   :  { %9405 = vmatpush.msra.mxu0 %v9336_v1  ;;  %v9328_v17 = vld [vmem:[#allocation24 + $0x118] sm:$0xff] }
 0xa35   :  { %9386 = vmatpush.msrb.mxu3 %v9319_v35  ;;  %9367 = vmatpush.msra.mxu2 %v9302_v15  ;;  %v8987_v39 = vadd.f32 %v8986_v50, %v8967_v7  ;;  %v9356_v44 = vld [vmem:[#allocation24 + $0x1f8] sm:$0xff]  ;;  %v9445_v50 = vld [vmem:[%s13791_s13 + $0x18] sm:$0xff]  ;;  %v9444_v7 = vld [vmem:[%s13791_s13 + $0x10] sm:$0xff] }
 0xa36   :  { %9406 = vmatpush.msra.mxu0 %v9335_v6  ;;  %9421 = vmatpush.msra.mxu1 %v9356_v44  ;;  %v9348_v46 = vld [vmem:[#allocation24 + $0x1b8] sm:$0xff] }
 0xa37   :  { %9387 = vmatpush.msrb.mxu3 %v9318_v24  ;;  %9368 = vmatpush.msra.mxu2 %v9301_v3  ;;  %v9007_v13 = vadd.f32 %v9006_v22, %v8987_v39  ;;  %v9026_v51 = vpop.f32.mrf.mxu0  ;;  %v9355_v3 = vld [vmem:[#allocation24 + $0x1f0] sm:$0xff]  ;;  %v9443_v39 = vld [vmem:[%s13791_s13 + $0x8] sm:$0xff] }
 0xa38   :  { %9407 = vmatpush.msra.mxu0 %v9334_v12  ;;  %9422 = vmatpush.msra.mxu1 %v9355_v3  ;;  %v9450_v33 = vld [vmem:[%s13791_s13 + $0x40] sm:$0xff] }
 0xa39   :  { %9388 = vmatpush.msrb.mxu3 %v9317_v53  ;;  %9369 = vmatpush.msra.mxu2 %v9300_v52  ;;  %v9027_v1 = vadd.f32 %v9026_v51, %v9007_v13  ;;  %v9353_v53 = vld [vmem:[#allocation24 + $0x1e0] sm:$0xff]  ;;  %v9351_v52 = vld [vmem:[#allocation24 + $0x1d0] sm:$0xff] }
 0xa3a   :  { %9408 = vmatpush.msra.mxu0 %v9333_v49  ;;  %v9046_v26 = vpop.f32.mrf.mxu1  ;;  %9423 = vmatpush.msra.mxu1 %v9354_v4  ;;  %v9352_v49 = vld [vmem:[#allocation24 + $0x1d8] sm:$0xff]  ;;  %v10371_v13 = vld [vmem:[#allocation25] ss:$0 sm:$0xff] }
 0xa3b   :  { %9389 = vmatpush.msrb.mxu3 %v9316_v56  ;;  %9370 = vmatpush.msra.mxu2 %v9299_v47  ;;  %v9047_v57 = vadd.f32 %v9046_v26, %v9027_v1  ;;  %v9350_v56 = vld [vmem:[#allocation24 + $0x1c8] sm:$0xff]  ;;  %v9347_v47 = vld [vmem:[#allocation24 + $0x1b0] sm:$0xff] }
 0xa3c   :  { %9409 = vmatpush.msra.mxu0 %v9332_v59  ;;  %9424 = vmatpush.msra.mxu1 %v9353_v53  ;;  %v9446_v60 = vld [vmem:[%s13791_s13 + $0x20] sm:$0xff] }
 0xa3d   :  { %9390 = vmatpush.msrb.mxu3 %v9315_v45  ;;  %9371 = vmatpush.msra.mxu2 %v9298_v42  ;;  %v9345_v45 = vld [vmem:[#allocation24 + $0x1a0] sm:$0xff]  ;;  %v9344_v42 = vld [vmem:[#allocation24 + $0x198] sm:$0xff] }
 0xa3e   :  { %9410 = vmatpush.msra.mxu0 %v9331_v14  ;;  %9425 = vmatpush.msra.mxu1 %v9352_v49  ;;  %v9442_v22 = vld [vmem:[%s13791_s13] sm:$0xff] }
 0xa3f   :  { %9391 = vmatpush.msrb.mxu3 %v9314_v43  ;;  %9372 = vmatpush.msra.mxu2 %v9297_v41  ;;  %v9343_v43 = vld [vmem:[#allocation24 + $0x190] sm:$0xff] }
 0xa40   :  { %9411 = vmatpush.msra.mxu0 %v9330_v27  ;;  %9426 = vmatpush.msra.mxu1 %v9351_v52  ;;  %v9456_v27 = vld [vmem:[%s13791_s13 + $0x70] sm:$0xff] }
 0xa41   :  { %9392 = vmatpush.msrb.mxu3 %v9313_v11  ;;  %9373 = vmatpush.msra.mxu2 %v9296_v31 }
 0xa42   :  { %9412 = vmatpush.msra.mxu0 %v9329_v29  ;;  %9427 = vmatpush.msra.mxu1 %v9350_v56  ;;  %v9126_v41 = vpop.f32.mrf.mxu1  ;;  %v9454_v29 = vld [vmem:[%s13791_s13 + $0x60] sm:$0xff] }
 0xa43   :  { %9393 = vmatpush.msrb.mxu3 %v9312_v9  ;;  %9374 = vmatpush.msra.mxu2 %v9295_v61  ;;  %v9127_v11 = vadd.f32 %v9126_v41, %v8539_v28 }
 0xa44   :  { %9413 = vmatpush.msra.mxu0 %v9328_v17  ;;  %9428 = vmatpush.msra.mxu1 %v9349_v37  ;;  %v9453_v17 = vld [vmem:[%s13791_s13 + $0x58] sm:$0xff] }
 0xa45   :  { %9394 = vmatpush.msrb.mxu3 %v9311_v2  ;;  %9375 = vmatpush.msra.mxu2 %v9294_v5 }
 0xa46   :  { %9414 = vmatpush.msra.mxu0 %v9327_v16  ;;  %9429 = vmatpush.msra.mxu1 %v9348_v46  ;;  %v9451_v16 = vld [vmem:[%s13791_s13 + $0x48] sm:$0xff] }
 0xa47   :  { %9395 = vmatpush.msrb.mxu3 %v9310_v48  ;;  %9376 = vmatpush.msra.mxu2 %v9293_v20 }
 0xa48   :  { %9377 = vmatmul.f32.vlgmr.msra.gmra.mxu2 %v9289_v8  ;;  %9415 = vmatpush.msra.mxu0 %v9326_v0  ;;  %v9457_v8 = vld [vmem:[%s13791_s13 + $0x78] sm:$0xff] }
 0xa49   :  { %9396 = vmatpush.msrb.mxu3 %v9309_v36  ;;  %9430 = vmatpush.msra.mxu1 %v9347_v47  ;;  %v9449_v0 = vld [vmem:[%s13791_s13 + $0x38] sm:$0xff] }
 0xa4a   :  { %9397 = vmatmul.f32.vlgmr.msrb.gmra.mxu3 %v9290_v32  ;;  %9416 = vmatpush.msra.mxu0 %v9325_v18  ;;  %v9455_v32 = vld [vmem:[%s13791_s13 + $0x68] sm:$0xff] }
 0xa4b   :  { %9431 = vmatpush.msra.mxu1 %v9346_v10  ;;  %9462 = vmatpush.msrb.mxu2 %v9457_v8  ;;  %v9447_v18 = vld [vmem:[%s13791_s13 + $0x28] sm:$0xff] }
 0xa4d   :  { %9432 = vmatpush.msra.mxu1 %v9345_v45  ;;  %9463 = vmatpush.msrb.mxu2 %v9456_v27 }
 0xa4f   :  { %9433 = vmatpush.msra.mxu1 %v9344_v42  ;;  %9464 = vmatpush.msrb.mxu2 %v9455_v32 }
 0xa50   :  { %v9106_v24 = vpop.f32.mrf.mxu0 }
 0xa51   :  { %9434 = vmatpush.msra.mxu1 %v9343_v43  ;;  %9465 = vmatpush.msrb.mxu2 %v9454_v29 }
 0xa53   :  { %9435 = vmatpush.msra.mxu1 %v9342_v58  ;;  %9466 = vmatpush.msrb.mxu2 %v9453_v17 }
 0xa54   :  { %v9066_v35 = vpop.f32.mrf.mxu2 }
 0xa55   :  { %v9067_v6 = vadd.f32 %v9066_v35, %v9047_v57  ;;  %9436 = vmatpush.msra.mxu1 %v9341_v30  ;;  %9467 = vmatpush.msrb.mxu2 %v9452_v40 }
 0xa56   :  { %v9086_v63 = vpop.f32.mrf.mxu3 }
 0xa57   :  { %v9087_v15 = vadd.f32 %v9086_v63, %v9067_v6  ;;  %9468 = vmatpush.msrb.mxu2 %v9451_v16 }
 0xa59   :  { %v9107_v12 = vadd.f32 %v9106_v24, %v9087_v15  ;;  %9469 = vmatpush.msrb.mxu2 %v9450_v33 }
 0xa5b   :  { %v9291_v19 = vmax.f32 %v9107_v12, 0.0  ;;  %9470 = vmatpush.msrb.mxu2 %v9449_v0  ;;  %v10372_v12 = vld [vmem:[#allocation7] ss:$0 sm:$0xff] }
 0xa5d   :  { %9417 = vmatmul.f32.vlgmr.msra.gmra.mxu0 %v9291_v19  ;;  %9471 = vmatpush.msrb.mxu2 %v9448_v38 }
 0xa5f   :  { %9472 = vmatpush.msrb.mxu2 %v9447_v18 }
 0xa61   :  { %9473 = vmatpush.msrb.mxu2 %v9446_v60 }
 0xa63   :  { %9474 = vmatpush.msrb.mxu2 %v9445_v50 }
 0xa65   :  { %9475 = vmatpush.msrb.mxu2 %v9444_v7 }
 0xa67   :  { %9476 = vmatpush.msrb.mxu2 %v9443_v39 }
 0xa69   :  { %9477 = vmatpush.msrb.mxu2 %v9442_v22 }
 0xa6a   :  { %v9206_v2 = vpop.f32.mrf.mxu1 }
 0xa71   :  { %v9186_v23 = vpop.f32.mrf.mxu0 }
 0xa76   :  { %v9146_v55 = vpop.f32.mrf.mxu2  ;;  %v9166_v54 = vpop.f32.mrf.mxu3 }
 0xa77   :  { %v9147_v31 = vadd.f32 %v9146_v55, %v9127_v11 }
 0xa79   :  { %v9167_v9 = vadd.f32 %v9166_v54, %v9147_v31 }
 0xa7b   :  { %v9187_v61 = vadd.f32 %v9186_v23, %v9167_v9 }
 0xa7d   :  { %v9207_v34 = vadd.f32 %v9206_v2, %v9187_v61 }
 0xaa5   :  { %v9266_v59 = vpop.f32.mrf.mxu0 }
 0xaa6   :  { %v9286_v20 = vpop.f32.mrf.mxu1 }
 0xaaa   :  { %v9246_v62 = vpop.f32.mrf.mxu3 }
 0xaad   :  { %v9226_v25 = vpop.f32.mrf.mxu2 }
 0xaae   :  { %v9227_v5 = vadd.f32 %v9226_v25, %v9207_v34 }
 0xab0   :  { %v9247_v48 = vadd.f32 %v9246_v62, %v9227_v5 }
 0xab2   :  { %v9267_v14 = vadd.f32 %v9266_v59, %v9247_v48 }
 0xab4   :  { %v9287_v36 = vadd.f32 %v9286_v20, %v9267_v14 }
 0xab6   :  { %v9292_v21 = vmax.f32 %v9287_v36, 0.0 }
 0xab8   :  { %9437 = vmatmul.f32.vlgmr.msra.gmra.mxu1 %v9292_v21 }
 0xacb   :  { %v9378_v51 = vpop.f32.mrf.mxu2 }
 0xacc   :  { %v9379_v1 = vadd.f32 %v10371_v13, %v9378_v51 }
 0xacd   :  { %v9398_v26 = vpop.f32.mrf.mxu3 }
 0xace   :  { %v9399_v35 = vadd.f32 %v9398_v26, %v9379_v1 }
 0xada   :  { %v9418_v57 = vpop.f32.mrf.mxu0 }
 0xadb   :  { %v9419_v6 = vadd.f32 %v9418_v57, %v9399_v35 }
 0xb35   :  { %v9438_v63 = vpop.f32.mrf.mxu1 }
 0xb36   :  { %v9439_v15 = vadd.f32 %v9438_v63, %v9419_v6 }
 0xb38   :  { %v9441_v24 = vmax.f32 %v9439_v15, 0.0 }
 0xb3a   :  { %9478 = vmatmul.f32.vlgmr.msrb.gmra.mxu2 %v9441_v24 }
 0xbbd   :  { %v9479_v19 = vpop.f32.mrf.mxu2 }
 0xbbe   :  { %v9480_v44 = vadd.f32 %v10372_v12, %v9479_v19 }
 0xbc0   :  { %9483 = vst.msk [vmem:[%s13793_s15] sm:$0x3] %vm9482_vm8, %v9480_v44 }
 0xbc1   :  { %9488 = vsyncpa [#allocation9], 1 }
 0xbc2   :  { %9489 = vsyncpa [#allocation11], 1 }
 0xbc3   :  { %9490 = vsyncpa [#allocation14], 1 }
 0xbc4   :  { %9491 = vsyncpa [#allocation17], 1 }
 0xbc5   :  { %9492 = vsyncpa [#allocation20], 1 }
 0xbc6   :  { %9493 = vsyncpa [#allocation23], 1 }
 0xbc7   :  { %9494 = vsyncpa [#allocation26], 1 }

</bundles_post_ra>
